<compile_context>
chip_gen: v7x
topology: tpu7x:2x2x1
jax: 0.10.0
libtpu: 0.0.40
codegen_flags: <defaults>
</compile_context>

<pallas_src>
import functools

import jax
import jax.numpy as jnp
import numpy as np
from jax import lax
from jax.experimental import pallas as pl
from jax.experimental.pallas import tpu as pltpu


def _rms_norm(x, w, eps):
    # WanRMSNorm: x * rsqrt(mean(x^2, -1) + eps) * weight   (f32 math)
    var = jnp.mean(x * x, axis=-1, keepdims=True)
    return x * lax.rsqrt(var + eps) * w


def _attn_kernel(*refs, num_heads, head_dim, qk_norm, eps, compute_dtype):
    if qk_norm:
        (hs_ref, enc_ref, wq_ref, bq_ref, wk_ref, bk_ref, wv_ref, bv_ref,
         wo_ref, bo_ref, nq_ref, nk_ref, o_ref, kc_ref, vc_ref, attn_ref) = refs
    else:
        (hs_ref, enc_ref, wq_ref, bq_ref, wk_ref, bk_ref, wv_ref, bv_ref,
         wo_ref, bo_ref, o_ref, kc_ref, vc_ref, attn_ref) = refs
        nq_ref = nk_ref = None

    cdt = compute_dtype
    qi = pl.program_id(1)

    # K/V projection (+ RMSNorm) once per batch element; cached in VMEM scratch and
    # reused by every query tile (query-tile grid axis is "arbitrary", so this carry
    # is well defined).
    @pl.when(qi == 0)
    def _():
        enc = enc_ref[0].astype(cdt)                                   # (Lk, enc_dim)
        k = jnp.dot(enc, wk_ref[...], preferred_element_type=jnp.float32) \
            + bk_ref[0].astype(jnp.float32)
        v = jnp.dot(enc, wv_ref[...], preferred_element_type=jnp.float32) \
            + bv_ref[0].astype(jnp.float32)
        if qk_norm:
            k = _rms_norm(k, nk_ref[0].astype(jnp.float32), eps)
        kc_ref[...] = k.astype(cdt)
        vc_ref[...] = v.astype(cdt)

    # Q projection (+ RMSNorm) for this query tile; softmax scale folded in once.
    hs = hs_ref[0].astype(cdt)                                         # (TQ, dim)
    q = jnp.dot(hs, wq_ref[...], preferred_element_type=jnp.float32) \
        + bq_ref[0].astype(jnp.float32)
    if qk_norm:
        q = _rms_norm(q, nq_ref[0].astype(jnp.float32), eps)
    q = (q * (head_dim ** -0.5)).astype(cdt)

    k = kc_ref[...]
    v = vc_ref[...]

    # Per-head attention.  q @ k^T via dot_general contracting the last dims (no
    # transposed k materialized).  Each head's output is written straight into its
    # lane columns of the VMEM scratch so a SINGLE output matmul follows the loop.
    # NOTE: the head loop is statically unrolled; for num_heads >= 16 a lax.fori_loop
    # over heads (pl.ds(pl.multiple_of(h*head_dim, 128), head_dim)) bounds live ranges.
    nt_dims = (((1,), (1,)), ((), ()))
    for h in range(num_heads):
        lo = h * head_dim
        hi = lo + head_dim
        s = lax.dot_general(q[:, lo:hi], k[:, lo:hi], nt_dims,
                            preferred_element_type=jnp.float32)        # (TQ, Lk)
        s = s - jnp.max(s, axis=-1, keepdims=True)
        p = jnp.exp(s)
        p = p / jnp.sum(p, axis=-1, keepdims=True)     # exact softmax (accuracy fix)
        oh = jnp.dot(p.astype(cdt), v[:, lo:hi],
                     preferred_element_type=jnp.float32)                # (TQ, hd)
        attn_ref[:, lo:hi] = oh.astype(cdt)

    # One big (TQ, dim) @ (dim, dim) output projection (review's main change).
    out = jnp.dot(attn_ref[...], wo_ref[...], preferred_element_type=jnp.float32) \
        + bo_ref[0].astype(jnp.float32)
    o_ref[0] = out.astype(o_ref.dtype)


def _vmem_capacity_bytes():
    try:
        info = pltpu.get_tpu_info()
        cap = getattr(info, "vmem_capacity_bytes", None)
        if cap:
            return int(cap)
    except Exception:
        pass
    return 64 * 1024 * 1024          # conservative default (v7x per-TensorCore VMEM)


def _vmem_step_estimate(tq, lk, dim, enc_dim, itemsize):
    tiles = 2 * (2 * tq * dim + lk * enc_dim) * itemsize          # hs/out/enc, 2-buffered
    weights = (2 * dim * dim + 2 * enc_dim * dim) * itemsize      # single-buffered
    scratch = (2 * lk * dim + tq * dim) * itemsize                # k/v cache + head concat
    interm = (2 * tq * dim + 2 * lk * dim + 2 * tq * lk + 8 * dim) * 4
    return tiles + weights + scratch + interm


def _auto_q_tile(lq, fits):
    # Largest lane/sublane-friendly tile that divides Lq and fits the VMEM budget.
    cands = [c for c in (2048, 1024, 512, 384, 256, 128, 64, 32, 16, 8)
             if c <= lq and lq % c == 0]
    if lq <= 256 or not cands:
        return lq
    for c in cands:
        if fits(c):
            return c
    return cands[-1]


def prepare_params(params, activation_dtype, mxu_dtype=None):
    """One-time parameter prep (outside the call path, per review): transpose Linear
    weights to (in, out) layout and cast to the MXU feed dtype; biases/norms in f32."""
    cdt = jnp.dtype(mxu_dtype or activation_dtype)
    prepared = {
        "wq_t": jnp.asarray(params["wq"]).T.astype(cdt),     # (dim, dim)
        "wk_t": jnp.asarray(params["wk"]).T.astype(cdt),     # (enc_dim, dim)
        "wv_t": jnp.asarray(params["wv"]).T.astype(cdt),     # (enc_dim, dim)
        "wo_t": jnp.asarray(params["wo"]).T.astype(cdt),     # (dim, dim)
        "bq": jnp.asarray(params["bq"], jnp.float32).reshape(1, -1),
        "bk": jnp.asarray(params["bk"], jnp.float32).reshape(1, -1),
        "bv": jnp.asarray(params["bv"], jnp.float32).reshape(1, -1),
        "bo": jnp.asarray(params["bo"], jnp.float32).reshape(1, -1),
        "compute_dtype": cdt,
    }
    for name in ("nq", "nk"):
        if name in params:
            prepared[name] = jnp.asarray(params[name], jnp.float32).reshape(1, -1)
    return prepared


def single_stream_multi_attention(hidden_states, encoder_hidden_states, prepared,
                                  *, num_heads, qk_norm=False, eps=1e-6, q_tile=None):
    B, Lq, dim = hidden_states.shape
    _, Lk, enc_dim = encoder_hidden_states.shape
    head_dim = dim // num_heads
    out_dtype = hidden_states.dtype
    cdt = jnp.dtype(prepared["compute_dtype"])
    itemsize = cdt.itemsize

    # Per-generation VMEM budgeting: 64 MiB parts (v7x) -> 48 MiB limit,
    # 128 MiB parts (v5e/v6e) -> 96 MiB limit; TQ sized so a grid step fits.
    vmem_cap = _vmem_capacity_bytes()
    vmem_limit = min(vmem_cap * 3 // 4, 96 * 1024 * 1024)
    budget = int(vmem_limit * 0.8)

    if q_tile is None:
        q_tile = _auto_q_tile(
            Lq, lambda t: _vmem_step_estimate(t, Lk, dim, enc_dim, itemsize) <= budget)
    TQ = q_tile
    assert Lq % TQ == 0, "q_tile must divide the query sequence length"
    num_q_tiles = Lq // TQ

    hs_map = lambda b, qi: (b, qi, 0)
    enc_map = lambda b, qi: (b, 0, 0)
    const2 = lambda b, qi: (0, 0)

    operands = [hidden_states, encoder_hidden_states,
                prepared["wq_t"], prepared["bq"],
                prepared["wk_t"], prepared["bk"],
                prepared["wv_t"], prepared["bv"],
                prepared["wo_t"], prepared["bo"]]
    const_shapes = [(dim, dim), (1, dim), (enc_dim, dim), (1, dim),
                    (enc_dim, dim), (1, dim), (dim, dim), (1, dim)]
    if qk_norm:
        operands += [prepared["nq"], prepared["nk"]]
        const_shapes += [(1, dim), (1, dim)]

    kernel = functools.partial(_attn_kernel, num_heads=num_heads, head_dim=head_dim,
                               qk_norm=qk_norm, eps=eps, compute_dtype=cdt)

    flops = 2 * B * (2 * Lq * dim * dim          # q + output projections
                     + 2 * Lk * enc_dim * dim    # k/v projections (once per batch)
                     + 2 * Lq * Lk * dim)        # qk^T + p@v over all heads
    transcendentals = B * num_heads * Lq * Lk    # exp
    bytes_accessed = ((hidden_states.size + encoder_hidden_states.size
                       + B * Lq * dim) * jnp.dtype(out_dtype).itemsize
                      + (2 * dim * dim + 2 * enc_dim * dim) * itemsize
                      + 6 * dim * 4)

    def run(single_buffer_weights):
        wkw = {}
        if single_buffer_weights and hasattr(pl, "Buffered"):
            wkw = dict(pipeline_mode=pl.Buffered(1))   # grid-invariant: single-buffer
        in_specs = [pl.BlockSpec((1, TQ, dim), hs_map),
                    pl.BlockSpec((1, Lk, enc_dim), enc_map)]
        in_specs += [pl.BlockSpec(shape, const2, **wkw) for shape in const_shapes]
        return pl.pallas_call(
            kernel,
            out_shape=jax.ShapeDtypeStruct((B, Lq, dim), out_dtype),
            grid_spec=pltpu.PrefetchScalarGridSpec(
                num_scalar_prefetch=0,
                grid=(B, num_q_tiles),
                in_specs=in_specs,
                out_specs=pl.BlockSpec((1, TQ, dim), hs_map),
                scratch_shapes=[pltpu.VMEM((Lk, dim), cdt),    # cached K (post-norm)
                                pltpu.VMEM((Lk, dim), cdt),    # cached V
                                pltpu.VMEM((TQ, dim), cdt)],   # head-concat buffer
            ),
            compiler_params=pltpu.CompilerParams(
                dimension_semantics=("parallel", "arbitrary"),
                vmem_limit_bytes=int(vmem_limit),
            ),
            cost_estimate=pl.CostEstimate(
                flops=int(flops),
                transcendentals=int(transcendentals),
                bytes_accessed=int(bytes_accessed),
            ),
        )(*operands)

    try:
        return run(True)
    except Exception:
        # Fallback if pipeline_mode=pl.Buffered(1) is rejected by this JAX build.
        return run(False)


def reference_forward(hidden_states, encoder_hidden_states, params,
                      *, num_heads, qk_norm=False, eps=1e-6):
    """Pure-JAX mirror of the PyTorch forward, used for correctness checking."""
    B, Lq, dim = hidden_states.shape
    head_dim = dim // num_heads
    q = hidden_states @ params["wq"].T + params["bq"][0]
    k = encoder_hidden_states @ params["wk"].T + params["bk"][0]
    v = encoder_hidden_states @ params["wv"].T + params["bv"][0]
    if qk_norm:
        q = _rms_norm(q, params["nq"][0], eps)
        k = _rms_norm(k, params["nk"][0], eps)
    Lk = k.shape[1]
    q = q.reshape(B, Lq, num_heads, head_dim).transpose(0, 2, 1, 3)
    k = k.reshape(B, Lk, num_heads, head_dim).transpose(0, 2, 1, 3)
    v = v.reshape(B, Lk, num_heads, head_dim).transpose(0, 2, 1, 3)
    s = jnp.einsum("bhqd,bhkd->bhqk", q, k) * head_dim ** (-0.5)
    p = jax.nn.softmax(s, axis=-1)
    o = jnp.einsum("bhqk,bhkd->bhqd", p, v)
    o = o.transpose(0, 2, 1, 3).reshape(B, Lq, dim)
    return o @ params["wo"].T + params["bo"][0]


def make_params(key, dim, enc_dim):
    """Deterministic synthetic parameters (shapes match the nn.Module __init__)."""
    ks = jax.random.split(key, 8)
    scale = 0.02
    return {
        "wq": scale * jax.random.normal(ks[0], (dim, dim), jnp.float32),
        "bq": scale * jax.random.normal(ks[1], (1, dim), jnp.float32),
        "wk": scale * jax.random.normal(ks[2], (dim, enc_dim), jnp.float32),
        "bk": scale * jax.random.normal(ks[3], (1, dim), jnp.float32),
        "wv": scale * jax.random.normal(ks[4], (dim, enc_dim), jnp.float32),
        "bv": scale * jax.random.normal(ks[5], (1, dim), jnp.float32),
        "wo": scale * jax.random.normal(ks[6], (dim, dim), jnp.float32),
        "bo": scale * jax.random.normal(ks[7], (1, dim), jnp.float32),
        "nq": jnp.ones((1, dim), jnp.float32),   # WanRMSNorm weight (init = ones)
        "nk": jnp.ones((1, dim), jnp.float32),
    }


if __name__ == "__main__":
    root = jax.random.PRNGKey(0)

    # (B, Lq, Lk, dim, enc_dim, num_heads, qk_norm, dtype, q_tile, rtol, atol)
    cases = [
        (2, 256, 16, 256, 128, 2, False, jnp.float32, None, 2e-2, 1e-3),
        (2, 256, 16, 256, 128, 2, True,  jnp.float32, None, 2e-2, 1e-3),
        (2, 512, 16, 256, 128, 4, True,  jnp.float32, 128,  2e-2, 1e-3),  # multi q-tile, cached K/V reused
        (2,   8,  8,  64,  32, 4, True,  jnp.float32, None, 2e-2, 1e-3),  # tiny/unaligned config
        (2, 256, 16, 256, 128, 2, False, jnp.bfloat16, 128, 5e-2, 1e-2),  # bf16 activation/weight path
    ]

    for idx, (B, Lq, Lk, dim, enc_dim, H, qk_norm, dtype, q_tile, rtol, atol) in enumerate(cases):
        k_hs, k_enc, k_par = jax.random.split(jax.random.fold_in(root, idx), 3)
        hs = jax.random.normal(k_hs, (B, Lq, dim), jnp.float32)
        enc = jax.random.normal(k_enc, (B, Lk, enc_dim), jnp.float32)
        params = make_params(k_par, dim, enc_dim)

        hs_in = hs.astype(dtype)
        enc_in = enc.astype(dtype)
        prepared = prepare_params(params, dtype)   # one-time weight prep (HBM-resident)

        out = single_stream_multi_attention(
            hs_in, enc_in, prepared,
            num_heads=H, qk_norm=qk_norm, eps=1e-6, q_tile=q_tile)
        out = jax.block_until_ready(out)

        ref = reference_forward(hs_in.astype(jnp.float32), enc_in.astype(jnp.float32),
                                params, num_heads=H, qk_norm=qk_norm, eps=1e-6)
        np.testing.assert_allclose(np.asarray(out.astype(jnp.float32)),
                                   np.asarray(ref), rtol=rtol, atol=atol)

    print("KERNEL_OK")
</pallas_src>

<mosaic_0001>
module attributes {stable_mosaic.version = 11 : i64} {
  func.func @_attn_kernel(%arg0: i32, %arg1: i32, %arg2: memref<1x256x256xf32, #tpu.memory_space<vmem>>, %arg3: memref<1x16x128xf32, #tpu.memory_space<vmem>>, %arg4: memref<256x256xf32, #tpu.memory_space<vmem>>, %arg5: memref<1x256xf32, #tpu.memory_space<vmem>>, %arg6: memref<128x256xf32, #tpu.memory_space<vmem>>, %arg7: memref<1x256xf32, #tpu.memory_space<vmem>>, %arg8: memref<128x256xf32, #tpu.memory_space<vmem>>, %arg9: memref<1x256xf32, #tpu.memory_space<vmem>>, %arg10: memref<256x256xf32, #tpu.memory_space<vmem>>, %arg11: memref<1x256xf32, #tpu.memory_space<vmem>>, %arg12: memref<1x256x256xf32, #tpu.memory_space<vmem>>, %arg13: memref<16x256xf32, #tpu.memory_space<vmem>>, %arg14: memref<16x256xf32, #tpu.memory_space<vmem>>, %arg15: memref<256x256xf32, #tpu.memory_space<vmem>>) attributes {dimension_semantics = [#tpu.dimension_semantics<parallel>, #tpu.dimension_semantics<arbitrary>], iteration_bounds = array<i64: 2, 1>, scalar_prefetch = 0 : i64, scratch_operands = 3 : i64, tpu.core_type = #tpu.core_type<tc>, window_params = [{transform_indices = @transform_0, window_bounds = array<i64: 1, 256, 256>}, {transform_indices = @transform_1, window_bounds = array<i64: 1, 16, 128>}, {pipeline_mode = #tpu.pipeline_mode<synchronous>, transform_indices = @transform_2, window_bounds = array<i64: 256, 256>}, {pipeline_mode = #tpu.pipeline_mode<synchronous>, transform_indices = @transform_3, window_bounds = array<i64: 1, 256>}, {pipeline_mode = #tpu.pipeline_mode<synchronous>, transform_indices = @transform_4, window_bounds = array<i64: 128, 256>}, {pipeline_mode = #tpu.pipeline_mode<synchronous>, transform_indices = @transform_5, window_bounds = array<i64: 1, 256>}, {pipeline_mode = #tpu.pipeline_mode<synchronous>, transform_indices = @transform_6, window_bounds = array<i64: 128, 256>}, {pipeline_mode = #tpu.pipeline_mode<synchronous>, transform_indices = @transform_7, window_bounds = array<i64: 1, 256>}, {pipeline_mode = #tpu.pipeline_mode<synchronous>, transform_indices = @transform_8, window_bounds = array<i64: 256, 256>}, {pipeline_mode = #tpu.pipeline_mode<synchronous>, transform_indices = @transform_9, window_bounds = array<i64: 1, 256>}, {transform_indices = @transform_10, window_bounds = array<i64: 1, 256, 256>}]} {
    %c0_i32 = arith.constant 0 : i32
    %0 = arith.cmpi eq, %arg1, %c0_i32 : i32
    %1 = arith.extui %0 : i1 to i32
    %c0_i32_0 = arith.constant 0 : i32
    %2 = arith.cmpi ne, %1, %c0_i32_0 : i32
    scf.if %2 {
      %c0_33 = arith.constant 0 : index
      %c0_34 = arith.constant 0 : index
      %c0_35 = arith.constant 0 : index
      %57 = vector.load %arg3[%c0_33, %c0_34, %c0_35] : memref<1x16x128xf32, #tpu.memory_space<vmem>>, vector<1x16x128xf32>
      %58 = vector.shape_cast %57 : vector<1x16x128xf32> to vector<16x128xf32>
      %c0_36 = arith.constant 0 : index
      %c0_37 = arith.constant 0 : index
      %59 = vector.load %arg6[%c0_36, %c0_37] : memref<128x256xf32, #tpu.memory_space<vmem>>, vector<128x256xf32>
      %cst_38 = arith.constant dense<0.000000e+00> : vector<16x256xf32>
      %60 = tpu.matmul %58, %59, %cst_38 {dimension_numbers = #tpu.dot_dimension_numbers<[1], [0], [0], [1], [0, 0, 1, 1], [], []>} : vector<16x128xf32>, vector<128x256xf32>, vector<16x256xf32> -> vector<16x256xf32>
      %c0_39 = arith.constant 0 : index
      %c0_40 = arith.constant 0 : index
      %61 = vector.load %arg7[%c0_39, %c0_40] : memref<1x256xf32, #tpu.memory_space<vmem>>, vector<1x256xf32>
      %62 = vector.shape_cast %61 : vector<1x256xf32> to vector<256xf32>
      %63 = vector.shape_cast %62 : vector<256xf32> to vector<1x256xf32>
      %64 = vector.broadcast %63 : vector<1x256xf32> to vector<16x256xf32>
      %65 = arith.addf %60, %64 : vector<16x256xf32>
      %c0_41 = arith.constant 0 : index
      %c0_42 = arith.constant 0 : index
      %66 = vector.load %arg8[%c0_41, %c0_42] : memref<128x256xf32, #tpu.memory_space<vmem>>, vector<128x256xf32>
      %cst_43 = arith.constant dense<0.000000e+00> : vector<16x256xf32>
      %67 = tpu.matmul %58, %66, %cst_43 {dimension_numbers = #tpu.dot_dimension_numbers<[1], [0], [0], [1], [0, 0, 1, 1], [], []>} : vector<16x128xf32>, vector<128x256xf32>, vector<16x256xf32> -> vector<16x256xf32>
      %c0_44 = arith.constant 0 : index
      %c0_45 = arith.constant 0 : index
      %68 = vector.load %arg9[%c0_44, %c0_45] : memref<1x256xf32, #tpu.memory_space<vmem>>, vector<1x256xf32>
      %69 = vector.shape_cast %68 : vector<1x256xf32> to vector<256xf32>
      %70 = vector.shape_cast %69 : vector<256xf32> to vector<1x256xf32>
      %71 = vector.broadcast %70 : vector<1x256xf32> to vector<16x256xf32>
      %72 = arith.addf %67, %71 : vector<16x256xf32>
      %c0_46 = arith.constant 0 : index
      %c0_47 = arith.constant 0 : index
      %73 = vector.load %arg13[%c0_46, %c0_47] : memref<16x256xf32, #tpu.memory_space<vmem>>, vector<16x256xf32>
      tpu.vector_store %arg13[%c0_46, %c0_47], %65 {strides = array<i32>} : memref<16x256xf32, #tpu.memory_space<vmem>>, vector<16x256xf32>,
      %c0_48 = arith.constant 0 : index
      %c0_49 = arith.constant 0 : index
      %74 = vector.load %arg14[%c0_48, %c0_49] : memref<16x256xf32, #tpu.memory_space<vmem>>, vector<16x256xf32>
      tpu.vector_store %arg14[%c0_48, %c0_49], %72 {strides = array<i32>} : memref<16x256xf32, #tpu.memory_space<vmem>>, vector<16x256xf32>,
    } else {
    }
    %c0 = arith.constant 0 : index
    %c0_1 = arith.constant 0 : index
    %c0_2 = arith.constant 0 : index
    %3 = vector.load %arg2[%c0, %c0_1, %c0_2] : memref<1x256x256xf32, #tpu.memory_space<vmem>>, vector<1x256x256xf32>
    %4 = vector.shape_cast %3 : vector<1x256x256xf32> to vector<256x256xf32>
    %c0_3 = arith.constant 0 : index
    %c0_4 = arith.constant 0 : index
    %5 = vector.load %arg4[%c0_3, %c0_4] : memref<256x256xf32, #tpu.memory_space<vmem>>, vector<256x256xf32>
    %cst = arith.constant dense<0.000000e+00> : vector<256x256xf32>
    %6 = tpu.matmul %4, %5, %cst {dimension_numbers = #tpu.dot_dimension_numbers<[1], [0], [0], [1], [0, 0, 1, 1], [], []>} : vector<256x256xf32>, vector<256x256xf32>, vector<256x256xf32> -> vector<256x256xf32>
    %c0_5 = arith.constant 0 : index
    %c0_6 = arith.constant 0 : index
    %7 = vector.load %arg5[%c0_5, %c0_6] : memref<1x256xf32, #tpu.memory_space<vmem>>, vector<1x256xf32>
    %8 = vector.shape_cast %7 : vector<1x256xf32> to vector<256xf32>
    %9 = vector.shape_cast %8 : vector<256xf32> to vector<1x256xf32>
    %10 = vector.broadcast %9 : vector<1x256xf32> to vector<256x256xf32>
    %11 = arith.addf %6, %10 : vector<256x256xf32>
    %cst_7 = arith.constant 0.0883883461 : f32
    %12 = vector.broadcast %cst_7 : f32 to vector<256x256xf32>
    %13 = arith.mulf %11, %12 : vector<256x256xf32>
    %c0_8 = arith.constant 0 : index
    %c0_9 = arith.constant 0 : index
    %14 = vector.load %arg13[%c0_8, %c0_9] : memref<16x256xf32, #tpu.memory_space<vmem>>, vector<16x256xf32>
    %c0_10 = arith.constant 0 : index
    %c0_11 = arith.constant 0 : index
    %15 = vector.load %arg14[%c0_10, %c0_11] : memref<16x256xf32, #tpu.memory_space<vmem>>, vector<16x256xf32>
    %16 = vector.extract_strided_slice %13 {offsets = [0, 0], sizes = [256, 128], strides = [1, 1]} : vector<256x256xf32> to vector<256x128xf32>
    %17 = vector.extract_strided_slice %14 {offsets = [0, 0], sizes = [16, 128], strides = [1, 1]} : vector<16x256xf32> to vector<16x128xf32>
    %cst_12 = arith.constant dense<0.000000e+00> : vector<256x16xf32>
    %18 = tpu.matmul %16, %17, %cst_12 {dimension_numbers = #tpu.dot_dimension_numbers<[1], [1], [0], [0], [0, 0, 1, 0], [], []>} : vector<256x128xf32>, vector<16x128xf32>, vector<256x16xf32> -> vector<256x16xf32>
    %cst_13 = arith.constant dense<0xFF800000> : vector<256xf32>
    %19 = vector.multi_reduction <maximumf>, %18, %cst_13 [1] : vector<256x16xf32> to vector<256xf32>
    %20 = vector.shape_cast %19 : vector<256xf32> to vector<256x1xf32>
    %21 = vector.broadcast %20 : vector<256x1xf32> to vector<256x16xf32>
    %22 = arith.subf %18, %21 : vector<256x16xf32>
    %23 = math.exp %22 : vector<256x16xf32>
    %cst_14 = arith.constant dense<0.000000e+00> : vector<256xf32>
    %24 = vector.multi_reduction <add>, %23, %cst_14 [1] : vector<256x16xf32> to vector<256xf32>
    %25 = vector.shape_cast %24 : vector<256xf32> to vector<256x1xf32>
    %26 = vector.broadcast %25 : vector<256x1xf32> to vector<256x16xf32>
    %27 = arith.divf %23, %26 : vector<256x16xf32>
    %28 = vector.extract_strided_slice %15 {offsets = [0, 0], sizes = [16, 128], strides = [1, 1]} : vector<16x256xf32> to vector<16x128xf32>
    %cst_15 = arith.constant dense<0.000000e+00> : vector<256x128xf32>
    %29 = tpu.matmul %27, %28, %cst_15 {dimension_numbers = #tpu.dot_dimension_numbers<[1], [0], [0], [1], [0, 0, 1, 1], [], []>} : vector<256x16xf32>, vector<16x128xf32>, vector<256x128xf32> -> vector<256x128xf32>
    %c0_16 = arith.constant 0 : index
    %c0_17 = arith.constant 0 : index
    %30 = vector.load %arg15[%c0_16, %c0_17] : memref<256x256xf32, #tpu.memory_space<vmem>>, vector<256x128xf32>
    tpu.vector_store %arg15[%c0_16, %c0_17], %29 {strides = array<i32>} : memref<256x256xf32, #tpu.memory_space<vmem>>, vector<256x128xf32>,
    %31 = vector.extract_strided_slice %13 {offsets = [0, 128], sizes = [256, 128], strides = [1, 1]} : vector<256x256xf32> to vector<256x128xf32>
    %32 = vector.extract_strided_slice %14 {offsets = [0, 128], sizes = [16, 128], strides = [1, 1]} : vector<16x256xf32> to vector<16x128xf32>
    %cst_18 = arith.constant dense<0.000000e+00> : vector<256x16xf32>
    %33 = tpu.matmul %31, %32, %cst_18 {dimension_numbers = #tpu.dot_dimension_numbers<[1], [1], [0], [0], [0, 0, 1, 0], [], []>} : vector<256x128xf32>, vector<16x128xf32>, vector<256x16xf32> -> vector<256x16xf32>
    %cst_19 = arith.constant dense<0xFF800000> : vector<256xf32>
    %34 = vector.multi_reduction <maximumf>, %33, %cst_19 [1] : vector<256x16xf32> to vector<256xf32>
    %35 = vector.shape_cast %34 : vector<256xf32> to vector<256x1xf32>
    %36 = vector.broadcast %35 : vector<256x1xf32> to vector<256x16xf32>
    %37 = arith.subf %33, %36 : vector<256x16xf32>
    %38 = math.exp %37 : vector<256x16xf32>
    %cst_20 = arith.constant dense<0.000000e+00> : vector<256xf32>
    %39 = vector.multi_reduction <add>, %38, %cst_20 [1] : vector<256x16xf32> to vector<256xf32>
    %40 = vector.shape_cast %39 : vector<256xf32> to vector<256x1xf32>
    %41 = vector.broadcast %40 : vector<256x1xf32> to vector<256x16xf32>
    %42 = arith.divf %38, %41 : vector<256x16xf32>
    %43 = vector.extract_strided_slice %15 {offsets = [0, 128], sizes = [16, 128], strides = [1, 1]} : vector<16x256xf32> to vector<16x128xf32>
    %cst_21 = arith.constant dense<0.000000e+00> : vector<256x128xf32>
    %44 = tpu.matmul %42, %43, %cst_21 {dimension_numbers = #tpu.dot_dimension_numbers<[1], [0], [0], [1], [0, 0, 1, 1], [], []>} : vector<256x16xf32>, vector<16x128xf32>, vector<256x128xf32> -> vector<256x128xf32>
    %c0_22 = arith.constant 0 : index
    %c128 = arith.constant 128 : index
    %45 = vector.load %arg15[%c0_22, %c128] : memref<256x256xf32, #tpu.memory_space<vmem>>, vector<256x128xf32>
    tpu.vector_store %arg15[%c0_22, %c128], %44 {strides = array<i32>} : memref<256x256xf32, #tpu.memory_space<vmem>>, vector<256x128xf32>,
    %c0_23 = arith.constant 0 : index
    %c0_24 = arith.constant 0 : index
    %46 = vector.load %arg15[%c0_23, %c0_24] : memref<256x256xf32, #tpu.memory_space<vmem>>, vector<256x256xf32>
    %c0_25 = arith.constant 0 : index
    %c0_26 = arith.constant 0 : index
    %47 = vector.load %arg10[%c0_25, %c0_26] : memref<256x256xf32, #tpu.memory_space<vmem>>, vector<256x256xf32>
    %cst_27 = arith.constant dense<0.000000e+00> : vector<256x256xf32>
    %48 = tpu.matmul %46, %47, %cst_27 {dimension_numbers = #tpu.dot_dimension_numbers<[1], [0], [0], [1], [0, 0, 1, 1], [], []>} : vector<256x256xf32>, vector<256x256xf32>, vector<256x256xf32> -> vector<256x256xf32>
    %c0_28 = arith.constant 0 : index
    %c0_29 = arith.constant 0 : index
    %49 = vector.load %arg11[%c0_28, %c0_29] : memref<1x256xf32, #tpu.memory_space<vmem>>, vector<1x256xf32>
    %50 = vector.shape_cast %49 : vector<1x256xf32> to vector<256xf32>
    %51 = vector.shape_cast %50 : vector<256xf32> to vector<1x256xf32>
    %52 = vector.broadcast %51 : vector<1x256xf32> to vector<256x256xf32>
    %53 = arith.addf %48, %52 : vector<256x256xf32>
    %c0_30 = arith.constant 0 : index
    %c0_31 = arith.constant 0 : index
    %c0_32 = arith.constant 0 : index
    %54 = vector.load %arg12[%c0_30, %c0_31, %c0_32] : memref<1x256x256xf32, #tpu.memory_space<vmem>>, vector<1x256x256xf32>
    %55 = vector.shape_cast %54 : vector<1x256x256xf32> to vector<256x256xf32>
    %56 = vector.shape_cast %53 : vector<256x256xf32> to vector<1x256x256xf32>
    tpu.vector_store %arg12[%c0_30, %c0_31, %c0_32], %56 {strides = array<i32>} : memref<1x256x256xf32, #tpu.memory_space<vmem>>, vector<1x256x256xf32>,
    return
  }
  func.func @transform_0(%arg0: i32, %arg1: i32) -> (i32, i32, i32) {
    %c0_i32 = arith.constant 0 : i32
    %c0_i32_0 = arith.constant 0 : i32
    return %arg0, %arg1, %c0_i32 : i32, i32, i32
  }
  func.func @transform_1(%arg0: i32, %arg1: i32) -> (i32, i32, i32) {
    %c0_i32 = arith.constant 0 : i32
    %c0_i32_0 = arith.constant 0 : i32
    %c0_i32_1 = arith.constant 0 : i32
    return %arg0, %c0_i32, %c0_i32_0 : i32, i32, i32
  }
  func.func @transform_2(%arg0: i32, %arg1: i32) -> (i32, i32) {
    %c0_i32 = arith.constant 0 : i32
    %c0_i32_0 = arith.constant 0 : i32
    %c0_i32_1 = arith.constant 0 : i32
    return %c0_i32, %c0_i32_0 : i32, i32
  }
  func.func @transform_3(%arg0: i32, %arg1: i32) -> (i32, i32) {
    %c0_i32 = arith.constant 0 : i32
    %c0_i32_0 = arith.constant 0 : i32
    %c0_i32_1 = arith.constant 0 : i32
    return %c0_i32, %c0_i32_0 : i32, i32
  }
  func.func @transform_4(%arg0: i32, %arg1: i32) -> (i32, i32) {
    %c0_i32 = arith.constant 0 : i32
    %c0_i32_0 = arith.constant 0 : i32
    %c0_i32_1 = arith.constant 0 : i32
    return %c0_i32, %c0_i32_0 : i32, i32
  }
  func.func @transform_5(%arg0: i32, %arg1: i32) -> (i32, i32) {
    %c0_i32 = arith.constant 0 : i32
    %c0_i32_0 = arith.constant 0 : i32
    %c0_i32_1 = arith.constant 0 : i32
    return %c0_i32, %c0_i32_0 : i32, i32
  }
  func.func @transform_6(%arg0: i32, %arg1: i32) -> (i32, i32) {
    %c0_i32 = arith.constant 0 : i32
    %c0_i32_0 = arith.constant 0 : i32
    %c0_i32_1 = arith.constant 0 : i32
    return %c0_i32, %c0_i32_0 : i32, i32
  }
  func.func @transform_7(%arg0: i32, %arg1: i32) -> (i32, i32) {
    %c0_i32 = arith.constant 0 : i32
    %c0_i32_0 = arith.constant 0 : i32
    %c0_i32_1 = arith.constant 0 : i32
    return %c0_i32, %c0_i32_0 : i32, i32
  }
  func.func @transform_8(%arg0: i32, %arg1: i32) -> (i32, i32) {
    %c0_i32 = arith.constant 0 : i32
    %c0_i32_0 = arith.constant 0 : i32
    %c0_i32_1 = arith.constant 0 : i32
    return %c0_i32, %c0_i32_0 : i32, i32
  }
  func.func @transform_9(%arg0: i32, %arg1: i32) -> (i32, i32) {
    %c0_i32 = arith.constant 0 : i32
    %c0_i32_0 = arith.constant 0 : i32
    %c0_i32_1 = arith.constant 0 : i32
    return %c0_i32, %c0_i32_0 : i32, i32
  }
  func.func @transform_10(%arg0: i32, %arg1: i32) -> (i32, i32, i32) {
    %c0_i32 = arith.constant 0 : i32
    %c0_i32_0 = arith.constant 0 : i32
    return %arg0, %arg1, %c0_i32 : i32, i32, i32
  }
}

module attributes {stable_mosaic.version = 11 : i64} {
  func.func @_attn_kernel(%arg0: i32, %arg1: i32, %arg2: memref<1x256x256xf32, #tpu.memory_space<vmem>>, %arg3: memref<1x16x128xf32, #tpu.memory_space<vmem>>, %arg4: memref<256x256xf32, #tpu.memory_space<vmem>>, %arg5: memref<1x256xf32, #tpu.memory_space<vmem>>, %arg6: memref<128x256xf32, #tpu.memory_space<vmem>>, %arg7: memref<1x256xf32, #tpu.memory_space<vmem>>, %arg8: memref<128x256xf32, #tpu.memory_space<vmem>>, %arg9: memref<1x256xf32, #tpu.memory_space<vmem>>, %arg10: memref<256x256xf32, #tpu.memory_space<vmem>>, %arg11: memref<1x256xf32, #tpu.memory_space<vmem>>, %arg12: memref<1x256x256xf32, #tpu.memory_space<vmem>>, %arg13: memref<16x256xf32, #tpu.memory_space<vmem>>, %arg14: memref<16x256xf32, #tpu.memory_space<vmem>>, %arg15: memref<256x256xf32, #tpu.memory_space<vmem>>) attributes {dimension_semantics = [#tpu.dimension_semantics<parallel>, #tpu.dimension_semantics<arbitrary>], iteration_bounds = array<i64: 2, 1>, scalar_prefetch = 0 : i64, scratch_operands = 3 : i64, tpu.core_type = #tpu.core_type<tc>, window_params = [{transform_indices = @transform_0, window_bounds = array<i64: 1, 256, 256>}, {transform_indices = @transform_1, window_bounds = array<i64: 1, 16, 128>}, {pipeline_mode = #tpu.pipeline_mode<synchronous>, transform_indices = @transform_2, window_bounds = array<i64: 256, 256>}, {pipeline_mode = #tpu.pipeline_mode<synchronous>, transform_indices = @transform_3, window_bounds = array<i64: 1, 256>}, {pipeline_mode = #tpu.pipeline_mode<synchronous>, transform_indices = @transform_4, window_bounds = array<i64: 128, 256>}, {pipeline_mode = #tpu.pipeline_mode<synchronous>, transform_indices = @transform_5, window_bounds = array<i64: 1, 256>}, {pipeline_mode = #tpu.pipeline_mode<synchronous>, transform_indices = @transform_6, window_bounds = array<i64: 128, 256>}, {pipeline_mode = #tpu.pipeline_mode<synchronous>, transform_indices = @transform_7, window_bounds = array<i64: 1, 256>}, {pipeline_mode = #tpu.pipeline_mode<synchronous>, transform_indices = @transform_8, window_bounds = array<i64: 256, 256>}, {pipeline_mode = #tpu.pipeline_mode<synchronous>, transform_indices = @transform_9, window_bounds = array<i64: 1, 256>}, {transform_indices = @transform_10, window_bounds = array<i64: 1, 256, 256>}]} {
    %c0_i32 = arith.constant 0 : i32
    %0 = arith.cmpi eq, %arg1, %c0_i32 : i32
    %1 = arith.extui %0 : i1 to i32
    %c0_i32_0 = arith.constant 0 : i32
    %2 = arith.cmpi ne, %1, %c0_i32_0 : i32
    scf.if %2 {
      %c0_33 = arith.constant 0 : index
      %c0_34 = arith.constant 0 : index
      %c0_35 = arith.constant 0 : index
      %57 = vector.load %arg3[%c0_33, %c0_34, %c0_35] : memref<1x16x128xf32, #tpu.memory_space<vmem>>, vector<1x16x128xf32>
      %58 = vector.shape_cast %57 : vector<1x16x128xf32> to vector<16x128xf32>
      %c0_36 = arith.constant 0 : index
      %c0_37 = arith.constant 0 : index
      %59 = vector.load %arg6[%c0_36, %c0_37] : memref<128x256xf32, #tpu.memory_space<vmem>>, vector<128x256xf32>
      %cst_38 = arith.constant dense<0.000000e+00> : vector<16x256xf32>
      %60 = tpu.matmul %58, %59, %cst_38 {dimension_numbers = #tpu.dot_dimension_numbers<[1], [0], [0], [1], [0, 0, 1, 1], [], []>} : vector<16x128xf32>, vector<128x256xf32>, vector<16x256xf32> -> vector<16x256xf32>
      %c0_39 = arith.constant 0 : index
      %c0_40 = arith.constant 0 : index
      %61 = vector.load %arg7[%c0_39, %c0_40] : memref<1x256xf32, #tpu.memory_space<vmem>>, vector<1x256xf32>
      %62 = vector.shape_cast %61 : vector<1x256xf32> to vector<256xf32>
      %63 = vector.shape_cast %62 : vector<256xf32> to vector<1x256xf32>
      %64 = vector.broadcast %63 : vector<1x256xf32> to vector<16x256xf32>
      %65 = arith.addf %60, %64 : vector<16x256xf32>
      %c0_41 = arith.constant 0 : index
      %c0_42 = arith.constant 0 : index
      %66 = vector.load %arg8[%c0_41, %c0_42] : memref<128x256xf32, #tpu.memory_space<vmem>>, vector<128x256xf32>
      %cst_43 = arith.constant dense<0.000000e+00> : vector<16x256xf32>
      %67 = tpu.matmul %58, %66, %cst_43 {dimension_numbers = #tpu.dot_dimension_numbers<[1], [0], [0], [1], [0, 0, 1, 1], [], []>} : vector<16x128xf32>, vector<128x256xf32>, vector<16x256xf32> -> vector<16x256xf32>
      %c0_44 = arith.constant 0 : index
      %c0_45 = arith.constant 0 : index
      %68 = vector.load %arg9[%c0_44, %c0_45] : memref<1x256xf32, #tpu.memory_space<vmem>>, vector<1x256xf32>
      %69 = vector.shape_cast %68 : vector<1x256xf32> to vector<256xf32>
      %70 = vector.shape_cast %69 : vector<256xf32> to vector<1x256xf32>
      %71 = vector.broadcast %70 : vector<1x256xf32> to vector<16x256xf32>
      %72 = arith.addf %67, %71 : vector<16x256xf32>
      %c0_46 = arith.constant 0 : index
      %c0_47 = arith.constant 0 : index
      %73 = vector.load %arg13[%c0_46, %c0_47] : memref<16x256xf32, #tpu.memory_space<vmem>>, vector<16x256xf32>
      tpu.vector_store %arg13[%c0_46, %c0_47], %65 {strides = array<i32>} : memref<16x256xf32, #tpu.memory_space<vmem>>, vector<16x256xf32>,
      %c0_48 = arith.constant 0 : index
      %c0_49 = arith.constant 0 : index
      %74 = vector.load %arg14[%c0_48, %c0_49] : memref<16x256xf32, #tpu.memory_space<vmem>>, vector<16x256xf32>
      tpu.vector_store %arg14[%c0_48, %c0_49], %72 {strides = array<i32>} : memref<16x256xf32, #tpu.memory_space<vmem>>, vector<16x256xf32>,
    } else {
    }
    %c0 = arith.constant 0 : index
    %c0_1 = arith.constant 0 : index
    %c0_2 = arith.constant 0 : index
    %3 = vector.load %arg2[%c0, %c0_1, %c0_2] : memref<1x256x256xf32, #tpu.memory_space<vmem>>, vector<1x256x256xf32>
    %4 = vector.shape_cast %3 : vector<1x256x256xf32> to vector<256x256xf32>
    %c0_3 = arith.constant 0 : index
    %c0_4 = arith.constant 0 : index
    %5 = vector.load %arg4[%c0_3, %c0_4] : memref<256x256xf32, #tpu.memory_space<vmem>>, vector<256x256xf32>
    %cst = arith.constant dense<0.000000e+00> : vector<256x256xf32>
    %6 = tpu.matmul %4, %5, %cst {dimension_numbers = #tpu.dot_dimension_numbers<[1], [0], [0], [1], [0, 0, 1, 1], [], []>} : vector<256x256xf32>, vector<256x256xf32>, vector<256x256xf32> -> vector<256x256xf32>
    %c0_5 = arith.constant 0 : index
    %c0_6 = arith.constant 0 : index
    %7 = vector.load %arg5[%c0_5, %c0_6] : memref<1x256xf32, #tpu.memory_space<vmem>>, vector<1x256xf32>
    %8 = vector.shape_cast %7 : vector<1x256xf32> to vector<256xf32>
    %9 = vector.shape_cast %8 : vector<256xf32> to vector<1x256xf32>
    %10 = vector.broadcast %9 : vector<1x256xf32> to vector<256x256xf32>
    %11 = arith.addf %6, %10 : vector<256x256xf32>
    %cst_7 = arith.constant 0.0883883461 : f32
    %12 = vector.broadcast %cst_7 : f32 to vector<256x256xf32>
    %13 = arith.mulf %11, %12 : vector<256x256xf32>
    %c0_8 = arith.constant 0 : index
    %c0_9 = arith.constant 0 : index
    %14 = vector.load %arg13[%c0_8, %c0_9] : memref<16x256xf32, #tpu.memory_space<vmem>>, vector<16x256xf32>
    %c0_10 = arith.constant 0 : index
    %c0_11 = arith.constant 0 : index
    %15 = vector.load %arg14[%c0_10, %c0_11] : memref<16x256xf32, #tpu.memory_space<vmem>>, vector<16x256xf32>
    %16 = vector.extract_strided_slice %13 {offsets = [0, 0], sizes = [256, 128], strides = [1, 1]} : vector<256x256xf32> to vector<256x128xf32>
    %17 = vector.extract_strided_slice %14 {offsets = [0, 0], sizes = [16, 128], strides = [1, 1]} : vector<16x256xf32> to vector<16x128xf32>
    %cst_12 = arith.constant dense<0.000000e+00> : vector<256x16xf32>
    %18 = tpu.matmul %16, %17, %cst_12 {dimension_numbers = #tpu.dot_dimension_numbers<[1], [1], [0], [0], [0, 0, 1, 0], [], []>} : vector<256x128xf32>, vector<16x128xf32>, vector<256x16xf32> -> vector<256x16xf32>
    %cst_13 = arith.constant dense<0xFF800000> : vector<256xf32>
    %19 = vector.multi_reduction <maximumf>, %18, %cst_13 [1] : vector<256x16xf32> to vector<256xf32>
    %20 = vector.shape_cast %19 : vector<256xf32> to vector<256x1xf32>
    %21 = vector.broadcast %20 : vector<256x1xf32> to vector<256x16xf32>
    %22 = arith.subf %18, %21 : vector<256x16xf32>
    %23 = math.exp %22 : vector<256x16xf32>
    %cst_14 = arith.constant dense<0.000000e+00> : vector<256xf32>
    %24 = vector.multi_reduction <add>, %23, %cst_14 [1] : vector<256x16xf32> to vector<256xf32>
    %25 = vector.shape_cast %24 : vector<256xf32> to vector<256x1xf32>
    %26 = vector.broadcast %25 : vector<256x1xf32> to vector<256x16xf32>
    %27 = arith.divf %23, %26 : vector<256x16xf32>
    %28 = vector.extract_strided_slice %15 {offsets = [0, 0], sizes = [16, 128], strides = [1, 1]} : vector<16x256xf32> to vector<16x128xf32>
    %cst_15 = arith.constant dense<0.000000e+00> : vector<256x128xf32>
    %29 = tpu.matmul %27, %28, %cst_15 {dimension_numbers = #tpu.dot_dimension_numbers<[1], [0], [0], [1], [0, 0, 1, 1], [], []>} : vector<256x16xf32>, vector<16x128xf32>, vector<256x128xf32> -> vector<256x128xf32>
    %c0_16 = arith.constant 0 : index
    %c0_17 = arith.constant 0 : index
    %30 = vector.load %arg15[%c0_16, %c0_17] : memref<256x256xf32, #tpu.memory_space<vmem>>, vector<256x128xf32>
    tpu.vector_store %arg15[%c0_16, %c0_17], %29 {strides = array<i32>} : memref<256x256xf32, #tpu.memory_space<vmem>>, vector<256x128xf32>,
    %31 = vector.extract_strided_slice %13 {offsets = [0, 128], sizes = [256, 128], strides = [1, 1]} : vector<256x256xf32> to vector<256x128xf32>
    %32 = vector.extract_strided_slice %14 {offsets = [0, 128], sizes = [16, 128], strides = [1, 1]} : vector<16x256xf32> to vector<16x128xf32>
    %cst_18 = arith.constant dense<0.000000e+00> : vector<256x16xf32>
    %33 = tpu.matmul %31, %32, %cst_18 {dimension_numbers = #tpu.dot_dimension_numbers<[1], [1], [0], [0], [0, 0, 1, 0], [], []>} : vector<256x128xf32>, vector<16x128xf32>, vector<256x16xf32> -> vector<256x16xf32>
    %cst_19 = arith.constant dense<0xFF800000> : vector<256xf32>
    %34 = vector.multi_reduction <maximumf>, %33, %cst_19 [1] : vector<256x16xf32> to vector<256xf32>
    %35 = vector.shape_cast %34 : vector<256xf32> to vector<256x1xf32>
    %36 = vector.broadcast %35 : vector<256x1xf32> to vector<256x16xf32>
    %37 = arith.subf %33, %36 : vector<256x16xf32>
    %38 = math.exp %37 : vector<256x16xf32>
    %cst_20 = arith.constant dense<0.000000e+00> : vector<256xf32>
    %39 = vector.multi_reduction <add>, %38, %cst_20 [1] : vector<256x16xf32> to vector<256xf32>
    %40 = vector.shape_cast %39 : vector<256xf32> to vector<256x1xf32>
    %41 = vector.broadcast %40 : vector<256x1xf32> to vector<256x16xf32>
    %42 = arith.divf %38, %41 : vector<256x16xf32>
    %43 = vector.extract_strided_slice %15 {offsets = [0, 128], sizes = [16, 128], strides = [1, 1]} : vector<16x256xf32> to vector<16x128xf32>
    %cst_21 = arith.constant dense<0.000000e+00> : vector<256x128xf32>
    %44 = tpu.matmul %42, %43, %cst_21 {dimension_numbers = #tpu.dot_dimension_numbers<[1], [0], [0], [1], [0, 0, 1, 1], [], []>} : vector<256x16xf32>, vector<16x128xf32>, vector<256x128xf32> -> vector<256x128xf32>
    %c0_22 = arith.constant 0 : index
    %c128 = arith.constant 128 : index
    %45 = vector.load %arg15[%c0_22, %c128] : memref<256x256xf32, #tpu.memory_space<vmem>>, vector<256x128xf32>
    tpu.vector_store %arg15[%c0_22, %c128], %44 {strides = array<i32>} : memref<256x256xf32, #tpu.memory_space<vmem>>, vector<256x128xf32>,
    %c0_23 = arith.constant 0 : index
    %c0_24 = arith.constant 0 : index
    %46 = vector.load %arg15[%c0_23, %c0_24] : memref<256x256xf32, #tpu.memory_space<vmem>>, vector<256x256xf32>
    %c0_25 = arith.constant 0 : index
    %c0_26 = arith.constant 0 : index
    %47 = vector.load %arg10[%c0_25, %c0_26] : memref<256x256xf32, #tpu.memory_space<vmem>>, vector<256x256xf32>
    %cst_27 = arith.constant dense<0.000000e+00> : vector<256x256xf32>
    %48 = tpu.matmul %46, %47, %cst_27 {dimension_numbers = #tpu.dot_dimension_numbers<[1], [0], [0], [1], [0, 0, 1, 1], [], []>} : vector<256x256xf32>, vector<256x256xf32>, vector<256x256xf32> -> vector<256x256xf32>
    %c0_28 = arith.constant 0 : index
    %c0_29 = arith.constant 0 : index
    %49 = vector.load %arg11[%c0_28, %c0_29] : memref<1x256xf32, #tpu.memory_space<vmem>>, vector<1x256xf32>
    %50 = vector.shape_cast %49 : vector<1x256xf32> to vector<256xf32>
    %51 = vector.shape_cast %50 : vector<256xf32> to vector<1x256xf32>
    %52 = vector.broadcast %51 : vector<1x256xf32> to vector<256x256xf32>
    %53 = arith.addf %48, %52 : vector<256x256xf32>
    %c0_30 = arith.constant 0 : index
    %c0_31 = arith.constant 0 : index
    %c0_32 = arith.constant 0 : index
    %54 = vector.load %arg12[%c0_30, %c0_31, %c0_32] : memref<1x256x256xf32, #tpu.memory_space<vmem>>, vector<1x256x256xf32>
    %55 = vector.shape_cast %54 : vector<1x256x256xf32> to vector<256x256xf32>
    %56 = vector.shape_cast %53 : vector<256x256xf32> to vector<1x256x256xf32>
    tpu.vector_store %arg12[%c0_30, %c0_31, %c0_32], %56 {strides = array<i32>} : memref<1x256x256xf32, #tpu.memory_space<vmem>>, vector<1x256x256xf32>,
    return
  }
  func.func @transform_0(%arg0: i32, %arg1: i32) -> (i32, i32, i32) {
    %c0_i32 = arith.constant 0 : i32
    %c0_i32_0 = arith.constant 0 : i32
    return %arg0, %arg1, %c0_i32 : i32, i32, i32
  }
  func.func @transform_1(%arg0: i32, %arg1: i32) -> (i32, i32, i32) {
    %c0_i32 = arith.constant 0 : i32
    %c0_i32_0 = arith.constant 0 : i32
    %c0_i32_1 = arith.constant 0 : i32
    return %arg0, %c0_i32, %c0_i32_0 : i32, i32, i32
  }
  func.func @transform_2(%arg0: i32, %arg1: i32) -> (i32, i32) {
    %c0_i32 = arith.constant 0 : i32
    %c0_i32_0 = arith.constant 0 : i32
    %c0_i32_1 = arith.constant 0 : i32
    return %c0_i32, %c0_i32_0 : i32, i32
  }
  func.func @transform_3(%arg0: i32, %arg1: i32) -> (i32, i32) {
    %c0_i32 = arith.constant 0 : i32
    %c0_i32_0 = arith.constant 0 : i32
    %c0_i32_1 = arith.constant 0 : i32
    return %c0_i32, %c0_i32_0 : i32, i32
  }
  func.func @transform_4(%arg0: i32, %arg1: i32) -> (i32, i32) {
    %c0_i32 = arith.constant 0 : i32
    %c0_i32_0 = arith.constant 0 : i32
    %c0_i32_1 = arith.constant 0 : i32
    return %c0_i32, %c0_i32_0 : i32, i32
  }
  func.func @transform_5(%arg0: i32, %arg1: i32) -> (i32, i32) {
    %c0_i32 = arith.constant 0 : i32
    %c0_i32_0 = arith.constant 0 : i32
    %c0_i32_1 = arith.constant 0 : i32
    return %c0_i32, %c0_i32_0 : i32, i32
  }
  func.func @transform_6(%arg0: i32, %arg1: i32) -> (i32, i32) {
    %c0_i32 = arith.constant 0 : i32
    %c0_i32_0 = arith.constant 0 : i32
    %c0_i32_1 = arith.constant 0 : i32
    return %c0_i32, %c0_i32_0 : i32, i32
  }
  func.func @transform_7(%arg0: i32, %arg1: i32) -> (i32, i32) {
    %c0_i32 = arith.constant 0 : i32
    %c0_i32_0 = arith.constant 0 : i32
    %c0_i32_1 = arith.constant 0 : i32
    return %c0_i32, %c0_i32_0 : i32, i32
  }
  func.func @transform_8(%arg0: i32, %arg1: i32) -> (i32, i32) {
    %c0_i32 = arith.constant 0 : i32
    %c0_i32_0 = arith.constant 0 : i32
    %c0_i32_1 = arith.constant 0 : i32
    return %c0_i32, %c0_i32_0 : i32, i32
  }
  func.func @transform_9(%arg0: i32, %arg1: i32) -> (i32, i32) {
    %c0_i32 = arith.constant 0 : i32
    %c0_i32_0 = arith.constant 0 : i32
    %c0_i32_1 = arith.constant 0 : i32
    return %c0_i32, %c0_i32_0 : i32, i32
  }
  func.func @transform_10(%arg0: i32, %arg1: i32) -> (i32, i32, i32) {
    %c0_i32 = arith.constant 0 : i32
    %c0_i32_0 = arith.constant 0 : i32
    return %arg0, %arg1, %c0_i32 : i32, i32, i32
  }
}

</mosaic_0001>

<bundles_post_ra>
// kernel: tpu_custom_call.1
= control target key start
LH: loop header
LB: loop body
LE: loop exit
PB: predicated region body
PF: predicated region fallthrough
CT: control target
= control target key end

     0   :  { %s6653_s0 = inlined_call_operand.hbm [shape: f32[2,256,256], index: 0, kind: input, shape index: {}]   ;;  %s6654_s1 = inlined_call_operand.hbm [shape: f32[2,16,128], index: 1, kind: input, shape index: {}]   ;;  %s6655_s2 = inlined_call_operand.hbm [shape: f32[256,256], index: 2, kind: input, shape index: {}]   ;;  %s6656_s3 = inlined_call_operand.vmem [shape: f32[1,256], index: 3, kind: input, shape index: {}]   ;;  %s6657_s4 = inlined_call_operand.hbm [shape: f32[128,256], index: 4, kind: input, shape index: {}]   ;;  %s6658_s5 = inlined_call_operand.vmem [shape: f32[1,256], index: 5, kind: input, shape index: {}]   ;;  %s6659_s6 = inlined_call_operand.hbm [shape: f32[128,256], index: 6, kind: input, shape index: {}]   ;;  %s6660_s7 = inlined_call_operand.vmem [shape: f32[1,256], index: 7, kind: input, shape index: {}]   ;;  %s6661_s8 = inlined_call_operand.hbm [shape: f32[256,256], index: 8, kind: input, shape index: {}]   ;;  %s6662_s9 = inlined_call_operand.vmem [shape: f32[1,256], index: 9, kind: input, shape index: {}]   ;;  %s6663_s10 = inlined_call_operand.hbm [shape: f32[2,256,256], index: 10, kind: output, shape index: {}]  }
   0x1   :  { %6673 = sst [smem:[#allocation49_spill]] %s6653_s0 }
   0x2   :  { %6674 = sst [smem:[#allocation50_spill]] %s6655_s2 }
   0x3   :  { %6675 = sst [smem:[#allocation51_spill]] %s6656_s3 }
   0x4   :  { %6676 = sst [smem:[#allocation52_spill]] %s6657_s4 }
   0x5   :  { %6677 = sst [smem:[#allocation53_spill]] %s6659_s6 }
   0x6   :  { %6678 = sst [smem:[#allocation54_spill]] %s6662_s9 }
   0x7   :  { %6679 = sst [smem:[#allocation55_spill]] %s6663_s10 }
   0x8   :  { %15 = vsyncpa [#allocation6], 0 }
   0x9   :  { %17 = vsyncpa [#allocation6 + $0x1], 0 }
   0xa   :  { %18 = vsyncpa [#allocation9], 0 }
   0xb   :  { %20 = vsyncpa [#allocation9 + $0x1], 0 }
   0xc   :  { %21 = vsyncpa [#allocation12], 0 }
   0xd   :  { %22 = vsyncpa [#allocation15], 0 }
   0xe   :  { %23 = vsyncpa [#allocation7], 0 }
   0xf   :  { %25 = vsyncpa [#allocation7 + $0x1], 0  ;;  %s5069_s13 = smov 0   ;;  %s5071_s14 = smov 0  }
  0x10   :  { %s5073_s15 = smov 0   ;;  %s5075_s16 = smov 0  }
  0x11   :  { %s5077_s17 = smov 0   ;;  %s5079_s18 = smov 0  }
  0x12 LB: > { %6680 = sst [smem:[#allocation23_spill]] %s4978_s13  ;;  %s5100_s19 = sadd.s32 4294967295, %s4998_s18   ;;  %s4998_s18 = sphi %s5079_s18, %s31_s18   ;;  %s4994_s17 = sphi %s5077_s17, %s6794_s17   ;;  %s4990_s16 = sphi %s5075_s16, %s6793_s16   ;;  %s4986_s15 = sphi %s5073_s15, %s6792_s15   ;;  %s4982_s14 = sphi %s5071_s14, %s6791_s14   ;;  %s4978_s13 = sphi %s5069_s13, %s6790_s13  }
  0x13   : > { %6681 = sst [smem:[#allocation24_spill]] %s4990_s16  ;;  %s3710_s20 = sadd.s32 4294967294, %s4998_s18  }
  0x14   : > { %p65_p0 = scmp.ne.s32.totalorder %s4982_s14, %s4978_s13  ;;  %p6666_p1 = scmp.eq.s32.totalorder %s5100_s19, 0 }
  0x15   : > { %p291_p3 = scmp.eq.s32.totalorder %s3710_s20, 1  ;;  %p3711_p5 = scmp.ge.s32.totalorder %s4998_s18, 1 }
  0x16   : > { %p5109_p4 = por %p6666_p1, %p65_p0  ;;  %p298_p7 = scmp.lt.s32.totalorder %s4998_s18, 3 }
  0x17   : > { %p5114_p6 = por %p291_p3, %p65_p0  ;;  %s5000_s24 = smov [#allocation10]  }
  0x18   : > { %s6682_s21 = scalar_select %p5109_p4, 1, 0 }
  0x19   : > { %s6683_s22 = scalar_select %p5114_p6, 1, 0 }
  0x1a   : > { %p5119_p8 = pnand %p3711_p5, %p298_p7  ;;  %s310_s25 = sshll.u32 %s5000_s24, 4  ;;  %s5123_s25 = int_to_ptr.vmem [resolvable:$true] %s310_s25 }
  0x1b   : > { %6684 = sst [smem:[#allocation25_spill]] %s6683_s22  ;;  %s5001_s27 = smov [#allocation11]  }
  0x1c   : > { %s6685_s23 = scalar_select %p5119_p8, 1, 0 }
  0x1d   : > { %p4379_p9 = pneg %p5119_p8  ;;  %s326_s28 = sshll.u32 %s5001_s27, 4  ;;  %s5134_s28 = int_to_ptr.vmem [resolvable:$true] %s326_s28 }
  0x1e   : > { %s5002_s29 = smov [#allocation13]   ;;  %s6687_s2 = sld [smem:[#allocation50_spill]] }
  0x1f   : > { %p5130_p11 = pnand %p4379_p9, %p6666_p1  ;;  %s5136_s30 = sshll.u32 %s5002_s29, 4  ;;  %s343_s30 = int_to_ptr.vmem [resolvable:$true] %s5136_s30 }
  0x21   : > { %p5146_p13 = pneg %p5130_p11 }
  0x24   : > { %s4728_s20 = scalar_lea.hbm %s6687_s2, 8192 }
  0x25   : > { %p4729_p12 = scmp.ne.s32.totalorder %s6687_s2, %s4728_s20  ;;  %p4735_p5 = scmp.lt.u32.totalorder %s4728_s20, %s6687_s2 }
  0x27   : > { %p4731_p0 = pnand %p5146_p13, %p4729_p12 }
  0x29   : > { %p4732_p3 = pneg %p4731_p0 }
  0x2b   : > { %p4737_p7 = pnand %p4735_p5, %p4732_p3 }
  0x2d   : > { %4740 = shalt.err (!%p4737_p7)
}
  0x2e   : > { %s4741_s22 = scalar_lea.vmem %s5123_s25, 8192  ;;  %p4749_p2 = scmp.lt.s32.totalorder %s5123_s25, %s5123_s25 }
  0x2f   : > { %p4742_p9 = scmp.ne.s32.totalorder %s5123_s25, %s4741_s22  ;;  %p4750_p6 = scmp.lt.s32.totalorder %s4741_s22, %s4741_s22 }
  0x31   : > { %p4744_p10 = pnand %p4742_p9, %p5146_p13  ;;  %p4751_p12 = por %p4750_p6, %p4749_p2 }
  0x33   : > { %p4745_p1 = pneg %p4744_p10 }
  0x35   : > { %p4752_p0 = pnand %p4751_p12, %p4745_p1 }
  0x37   : > { %4755 = shalt.err (!%p4752_p0)
}
  0x38   : > { %s6670_s11 = smov 256   ;;  %s5004_s12 = smov 16  }
  0x39   : > { %4382 = dma.hbm_to_vmem [thread:$0]  (!%p5130_p11), %s6687_s2, 8192, %s5123_s25, [#allocation9], %s6670_s11, %s6670_s11, %s5004_s12  }
  0x3a   : > { %s6689_s4 = sld [smem:[#allocation52_spill]] }
  0x40   : > { %s4756_s22 = scalar_lea.hbm %s6689_s4, 4096 }
  0x41   : > { %p4757_p1 = scmp.ne.s32.totalorder %s6689_s4, %s4756_s22  ;;  %p4763_p10 = scmp.lt.u32.totalorder %s4756_s22, %s6689_s4 }
  0x43   : > { %p4759_p2 = pnand %p4757_p1, %p5146_p13 }
  0x45   : > { %p4760_p6 = pneg %p4759_p2 }
  0x47   : > { %p4765_p3 = pnand %p4763_p10, %p4760_p6 }
  0x49   : > { %4768 = shalt.err (!%p4765_p3)
}
  0x4a   : > { %s4769_s25 = scalar_lea.vmem %s5134_s28, 4096  ;;  %p4777_p12 = scmp.lt.s32.totalorder %s5134_s28, %s5134_s28 }
  0x4b   : > { %p4770_p5 = scmp.ne.s32.totalorder %s5134_s28, %s4769_s25  ;;  %p4778_p0 = scmp.lt.s32.totalorder %s4769_s25, %s4769_s25 }
  0x4d   : > { %p4772_p7 = pnand %p4770_p5, %p5146_p13  ;;  %p4779_p1 = por %p4778_p0, %p4777_p12 }
  0x4f   : > { %p4773_p9 = pneg %p4772_p7 }
  0x51   : > { %p4780_p2 = pnand %p4779_p1, %p4773_p9 }
  0x53   : > { %4783 = shalt.err (!%p4780_p2)
}
  0x54   : > { %4385 = dma.hbm_to_vmem [thread:$0]  (!%p5130_p11), %s6689_s4, 4096, %s5134_s28, [#allocation12], %s6670_s11, %s6670_s11, %s5004_s12  }
  0x55   : > { %s6690_s6 = sld [smem:[#allocation53_spill]] }
  0x5b   : > { %s4784_s20 = scalar_lea.hbm %s6690_s6, 4096 }
  0x5c   : > { %p4785_p6 = scmp.ne.s32.totalorder %s6690_s6, %s4784_s20  ;;  %p4791_p5 = scmp.lt.u32.totalorder %s4784_s20, %s6690_s6 }
  0x5e   : > { %p4787_p10 = pnand %p4785_p6, %p5146_p13 }
  0x60   : > { %p4788_p3 = pneg %p4787_p10 }
  0x62   : > { %p4793_p7 = pnand %p4791_p5, %p4788_p3 }
  0x64   : > { %4796 = shalt.err (!%p4793_p7)
}
  0x65   : > { %s4797_s25 = scalar_lea.vmem %s343_s30, 4096  ;;  %p4805_p1 = scmp.lt.s32.totalorder %s343_s30, %s343_s30 }
  0x66   : > { %p4798_p9 = scmp.ne.s32.totalorder %s343_s30, %s4797_s25  ;;  %p4806_p2 = scmp.lt.s32.totalorder %s4797_s25, %s4797_s25 }
  0x68   : > { %p4800_p12 = pnand %p4798_p9, %p5146_p13  ;;  %p4807_p4 = por %p4806_p2, %p4805_p1 }
  0x6a   : > { %p4801_p0 = pneg %p4800_p12 }
  0x6c   : > { %p4808_p8 = pnand %p4807_p4, %p4801_p0 }
  0x6e   : > { %4811 = shalt.err (!%p4808_p8)
}
  0x6f   : > { %4388 = dma.hbm_to_vmem [thread:$0]  (!%p5130_p11), %s6690_s6, 4096, %s343_s30, [#allocation12], %s6670_s11, %s6670_s11, %s5004_s12  }
  0x70   : > { %s5005_s9 = smov [#allocation14]   ;;  %s4812_s24 = scalar_lea.hbm %s6661_s8, 8192 }
  0x71   : > { %s358_s10 = sshll.u32 %s5005_s9, 4  ;;  %p4813_p4 = scmp.ne.s32.totalorder %s6661_s8, %s4812_s24  ;;  %s359_s10 = int_to_ptr.vmem [resolvable:$true] %s358_s10 }
  0x72   : > { %p4819_p10 = scmp.lt.u32.totalorder %s4812_s24, %s6661_s8 }
  0x73   : > { %p4815_p8 = pnand %p4813_p4, %p5146_p13 }
  0x75   : > { %p4816_p6 = pneg %p4815_p8 }
  0x77   : > { %p4821_p3 = pnand %p4819_p10, %p4816_p6 }
  0x79   : > { %4824 = shalt.err (!%p4821_p3)
}
  0x7a   : > { %s4825_s30 = scalar_lea.vmem %s359_s10, 8192  ;;  %p4833_p12 = scmp.lt.s32.totalorder %s359_s10, %s359_s10 }
  0x7b   : > { %p4826_p5 = scmp.ne.s32.totalorder %s359_s10, %s4825_s30  ;;  %p4834_p0 = scmp.lt.s32.totalorder %s4825_s30, %s4825_s30 }
  0x7d   : > { %p4828_p7 = pnand %p4826_p5, %p5146_p13  ;;  %p4835_p1 = por %p4834_p0, %p4833_p12 }
  0x7f   : > { %p4829_p9 = pneg %p4828_p7 }
  0x81   : > { %p4836_p2 = pnand %p4835_p1, %p4829_p9 }
  0x83   : > { %4839 = shalt.err (!%p4836_p2)
}
  0x84   : > { %4391 = dma.hbm_to_vmem [thread:$0]  (!%p5130_p11), %s6661_s8, 8192, %s359_s10, [#allocation15], %s6670_s11, %s6670_s11, %s5004_s12  }
  0x85   : > { %s43_s13 = sadd.s32 1, %s4994_s17  ;;  %s52_s26 = sadd.s32 1, %s4986_s15 }
  0x86   : > { %p45_p13 = scmp.ge.s32.totalorder %s43_s13, 2  ;;  %p59_p4 = scmp.ne.s32.totalorder %s4986_s15, %s4982_s14 }
  0x87   : > { %p60_p8 = scmp.eq.s32.totalorder %s4998_s18, 0  ;;  %p4407_p6 = scmp.lt.s32.totalorder %s4998_s18, 2 }
  0x88   : > { %s6796_s13 = smov (%p45_p13, %s43_s13), 0  ;;  %p6691_p3 = scmp.eq.s32.totalorder %s5100_s19, 1 }
  0x89   : > { %p61_p10 = por %p60_p8, %p59_p4  ;;  %s47_s16 = ssub.s32 %s4994_s17, %s6796_s13 }
  0x8a   : > { %p5249_p5 = por %p6691_p3, %p59_p4  ;;  %s5256_s20 = sand.u32 1, %s4986_s15  }
  0x8b   : > { %p50_p11 = scmp.eq.s32.totalorder %s47_s16, 0  ;;  %s3717_s10 = sshll.u32 %s5256_s20, 9 }
  0x8c   : > { %s3800_s24 = sshll.u32 %s4994_s17, 13  ;;  %s6693_s0 = sld [smem:[#allocation49_spill]] }
  0x8d   : > { %s5261_s27 = scalar_select %p50_p11, %s4986_s15, %s52_s26  }
  0x8e   : > { %s379_s30 = scalar_lea.vmem [#allocation5], %s3717_s10  ;;  %p5270_p7 = pnand %p4407_p6, %p61_p10 }
  0x8f   : > { %s389_s28 = sshll.u32 %s379_s30, 4  ;;  %s376_s16 = scalar_lea.sflag [#allocation6], %s5256_s20  ;;  %s5274_s28 = int_to_ptr.vmem [resolvable:$true] %s389_s28 }
  0x90   : > { %p4842_p12 = pneg %p5270_p7 }
  0x92   : > { %s5266_s25 = scalar_lea.hbm %s6693_s0, %s3800_s24  ;;  %s4845_s22 = scalar_lea.hbm %s6693_s0, 16384 }
  0x93   : > { %s4840_s29 = scalar_lea.hbm %s5266_s25, 8192  ;;  %p4846_p2 = scmp.lt.u32.totalorder %s5266_s25, %s6693_s0 }
  0x94   : > { %p4841_p9 = scmp.ne.s32.totalorder %s5266_s25, %s4840_s29  ;;  %p4847_p13 = scmp.lt.u32.totalorder %s4845_s22, %s4840_s29 }
  0x95   : > { %p4849_p8 = scmp.lt.u32.totalorder %s4840_s29, %s5266_s25 }
  0x96   : > { %p4843_p0 = pnand %p4842_p12, %p4841_p9  ;;  %p4848_p4 = por %p4847_p13, %p4846_p2 }
  0x98   : > { %p4844_p1 = pneg %p4843_p0  ;;  %p4850_p6 = por %p4849_p8, %p4848_p4 }
  0x9a   : > { %p4851_p10 = pnand %p4850_p6, %p4844_p1 }
  0x9c   : > { %4854 = shalt.err (!%p4851_p10)
}
  0x9d   : > { %s4855_s26 = scalar_lea.vmem %s5274_s28, 8192  ;;  %s5006_s10 = smov [#allocation5]  }
  0x9e   : > { %p4856_p3 = scmp.ne.s32.totalorder %s5274_s28, %s4855_s26  ;;  %s4860_s24 = sshll.u32 %s5006_s10, 4  ;;  %s4861_s24 = int_to_ptr.vmem [resolvable:$false] %s4860_s24 }
  0x9f   : > { %s4862_s11 = scalar_lea.vmem %s4861_s24, 16384  ;;  %p4863_p0 = scmp.lt.s32.totalorder %s5274_s28, %s4861_s24 }
  0xa0   : > { %p4858_p11 = pnand %p4856_p3, %p4842_p12  ;;  %p4864_p2 = scmp.lt.s32.totalorder %s4862_s11, %s4855_s26 }
  0xa2   : > { %p4859_p9 = pneg %p4858_p11  ;;  %p4865_p13 = por %p4864_p2, %p4863_p0 }
  0xa4   : > { %p4866_p4 = pnand %p4865_p13, %p4859_p9 }
  0xa6   : > { %4869 = shalt.err (!%p4866_p4)
}
  0xa7   : > { %s6695_s29 = smov 256   ;;  %s3720_s22 = sshll.u32 %s5256_s20, 4 }
  0xa8   : > { %4395 = dma.hbm_to_vmem [thread:$0]  (!%p5270_p7), %s5266_s25, 8192, %s5274_s28, %s376_s16, %s6695_s29, %s6695_s29, %s5004_s12  }
  0xa9   : > { %s3801_s30 = sshll.u32 %s4994_s17, 8  ;;  %s403_s11 = scalar_lea.vmem [#allocation8], %s3720_s22 }
  0xaa   : > { %s5313_s24 = scalar_lea.hbm %s6654_s1, %s3801_s30  ;;  %s410_s0 = sshll.u32 %s403_s11, 4  ;;  %s5315_s0 = int_to_ptr.vmem [resolvable:$true] %s410_s0 }
  0xab   : > { %s6696_s2 = sand.u32 1, %s4998_s18   ;;  %s4870_s6 = scalar_lea.hbm %s5313_s24, 256 }
  0xac   : > { %s5319_s4 = scalar_lea.sflag [#allocation9], %s6696_s2  ;;  %p4871_p1 = scmp.ne.s32.totalorder %s5313_s24, %s4870_s6 }
  0xad   : > { %s4875_s25 = scalar_lea.hbm %s6654_s1, 512  ;;  %p4876_p10 = scmp.lt.u32.totalorder %s5313_s24, %s6654_s1 }
  0xae   : > { %p4873_p8 = pnand %p4871_p1, %p4842_p12  ;;  %p4877_p3 = scmp.lt.u32.totalorder %s4875_s25, %s4870_s6 }
  0xaf   : > { %p4879_p9 = scmp.lt.u32.totalorder %s4870_s6, %s5313_s24 }
  0xb0   : > { %p4874_p6 = pneg %p4873_p8  ;;  %p4878_p11 = por %p4877_p3, %p4876_p10 }
  0xb2   : > { %p4880_p0 = por %p4879_p9, %p4878_p11 }
  0xb4   : > { %p4881_p2 = pnand %p4880_p0, %p4874_p6 }
  0xb6   : > { %4884 = shalt.err (!%p4881_p2)
}
  0xb7   : > { %s4885_s2 = scalar_lea.vmem %s5315_s0, 256  ;;  %s5007_s29 = smov [#allocation8]  }
  0xb8   : > { %p4886_p13 = scmp.ne.s32.totalorder %s5315_s0, %s4885_s2  ;;  %s4890_s22 = sshll.u32 %s5007_s29, 4  ;;  %s4891_s22 = int_to_ptr.vmem [resolvable:$false] %s4890_s22 }
  0xb9   : > { %s4892_s30 = scalar_lea.vmem %s4891_s22, 512  ;;  %p4893_p8 = scmp.lt.s32.totalorder %s5315_s0, %s4891_s22 }
  0xba   : > { %p4888_p4 = pnand %p4886_p13, %p4842_p12  ;;  %p4894_p10 = scmp.lt.s32.totalorder %s4892_s30, %s4885_s2 }
  0xbc   : > { %p4889_p1 = pneg %p4888_p4  ;;  %p4895_p3 = por %p4894_p10, %p4893_p8 }
  0xbe   : > { %p4896_p11 = pnand %p4895_p3, %p4889_p1 }
  0xc0   : > { %4899 = shalt.err (!%p4896_p11)
}
  0xc1   : > { %s5008_s6 = smov 128   ;;  %s5009_s26 = smov 8  }
  0xc2   : > { %4398 = dma.hbm_to_vmem [thread:$0]  (!%p5270_p7), %s5313_s24, 256, %s5315_s0, %s5319_s4, %s5008_s6, %s5008_s6, %s5009_s26  }
  0xc3   : > { %p6697_p12 = scmp.ne.s32.totalorder %s6685_s23, 0 }
  0xc5   : > { %422 = sbr.rel (%p6697_p12) target bundleno = 2290 (0x8f2), region = 60 }
  0xcc   : > { %s5348_s10 = sand.u32 1, %s4982_s14   ;;  %p6698_p6 = scmp.ne.s32.totalorder %s6682_s21, 0 }
  0xcd   : > { %s3724_s11 = sshll.u32 %s5348_s10, 9  ;;  %s425_s12 = scalar_lea.sflag [#allocation6], %s5348_s10 }
  0xce   : > { %s5354_s20 = scalar_lea.vmem [#allocation5], %s3724_s11 }
  0xcf   : > { %4953 = dma.done.wait (%p6698_p6), %s425_s12, 8192  }
  0xd0   : > { %4955 = vsyncadd (%p6698_p6), %s425_s12, 4294959104  ;;  %s433_s0 = sand.u32 1, %s5100_s19   ;;  %s3725_s4 = sshll.u32 %s5348_s10, 4 }
  0xd1   : > { %s434_s23 = scalar_lea.sflag [#allocation9], %s433_s0  ;;  %s5362_s3 = scalar_lea.vmem [#allocation8], %s3725_s4 }
  0xd2   : > { %4957 = dma.done.wait (%p6698_p6), %s434_s23, 256  }
  0xd3   : > { %4959 = vsyncadd (%p6698_p6), %s434_s23, 4294967040  ;;  %p6699_p7 = scmp.eq.s32.totalorder %s5100_s19, 0 }
  0xd5   : > { %4961 = dma.done.wait (%p6699_p7), [#allocation9], 8192   ;;  %p6700_p9 = pmov %p6699_p7 }
  0xd6   : > { %p6701_p0 = pmov %p6699_p7 }
  0xd7   : > { %4963 = vsyncadd (%p6700_p9), [#allocation9], 4294959104 }
  0xd8   : > { %4965 = dma.done.wait (%p6701_p0), [#allocation12], 8192   ;;  %p6702_p2 = pmov %p6701_p0 }
  0xd9   : > { %p6703_p13 = pmov %p6701_p0 }
  0xda   : > { %4967 = vsyncadd (%p6702_p2), [#allocation12], 4294959104 }
  0xdb   : > { %4969 = dma.done.wait (%p6703_p13), [#allocation15], 8192   ;;  %p6704_p4 = pmov %p6701_p0 }
  0xdc   : > { %v5010_v0 = vmov 0.0   ;;  %v504_v1 = vld [vmem:[#allocation11 + $0x8] sm:$0xff]  ;;  %v506_v2 = vld [vmem:[#allocation11 + $0x18] sm:$0xff]  ;;  %v503_v3 = vld [vmem:[#allocation11] sm:$0xff]  ;;  %s6707_s2 = sld [smem:[#allocation51_spill]]  ;;  %vm1447_vm0 = vcmask 130048  }
  0xdd   : > { %4971 = vsyncadd (%p6704_p4), [#allocation15], 4294959104  ;;  %611 = vmatprep.mubr.f32.mxu0 %v5010_v0  ;;  %732 = vmatprep.mubr.f32.mxu1 %v5010_v0  ;;  %v4147_v4 = vpack.c.bf16 %v506_v2, %v504_v1  ;;  %v505_v5 = vld [vmem:[#allocation11 + $0x10] sm:$0xff]  ;;  %v508_v6 = vld [vmem:[#allocation11 + $0x28] sm:$0xff]  ;;  %s6780_s30 = sld [smem:[#allocation54_spill]]  ;;  %s6469_s6 = scalar_lea.vmem [#allocation16], %s3724_s11 }
  0xde   : > { %v510_v7 = vld [vmem:[#allocation11 + $0x38] sm:$0xff]  ;;  %v4149_v8 = vpack.c.bf16 %v505_v5, %v503_v3  ;;  %v507_v10 = vld [vmem:[#allocation11 + $0x20] sm:$0xff]  ;;  %v509_v11 = vld [vmem:[#allocation11 + $0x30] sm:$0xff]  ;;  %s6783_s26 = sld [smem:[#allocation24_spill]]  ;;  %s3561_s12 = sshll.u32 %s6469_s6, 4  ;;  %s6601_s12 = int_to_ptr.vmem [resolvable:$true] %s3561_s12 }
  0xdf   : > { %v4151_v9 = vpack.c.bf16 %v510_v7, %v508_v6  ;;  %v512_v12 = vld [vmem:[#allocation11 + $0x48] sm:$0xff]  ;;  %4148 = vmatprep.subr.bf16.mxu0 %v4147_v4  ;;  %v514_v13 = vld [vmem:[#allocation11 + $0x58] sm:$0xff]  ;;  %v4153_v14 = vpack.c.bf16 %v509_v11, %v507_v10  ;;  %v511_v16 = vld [vmem:[#allocation11 + $0x40] sm:$0xff]  ;;  %s6784_s4 = sld [smem:[#allocation55_spill]]  ;;  %s4900_s19 = scalar_lea.vmem %s6601_s12, 8192 }
  0xe0   : > { %4150 = vmatpush1.bf16.msra.mxu0 %v4149_v8  ;;  %v4155_v15 = vpack.c.bf16 %v514_v13, %v512_v12  ;;  %v513_v17 = vld [vmem:[#allocation11 + $0x50] sm:$0xff]  ;;  %v516_v18 = vld [vmem:[#allocation11 + $0x68] sm:$0xff]  ;;  %v518_v19 = vld [vmem:[#allocation11 + $0x78] sm:$0xff]  ;;  %p4901_p1 = scmp.ne.s32.totalorder %s6601_s12, %s4900_s19  ;;  %s5011_s21 = smov [#allocation16]  }
  0xe1   : > { %4152 = vmatprep.subr.bf16.mxu0 %v4151_v9  ;;  %v4157_v20 = vpack.c.bf16 %v513_v17, %v511_v16  ;;  %v4159_v21 = vpack.c.bf16 %v518_v19, %v516_v18  ;;  %v515_v22 = vld [vmem:[#allocation11 + $0x60] sm:$0xff]  ;;  %v517_v23 = vld [vmem:[#allocation11 + $0x70] sm:$0xff]  ;;  %v520_v24 = vld [vmem:[#allocation11 + $0x88] sm:$0xff]  ;;  %s4904_s24 = sshll.u32 %s5011_s21, 4  ;;  %s4905_s24 = int_to_ptr.vmem [resolvable:$false] %s4904_s24 }
  0xe2   : > { %v522_v25 = vld [vmem:[#allocation11 + $0x98] sm:$0xff]  ;;  %v4161_v26 = vpack.c.bf16 %v517_v23, %v515_v22  ;;  %v519_v28 = vld [vmem:[#allocation11 + $0x80] sm:$0xff]  ;;  %v521_v29 = vld [vmem:[#allocation11 + $0x90] sm:$0xff]  ;;  %p4902_p8 = pnand %p4901_p1, %p5249_p5  ;;  %s4906_s25 = scalar_lea.vmem %s4905_s24, 16384 }
  0xe3   : > { %v4163_v27 = vpack.c.bf16 %v522_v25, %v520_v24  ;;  %v524_v30 = vld [vmem:[#allocation11 + $0xa8] sm:$0xff]  ;;  %v526_v31 = vld [vmem:[#allocation11 + $0xb8] sm:$0xff]  ;;  %v4165_v32 = vpack.c.bf16 %v521_v29, %v519_v28  ;;  %v523_v34 = vld [vmem:[#allocation11 + $0xa0] sm:$0xff]  ;;  %p4907_p3 = scmp.lt.s32.totalorder %s6601_s12, %s4905_s24  ;;  %p4908_p11 = scmp.lt.s32.totalorder %s4906_s25, %s4900_s19 }
  0xe4   : > { %4154 = vmatpush1.bf16.msra.mxu0 %v4153_v14  ;;  %v4167_v33 = vpack.c.bf16 %v526_v31, %v524_v30  ;;  %v525_v35 = vld [vmem:[#allocation11 + $0xb0] sm:$0xff]  ;;  %v528_v36 = vld [vmem:[#allocation11 + $0xc8] sm:$0xff]  ;;  %v530_v37 = vld [vmem:[#allocation11 + $0xd8] sm:$0xff]  ;;  %s3802_s11 = sshll.u32 %s6783_s26, 13  ;;  %p4903_p10 = pneg %p4902_p8 }
  0xe5   : > { %4156 = vmatprep.subr.bf16.mxu0 %v4155_v15  ;;  %v4169_v38 = vpack.c.bf16 %v525_v35, %v523_v34  ;;  %v4171_v39 = vpack.c.bf16 %v530_v37, %v528_v36  ;;  %v527_v40 = vld [vmem:[#allocation11 + $0xc0] sm:$0xff]  ;;  %v529_v41 = vld [vmem:[#allocation11 + $0xd0] sm:$0xff]  ;;  %v532_v42 = vld [vmem:[#allocation11 + $0xe8] sm:$0xff]  ;;  %s6599_s23 = scalar_lea.hbm %s6784_s4, %s3802_s11  ;;  %p4909_p12 = por %p4908_p11, %p4907_p3 }
  0xe6   : > { %v534_v43 = vld [vmem:[#allocation11 + $0xf8] sm:$0xff]  ;;  %v4173_v44 = vpack.c.bf16 %v529_v41, %v527_v40  ;;  %v531_v46 = vld [vmem:[#allocation11 + $0xe0] sm:$0xff]  ;;  %v533_v47 = vld [vmem:[#allocation11 + $0xf0] sm:$0xff] }
  0xe7   : > { %v4175_v45 = vpack.c.bf16 %v534_v43, %v532_v42  ;;  %v818_v48 = vld [vmem:[#allocation10 + $0x8] sm:$0xff]  ;;  %v820_v49 = vld [vmem:[#allocation10 + $0x18] sm:$0xff]  ;;  %v4177_v50 = vpack.c.bf16 %v533_v47, %v531_v46  ;;  %v817_v52 = vld [vmem:[#allocation10] sm:$0xff]  ;;  %p4910_p6 = pnand %p4909_p12, %p4903_p10 }
  0xe8   : > { %4158 = vmatpush1.bf16.msra.mxu0 %v4157_v20  ;;  %v4211_v51 = vpack.c.bf16 %v820_v49, %v818_v48  ;;  %v819_v53 = vld [vmem:[#allocation10 + $0x10] sm:$0xff]  ;;  %v822_v54 = vld [vmem:[#allocation10 + $0x28] sm:$0xff]  ;;  %v824_v55 = vld [vmem:[#allocation10 + $0x38] sm:$0xff] }
  0xe9   : > { %4160 = vmatprep.subr.bf16.mxu0 %v4159_v21  ;;  %v5383_v56 = vld [vmem:[%s5362_s3] sm:$0xff]  ;;  %v4213_v57 = vpack.c.bf16 %v819_v53, %v817_v52  ;;  %v4215_v58 = vpack.c.bf16 %v824_v55, %v822_v54  ;;  %v826_v61 = vld [vmem:[#allocation10 + $0x48] sm:$0xff]  ;;  %v828_v62 = vld [vmem:[#allocation10 + $0x58] sm:$0xff] }
  0xea   : > { %v821_v59 = vld [vmem:[#allocation10 + $0x20] sm:$0xff]  ;;  %v823_v60 = vld [vmem:[#allocation10 + $0x30] sm:$0xff]  ;;  %v5388_v63 = vld [vmem:[%s5362_s3 + $0x8] sm:$0xff]  ;;  %v4219_v2 = vpack.c.bf16 %v828_v62, %v826_v61  ;;  %s3545_s3 = scalar_lea.sflag [#allocation7], %s5348_s10 }
  0xeb   : > { %v4217_v1 = vpack.c.bf16 %v823_v60, %v821_v59  ;;  %v825_v3 = vld [vmem:[#allocation10 + $0x40] sm:$0xff]  ;;  %v827_v4 = vld [vmem:[#allocation10 + $0x50] sm:$0xff]  ;;  %v754_v5 = vld [vmem:[%s5354_s20 + $0x8] sm:$0xff] }
  0xec   : > { %4162 = vmatpush1.bf16.msra.mxu0 %v4161_v26  ;;  %v830_v6 = vld [vmem:[#allocation10 + $0x68] sm:$0xff]  ;;  %v832_v7 = vld [vmem:[#allocation10 + $0x78] sm:$0xff]  ;;  %v829_v8 = vld [vmem:[#allocation10 + $0x60] sm:$0xff]  ;;  %v4221_v11 = vpack.c.bf16 %v827_v4, %v825_v3 }
  0xed   : > { %4164 = vmatprep.subr.bf16.mxu0 %v4163_v27  ;;  %v625_v9 = vld [vmem:[#allocation13 + $0x8] sm:$0xff]  ;;  %v627_v10 = vld [vmem:[#allocation13 + $0x18] sm:$0xff]  ;;  %v831_v12 = vld [vmem:[#allocation10 + $0x70] sm:$0xff]  ;;  %v4223_v16 = vpack.c.bf16 %v832_v7, %v830_v6 }
  0xee   : > { %v4179_v13 = vpack.c.bf16 %v627_v10, %v625_v9  ;;  %v624_v14 = vld [vmem:[#allocation13] sm:$0xff]  ;;  %v626_v15 = vld [vmem:[#allocation13 + $0x10] sm:$0xff]  ;;  %v834_v17 = vld [vmem:[#allocation10 + $0x88] sm:$0xff]  ;;  %v4225_v28 = vpack.c.bf16 %v831_v12, %v829_v8 }
  0xef   : > { %v4181_v18 = vpack.c.bf16 %v626_v15, %v624_v14  ;;  %v629_v19 = vld [vmem:[#allocation13 + $0x28] sm:$0xff]  ;;  %v631_v20 = vld [vmem:[#allocation13 + $0x38] sm:$0xff]  ;;  %v628_v23 = vld [vmem:[#allocation13 + $0x20] sm:$0xff] }
  0xf0   : > { %4166 = vmatpush1.bf16.msra.mxu0 %v4165_v32  ;;  %v836_v21 = vld [vmem:[#allocation10 + $0x98] sm:$0xff]  ;;  %4180 = vmatprep.subr.bf16.mxu1 %v4179_v13  ;;  %v4183_v22 = vpack.c.bf16 %v631_v20, %v629_v19  ;;  %v630_v24 = vld [vmem:[#allocation13 + $0x30] sm:$0xff]  ;;  %v633_v26 = vld [vmem:[#allocation13 + $0x48] sm:$0xff] }
  0xf1   : > { %4168 = vmatprep.subr.bf16.mxu0 %v4167_v33  ;;  %4182 = vmatpush1.bf16.msra.mxu1 %v4181_v18  ;;  %v4185_v25 = vpack.c.bf16 %v630_v24, %v628_v23  ;;  %v635_v27 = vld [vmem:[#allocation13 + $0x58] sm:$0xff]  ;;  %v833_v29 = vld [vmem:[#allocation10 + $0x80] sm:$0xff]  ;;  %v634_v32 = vld [vmem:[#allocation13 + $0x50] sm:$0xff]  ;;  %v4227_v33 = vpack.c.bf16 %v836_v21, %v834_v17 }
  0xf2   : > { %4184 = vmatprep.subr.bf16.mxu1 %v4183_v22  ;;  %v4187_v30 = vpack.c.bf16 %v635_v27, %v633_v26  ;;  %v632_v31 = vld [vmem:[#allocation13 + $0x40] sm:$0xff]  ;;  %v835_v34 = vld [vmem:[#allocation10 + $0x90] sm:$0xff]  ;;  %v637_v35 = vld [vmem:[#allocation13 + $0x68] sm:$0xff] }
  0xf3   : > { %v639_v36 = vld [vmem:[#allocation13 + $0x78] sm:$0xff]  ;;  %v838_v37 = vld [vmem:[#allocation10 + $0xa8] sm:$0xff]  ;;  %v4229_v40 = vpack.c.bf16 %v835_v34, %v833_v29  ;;  %v837_v41 = vld [vmem:[#allocation10 + $0xa0] sm:$0xff] }
  0xf4   : > { %4170 = vmatpush1.bf16.msra.mxu0 %v4169_v38  ;;  %v840_v38 = vld [vmem:[#allocation10 + $0xb8] sm:$0xff]  ;;  %v4191_v42 = vpack.c.bf16 %v639_v36, %v637_v35  ;;  %v636_v43 = vld [vmem:[#allocation13 + $0x60] sm:$0xff]  ;;  %v839_v46 = vld [vmem:[#allocation10 + $0xb0] sm:$0xff] }
  0xf5   : > { %4172 = vmatprep.subr.bf16.mxu0 %v4171_v39  ;;  %4186 = vmatpush1.bf16.msra.mxu1 %v4185_v25  ;;  %v4189_v39 = vpack.c.bf16 %v634_v32, %v632_v31  ;;  %v641_v47 = vld [vmem:[#allocation13 + $0x88] sm:$0xff]  ;;  %v643_v48 = vld [vmem:[#allocation13 + $0x98] sm:$0xff]  ;;  %v4233_v52 = vpack.c.bf16 %v839_v46, %v837_v41  ;;  %v841_v53 = vld [vmem:[#allocation10 + $0xc0] sm:$0xff] }
  0xf6   : > { %4188 = vmatprep.subr.bf16.mxu1 %v4187_v30  ;;  %v842_v49 = vld [vmem:[#allocation10 + $0xc8] sm:$0xff]  ;;  %v4195_v54 = vpack.c.bf16 %v643_v48, %v641_v47  ;;  %v640_v55 = vld [vmem:[#allocation13 + $0x80] sm:$0xff]  ;;  %v843_v59 = vld [vmem:[#allocation10 + $0xd0] sm:$0xff] }
  0xf7   : > { %v645_v60 = vld [vmem:[#allocation13 + $0xa8] sm:$0xff]  ;;  %v647_v61 = vld [vmem:[#allocation13 + $0xb8] sm:$0xff]  ;;  %v4237_v3 = vpack.c.bf16 %v843_v59, %v841_v53  ;;  %v845_v4 = vld [vmem:[#allocation10 + $0xe0] sm:$0xff] }
  0xf8   : > { %4174 = vmatpush1.bf16.msra.mxu0 %v4173_v44  ;;  %v638_v44 = vld [vmem:[#allocation13 + $0x70] sm:$0xff]  ;;  %v846_v62 = vld [vmem:[#allocation10 + $0xe8] sm:$0xff]  ;;  %v644_v6 = vld [vmem:[#allocation13 + $0xa0] sm:$0xff] }
  0xf9   : > { %4176 = vmatprep.subr.bf16.mxu0 %v4175_v45  ;;  %v4231_v45 = vpack.c.bf16 %v840_v38, %v838_v37  ;;  %4190 = vmatpush1.bf16.msra.mxu1 %v4189_v39  ;;  %v646_v7 = vld [vmem:[#allocation13 + $0xb0] sm:$0xff]  ;;  %v649_v10 = vld [vmem:[#allocation13 + $0xc8] sm:$0xff]  ;;  %v852_v13 = vld [vmem:[#allocation10 + $0x118] sm:$0xff] }
  0xfa   : > { %4192 = vmatprep.subr.bf16.mxu1 %v4191_v42  ;;  %v847_v9 = vld [vmem:[#allocation10 + $0xf0] sm:$0xff]  ;;  %v850_v12 = vld [vmem:[#allocation10 + $0x108] sm:$0xff]  ;;  %v4201_v14 = vpack.c.bf16 %v646_v7, %v644_v6  ;;  %v648_v18 = vld [vmem:[#allocation13 + $0xc0] sm:$0xff] }
  0xfb   : > { %v4241_v15 = vpack.c.bf16 %v847_v9, %v845_v4  ;;  %v650_v19 = vld [vmem:[#allocation13 + $0xd0] sm:$0xff]  ;;  %v4243_v20 = vpack.c.bf16 %v852_v13, %v850_v12  ;;  %v653_v22 = vld [vmem:[#allocation13 + $0xe8] sm:$0xff]  ;;  %v655_v23 = vld [vmem:[#allocation13 + $0xf8] sm:$0xff] }
  0xfc   : > { %4178 = vmatpush1.bf16.msra.mxu0 %v4177_v50  ;;  %v844_v50 = vld [vmem:[#allocation10 + $0xd8] sm:$0xff]  ;;  %v851_v21 = vld [vmem:[#allocation10 + $0x110] sm:$0xff]  ;;  %v854_v24 = vld [vmem:[#allocation10 + $0x128] sm:$0xff]  ;;  %v4205_v26 = vpack.c.bf16 %v650_v19, %v648_v18 }
  0xfd   : > { %4212 = vmatprep.subr.bf16.mxu0 %v4211_v51  ;;  %v4193_v51 = vpack.c.bf16 %v638_v44, %v636_v43  ;;  %v856_v25 = vld [vmem:[#allocation10 + $0x138] sm:$0xff]  ;;  %v652_v29 = vld [vmem:[#allocation13 + $0xe0] sm:$0xff]  ;;  %v654_v30 = vld [vmem:[#allocation13 + $0xf0] sm:$0xff] }
  0xfe   : > { %v4247_v31 = vpack.c.bf16 %v856_v25, %v854_v24  ;;  %v853_v32 = vld [vmem:[#allocation10 + $0x120] sm:$0xff]  ;;  %v858_v34 = vld [vmem:[#allocation10 + $0x148] sm:$0xff]  ;;  %v860_v35 = vld [vmem:[#allocation10 + $0x158] sm:$0xff]  ;;  %v4209_v36 = vpack.c.bf16 %v654_v30, %v652_v29 }
  0xff   : > { %612 = vmatmul.mubr.f32.vlgmr.msra.gmra.mrb[0].mxu0 %v5383_v56  ;;  %4194 = vmatpush1.bf16.msra.mxu1 %v4193_v51  ;;  %v4251_v38 = vpack.c.bf16 %v860_v35, %v858_v34  ;;  %v857_v39 = vld [vmem:[#allocation10 + $0x140] sm:$0xff]  ;;  %v862_v41 = vld [vmem:[#allocation10 + $0x168] sm:$0xff]  ;;  %v864_v42 = vld [vmem:[#allocation10 + $0x178] sm:$0xff] }
 0x100   : > { %4214 = vmatpush1.bf16.msra.mxu0 %v4213_v57  ;;  %617 = vmatprep.mubr.f32.mxu0 %v5010_v0  ;;  %v642_v57 = vld [vmem:[#allocation13 + $0x90] sm:$0xff]  ;;  %v4255_v44 = vpack.c.bf16 %v864_v42, %v862_v41  ;;  %v866_v47 = vld [vmem:[#allocation10 + $0x188] sm:$0xff]  ;;  %v868_v48 = vld [vmem:[#allocation10 + $0x198] sm:$0xff] }
 0x101   : > { %4216 = vmatprep.subr.bf16.mxu0 %v4215_v58  ;;  %v4235_v58 = vpack.c.bf16 %v844_v50, %v842_v49  ;;  %4196 = vmatprep.subr.bf16.mxu1 %v4195_v54  ;;  %v863_v46 = vld [vmem:[#allocation10 + $0x170] sm:$0xff]  ;;  %v4259_v50 = vpack.c.bf16 %v868_v48, %v866_v47  ;;  %v865_v51 = vld [vmem:[#allocation10 + $0x180] sm:$0xff]  ;;  %v870_v53 = vld [vmem:[#allocation10 + $0x1a8] sm:$0xff] }
 0x102   : > { %v872_v54 = vld [vmem:[#allocation10 + $0x1b8] sm:$0xff]  ;;  %v871_v59 = vld [vmem:[#allocation10 + $0x1b0] sm:$0xff]  ;;  %v757_v12 = vld [vmem:[%s5354_s20 + $0x20] sm:$0xff] }
 0x103   : > { %618 = vmatmul.mubr.f32.gmra.mrb[2].mxu0 %v5388_v63  ;;  %v879_v6 = vld [vmem:[#allocation10 + $0x1f0] sm:$0xff]  ;;  %v756_v9 = vld [vmem:[%s5354_s20 + $0x18] sm:$0xff]  ;;  %v766_v19 = vld [vmem:[%s5354_s20 + $0x68] sm:$0xff] }
 0x104   : > { %4218 = vmatpush1.bf16.msra.mxu0 %v4217_v1  ;;  %957 = vmatprep.mubr.f32.mxu0 %v754_v5  ;;  %v848_v1 = vld [vmem:[#allocation10 + $0xf8] sm:$0xff]  ;;  %v4199_v5 = vpack.c.bf16 %v647_v61, %v645_v60  ;;  %v874_v60 = vld [vmem:[#allocation10 + $0x1c8] sm:$0xff]  ;;  %v763_v18 = vld [vmem:[%s5354_s20 + $0x50] sm:$0xff] }
 0x105   : > { %4220 = vmatprep.subr.bf16.mxu0 %v4219_v2  ;;  %v4197_v2 = vpack.c.bf16 %v642_v57, %v640_v55  ;;  %v4239_v8 = vpack.c.bf16 %v848_v1, %v846_v62  ;;  %v4263_v57 = vpack.c.bf16 %v872_v54, %v870_v53  ;;  %v873_v62 = vld [vmem:[#allocation10 + $0x1c0] sm:$0xff]  ;;  %v875_v1 = vld [vmem:[#allocation10 + $0x1d0] sm:$0xff]  ;;  %v760_v13 = vld [vmem:[%s5354_s20 + $0x38] sm:$0xff] }
 0x106   : > { %v769_v24 = vld [vmem:[%s5354_s20 + $0x80] sm:$0xff]  ;;  %v772_v25 = vld [vmem:[%s5354_s20 + $0x98] sm:$0xff]  ;;  %v775_v30 = vld [vmem:[%s5354_s20 + $0xb0] sm:$0xff] }
 0x107   : > { %4198 = vmatpush1.bf16.msra.mxu1 %v4197_v2  ;;  %v878_v2 = vld [vmem:[#allocation10 + $0x1e8] sm:$0xff]  ;;  %v776_v29 = vld [vmem:[%s5354_s20 + $0xb8] sm:$0xff]  ;;  %v779_v34 = vld [vmem:[%s5354_s20 + $0xd0] sm:$0xff] }
 0x108   : > { %4222 = vmatpush1.bf16.msra.mxu0 %v4221_v11  ;;  %v651_v11 = vld [vmem:[#allocation13 + $0xd8] sm:$0xff]  ;;  %4200 = vmatprep.subr.bf16.mxu1 %v4199_v5  ;;  %v877_v5 = vld [vmem:[#allocation10 + $0x1e0] sm:$0xff]  ;;  %v782_v35 = vld [vmem:[%s5354_s20 + $0xe8] sm:$0xff] }
 0x109   : > { %4224 = vmatprep.subr.bf16.mxu0 %v4223_v16  ;;  %v849_v16 = vld [vmem:[#allocation10 + $0x100] sm:$0xff]  ;;  %v4203_v17 = vpack.c.bf16 %v651_v11, %v649_v10  ;;  %v4273_v7 = vpack.c.bf16 %v879_v6, %v877_v5  ;;  %v755_v10 = vld [vmem:[%s5354_s20 + $0x10] sm:$0xff]  ;;  %v758_v11 = vld [vmem:[%s5354_s20 + $0x28] sm:$0xff] }
 0x10a   : > { %v4245_v27 = vpack.c.bf16 %v851_v21, %v849_v16  ;;  %v761_v16 = vld [vmem:[%s5354_s20 + $0x40] sm:$0xff]  ;;  %v768_v21 = vld [vmem:[%s5354_s20 + $0x78] sm:$0xff]  ;;  %v787_v42 = vld [vmem:[%s5354_s20 + $0x110] sm:$0xff] }
 0x10b   : > { %4202 = vmatpush1.bf16.msra.mxu1 %v4201_v14  ;;  %v759_v14 = vld [vmem:[%s5354_s20 + $0x30] sm:$0xff]  ;;  %v788_v41 = vld [vmem:[%s5354_s20 + $0x118] sm:$0xff]  ;;  %v794_v47 = vld [vmem:[%s5354_s20 + $0x148] sm:$0xff] }
 0x10c   : > { %4226 = vmatpush1.bf16.msra.mxu0 %v4225_v28  ;;  %4204 = vmatprep.subr.bf16.mxu1 %v4203_v17  ;;  %v4207_v28 = vpack.c.bf16 %v655_v23, %v653_v22  ;;  %v764_v17 = vld [vmem:[%s5354_s20 + $0x58] sm:$0xff]  ;;  %v767_v22 = vld [vmem:[%s5354_s20 + $0x70] sm:$0xff]  ;;  %v770_v23 = vld [vmem:[%s5354_s20 + $0x88] sm:$0xff] }
 0x10d   : > { %4228 = vmatprep.subr.bf16.mxu0 %v4227_v33  ;;  %v855_v33 = vld [vmem:[#allocation10 + $0x130] sm:$0xff]  ;;  %v793_v48 = vld [vmem:[%s5354_s20 + $0x140] sm:$0xff]  ;;  %v800_v53 = vld [vmem:[%s5354_s20 + $0x178] sm:$0xff] }
 0x10e   : > { %v4249_v37 = vpack.c.bf16 %v855_v33, %v853_v32  ;;  %v777_v32 = vld [vmem:[%s5354_s20 + $0xc0] sm:$0xff]  ;;  %v780_v33 = vld [vmem:[%s5354_s20 + $0xd8] sm:$0xff]  ;;  %v799_v54 = vld [vmem:[%s5354_s20 + $0x170] sm:$0xff] }
 0x10f   : > { %4206 = vmatpush1.bf16.msra.mxu1 %v4205_v26  ;;  %v771_v26 = vld [vmem:[%s5354_s20 + $0x90] sm:$0xff]  ;;  %v816_v5 = vld [vmem:[%s5354_s20 + $0x1f8] sm:$0xff] }
 0x110   : > { %4230 = vmatpush1.bf16.msra.mxu0 %v4229_v40  ;;  %4208 = vmatprep.subr.bf16.mxu1 %v4207_v28  ;;  %v859_v40 = vld [vmem:[#allocation10 + $0x150] sm:$0xff]  ;;  %v773_v28 = vld [vmem:[%s5354_s20 + $0xa0] sm:$0xff] }
 0x111   : > { %4232 = vmatprep.subr.bf16.mxu0 %v4231_v45  ;;  %v4253_v43 = vpack.c.bf16 %v859_v40, %v857_v39  ;;  %v861_v45 = vld [vmem:[#allocation10 + $0x160] sm:$0xff]  ;;  %v786_v39 = vld [vmem:[%s5354_s20 + $0x108] sm:$0xff]  ;;  %v815_v6 = vld [vmem:[%s5354_s20 + $0x1f0] sm:$0xff] }
 0x112   : > { %v4257_v49 = vpack.c.bf16 %v863_v46, %v861_v45  ;;  %v785_v40 = vld [vmem:[%s5354_s20 + $0x100] sm:$0xff]  ;;  %v792_v45 = vld [vmem:[%s5354_s20 + $0x138] sm:$0xff]  ;;  %v791_v46 = vld [vmem:[%s5354_s20 + $0x130] sm:$0xff] }
 0x113   : > { %4210 = vmatpush1.bf16.msra.mxu1 %v4209_v36  ;;  %v781_v36 = vld [vmem:[%s5354_s20 + $0xe0] sm:$0xff] }
 0x114   : > { %4234 = vmatpush1.bf16.msra.mxu0 %v4233_v52  ;;  %v867_v52 = vld [vmem:[#allocation10 + $0x190] sm:$0xff] }
 0x115   : > { %4236 = vmatprep.subr.bf16.mxu0 %v4235_v58  ;;  %v4261_v55 = vpack.c.bf16 %v867_v52, %v865_v51  ;;  %v869_v58 = vld [vmem:[#allocation10 + $0x1a0] sm:$0xff]  ;;  %v798_v51 = vld [vmem:[%s5354_s20 + $0x168] sm:$0xff] }
 0x116   : > { %733 = vmatmul.mubr.f32.vlgmr.msra.gmra.mrb[0].mxu1 %v5383_v56  ;;  %v876_v56 = vld [vmem:[#allocation10 + $0x1d8] sm:$0xff]  ;;  %v797_v52 = vld [vmem:[%s5354_s20 + $0x160] sm:$0xff] }
 0x117   : > { %738 = vmatprep.mubr.f32.mxu1 %v5010_v0  ;;  %v4265_v0 = vpack.c.bf16 %v871_v59, %v869_v58  ;;  %v4267_v61 = vpack.c.bf16 %v876_v56, %v874_v60  ;;  %v804_v58 = vld [vmem:[%s5354_s20 + $0x198] sm:$0xff]  ;;  %v803_v59 = vld [vmem:[%s5354_s20 + $0x190] sm:$0xff]  ;;  %v806_v60 = vld [vmem:[%s5354_s20 + $0x1a8] sm:$0xff] }
 0x118   : > { %4238 = vmatpush1.bf16.msra.mxu0 %v4237_v3  ;;  %v880_v3 = vld [vmem:[#allocation10 + $0x1f8] sm:$0xff]  ;;  %v805_v56 = vld [vmem:[%s5354_s20 + $0x1a0] sm:$0xff] }
 0x119   : > { %4240 = vmatprep.subr.bf16.mxu0 %v4239_v8  ;;  %v4271_v4 = vpack.c.bf16 %v880_v3, %v878_v2  ;;  %v753_v8 = vld [vmem:[%s5354_s20] sm:$0xff]  ;;  %v812_v2 = vld [vmem:[%s5354_s20 + $0x1d8] sm:$0xff]  ;;  %v811_v3 = vld [vmem:[%s5354_s20 + $0x1d0] sm:$0xff] }
 0x11a   : > { %739 = vmatmul.mubr.f32.gmra.mrb[2].mxu1 %v5388_v63  ;;  %v4269_v63 = vpack.c.bf16 %v875_v1, %v873_v62  ;;  %v810_v62 = vld [vmem:[%s5354_s20 + $0x1c8] sm:$0xff]  ;;  %v809_v1 = vld [vmem:[%s5354_s20 + $0x1c0] sm:$0xff] }
 0x11c   : > { %4242 = vmatpush1.bf16.msra.mxu0 %v4241_v15  ;;  %v762_v15 = vld [vmem:[%s5354_s20 + $0x48] sm:$0xff] }
 0x11d   : > { %4244 = vmatprep.subr.bf16.mxu0 %v4243_v20  ;;  %v765_v20 = vld [vmem:[%s5354_s20 + $0x60] sm:$0xff] }
 0x120   : > { %4246 = vmatpush1.bf16.msra.mxu0 %v4245_v27  ;;  %v774_v27 = vld [vmem:[%s5354_s20 + $0xa8] sm:$0xff] }
 0x121   : > { %4248 = vmatprep.subr.bf16.mxu0 %v4247_v31  ;;  %v778_v31 = vld [vmem:[%s5354_s20 + $0xc8] sm:$0xff] }
 0x124   : > { %4250 = vmatpush1.bf16.msra.mxu0 %v4249_v37  ;;  %v784_v37 = vld [vmem:[%s5354_s20 + $0xf8] sm:$0xff] }
 0x125   : > { %4252 = vmatprep.subr.bf16.mxu0 %v4251_v38  ;;  %v783_v38 = vld [vmem:[%s5354_s20 + $0xf0] sm:$0xff] }
 0x128   : > { %4254 = vmatpush1.bf16.msra.mxu0 %v4253_v43  ;;  %v790_v43 = vld [vmem:[%s5354_s20 + $0x128] sm:$0xff] }
 0x129   : > { %4256 = vmatprep.subr.bf16.mxu0 %v4255_v44  ;;  %v789_v44 = vld [vmem:[%s5354_s20 + $0x120] sm:$0xff] }
 0x12c   : > { %4258 = vmatpush1.bf16.msra.mxu0 %v4257_v49  ;;  %v796_v49 = vld [vmem:[%s5354_s20 + $0x158] sm:$0xff] }
 0x12d   : > { %4260 = vmatprep.subr.bf16.mxu0 %v4259_v50  ;;  %v795_v50 = vld [vmem:[%s5354_s20 + $0x150] sm:$0xff] }
 0x130   : > { %4262 = vmatpush1.bf16.msra.mxu0 %v4261_v55  ;;  %v802_v55 = vld [vmem:[%s5354_s20 + $0x188] sm:$0xff] }
 0x131   : > { %4264 = vmatprep.subr.bf16.mxu0 %v4263_v57  ;;  %v801_v57 = vld [vmem:[%s5354_s20 + $0x180] sm:$0xff] }
 0x134   : > { %4266 = vmatpush1.bf16.msra.mxu0 %v4265_v0  ;;  %v808_v0 = vld [vmem:[%s5354_s20 + $0x1b8] sm:$0xff] }
 0x135   : > { %4268 = vmatprep.subr.bf16.mxu0 %v4267_v61  ;;  %v807_v61 = vld [vmem:[%s5354_s20 + $0x1b0] sm:$0xff] }
 0x138   : > { %4270 = vmatpush1.bf16.msra.mxu0 %v4269_v63  ;;  %v814_v63 = vld [vmem:[%s5354_s20 + $0x1e8] sm:$0xff] }
 0x139   : > { %4272 = vmatprep.subr.bf16.mxu0 %v4271_v4  ;;  %v813_v4 = vld [vmem:[%s5354_s20 + $0x1e0] sm:$0xff] }
 0x13c   : > { %4274 = vmatpush1.bf16.msra.mxu0 %v4273_v7  ;;  %v537_v7 = vlaneseq }
 0x13f   : > { %958 = vmatmul.mubr.f32.vlgmr.msra.gmra.mrb[4].mxu0 %v753_v8  ;;  %v538_v8 = vshrl.u32 %v537_v7, 7 }
 0x140   : > { %963 = vmatprep.mubr.f32.mxu0 %v756_v9 }
 0x141   : > { %v5458_v9 = vsub.s32 1, %v538_v8 }
 0x143   : > { %964 = vmatmul.mubr.f32.gmra.mrb[6].mxu0 %v755_v10  ;;  %6705 = vst [vmem:[#allocation26_spill] sm:$0xff] %v5458_v9  ;;  %v535_v10 = vld [vmem:[%s6658_s5] sm:$0x3] }
 0x144   : > { %969 = vmatprep.mubr.f32.mxu0 %v758_v11  ;;  %v5463_v11 = vsub.s32 0, %v538_v8 }
 0x146   : > { %6706 = vst [vmem:[#allocation27_spill] sm:$0xff] %v5463_v11 }
 0x147   : > { %970 = vmatmul.mubr.f32.gmra.mrb[8].mxu0 %v757_v12  ;;  %v544_v12 = vrot.slane %v535_v10, %v5458_v9 }
 0x148   : > { %975 = vmatprep.mubr.f32.mxu0 %v760_v13 }
 0x14b   : > { %976 = vmatmul.mubr.f32.gmra.mrb[10].mxu0 %v759_v14  ;;  %v540_v14 = vrot.slane %v535_v10, %v5463_v11 }
 0x14c   : > { %981 = vmatprep.mubr.f32.mxu0 %v762_v15 }
 0x14f   : > { %982 = vmatmul.mubr.f32.gmra.mrb[12].mxu0 %v761_v16 }
 0x150   : > { %987 = vmatprep.mubr.f32.mxu0 %v764_v17 }
 0x153   : > { %988 = vmatmul.mubr.f32.gmra.mrb[14].mxu0 %v763_v18 }
 0x154   : > { %993 = vmatprep.mubr.f32.mxu0 %v766_v19 }
 0x157   : > { %994 = vmatmul.mubr.f32.gmra.mrb[16].mxu0 %v765_v20 }
 0x158   : > { %999 = vmatprep.mubr.f32.mxu0 %v768_v21 }
 0x15b   : > { %1000 = vmatmul.mubr.f32.gmra.mrb[18].mxu0 %v767_v22 }
 0x15c   : > { %1005 = vmatprep.mubr.f32.mxu0 %v770_v23 }
 0x15f   : > { %1006 = vmatmul.mubr.f32.gmra.mrb[20].mxu0 %v769_v24  ;;  %v656_v24 = vld [vmem:[%s6660_s7] sm:$0x3] }
 0x160   : > { %1011 = vmatprep.mubr.f32.mxu0 %v772_v25  ;;  %v5473_v25 = vrot.slane %v656_v24, %v5458_v9 }
 0x163   : > { %1012 = vmatmul.mubr.f32.gmra.mrb[22].mxu0 %v771_v26  ;;  %v661_v26 = vrot.slane %v656_v24, %v5463_v11 }
 0x164   : > { %1017 = vmatprep.mubr.f32.mxu0 %v774_v27 }
 0x167   : > { %1018 = vmatmul.mubr.f32.gmra.mrb[24].mxu0 %v773_v28 }
 0x168   : > { %1023 = vmatprep.mubr.f32.mxu0 %v776_v29 }
 0x16b   : > { %1024 = vmatmul.mubr.f32.gmra.mrb[26].mxu0 %v775_v30 }
 0x16c   : > { %1029 = vmatprep.mubr.f32.mxu0 %v778_v31 }
 0x16f   : > { %1030 = vmatmul.mubr.f32.gmra.mrb[28].mxu0 %v777_v32 }
 0x170   : > { %1035 = vmatprep.mubr.f32.mxu0 %v780_v33 }
 0x173   : > { %1036 = vmatmul.mubr.f32.gmra.mrb[30].mxu0 %v779_v34  ;;  %v881_v34 = vld [vmem:[%s6707_s2] sm:$0x3] }
 0x174   : > { %1041 = vmatprep.mubr.f32.mxu0 %v782_v35  ;;  %v5486_v35 = vrot.slane %v881_v34, %v5463_v11 }
 0x177   : > { %1042 = vmatmul.mubr.f32.gmra.mrb[32].mxu0 %v781_v36  ;;  %v5489_v36 = vrot.slane %v881_v34, %v5458_v9 }
 0x178   : > { %1047 = vmatprep.mubr.f32.mxu0 %v784_v37 }
 0x17b   : > { %1048 = vmatmul.mubr.f32.gmra.mrb[34].mxu0 %v783_v38 }
 0x17c   : > { %1053 = vmatprep.mubr.f32.mxu0 %v786_v39 }
 0x17f   : > { %1054 = vmatmul.mubr.f32.gmra.mrb[36].mxu0 %v785_v40 }
 0x180   : > { %1059 = vmatprep.mubr.f32.mxu0 %v788_v41 }
 0x183   : > { %1060 = vmatmul.mubr.f32.gmra.mrb[38].mxu0 %v787_v42 }
 0x184   : > { %1065 = vmatprep.mubr.f32.mxu0 %v790_v43 }
 0x187   : > { %1066 = vmatmul.mubr.f32.gmra.mrb[40].mxu0 %v789_v44 }
 0x188   : > { %1071 = vmatprep.mubr.f32.mxu0 %v792_v45 }
 0x18b   : > { %1072 = vmatmul.mubr.f32.gmra.mrb[42].mxu0 %v791_v46 }
 0x18c   : > { %1077 = vmatprep.mubr.f32.mxu0 %v794_v47 }
 0x18f   : > { %1078 = vmatmul.mubr.f32.gmra.mrb[44].mxu0 %v793_v48 }
 0x190   : > { %1083 = vmatprep.mubr.f32.mxu0 %v796_v49 }
 0x193   : > { %1084 = vmatmul.mubr.f32.gmra.mrb[46].mxu0 %v795_v50 }
 0x194   : > { %1089 = vmatprep.mubr.f32.mxu0 %v798_v51 }
 0x197   : > { %1090 = vmatmul.mubr.f32.gmra.mrb[48].mxu0 %v797_v52 }
 0x198   : > { %1095 = vmatprep.mubr.f32.mxu0 %v800_v53 }
 0x19b   : > { %1096 = vmatmul.mubr.f32.gmra.mrb[50].mxu0 %v799_v54 }
 0x19c   : > { %1101 = vmatprep.mubr.f32.mxu0 %v802_v55 }
 0x19f   : > { %1102 = vmatmul.mubr.f32.gmra.mrb[52].mxu0 %v801_v57 }
 0x1a0   : > { %1107 = vmatprep.mubr.f32.mxu0 %v804_v58 }
 0x1a3   : > { %1108 = vmatmul.mubr.f32.gmra.mrb[54].mxu0 %v803_v59 }
 0x1a4   : > { %1113 = vmatprep.mubr.f32.mxu0 %v806_v60 }
 0x1a7   : > { %1114 = vmatmul.mubr.f32.gmra.mrb[56].mxu0 %v805_v56 }
 0x1a8   : > { %1119 = vmatprep.mubr.f32.mxu0 %v808_v0 }
 0x1ab   : > { %1120 = vmatmul.mubr.f32.gmra.mrb[58].mxu0 %v807_v61 }
 0x1ac   : > { %1125 = vmatprep.mubr.f32.mxu0 %v810_v62 }
 0x1af   : > { %1126 = vmatmul.mubr.f32.gmra.mrb[60].mxu0 %v809_v1 }
 0x1b0   : > { %1131 = vmatprep.mubr.f32.mxu0 %v812_v2 }
 0x1b3   : > { %1132 = vmatmul.mubr.f32.gmra.mrb[62].mxu0 %v811_v3 }
 0x1b4   : > { %1137 = vmatprep.mubr.f32.mxu0 %v814_v63 }
 0x1b7   : > { %1138 = vmatmul.mubr.f32.gmra.mrb[64].mxu0 %v813_v4 }
 0x1b8   : > { %1143 = vmatprep.mubr.f32.mxu0 %v816_v5 }
 0x1bb   : > { %1144 = vmatmul.mubr.f32.gmra.mrb[66].mxu0 %v815_v6 }
 0x1d2   : > { %v613_v13 = vpop.f32.mrb[0].mxu0 }
 0x1d3   : > { %v615_v15 = vpop.f32.mrb[1].mxu0  ;;  %v614_v18 = vadd.f32 %v613_v13, %v540_v14 }
 0x1d4   : > { %v616_v16 = vadd.f32 %v615_v15, %v544_v12 }
 0x1d6   : > { %v619_v17 = vpop.f32.mrb[2].mxu0 }
 0x1d7   : > { %v620_v19 = vadd.f32 %v619_v17, %v540_v14  ;;  %v621_v20 = vpop.f32.mrb[3].mxu0 }
 0x1d8   : > { %v622_v21 = vadd.f32 %v621_v20, %v544_v12 }
 0x1d9   : > { %v4275_v22 = vpack.c.bf16 %v620_v19, %v614_v18 }
 0x1da   : > { %v5467_v23 = vpack.c.bf16 %v622_v21, %v616_v16 }
 0x1db   : > { %4276 = vmatprep.subr.bf16.mxu0 %v4275_v22  ;;  %4355 = vmatprep.subr.bf16.mxu1 %v4275_v22 }
 0x1dc   : > { %4278 = vmatpush3.bf16.xpose.msra.mxu0 %v4275_v22  ;;  %4356 = vmatpush3.bf16.xpose.msra.mxu1 %v4275_v22 }
 0x1e9   : > { %v734_v27 = vpop.f32.mrb[0].mxu1 }
 0x1ea   : > { %v736_v28 = vpop.f32.mrb[1].mxu1  ;;  %v735_v30 = vadd.f32 %v734_v27, %v661_v26 }
 0x1eb   : > { %v5477_v29 = vadd.f32 %v736_v28, %v5473_v25 }
 0x1ed   : > { %v740_v31 = vpop.f32.mrb[2].mxu1 }
 0x1ee   : > { %v741_v32 = vadd.f32 %v740_v31, %v661_v26 }
 0x1f0   : > { %v5479_v33 = vpack.c.bf16 %v741_v32, %v735_v30 }
 0x1f2   : > { %4280 = vmatprep.subr.bf16.mxu1 %v5479_v33 }
 0x212   : > { %v959_v37 = vpop.f32.mrb[4].mxu0 }
 0x213   : > { %v960_v38 = vadd.f32 %v959_v37, %v5486_v35  ;;  %v961_v39 = vpop.f32.mrb[5].mxu0 }
 0x214   : > { %v5493_v40 = vadd.f32 %v961_v39, %v5489_v36 }
 0x215   : > { %v1150_v41 = vmul.f32 0.088388346, %v960_v38 }
 0x216   : > { %v965_v42 = vpop.f32.mrb[6].mxu0 }
 0x217   : > { %v966_v43 = vadd.f32 %v965_v42, %v5486_v35  ;;  %3943 = vmatprep.mubr.f32.mxu0 %v1150_v41  ;;  %v967_v44 = vpop.f32.mrb[7].mxu0 }
 0x218   : > { %v5497_v45 = vadd.f32 %v967_v44, %v5489_v36 }
 0x219   : > { %v1152_v46 = vmul.f32 0.088388346, %v966_v43 }
 0x21a   : > { %v971_v47 = vpop.f32.mrb[8].mxu0 }
 0x21b   : > { %3944 = vmatmul.mubr.f32.vlgmr.msra.gmra.mrb[68].mxu0 %v1152_v46  ;;  %v972_v48 = vadd.f32 %v971_v47, %v5486_v35  ;;  %v973_v49 = vpop.f32.mrb[9].mxu0 }
 0x21c   : > { %v5501_v50 = vadd.f32 %v973_v49, %v5489_v36 }
 0x21d   : > { %v1154_v51 = vmul.f32 0.088388346, %v972_v48 }
 0x21e   : > { %v977_v52 = vpop.f32.mrb[10].mxu0 }
 0x21f   : > { %v978_v53 = vadd.f32 %v977_v52, %v5486_v35  ;;  %3946 = vmatprep.mubr.f32.mxu0 %v1154_v51  ;;  %v979_v54 = vpop.f32.mrb[11].mxu0 }
 0x220   : > { %v5505_v55 = vadd.f32 %v979_v54, %v5489_v36 }
 0x221   : > { %v1156_v57 = vmul.f32 0.088388346, %v978_v53 }
 0x222   : > { %v983_v58 = vpop.f32.mrb[12].mxu0 }
 0x223   : > { %3947 = vmatmul.mubr.f32.gmra.mrb[70].mxu0 %v1156_v57  ;;  %v984_v59 = vadd.f32 %v983_v58, %v5486_v35  ;;  %v985_v60 = vpop.f32.mrb[13].mxu0 }
 0x224   : > { %v5509_v56 = vadd.f32 %v985_v60, %v5489_v36 }
 0x225   : > { %v1158_v0 = vmul.f32 0.088388346, %v984_v59 }
 0x226   : > { %v989_v61 = vpop.f32.mrb[14].mxu0 }
 0x227   : > { %v990_v62 = vadd.f32 %v989_v61, %v5486_v35  ;;  %3949 = vmatprep.mubr.f32.mxu0 %v1158_v0  ;;  %v991_v1 = vpop.f32.mrb[15].mxu0 }
 0x228   : > { %v5513_v2 = vadd.f32 %v991_v1, %v5489_v36 }
 0x229   : > { %v1160_v3 = vmul.f32 0.088388346, %v990_v62 }
 0x22a   : > { %v995_v63 = vpop.f32.mrb[16].mxu0 }
 0x22b   : > { %3950 = vmatmul.mubr.f32.gmra.mrb[72].mxu0 %v1160_v3  ;;  %v996_v4 = vadd.f32 %v995_v63, %v5486_v35  ;;  %v997_v5 = vpop.f32.mrb[17].mxu0 }
 0x22c   : > { %v5517_v6 = vadd.f32 %v997_v5, %v5489_v36 }
 0x22d   : > { %v1162_v7 = vmul.f32 0.088388346, %v996_v4 }
 0x22e   : > { %v1001_v8 = vpop.f32.mrb[18].mxu0 }
 0x22f   : > { %v1002_v10 = vadd.f32 %v1001_v8, %v5486_v35  ;;  %3952 = vmatprep.mubr.f32.mxu0 %v1162_v7  ;;  %v1003_v12 = vpop.f32.mrb[19].mxu0 }
 0x230   : > { %v5521_v13 = vadd.f32 %v1003_v12, %v5489_v36 }
 0x231   : > { %v1164_v14 = vmul.f32 0.088388346, %v1002_v10 }
 0x232   : > { %v1007_v15 = vpop.f32.mrb[20].mxu0 }
 0x233   : > { %3953 = vmatmul.mubr.f32.gmra.mrb[74].mxu0 %v1164_v14  ;;  %v1008_v16 = vadd.f32 %v1007_v15, %v5486_v35  ;;  %v1009_v17 = vpop.f32.mrb[21].mxu0 }
 0x234   : > { %v5525_v18 = vadd.f32 %v1009_v17, %v5489_v36 }
 0x235   : > { %v1166_v19 = vmul.f32 0.088388346, %v1008_v16 }
 0x236   : > { %v1013_v20 = vpop.f32.mrb[22].mxu0 }
 0x237   : > { %v1014_v21 = vadd.f32 %v1013_v20, %v5486_v35  ;;  %3955 = vmatprep.mubr.f32.mxu0 %v1166_v19  ;;  %v1015_v22 = vpop.f32.mrb[23].mxu0 }
 0x238   : > { %v5529_v24 = vadd.f32 %v1015_v22, %v5489_v36 }
 0x239   : > { %v1168_v26 = vmul.f32 0.088388346, %v1014_v21 }
 0x23a   : > { %v1019_v27 = vpop.f32.mrb[24].mxu0 }
 0x23b   : > { %3956 = vmatmul.mubr.f32.gmra.mrb[76].mxu0 %v1168_v26  ;;  %v1020_v28 = vadd.f32 %v1019_v27, %v5486_v35  ;;  %v1021_v30 = vpop.f32.mrb[25].mxu0 }
 0x23c   : > { %v5533_v31 = vadd.f32 %v1021_v30, %v5489_v36 }
 0x23d   : > { %v1170_v32 = vmul.f32 0.088388346, %v1020_v28 }
 0x23e   : > { %v1025_v34 = vpop.f32.mrb[26].mxu0 }
 0x23f   : > { %v1026_v37 = vadd.f32 %v1025_v34, %v5486_v35  ;;  %3958 = vmatprep.mubr.f32.mxu0 %v1170_v32  ;;  %v1027_v38 = vpop.f32.mrb[27].mxu0 }
 0x240   : > { %v5537_v39 = vadd.f32 %v1027_v38, %v5489_v36 }
 0x241   : > { %v1172_v41 = vmul.f32 0.088388346, %v1026_v37 }
 0x242   : > { %v1031_v42 = vpop.f32.mrb[28].mxu0 }
 0x243   : > { %3959 = vmatmul.mubr.f32.gmra.mrb[78].mxu0 %v1172_v41  ;;  %v1032_v43 = vadd.f32 %v1031_v42, %v5486_v35  ;;  %v1033_v44 = vpop.f32.mrb[29].mxu0 }
 0x244   : > { %v5541_v46 = vadd.f32 %v1033_v44, %v5489_v36 }
 0x245   : > { %v1174_v47 = vmul.f32 0.088388346, %v1032_v43 }
 0x246   : > { %v1037_v48 = vpop.f32.mrb[30].mxu0 }
 0x247   : > { %v1038_v49 = vadd.f32 %v1037_v48, %v5486_v35  ;;  %3961 = vmatprep.mubr.f32.mxu0 %v1174_v47  ;;  %v1039_v51 = vpop.f32.mrb[31].mxu0 }
 0x248   : > { %v5545_v52 = vadd.f32 %v1039_v51, %v5489_v36 }
 0x249   : > { %v1176_v53 = vmul.f32 0.088388346, %v1038_v49 }
 0x24a   : > { %v1043_v54 = vpop.f32.mrb[32].mxu0 }
 0x24b   : > { %3962 = vmatmul.mubr.f32.gmra.mrb[80].mxu0 %v1176_v53  ;;  %v1044_v57 = vadd.f32 %v1043_v54, %v5486_v35  ;;  %v1045_v58 = vpop.f32.mrb[33].mxu0 }
 0x24c   : > { %v5549_v59 = vadd.f32 %v1045_v58, %v5489_v36 }
 0x24d   : > { %v1178_v60 = vmul.f32 0.088388346, %v1044_v57 }
 0x24e   : > { %v1049_v0 = vpop.f32.mrb[34].mxu0 }
 0x24f   : > { %v1050_v61 = vadd.f32 %v1049_v0, %v5486_v35  ;;  %3964 = vmatprep.mubr.f32.mxu0 %v1178_v60  ;;  %v1051_v62 = vpop.f32.mrb[35].mxu0 }
 0x250   : > { %v5553_v1 = vadd.f32 %v1051_v62, %v5489_v36 }
 0x251   : > { %v1180_v3 = vmul.f32 0.088388346, %v1050_v61 }
 0x252   : > { %v1055_v63 = vpop.f32.mrb[36].mxu0 }
 0x253   : > { %3965 = vmatmul.mubr.f32.gmra.mrb[82].mxu0 %v1180_v3  ;;  %v1056_v4 = vadd.f32 %v1055_v63, %v5486_v35  ;;  %v1057_v5 = vpop.f32.mrb[37].mxu0 }
 0x254   : > { %v5557_v7 = vadd.f32 %v1057_v5, %v5489_v36 }
 0x255   : > { %v1182_v8 = vmul.f32 0.088388346, %v1056_v4 }
 0x256   : > { %v1061_v10 = vpop.f32.mrb[38].mxu0 }
 0x257   : > { %v1062_v12 = vadd.f32 %v1061_v10, %v5486_v35  ;;  %3967 = vmatprep.mubr.f32.mxu0 %v1182_v8  ;;  %v1063_v14 = vpop.f32.mrb[39].mxu0 }
 0x258   : > { %v5561_v15 = vadd.f32 %v1063_v14, %v5489_v36 }
 0x259   : > { %v1184_v16 = vmul.f32 0.088388346, %v1062_v12 }
 0x25a   : > { %6708 = vst [vmem:[#allocation28_spill] sm:$0xff] %v5561_v15  ;;  %v1067_v17 = vpop.f32.mrb[40].mxu0 }
 0x25b   : > { %3968 = vmatmul.mubr.f32.gmra.mrb[84].mxu0 %v1184_v16  ;;  %v1068_v19 = vadd.f32 %v1067_v17, %v5486_v35  ;;  %v1069_v20 = vpop.f32.mrb[41].mxu0 }
 0x25c   : > { %v5565_v21 = vadd.f32 %v1069_v20, %v5489_v36 }
 0x25d   : > { %v1186_v22 = vmul.f32 0.088388346, %v1068_v19 }
 0x25e   : > { %6709 = vst [vmem:[#allocation29_spill] sm:$0xff] %v5565_v21  ;;  %v1073_v26 = vpop.f32.mrb[42].mxu0 }
 0x25f   : > { %v1074_v27 = vadd.f32 %v1073_v26, %v5486_v35  ;;  %3970 = vmatprep.mubr.f32.mxu1 %v1186_v22  ;;  %v1075_v28 = vpop.f32.mrb[43].mxu0 }
 0x260   : > { %v5569_v30 = vadd.f32 %v1075_v28, %v5489_v36 }
 0x261   : > { %v1188_v32 = vmul.f32 0.088388346, %v1074_v27 }
 0x262   : > { %6710 = vst [vmem:[#allocation30_spill] sm:$0xff] %v5569_v30  ;;  %v1079_v34 = vpop.f32.mrb[44].mxu0 }
 0x263   : > { %3971 = vmatmul.mubr.f32.vlgmr.msra.gmra.mrb[4].mxu1 %v1188_v32  ;;  %v1080_v37 = vadd.f32 %v1079_v34, %v5486_v35  ;;  %v1081_v38 = vpop.f32.mrb[45].mxu0 }
 0x264   : > { %4282 = vmatpush3.bf16.msra.mxu1 %v5479_v33  ;;  %v5574_v41 = vadd.f32 %v1081_v38, %v5489_v36 }
 0x265   : > { %v1190_v42 = vmul.f32 0.088388346, %v1080_v37  ;;  %4284 = vmatprep.subr.bf16.mxu1 %v5467_v23 }
 0x266   : > { %6711 = vst [vmem:[#allocation31_spill] sm:$0xff] %v5574_v41  ;;  %v1085_v43 = vpop.f32.mrb[46].mxu0 }
 0x267   : > { %v1086_v44 = vadd.f32 %v1085_v43, %v5486_v35  ;;  %3973 = vmatprep.mubr.f32.mxu1 %v1190_v42  ;;  %v1087_v47 = vpop.f32.mrb[47].mxu0 }
 0x268   : > { %v5579_v48 = vadd.f32 %v1087_v47, %v5489_v36 }
 0x269   : > { %v1192_v49 = vmul.f32 0.088388346, %v1086_v44 }
 0x26a   : > { %6712 = vst [vmem:[#allocation32_spill] sm:$0xff] %v5579_v48  ;;  %v1091_v51 = vpop.f32.mrb[48].mxu0 }
 0x26b   : > { %3974 = vmatmul.mubr.f32.gmra.mrb[6].mxu1 %v1192_v49  ;;  %v1092_v53 = vadd.f32 %v1091_v51, %v5486_v35  ;;  %v1093_v33 = vpop.f32.mrb[49].mxu0 }
 0x26c   : > { %v5583_v54 = vadd.f32 %v1093_v33, %v5489_v36 }
 0x26d   : > { %v1194_v57 = vmul.f32 0.088388346, %v1092_v53 }
 0x26e   : > { %6713 = vst [vmem:[#allocation33_spill] sm:$0xff] %v5583_v54  ;;  %v1097_v58 = vpop.f32.mrb[50].mxu0 }
 0x26f   : > { %v1098_v60 = vadd.f32 %v1097_v58, %v5486_v35  ;;  %3976 = vmatprep.mubr.f32.mxu1 %v1194_v57  ;;  %v1099_v0 = vpop.f32.mrb[51].mxu0 }
 0x270   : > { %v5587_v61 = vadd.f32 %v1099_v0, %v5489_v36 }
 0x271   : > { %v1196_v62 = vmul.f32 0.088388346, %v1098_v60 }
 0x272   : > { %6714 = vst [vmem:[#allocation34_spill] sm:$0xff] %v5587_v61  ;;  %v1103_v3 = vpop.f32.mrb[52].mxu0 }
 0x273   : > { %3977 = vmatmul.mubr.f32.gmra.mrb[8].mxu1 %v1196_v62  ;;  %v1104_v63 = vadd.f32 %v1103_v3, %v5486_v35  ;;  %v1105_v4 = vpop.f32.mrb[53].mxu0 }
 0x274   : > { %v5591_v5 = vadd.f32 %v1105_v4, %v5489_v36 }
 0x275   : > { %v1198_v8 = vmul.f32 0.088388346, %v1104_v63 }
 0x276   : > { %6715 = vst [vmem:[#allocation35_spill] sm:$0xff] %v5591_v5  ;;  %v1109_v10 = vpop.f32.mrb[54].mxu0 }
 0x277   : > { %v1110_v12 = vadd.f32 %v1109_v10, %v5486_v35  ;;  %3979 = vmatprep.mubr.f32.mxu1 %v1198_v8  ;;  %v1111_v14 = vpop.f32.mrb[55].mxu0 }
 0x278   : > { %v5595_v16 = vadd.f32 %v1111_v14, %v5489_v36 }
 0x279   : > { %v1200_v17 = vmul.f32 0.088388346, %v1110_v12 }
 0x27a   : > { %6716 = vst [vmem:[#allocation36_spill] sm:$0xff] %v5595_v16  ;;  %v1115_v19 = vpop.f32.mrb[56].mxu0 }
 0x27b   : > { %3980 = vmatmul.mubr.f32.gmra.mrb[10].mxu1 %v1200_v17  ;;  %v1116_v20 = vadd.f32 %v1115_v19, %v5486_v35  ;;  %v1117_v22 = vpop.f32.mrb[57].mxu0  ;;  %v742_v17 = vpop.f32.mrb[3].mxu1 }
 0x27c   : > { %v5599_v26 = vadd.f32 %v1117_v22, %v5489_v36  ;;  %v743_v19 = vadd.f32 %v742_v17, %v5473_v25 }
 0x27d   : > { %v1202_v27 = vmul.f32 0.088388346, %v1116_v20 }
 0x27e   : > { %6717 = vst [vmem:[#allocation37_spill] sm:$0xff] %v5599_v26  ;;  %v1121_v28 = vpop.f32.mrb[58].mxu0  ;;  %v4287_v20 = vpack.c.bf16 %v743_v19, %v5477_v29 }
 0x27f   : > { %v1122_v32 = vadd.f32 %v1121_v28, %v5486_v35  ;;  %3982 = vmatprep.mubr.f32.mxu1 %v1202_v27  ;;  %v1123_v34 = vpop.f32.mrb[59].mxu0 }
 0x280   : > { %v5603_v37 = vadd.f32 %v1123_v34, %v5489_v36  ;;  %4288 = vmatprep.subr.bf16.mxu0 %v4287_v20 }
 0x281   : > { %v1204_v38 = vmul.f32 0.088388346, %v1122_v32  ;;  %4290 = vmatpush3.bf16.msra.mxu0 %v4287_v20 }
 0x282   : > { %6718 = vst [vmem:[#allocation38_spill] sm:$0xff] %v5603_v37  ;;  %v1127_v42 = vpop.f32.mrb[60].mxu0 }
 0x283   : > { %3983 = vmatmul.mubr.f32.gmra.mrb[12].mxu1 %v1204_v38  ;;  %v1128_v43 = vadd.f32 %v1127_v42, %v5486_v35  ;;  %v1129_v44 = vpop.f32.mrb[61].mxu0 }
 0x284   : > { %v5607_v47 = vadd.f32 %v1129_v44, %v5489_v36 }
 0x285   : > { %v1206_v49 = vmul.f32 0.088388346, %v1128_v43 }
 0x286   : > { %6719 = vst [vmem:[#allocation39_spill] sm:$0xff] %v5607_v47  ;;  %v1133_v51 = vpop.f32.mrb[62].mxu0 }
 0x287   : > { %v1134_v53 = vadd.f32 %v1133_v51, %v5486_v35  ;;  %3985 = vmatprep.mubr.f32.mxu1 %v1206_v49  ;;  %v1135_v33 = vpop.f32.mrb[63].mxu0 }
 0x288   : > { %v5611_v57 = vadd.f32 %v1135_v33, %v5489_v36 }
 0x289   : > { %v1208_v58 = vmul.f32 0.088388346, %v1134_v53 }
 0x28a   : > { %6720 = vst [vmem:[#allocation40_spill] sm:$0xff] %v5611_v57  ;;  %v1139_v60 = vpop.f32.mrb[64].mxu0 }
 0x28b   : > { %3986 = vmatmul.mubr.f32.gmra.mrb[14].mxu1 %v1208_v58  ;;  %v1140_v0 = vadd.f32 %v1139_v60, %v5486_v35  ;;  %v1141_v62 = vpop.f32.mrb[65].mxu0 }
 0x28c   : > { %v5615_v3 = vadd.f32 %v1141_v62, %v5489_v36 }
 0x28d   : > { %v1210_v63 = vmul.f32 0.088388346, %v1140_v0 }
 0x28e   : > { %6721 = vst [vmem:[#allocation41_spill] sm:$0xff] %v5615_v3  ;;  %v1145_v4 = vpop.f32.mrb[66].mxu0 }
 0x28f   : > { %v1146_v8 = vadd.f32 %v1145_v4, %v5486_v35  ;;  %3988 = vmatprep.mubr.f32.mxu1 %v1210_v63  ;;  %v1147_v10 = vpop.f32.mrb[67].mxu0 }
 0x290   : > { %v5619_v12 = vadd.f32 %v1147_v10, %v5489_v36 }
 0x291   : > { %v1212_v14 = vmul.f32 0.088388346, %v1146_v8 }
 0x292   : > { %6722 = vst [vmem:[#allocation42_spill] sm:$0xff] %v5619_v12 }
 0x293   : > { %3989 = vmatmul.mubr.f32.gmra.mrb[16].mxu1 %v1212_v14 }
 0x2ee   : > { %v5623_v22 = vpop.f32.mrb[68].mxu0 }
 0x2ef   : > { %v5625_v27 = vpop.f32.mrb[69].mxu0  ;;  %v1451_v36 = vsel %vm1447_vm0, %v5623_v22, -inf }
 0x2f0   : > { %v1448_v35 = vsel %vm1447_vm0, %v5625_v27, -inf }
 0x2f1   : > { %1449 = vmax.xlane.f32.xlu0 %v1448_v35 }
 0x2f5   : > { %1452 = vmax.xlane.f32.xlu0 %v1451_v36 }
 0x2f6   : > { %v5631_v28 = vpop.f32.mrb[70].mxu0 }
 0x2f7   : > { %v5633_v25 = vpop.f32.mrb[71].mxu0  ;;  %v1457_v32 = vsel %vm1447_vm0, %v5631_v28, -inf }
 0x2f8   : > { %v1454_v29 = vsel %vm1447_vm0, %v5633_v25, -inf }
 0x2f9   : > { %1455 = vmax.xlane.f32.xlu1 %v1454_v29 }
 0x2fd   : > { %1458 = vmax.xlane.f32.xlu1 %v1457_v32 }
 0x2fe   : > { %v5639_v34 = vpop.f32.mrb[72].mxu0 }
 0x2ff   : > { %v5641_v38 = vpop.f32.mrb[73].mxu0  ;;  %v1463_v42 = vsel %vm1447_vm0, %v5639_v34, -inf }
 0x300   : > { %v1460_v43 = vsel %vm1447_vm0, %v5641_v38, -inf }
 0x301   : > { %1464 = vmax.xlane.f32.xlu1 %v1463_v42  ;;  %1461 = vmax.xlane.f32.xlu0 %v1460_v43 }
 0x306   : > { %v5647_v44 = vpop.f32.mrb[74].mxu0 }
 0x307   : > { %v5649_v49 = vpop.f32.mrb[75].mxu0  ;;  %v1469_v51 = vsel %vm1447_vm0, %v5647_v44, -inf }
 0x308   : > { %1470 = vmax.xlane.f32.xlu1 %v1469_v51  ;;  %v1466_v53 = vsel %vm1447_vm0, %v5649_v49, -inf }
 0x309   : > { %1467 = vmax.xlane.f32.xlu0 %v1466_v53 }
 0x30e   : > { %v5655_v33 = vpop.f32.mrb[76].mxu0 }
 0x30f   : > { %v5657_v58 = vpop.f32.mrb[77].mxu0  ;;  %v1475_v60 = vsel %vm1447_vm0, %v5655_v33, -inf }
 0x310   : > { %1476 = vmax.xlane.f32.xlu1 %v1475_v60  ;;  %v1472_v0 = vsel %vm1447_vm0, %v5657_v58, -inf }
 0x311   : > { %1473 = vmax.xlane.f32.xlu0 %v1472_v0 }
 0x316   : > { %v5663_v62 = vpop.f32.mrb[78].mxu0 }
 0x317   : > { %v5665_v63 = vpop.f32.mrb[79].mxu0  ;;  %v1481_v4 = vsel %vm1447_vm0, %v5663_v62, -inf }
 0x318   : > { %1482 = vmax.xlane.f32.xlu1 %v1481_v4  ;;  %v1478_v8 = vsel %vm1447_vm0, %v5665_v63, -inf }
 0x319   : > { %1479 = vmax.xlane.f32.xlu0 %v1478_v8 }
 0x31e   : > { %v5671_v10 = vpop.f32.mrb[80].mxu0 }
 0x31f   : > { %v5673_v14 = vpop.f32.mrb[81].mxu0  ;;  %v1487_v17 = vsel %vm1447_vm0, %v5671_v10, -inf }
 0x320   : > { %1488 = vmax.xlane.f32.xlu1 %v1487_v17  ;;  %v1484_v19 = vsel %vm1447_vm0, %v5673_v14, -inf }
 0x321   : > { %1485 = vmax.xlane.f32.xlu0 %v1484_v19 }
 0x326   : > { %v5679_v20 = vpop.f32.mrb[82].mxu0 }
 0x327   : > { %v5681_v35 = vpop.f32.mrb[83].mxu0  ;;  %v1493_v36 = vsel %vm1447_vm0, %v5679_v20, -inf }
 0x328   : > { %1494 = vmax.xlane.f32.xlu1 %v1493_v36  ;;  %v1490_v29 = vsel %vm1447_vm0, %v5681_v35, -inf }
 0x329   : > { %1491 = vmax.xlane.f32.xlu0 %v1490_v29 }
 0x32e   : > { %v5687_v32 = vpop.f32.mrb[84].mxu0 }
 0x32f   : > { %v5689_v42 = vpop.f32.mrb[85].mxu0  ;;  %v1499_v43 = vsel %vm1447_vm0, %v5687_v32, -inf }
 0x330   : > { %1500 = vmax.xlane.f32.xlu1 %v1499_v43  ;;  %v1496_v51 = vsel %vm1447_vm0, %v5689_v42, -inf }
 0x331   : > { %1497 = vmax.xlane.f32.xlu0 %v1496_v51 }
 0x336   : > { %v5695_v53 = vpop.f32.mrb[4].mxu1 }
 0x337   : > { %v5697_v60 = vpop.f32.mrb[5].mxu1  ;;  %v1505_v0 = vsel %vm1447_vm0, %v5695_v53, -inf }
 0x338   : > { %1506 = vmax.xlane.f32.xlu1 %v1505_v0  ;;  %v1502_v4 = vsel %vm1447_vm0, %v5697_v60, -inf }
 0x339   : > { %1503 = vmax.xlane.f32.xlu0 %v1502_v4 }
 0x33e   : > { %v5703_v8 = vpop.f32.mrb[6].mxu1 }
 0x33f   : > { %v5705_v17 = vpop.f32.mrb[7].mxu1  ;;  %v1511_v19 = vsel %vm1447_vm0, %v5703_v8, -inf }
 0x340   : > { %1512 = vmax.xlane.f32.xlu1 %v1511_v19  ;;  %v1508_v36 = vsel %vm1447_vm0, %v5705_v17, -inf }
 0x341   : > { %1509 = vmax.xlane.f32.xlu0 %v1508_v36 }
 0x346   : > { %v5711_v29 = vpop.f32.mrb[8].mxu1 }
 0x347   : > { %v5713_v43 = vpop.f32.mrb[9].mxu1  ;;  %v1517_v51 = vsel %vm1447_vm0, %v5711_v29, -inf }
 0x348   : > { %1518 = vmax.xlane.f32.xlu1 %v1517_v51  ;;  %v1514_v0 = vsel %vm1447_vm0, %v5713_v43, -inf }
 0x349   : > { %1515 = vmax.xlane.f32.xlu0 %v1514_v0 }
 0x34e   : > { %v5719_v4 = vpop.f32.mrb[10].mxu1 }
 0x34f   : > { %v5721_v9 = vpop.f32.mrb[11].mxu1  ;;  %v1523_v19 = vsel %vm1447_vm0, %v5719_v4, -inf }
 0x350   : > { %1524 = vmax.xlane.f32.xlu1 %v1523_v19  ;;  %v1520_v36 = vsel %vm1447_vm0, %v5721_v9, -inf }
 0x351   : > { %1521 = vmax.xlane.f32.xlu0 %v1520_v36 }
 0x356   : > { %v5727_v11 = vpop.f32.mrb[12].mxu1 }
 0x357   : > { %v5729_v12 = vpop.f32.mrb[13].mxu1  ;;  %v1529_v51 = vsel %vm1447_vm0, %v5727_v11, -inf }
 0x358   : > { %1530 = vmax.xlane.f32.xlu1 %v1529_v51  ;;  %v1526_v0 = vsel %vm1447_vm0, %v5729_v12, -inf }
 0x359   : > { %1527 = vmax.xlane.f32.xlu0 %v1526_v0 }
 0x35e   : > { %v5735_v3 = vpop.f32.mrb[14].mxu1 }
 0x35f   : > { %v5737_v57 = vpop.f32.mrb[15].mxu1  ;;  %v1535_v19 = vsel %vm1447_vm0, %v5735_v3, -inf }
 0x360   : > { %1536 = vmax.xlane.f32.xlu1 %v1535_v19  ;;  %v1532_v36 = vsel %vm1447_vm0, %v5737_v57, -inf }
 0x361   : > { %1533 = vmax.xlane.f32.xlu0 %v1532_v36 }
 0x366   : > { %v5743_v47 = vpop.f32.mrb[16].mxu1 }
 0x367   : > { %v5745_v37 = vpop.f32.mrb[17].mxu1  ;;  %v1541_v51 = vsel %vm1447_vm0, %v5743_v47, -inf }
 0x368   : > { %1542 = vmax.xlane.f32.xlu1 %v1541_v51  ;;  %v1538_v0 = vsel %vm1447_vm0, %v5745_v37, -inf }
 0x369   : > { %1539 = vmax.xlane.f32.xlu0 %v1538_v0 }
 0x37e   : > { %v1450_v26 = vpop.xlane.xlu0 %1449 }
 0x37f   : > { %v1544_v16 = vsub.f32 %v5625_v27, %v1450_v26 }
 0x381   : > { %v1576_v19 = vmul.f32 1.442695, %v1544_v16 }
 0x382   : > { %v1453_v5 = vpop.xlane.xlu0 %1452 }
 0x383   : > { %4472 = vpow2.f32 %v1576_v19  ;;  %v1545_v36 = vsub.f32 %v5623_v22, %v1453_v5 }
 0x385   : > { %v1578_v61 = vmul.f32 1.442695, %v1545_v36 }
 0x386   : > { %v1456_v54 = vpop.xlane.xlu1 %1455 }
 0x387   : > { %4474 = vpow2.f32 %v1578_v61  ;;  %v1546_v48 = vsub.f32 %v5633_v25, %v1456_v54 }
 0x389   : > { %v1580_v41 = vmul.f32 1.442695, %v1546_v48 }
 0x38a   : > { %v1459_v30 = vpop.xlane.xlu1 %1458 }
 0x38b   : > { %4476 = vpow2.f32 %v1580_v41  ;;  %v1547_v51 = vsub.f32 %v5631_v28, %v1459_v30 }
 0x38d   : > { %v5755_v21 = vpop.eup %4472  ;;  %v1582_v0 = vmul.f32 1.442695, %v1547_v51 }
 0x38e   : > { %v1465_v15 = vpop.xlane.xlu1 %1464  ;;  %v1462_v26 = vpop.xlane.xlu0 %1461  ;;  %v1640_v16 = vsel %vm1447_vm0, %v5755_v21, 0.0 }
 0x38f   : > { %4478 = vpow2.f32 %v1582_v0  ;;  %v1549_v5 = vsub.f32 %v5639_v34, %v1465_v15  ;;  %v1548_v61 = vsub.f32 %v5641_v38, %v1462_v26  ;;  %1641 = vadd.xlane.f32.xlu0 %v1640_v16 }
 0x391   : > { %v5761_v54 = vpop.eup %4474  ;;  %v1586_v48 = vmul.f32 1.442695, %v1549_v5  ;;  %v1584_v41 = vmul.f32 1.442695, %v1548_v61 }
 0x392   : > { %v1643_v30 = vsel %vm1447_vm0, %v5761_v54, 0.0 }
 0x393   : > { %4480 = vpow2.f32 %v1586_v48  ;;  %1644 = vadd.xlane.f32.xlu1 %v1643_v30 }
 0x394   : > { %4482 = vpow2.f32 %v1584_v41 }
 0x395   : > { %v5765_v22 = vpop.eup %4476  ;;  %v1471_v27 = vpop.xlane.xlu1 %1470 }
 0x396   : > { %v1551_v28 = vsub.f32 %v5647_v44, %v1471_v27  ;;  %v1468_v25 = vpop.xlane.xlu0 %1467  ;;  %v1646_v15 = vsel %vm1447_vm0, %v5765_v22, 0.0 }
 0x397   : > { %v1550_v34 = vsub.f32 %v5649_v49, %v1468_v25  ;;  %1647 = vadd.xlane.f32.xlu0 %v1646_v15 }
 0x398   : > { %v1590_v38 = vmul.f32 1.442695, %v1551_v28 }
 0x399   : > { %v5771_v19 = vpop.eup %4478  ;;  %v1588_v36 = vmul.f32 1.442695, %v1550_v34 }
 0x39a   : > { %4484 = vpow2.f32 %v1590_v38  ;;  %v1649_v51 = vsel %vm1447_vm0, %v5771_v19, 0.0 }
 0x39b   : > { %4486 = vpow2.f32 %v1588_v36  ;;  %1650 = vadd.xlane.f32.xlu1 %v1649_v51 }
 0x39d   : > { %v5775_v0 = vpop.eup %4480  ;;  %v1477_v44 = vpop.xlane.xlu1 %1476 }
 0x39e   : > { %v5777_v26 = vpop.eup %4482  ;;  %v1553_v16 = vsub.f32 %v5655_v33, %v1477_v44  ;;  %v1474_v5 = vpop.xlane.xlu0 %1473  ;;  %v1655_v49 = vsel %vm1447_vm0, %v5775_v0, 0.0 }
 0x39f   : > { %v1552_v61 = vsub.f32 %v5657_v58, %v1474_v5  ;;  %1656 = vadd.xlane.f32.xlu1 %v1655_v49  ;;  %v1652_v48 = vsel %vm1447_vm0, %v5777_v26, 0.0 }
 0x3a0   : > { %v1594_v41 = vmul.f32 1.442695, %v1553_v16  ;;  %1653 = vadd.xlane.f32.xlu0 %v1652_v48 }
 0x3a1   : > { %v1592_v30 = vmul.f32 1.442695, %v1552_v61 }
 0x3a2   : > { %4488 = vpow2.f32 %v1594_v41 }
 0x3a3   : > { %4490 = vpow2.f32 %v1592_v30 }
 0x3a4   : > { %v5785_v27 = vpop.eup %4484 }
 0x3a5   : > { %v5787_v28 = vpop.eup %4486  ;;  %v1483_v33 = vpop.xlane.xlu1 %1482  ;;  %v1661_v25 = vsel %vm1447_vm0, %v5785_v27, 0.0 }
 0x3a6   : > { %v1555_v15 = vsub.f32 %v5663_v62, %v1483_v33  ;;  %v1480_v58 = vpop.xlane.xlu0 %1479  ;;  %1662 = vadd.xlane.f32.xlu1 %v1661_v25  ;;  %v1658_v34 = vsel %vm1447_vm0, %v5787_v28, 0.0 }
 0x3a7   : > { %v1554_v38 = vsub.f32 %v5665_v63, %v1480_v58  ;;  %1659 = vadd.xlane.f32.xlu0 %v1658_v34 }
 0x3a8   : > { %v1598_v36 = vmul.f32 1.442695, %v1555_v15 }
 0x3a9   : > { %v1596_v51 = vmul.f32 1.442695, %v1554_v38 }
 0x3aa   : > { %4492 = vpow2.f32 %v1598_v36 }
 0x3ab   : > { %4494 = vpow2.f32 %v1596_v51 }
 0x3ac   : > { %v5795_v44 = vpop.eup %4488 }
 0x3ad   : > { %v5797_v16 = vpop.eup %4490  ;;  %v1489_v5 = vpop.xlane.xlu1 %1488  ;;  %v1667_v62 = vsel %vm1447_vm0, %v5795_v44, 0.0 }
 0x3ae   : > { %v1557_v49 = vsub.f32 %v5671_v10, %v1489_v5  ;;  %v1486_v61 = vpop.xlane.xlu0 %1485  ;;  %1668 = vadd.xlane.f32.xlu1 %v1667_v62  ;;  %v1664_v63 = vsel %vm1447_vm0, %v5797_v16, 0.0 }
 0x3af   : > { %v1556_v48 = vsub.f32 %v5673_v14, %v1486_v61  ;;  %1665 = vadd.xlane.f32.xlu0 %v1664_v63 }
 0x3b0   : > { %v1602_v41 = vmul.f32 1.442695, %v1557_v49 }
 0x3b1   : > { %v1600_v30 = vmul.f32 1.442695, %v1556_v48 }
 0x3b2   : > { %4496 = vpow2.f32 %v1602_v41 }
 0x3b3   : > { %4498 = vpow2.f32 %v1600_v30 }
 0x3b4   : > { %v5805_v33 = vpop.eup %4492 }
 0x3b5   : > { %v5807_v25 = vpop.eup %4494  ;;  %v1495_v15 = vpop.xlane.xlu1 %1494  ;;  %v1673_v10 = vsel %vm1447_vm0, %v5805_v33, 0.0 }
 0x3b6   : > { %v1559_v58 = vsub.f32 %v5679_v20, %v1495_v15  ;;  %v1492_v34 = vpop.xlane.xlu0 %1491  ;;  %1674 = vadd.xlane.f32.xlu1 %v1673_v10  ;;  %v1670_v14 = vsel %vm1447_vm0, %v5807_v25, 0.0 }
 0x3b7   : > { %v1558_v38 = vsub.f32 %v5681_v35, %v1492_v34  ;;  %1671 = vadd.xlane.f32.xlu0 %v1670_v14 }
 0x3b8   : > { %v1606_v36 = vmul.f32 1.442695, %v1559_v58 }
 0x3b9   : > { %v1604_v51 = vmul.f32 1.442695, %v1558_v38 }
 0x3ba   : > { %4500 = vpow2.f32 %v1606_v36 }
 0x3bb   : > { %4502 = vpow2.f32 %v1604_v51 }
 0x3bc   : > { %v5815_v5 = vpop.eup %4496 }
 0x3bd   : > { %v5817_v62 = vpop.eup %4498  ;;  %v1501_v49 = vpop.xlane.xlu1 %1500  ;;  %v1679_v20 = vsel %vm1447_vm0, %v5815_v5, 0.0 }
 0x3be   : > { %v1561_v61 = vsub.f32 %v5687_v32, %v1501_v49  ;;  %1680 = vadd.xlane.f32.xlu1 %v1679_v20  ;;  %v1498_v63 = vpop.xlane.xlu0 %1497  ;;  %v1676_v35 = vsel %vm1447_vm0, %v5817_v62, 0.0 }
 0x3bf   : > { %v1560_v48 = vsub.f32 %v5689_v42, %v1498_v63  ;;  %1677 = vadd.xlane.f32.xlu0 %v1676_v35 }
 0x3c0   : > { %v1610_v41 = vmul.f32 1.442695, %v1561_v61 }
 0x3c1   : > { %v1608_v30 = vmul.f32 1.442695, %v1560_v48 }
 0x3c2   : > { %4504 = vpow2.f32 %v1610_v41 }
 0x3c3   : > { %4506 = vpow2.f32 %v1608_v30 }
 0x3c4   : > { %v5825_v15 = vpop.eup %4500 }
 0x3c5   : > { %v5827_v10 = vpop.eup %4502  ;;  %v1507_v58 = vpop.xlane.xlu1 %1506  ;;  %v1685_v32 = vsel %vm1447_vm0, %v5825_v15, 0.0 }
 0x3c6   : > { %v1563_v34 = vsub.f32 %v5695_v53, %v1507_v58  ;;  %1686 = vadd.xlane.f32.xlu1 %v1685_v32  ;;  %v1504_v14 = vpop.xlane.xlu0 %1503  ;;  %v1682_v42 = vsel %vm1447_vm0, %v5827_v10, 0.0 }
 0x3c7   : > { %v1562_v38 = vsub.f32 %v5697_v60, %v1504_v14  ;;  %1683 = vadd.xlane.f32.xlu0 %v1682_v42 }
 0x3c8   : > { %v1614_v36 = vmul.f32 1.442695, %v1563_v34 }
 0x3c9   : > { %v1612_v51 = vmul.f32 1.442695, %v1562_v38 }
 0x3ca   : > { %4508 = vpow2.f32 %v1614_v36 }
 0x3cb   : > { %4510 = vpow2.f32 %v1612_v51 }
 0x3cc   : > { %v5835_v49 = vpop.eup %4504 }
 0x3cd   : > { %v5837_v20 = vpop.eup %4506  ;;  %v1513_v61 = vpop.xlane.xlu1 %1512  ;;  %v1691_v53 = vsel %vm1447_vm0, %v5835_v49, 0.0 }
 0x3ce   : > { %v1565_v63 = vsub.f32 %v5703_v8, %v1513_v61  ;;  %1692 = vadd.xlane.f32.xlu1 %v1691_v53  ;;  %v1510_v35 = vpop.xlane.xlu0 %1509  ;;  %v1688_v60 = vsel %vm1447_vm0, %v5837_v20, 0.0 }
 0x3cf   : > { %v1564_v48 = vsub.f32 %v5705_v17, %v1510_v35  ;;  %1689 = vadd.xlane.f32.xlu0 %v1688_v60 }
 0x3d0   : > { %v1618_v41 = vmul.f32 1.442695, %v1565_v63 }
 0x3d1   : > { %v1616_v30 = vmul.f32 1.442695, %v1564_v48 }
 0x3d2   : > { %4512 = vpow2.f32 %v1618_v41 }
 0x3d3   : > { %4514 = vpow2.f32 %v1616_v30 }
 0x3d4   : > { %v5845_v58 = vpop.eup %4508 }
 0x3d5   : > { %v5847_v32 = vpop.eup %4510  ;;  %v1519_v34 = vpop.xlane.xlu1 %1518  ;;  %v1697_v8 = vsel %vm1447_vm0, %v5845_v58, 0.0 }
 0x3d6   : > { %v1567_v14 = vsub.f32 %v5711_v29, %v1519_v34  ;;  %1698 = vadd.xlane.f32.xlu1 %v1697_v8  ;;  %v1516_v42 = vpop.xlane.xlu0 %1515  ;;  %v1694_v17 = vsel %vm1447_vm0, %v5847_v32, 0.0 }
 0x3d7   : > { %v1566_v38 = vsub.f32 %v5713_v43, %v1516_v42  ;;  %1695 = vadd.xlane.f32.xlu0 %v1694_v17 }
 0x3d8   : > { %v1622_v36 = vmul.f32 1.442695, %v1567_v14 }
 0x3d9   : > { %v1620_v51 = vmul.f32 1.442695, %v1566_v38 }
 0x3da   : > { %4516 = vpow2.f32 %v1622_v36 }
 0x3db   : > { %4518 = vpow2.f32 %v1620_v51 }
 0x3dc   : > { %v5855_v61 = vpop.eup %4512 }
 0x3dd   : > { %v5857_v53 = vpop.eup %4514  ;;  %v1525_v63 = vpop.xlane.xlu1 %1524  ;;  %v1703_v29 = vsel %vm1447_vm0, %v5855_v61, 0.0 }
 0x3de   : > { %v1569_v35 = vsub.f32 %v5719_v4, %v1525_v63  ;;  %1704 = vadd.xlane.f32.xlu1 %v1703_v29  ;;  %v1522_v60 = vpop.xlane.xlu0 %1521  ;;  %v1700_v43 = vsel %vm1447_vm0, %v5857_v53, 0.0 }
 0x3df   : > { %v1568_v48 = vsub.f32 %v5721_v9, %v1522_v60  ;;  %1701 = vadd.xlane.f32.xlu0 %v1700_v43 }
 0x3e0   : > { %v1626_v41 = vmul.f32 1.442695, %v1569_v35 }
 0x3e1   : > { %v1624_v30 = vmul.f32 1.442695, %v1568_v48 }
 0x3e2   : > { %4520 = vpow2.f32 %v1626_v41 }
 0x3e3   : > { %4522 = vpow2.f32 %v1624_v30 }
 0x3e4   : > { %v5865_v34 = vpop.eup %4516 }
 0x3e5   : > { %v5867_v8 = vpop.eup %4518  ;;  %v1531_v14 = vpop.xlane.xlu1 %1530  ;;  %v1709_v4 = vsel %vm1447_vm0, %v5865_v34, 0.0 }
 0x3e6   : > { %v1571_v42 = vsub.f32 %v5727_v11, %v1531_v14  ;;  %1710 = vadd.xlane.f32.xlu1 %v1709_v4  ;;  %v1528_v17 = vpop.xlane.xlu0 %1527  ;;  %v1706_v9 = vsel %vm1447_vm0, %v5867_v8, 0.0 }
 0x3e7   : > { %v1570_v38 = vsub.f32 %v5729_v12, %v1528_v17  ;;  %1707 = vadd.xlane.f32.xlu0 %v1706_v9 }
 0x3e8   : > { %v1630_v36 = vmul.f32 1.442695, %v1571_v42 }
 0x3e9   : > { %v1628_v51 = vmul.f32 1.442695, %v1570_v38 }
 0x3ea   : > { %4524 = vpow2.f32 %v1630_v36 }
 0x3eb   : > { %4526 = vpow2.f32 %v1628_v51 }
 0x3ec   : > { %v5875_v63 = vpop.eup %4520 }
 0x3ed   : > { %v5877_v29 = vpop.eup %4522  ;;  %v1537_v35 = vpop.xlane.xlu1 %1536  ;;  %v1715_v11 = vsel %vm1447_vm0, %v5875_v63, 0.0 }
 0x3ee   : > { %v1573_v60 = vsub.f32 %v5735_v3, %v1537_v35  ;;  %1716 = vadd.xlane.f32.xlu1 %v1715_v11  ;;  %v1534_v43 = vpop.xlane.xlu0 %1533  ;;  %v1712_v12 = vsel %vm1447_vm0, %v5877_v29, 0.0 }
 0x3ef   : > { %v1572_v48 = vsub.f32 %v5737_v57, %v1534_v43  ;;  %1713 = vadd.xlane.f32.xlu0 %v1712_v12 }
 0x3f0   : > { %v1634_v41 = vmul.f32 1.442695, %v1573_v60 }
 0x3f1   : > { %v1632_v30 = vmul.f32 1.442695, %v1572_v48 }
 0x3f2   : > { %4528 = vpow2.f32 %v1634_v41 }
 0x3f3   : > { %4530 = vpow2.f32 %v1632_v30 }
 0x3f4   : > { %v5885_v14 = vpop.eup %4524 }
 0x3f5   : > { %v5887_v4 = vpop.eup %4526  ;;  %v1543_v42 = vpop.xlane.xlu1 %1542  ;;  %v1721_v3 = vsel %vm1447_vm0, %v5885_v14, 0.0 }
 0x3f6   : > { %v1575_v17 = vsub.f32 %v5743_v47, %v1543_v42  ;;  %1722 = vadd.xlane.f32.xlu1 %v1721_v3  ;;  %v1540_v9 = vpop.xlane.xlu0 %1539  ;;  %v1718_v57 = vsel %vm1447_vm0, %v5887_v4, 0.0 }
 0x3f7   : > { %v1574_v38 = vsub.f32 %v5745_v37, %v1540_v9  ;;  %1719 = vadd.xlane.f32.xlu0 %v1718_v57 }
 0x3f8   : > { %v1638_v36 = vmul.f32 1.442695, %v1575_v17 }
 0x3f9   : > { %v1636_v51 = vmul.f32 1.442695, %v1574_v38 }
 0x3fa   : > { %4532 = vpow2.f32 %v1638_v36 }
 0x3fb   : > { %4534 = vpow2.f32 %v1636_v51 }
 0x3fc   : > { %v5895_v35 = vpop.eup %4528 }
 0x3fd   : > { %v5897_v11 = vpop.eup %4530  ;;  %v1727_v60 = vsel %vm1447_vm0, %v5895_v35, 0.0 }
 0x3fe   : > { %1728 = vadd.xlane.f32.xlu1 %v1727_v60  ;;  %v1724_v47 = vsel %vm1447_vm0, %v5897_v11, 0.0 }
 0x3ff   : > { %1725 = vadd.xlane.f32.xlu0 %v1724_v47 }
 0x404   : > { %v5903_v43 = vpop.eup %4532 }
 0x405   : > { %v5905_v37 = vpop.eup %4534  ;;  %v1733_v12 = vsel %vm1447_vm0, %v5903_v43, 0.0 }
 0x406   : > { %1734 = vadd.xlane.f32.xlu1 %v1733_v12  ;;  %v1730_v48 = vsel %vm1447_vm0, %v5905_v37, 0.0 }
 0x407   : > { %1731 = vadd.xlane.f32.xlu0 %v1730_v48 }
 0x41c   : > { %v1642_v41 = vpop.xlane.xlu0 %1641 }
 0x41d   : > { %4536 = vrcp.f32 %v1642_v41 }
 0x420   : > { %v1645_v30 = vpop.xlane.xlu1 %1644 }
 0x421   : > { %4538 = vrcp.f32 %v1645_v30 }
 0x424   : > { %v1648_v42 = vpop.xlane.xlu0 %1647 }
 0x425   : > { %4540 = vrcp.f32 %v1648_v42 }
 0x427   : > { %v4537_v3 = vpop.eup %4536 }
 0x428   : > { %v1651_v17 = vpop.xlane.xlu1 %1650  ;;  %v1737_v9 = vmul.f32 %v4537_v3, %v5755_v21 }
 0x429   : > { %4542 = vrcp.f32 %v1651_v17 }
 0x42a   : > { %3995 = vmatprep.mubr.msk.f32.mxu1 %vm1447_vm0, %v1737_v9 }
 0x42b   : > { %v4539_v57 = vpop.eup %4538 }
 0x42c   : > { %v1739_v38 = vmul.f32 %v4539_v57, %v5761_v54  ;;  %v1657_v36 = vpop.xlane.xlu1 %1656 }
 0x42d   : > { %4544 = vrcp.f32 %v1657_v36  ;;  %v1654_v51 = vpop.xlane.xlu0 %1653 }
 0x42e   : > { %4546 = vrcp.f32 %v1654_v51  ;;  %3996 = vmatmul.mubr.msk.f32.vlgmr.msra.gmra.mrb[18].mxu1 %vm1447_vm0, %v1739_v38 }
 0x42f   : > { %v4541_v60 = vpop.eup %4540  ;;  %4286 = vmatpush3.bf16.xpose.msra.mxu1 %v5467_v23 }
 0x430   : > { %v1741_v47 = vmul.f32 %v4541_v60, %v5765_v22 }
 0x432   : > { %3998 = vmatprep.mubr.msk.f32.mxu1 %vm1447_vm0, %v1741_v47 }
 0x433   : > { %v4543_v21 = vpop.eup %4542  ;;  %v1663_v12 = vpop.xlane.xlu1 %1662 }
 0x434   : > { %4548 = vrcp.f32 %v1663_v12  ;;  %v1660_v48 = vpop.xlane.xlu0 %1659  ;;  %v1743_v41 = vmul.f32 %v4543_v21, %v5771_v19 }
 0x435   : > { %4550 = vrcp.f32 %v1660_v48 }
 0x436   : > { %3999 = vmatmul.mubr.msk.f32.gmra.mrb[20].mxu1 %vm1447_vm0, %v1743_v41 }
 0x437   : > { %v4545_v54 = vpop.eup %4544 }
 0x438   : > { %v4547_v30 = vpop.eup %4546  ;;  %v1747_v42 = vmul.f32 %v4545_v54, %v5775_v0 }
 0x439   : > { %v1745_v3 = vmul.f32 %v4547_v30, %v5777_v26 }
 0x43b   : > { %4001 = vmatprep.mubr.msk.f32.mxu1 %vm1447_vm0, %v1745_v3  ;;  %v1669_v23 = vpop.xlane.xlu1 %1668 }
 0x43c   : > { %4552 = vrcp.f32 %v1669_v23  ;;  %4002 = vmatmul.mubr.msk.f32.gmra.mrb[22].mxu1 %vm1447_vm0, %v1747_v42  ;;  %v1666_v22 = vpop.xlane.xlu0 %1665 }
 0x43d   : > { %4554 = vrcp.f32 %v1666_v22 }
 0x43e   : > { %v4549_v17 = vpop.eup %4548 }
 0x43f   : > { %v4551_v9 = vpop.eup %4550  ;;  %v1751_v57 = vmul.f32 %v4549_v17, %v5785_v27 }
 0x440   : > { %v1749_v19 = vmul.f32 %v4551_v9, %v5787_v28 }
 0x442   : > { %4004 = vmatprep.mubr.msk.f32.mxu1 %vm1447_vm0, %v1749_v19 }
 0x443   : > { %v1675_v38 = vpop.xlane.xlu1 %1674  ;;  %4005 = vmatmul.mubr.msk.f32.gmra.mrb[24].mxu1 %vm1447_vm0, %v1751_v57 }
 0x444   : > { %4556 = vrcp.f32 %v1675_v38  ;;  %v1672_v0 = vpop.xlane.xlu0 %1671 }
 0x445   : > { %4558 = vrcp.f32 %v1672_v0 }
 0x446   : > { %v4553_v26 = vpop.eup %4552 }
 0x447   : > { %v4555_v36 = vpop.eup %4554  ;;  %v1755_v60 = vmul.f32 %v4553_v26, %v5795_v44 }
 0x448   : > { %v1753_v51 = vmul.f32 %v4555_v36, %v5797_v16 }
 0x44a   : > { %4007 = vmatprep.mubr.msk.f32.mxu1 %vm1447_vm0, %v1753_v51 }
 0x44b   : > { %v1681_v47 = vpop.xlane.xlu1 %1680  ;;  %4008 = vmatmul.mubr.msk.f32.gmra.mrb[26].mxu1 %vm1447_vm0, %v1755_v60 }
 0x44c   : > { %4560 = vrcp.f32 %v1681_v47  ;;  %v1678_v27 = vpop.xlane.xlu0 %1677 }
 0x44d   : > { %4562 = vrcp.f32 %v1678_v27 }
 0x44e   : > { %v4557_v28 = vpop.eup %4556 }
 0x44f   : > { %v4559_v21 = vpop.eup %4558  ;;  %v1759_v48 = vmul.f32 %v4557_v28, %v5805_v33 }
 0x450   : > { %v1757_v12 = vmul.f32 %v4559_v21, %v5807_v25 }
 0x452   : > { %4010 = vmatprep.mubr.msk.f32.mxu1 %vm1447_vm0, %v1757_v12 }
 0x453   : > { %v1687_v41 = vpop.xlane.xlu1 %1686  ;;  %4011 = vmatmul.mubr.msk.f32.gmra.mrb[28].mxu1 %vm1447_vm0, %v1759_v48 }
 0x454   : > { %4564 = vrcp.f32 %v1687_v41  ;;  %v1684_v44 = vpop.xlane.xlu0 %1683 }
 0x455   : > { %4566 = vrcp.f32 %v1684_v44 }
 0x456   : > { %v4561_v16 = vpop.eup %4560 }
 0x457   : > { %v4563_v54 = vpop.eup %4562  ;;  %v1763_v42 = vmul.f32 %v4561_v16, %v5815_v5 }
 0x458   : > { %v1761_v30 = vmul.f32 %v4563_v54, %v5817_v62 }
 0x45a   : > { %4013 = vmatprep.mubr.msk.f32.mxu1 %vm1447_vm0, %v1761_v30 }
 0x45b   : > { %v1693_v3 = vpop.xlane.xlu1 %1692  ;;  %4014 = vmatmul.mubr.msk.f32.gmra.mrb[30].mxu1 %vm1447_vm0, %v1763_v42 }
 0x45c   : > { %4568 = vrcp.f32 %v1693_v3  ;;  %v1690_v33 = vpop.xlane.xlu0 %1689 }
 0x45d   : > { %4570 = vrcp.f32 %v1690_v33 }
 0x45e   : > { %v4565_v25 = vpop.eup %4564 }
 0x45f   : > { %v4567_v23 = vpop.eup %4566  ;;  %v1767_v17 = vmul.f32 %v4565_v25, %v5825_v15 }
 0x460   : > { %v1765_v22 = vmul.f32 %v4567_v23, %v5827_v10 }
 0x462   : > { %4016 = vmatprep.mubr.msk.f32.mxu1 %vm1447_vm0, %v1765_v22 }
 0x463   : > { %v1699_v9 = vpop.xlane.xlu1 %1698  ;;  %4017 = vmatmul.mubr.msk.f32.gmra.mrb[32].mxu1 %vm1447_vm0, %v1767_v17 }
 0x464   : > { %4572 = vrcp.f32 %v1699_v9  ;;  %v1696_v5 = vpop.xlane.xlu0 %1695 }
 0x465   : > { %4574 = vrcp.f32 %v1696_v5 }
 0x466   : > { %v4569_v62 = vpop.eup %4568 }
 0x467   : > { %v4571_v19 = vpop.eup %4570  ;;  %v1771_v38 = vmul.f32 %v4569_v62, %v5835_v49 }
 0x468   : > { %v1769_v57 = vmul.f32 %v4571_v19, %v5837_v20  ;;  %v1151_v19 = vmul.f32 0.088388346, %v5493_v40  ;;  %v1163_v40 = vmul.f32 0.088388346, %v5517_v6  ;;  %v1177_v6 = vmul.f32 0.088388346, %v5545_v52 }
 0x46a   : > { %4019 = vmatprep.mubr.msk.f32.mxu1 %vm1447_vm0, %v1769_v57  ;;  %v1157_v57 = vmul.f32 0.088388346, %v5505_v55  ;;  %v1171_v55 = vmul.f32 0.088388346, %v5533_v31  ;;  %v6723_v31 = vld [vmem:[#allocation28_spill] sm:$0xff] }
 0x46b   : > { %v1705_v0 = vpop.xlane.xlu1 %1704  ;;  %4020 = vmatmul.mubr.msk.f32.gmra.mrb[34].mxu1 %vm1447_vm0, %v1771_v38  ;;  %v1159_v38 = vmul.f32 0.088388346, %v5509_v56  ;;  %v1173_v56 = vmul.f32 0.088388346, %v5537_v39 }
 0x46c   : > { %4576 = vrcp.f32 %v1705_v0  ;;  %v1702_v15 = vpop.xlane.xlu0 %1701  ;;  %v1185_v0 = vmul.f32 0.088388346, %v6723_v31 }
 0x46d   : > { %4578 = vrcp.f32 %v1702_v15  ;;  %v6724_v15 = vld [vmem:[#allocation29_spill] sm:$0xff] }
 0x46e   : > { %v4573_v10 = vpop.eup %4572  ;;  %v1187_v39 = vmul.f32 0.088388346, %v6724_v15 }
 0x46f   : > { %v4575_v26 = vpop.eup %4574  ;;  %v1775_v51 = vmul.f32 %v4573_v10, %v5845_v58 }
 0x470   : > { %v1773_v36 = vmul.f32 %v4575_v26, %v5847_v32  ;;  %v6726_v26 = vld [vmem:[#allocation31_spill] sm:$0xff] }
 0x471   : > { %v1191_v52 = vmul.f32 0.088388346, %v6726_v26 }
 0x472   : > { %4022 = vmatprep.mubr.msk.f32.mxu1 %vm1447_vm0, %v1773_v36 }
 0x473   : > { %v1711_v60 = vpop.xlane.xlu1 %1710  ;;  %4023 = vmatmul.mubr.msk.f32.gmra.mrb[36].mxu1 %vm1447_vm0, %v1775_v51  ;;  %v6728_v51 = vld [vmem:[#allocation33_spill] sm:$0xff] }
 0x474   : > { %4580 = vrcp.f32 %v1711_v60  ;;  %v1708_v49 = vpop.xlane.xlu0 %1707 }
 0x475   : > { %4582 = vrcp.f32 %v1708_v49  ;;  %v6730_v49 = vld [vmem:[#allocation35_spill] sm:$0xff] }
 0x476   : > { %v4577_v20 = vpop.eup %4576 }
 0x477   : > { %v4579_v47 = vpop.eup %4578  ;;  %v1779_v28 = vmul.f32 %v4577_v20, %v5855_v61  ;;  %v1199_v20 = vmul.f32 0.088388346, %v6730_v49 }
 0x478   : > { %v1777_v27 = vmul.f32 %v4579_v47, %v5857_v53  ;;  %v6731_v47 = vld [vmem:[#allocation36_spill] sm:$0xff] }
 0x47a   : > { %4025 = vmatprep.mubr.msk.f32.mxu1 %vm1447_vm0, %v1777_v27  ;;  %v1201_v27 = vmul.f32 0.088388346, %v6731_v47 }
 0x47b   : > { %v1717_v21 = vpop.xlane.xlu1 %1716  ;;  %4026 = vmatmul.mubr.msk.f32.gmra.mrb[38].mxu1 %vm1447_vm0, %v1779_v28  ;;  %v6732_v28 = vld [vmem:[#allocation37_spill] sm:$0xff] }
 0x47c   : > { %4584 = vrcp.f32 %v1717_v21  ;;  %v1714_v58 = vpop.xlane.xlu0 %1713  ;;  %v1203_v21 = vmul.f32 0.088388346, %v6732_v28 }
 0x47d   : > { %4586 = vrcp.f32 %v1714_v58  ;;  %v6733_v58 = vld [vmem:[#allocation38_spill] sm:$0xff] }
 0x47e   : > { %v4581_v32 = vpop.eup %4580 }
 0x47f   : > { %v4583_v12 = vpop.eup %4582  ;;  %v1783_v41 = vmul.f32 %v4581_v32, %v5865_v34  ;;  %v1205_v32 = vmul.f32 0.088388346, %v6733_v58 }
 0x480   : > { %v1781_v48 = vmul.f32 %v4583_v12, %v5867_v8  ;;  %v6734_v12 = vld [vmem:[#allocation39_spill] sm:$0xff] }
 0x482   : > { %4028 = vmatprep.mubr.msk.f32.mxu1 %vm1447_vm0, %v1781_v48  ;;  %v1207_v48 = vmul.f32 0.088388346, %v6734_v12 }
 0x483   : > { %v1723_v44 = vpop.xlane.xlu1 %1722  ;;  %4029 = vmatmul.mubr.msk.f32.gmra.mrb[40].mxu1 %vm1447_vm0, %v1783_v41  ;;  %v6735_v41 = vld [vmem:[#allocation40_spill] sm:$0xff] }
 0x484   : > { %4588 = vrcp.f32 %v1723_v44  ;;  %v1720_v61 = vpop.xlane.xlu0 %1719  ;;  %v1209_v44 = vmul.f32 0.088388346, %v6735_v41 }
 0x485   : > { %4590 = vrcp.f32 %v1720_v61  ;;  %v6736_v61 = vld [vmem:[#allocation41_spill] sm:$0xff] }
 0x486   : > { %v4585_v53 = vpop.eup %4584 }
 0x487   : > { %v4587_v16 = vpop.eup %4586  ;;  %v1787_v30 = vmul.f32 %v4585_v53, %v5875_v63  ;;  %v1211_v53 = vmul.f32 0.088388346, %v6736_v61 }
 0x488   : > { %v1785_v54 = vmul.f32 %v4587_v16, %v5877_v29  ;;  %v6737_v16 = vld [vmem:[#allocation42_spill] sm:$0xff] }
 0x48a   : > { %4031 = vmatprep.mubr.msk.f32.mxu1 %vm1447_vm0, %v1785_v54  ;;  %v1213_v54 = vmul.f32 0.088388346, %v6737_v16 }
 0x48b   : > { %v1729_v42 = vpop.xlane.xlu1 %1728  ;;  %4032 = vmatmul.mubr.msk.f32.gmra.mrb[42].mxu1 %vm1447_vm0, %v1787_v30 }
 0x48c   : > { %4592 = vrcp.f32 %v1729_v42  ;;  %v1726_v34 = vpop.xlane.xlu0 %1725 }
 0x48d   : > { %4594 = vrcp.f32 %v1726_v34 }
 0x48e   : > { %v4589_v8 = vpop.eup %4588 }
 0x48f   : > { %v4591_v3 = vpop.eup %4590  ;;  %v1791_v25 = vmul.f32 %v4589_v8, %v5885_v14 }
 0x490   : > { %v1789_v33 = vmul.f32 %v4591_v3, %v5887_v4 }
 0x492   : > { %4034 = vmatprep.mubr.msk.f32.mxu1 %vm1447_vm0, %v1789_v33 }
 0x493   : > { %v1735_v23 = vpop.xlane.xlu1 %1734  ;;  %4035 = vmatmul.mubr.msk.f32.gmra.mrb[44].mxu1 %vm1447_vm0, %v1791_v25 }
 0x494   : > { %4596 = vrcp.f32 %v1735_v23  ;;  %v1732_v63 = vpop.xlane.xlu0 %1731 }
 0x495   : > { %4598 = vrcp.f32 %v1732_v63 }
 0x496   : > { %v4593_v29 = vpop.eup %4592 }
 0x497   : > { %v4595_v22 = vpop.eup %4594  ;;  %v1795_v9 = vmul.f32 %v4593_v29, %v5895_v35  ;;  %v1155_v35 = vmul.f32 0.088388346, %v5501_v50  ;;  %v1169_v50 = vmul.f32 0.088388346, %v5529_v24  ;;  %v1183_v24 = vmul.f32 0.088388346, %v5557_v7 }
 0x498   : > { %v1793_v17 = vmul.f32 %v4595_v22, %v5897_v11  ;;  %v1153_v11 = vmul.f32 0.088388346, %v5497_v45  ;;  %v1167_v45 = vmul.f32 0.088388346, %v5525_v18  ;;  %v1181_v18 = vmul.f32 0.088388346, %v5553_v1 }
 0x499   : > { %v1195_v1 = vmul.f32 0.088388346, %v6728_v51  ;;  %v6729_v7 = vld [vmem:[#allocation34_spill] sm:$0xff] }
 0x49a   : > { %4037 = vmatprep.mubr.msk.f32.mxu1 %vm1447_vm0, %v1793_v17  ;;  %v1197_v60 = vmul.f32 0.088388346, %v6729_v7 }
 0x49b   : > { %4038 = vmatmul.mubr.msk.f32.gmra.mrb[46].mxu1 %vm1447_vm0, %v1795_v9 }
 0x49e   : > { %v4597_v4 = vpop.eup %4596 }
 0x49f   : > { %v4599_v14 = vpop.eup %4598  ;;  %v1799_v62 = vmul.f32 %v4597_v4, %v5903_v43  ;;  %v1161_v43 = vmul.f32 0.088388346, %v5513_v2  ;;  %v1175_v2 = vmul.f32 0.088388346, %v5541_v46  ;;  %v6725_v46 = vld [vmem:[#allocation30_spill] sm:$0xff] }
 0x4a0   : > { %v1797_v5 = vmul.f32 %v4599_v14, %v5905_v37  ;;  %v1165_v37 = vmul.f32 0.088388346, %v5521_v13  ;;  %v1179_v13 = vmul.f32 0.088388346, %v5549_v59  ;;  %v1189_v10 = vmul.f32 0.088388346, %v6725_v46 }
 0x4a1   : > { %v6727_v59 = vld [vmem:[#allocation32_spill] sm:$0xff] }
 0x4a2   : > { %4040 = vmatprep.mubr.msk.f32.mxu1 %vm1447_vm0, %v1797_v5  ;;  %v1193_v36 = vmul.f32 0.088388346, %v6727_v59 }
 0x4a3   : > { %4041 = vmatmul.mubr.msk.f32.gmra.mrb[48].mxu1 %vm1447_vm0, %v1799_v62 }
 0x4a4   : > { %4047 = vmatprep.mubr.f32.mxu1 %v1151_v19 }
 0x4a7   : > { %4048 = vmatmul.mubr.f32.vlgmr.msra.gmra.mrb[50].mxu1 %v1153_v11 }
 0x4a8   : > { %4050 = vmatprep.mubr.f32.mxu1 %v1155_v35 }
 0x4ab   : > { %4051 = vmatmul.mubr.f32.gmra.mrb[52].mxu1 %v1157_v57 }
 0x4ac   : > { %4053 = vmatprep.mubr.f32.mxu1 %v1159_v38 }
 0x4af   : > { %4054 = vmatmul.mubr.f32.gmra.mrb[54].mxu1 %v1161_v43 }
 0x4b0   : > { %4056 = vmatprep.mubr.f32.mxu1 %v1163_v40 }
 0x4b3   : > { %4057 = vmatmul.mubr.f32.gmra.mrb[56].mxu1 %v1165_v37 }
 0x4b4   : > { %4059 = vmatprep.mubr.f32.mxu1 %v1167_v45 }
 0x4b7   : > { %4060 = vmatmul.mubr.f32.gmra.mrb[58].mxu1 %v1169_v50 }
 0x4b8   : > { %4062 = vmatprep.mubr.f32.mxu1 %v1171_v55 }
 0x4bb   : > { %4063 = vmatmul.mubr.f32.gmra.mrb[60].mxu1 %v1173_v56 }
 0x4bc   : > { %4065 = vmatprep.mubr.f32.mxu1 %v1175_v2 }
 0x4bf   : > { %4066 = vmatmul.mubr.f32.gmra.mrb[62].mxu1 %v1177_v6 }
 0x4c0   : > { %4068 = vmatprep.mubr.f32.mxu1 %v1179_v13 }
 0x4c3   : > { %4069 = vmatmul.mubr.f32.gmra.mrb[64].mxu1 %v1181_v18 }
 0x4c4   : > { %4071 = vmatprep.mubr.f32.mxu1 %v1183_v24 }
 0x4c7   : > { %4072 = vmatmul.mubr.f32.gmra.mrb[66].mxu1 %v1185_v0 }
 0x4c8   : > { %4074 = vmatprep.mubr.f32.mxu1 %v1187_v39 }
 0x4cb   : > { %4075 = vmatmul.mubr.f32.gmra.mrb[68].mxu1 %v1189_v10 }
 0x4cc   : > { %4077 = vmatprep.mubr.f32.mxu1 %v1191_v52 }
 0x4cf   : > { %4078 = vmatmul.mubr.f32.gmra.mrb[70].mxu1 %v1193_v36 }
 0x4d0   : > { %4080 = vmatprep.mubr.f32.mxu1 %v1195_v1 }
 0x4d3   : > { %4081 = vmatmul.mubr.f32.gmra.mrb[72].mxu1 %v1197_v60 }
 0x4d4   : > { %4083 = vmatprep.mubr.f32.mxu1 %v1199_v20 }
 0x4d7   : > { %4084 = vmatmul.mubr.f32.gmra.mrb[74].mxu1 %v1201_v27 }
 0x4d8   : > { %4086 = vmatprep.mubr.f32.mxu1 %v1203_v21 }
 0x4db   : > { %4087 = vmatmul.mubr.f32.gmra.mrb[76].mxu1 %v1205_v32 }
 0x4dc   : > { %4089 = vmatprep.mubr.f32.mxu1 %v1207_v48 }
 0x4df   : > { %4090 = vmatmul.mubr.f32.gmra.mrb[78].mxu1 %v1209_v44 }
 0x4e0   : > { %4092 = vmatprep.mubr.f32.mxu1 %v1211_v53 }
 0x4e3   : > { %4093 = vmatmul.mubr.f32.gmra.mrb[80].mxu1 %v1213_v54 }
 0x501   : > { %v6008_v30 = vpop.f32.mrb[18].mxu1 }
 0x502   : > { %v6010_v42 = vpop.f32.mrb[19].mxu1 }
 0x509   : > { %v6012_v34 = vpop.f32.mrb[20].mxu1 }
 0x50a   : > { %v6014_v8 = vpop.f32.mrb[21].mxu1 }
 0x50f   : > { %v6016_v3 = vpop.f32.mrb[22].mxu1 }
 0x510   : > { %v6018_v33 = vpop.f32.mrb[23].mxu1 }
 0x516   : > { %v6020_v25 = vpop.f32.mrb[24].mxu1 }
 0x517   : > { %v6022_v23 = vpop.f32.mrb[25].mxu1 }
 0x51e   : > { %v6024_v63 = vpop.f32.mrb[26].mxu1 }
 0x51f   : > { %v6026_v29 = vpop.f32.mrb[27].mxu1 }
 0x526   : > { %v6028_v22 = vpop.f32.mrb[28].mxu1 }
 0x527   : > { %6738 = vst [vmem:[#allocation28_spill] sm:$0xff] %v6028_v22  ;;  %v6030_v17 = vpop.f32.mrb[29].mxu1  ;;  %v3198_v22 = vld [vmem:[#allocation14 + $0x198] sm:$0xff] }
 0x52e   : > { %v6032_v9 = vpop.f32.mrb[30].mxu1 }
 0x52f   : > { %6739 = vst [vmem:[#allocation29_spill] sm:$0xff] %v6032_v9  ;;  %v6034_v4 = vpop.f32.mrb[31].mxu1  ;;  %v3162_v9 = vld [vmem:[#allocation14 + $0x78] sm:$0xff] }
 0x530   : > { %6740 = vst [vmem:[#allocation30_spill] sm:$0xff] %v6034_v4  ;;  %v3159_v4 = vld [vmem:[#allocation14 + $0x60] sm:$0xff] }
 0x536   : > { %v6036_v14 = vpop.f32.mrb[32].mxu1 }
 0x537   : > { %6741 = vst [vmem:[#allocation31_spill] sm:$0xff] %v6036_v14  ;;  %v6038_v5 = vpop.f32.mrb[33].mxu1  ;;  %v3155_v14 = vld [vmem:[#allocation14 + $0x40] sm:$0xff] }
 0x538   : > { %6742 = vst [vmem:[#allocation32_spill] sm:$0xff] %v6038_v5  ;;  %v3160_v5 = vld [vmem:[#allocation14 + $0x68] sm:$0xff] }
 0x53e   : > { %v6040_v62 = vpop.f32.mrb[34].mxu1 }
 0x53f   : > { %6743 = vst [vmem:[#allocation33_spill] sm:$0xff] %v6040_v62  ;;  %v6042_v19 = vpop.f32.mrb[35].mxu1 }
 0x540   : > { %6744 = vst [vmem:[#allocation34_spill] sm:$0xff] %v6042_v19 }
 0x546   : > { %v6044_v11 = vpop.f32.mrb[36].mxu1 }
 0x547   : > { %6745 = vst [vmem:[#allocation35_spill] sm:$0xff] %v6044_v11  ;;  %v6046_v35 = vpop.f32.mrb[37].mxu1 }
 0x548   : > { %6746 = vst [vmem:[#allocation36_spill] sm:$0xff] %v6046_v35 }
 0x54e   : > { %v6048_v57 = vpop.f32.mrb[38].mxu1 }
 0x54f   : > { %6747 = vst [vmem:[#allocation37_spill] sm:$0xff] %v6048_v57  ;;  %v6050_v38 = vpop.f32.mrb[39].mxu1 }
 0x550   : > { %6748 = vst [vmem:[#allocation38_spill] sm:$0xff] %v6050_v38 }
 0x556   : > { %v6052_v43 = vpop.f32.mrb[40].mxu1 }
 0x557   : > { %6749 = vst [vmem:[#allocation39_spill] sm:$0xff] %v6052_v43  ;;  %v6054_v40 = vpop.f32.mrb[41].mxu1 }
 0x558   : > { %6750 = vst [vmem:[#allocation40_spill] sm:$0xff] %v6054_v40 }
 0x55e   : > { %v6056_v37 = vpop.f32.mrb[42].mxu1 }
 0x55f   : > { %6751 = vst [vmem:[#allocation41_spill] sm:$0xff] %v6056_v37  ;;  %v6058_v45 = vpop.f32.mrb[43].mxu1 }
 0x560   : > { %6752 = vst [vmem:[#allocation42_spill] sm:$0xff] %v6058_v45 }
 0x566   : > { %v6060_v50 = vpop.f32.mrb[44].mxu1 }
 0x567   : > { %6753 = vst [vmem:[#allocation43_spill] sm:$0xff] %v6060_v50  ;;  %v6062_v55 = vpop.f32.mrb[45].mxu1 }
 0x568   : > { %6754 = vst [vmem:[#allocation44_spill] sm:$0xff] %v6062_v55 }
 0x56e   : > { %v6064_v56 = vpop.f32.mrb[46].mxu1 }
 0x56f   : > { %6755 = vst [vmem:[#allocation45_spill] sm:$0xff] %v6064_v56  ;;  %v6066_v2 = vpop.f32.mrb[47].mxu1 }
 0x570   : > { %6756 = vst [vmem:[#allocation46_spill] sm:$0xff] %v6066_v2 }
 0x576   : > { %v6068_v6 = vpop.f32.mrb[48].mxu1 }
 0x577   : > { %6757 = vst [vmem:[#allocation47_spill] sm:$0xff] %v6068_v6  ;;  %v6070_v13 = vpop.f32.mrb[49].mxu1 }
 0x578   : > { %6758 = vst [vmem:[#allocation48_spill] sm:$0xff] %v6070_v13 }
 0x57a   : > { %v6072_v18 = vpop.f32.mrb[50].mxu1 }
 0x57b   : > { %v6074_v24 = vpop.f32.mrb[51].mxu1  ;;  %v2381_v31 = vsel %vm1447_vm0, %v6072_v18, -inf }
 0x57c   : > { %2382 = vmax.xlane.f32.xlu1 %v2381_v31  ;;  %v2378_v0 = vsel %vm1447_vm0, %v6074_v24, -inf }
 0x57d   : > { %2379 = vmax.xlane.f32.xlu0 %v2378_v0 }
 0x57e   : > { %v6080_v15 = vpop.f32.mrb[52].mxu1 }
 0x57f   : > { %v6082_v39 = vpop.f32.mrb[53].mxu1  ;;  %v2387_v46 = vsel %vm1447_vm0, %v6080_v15, -inf }
 0x580   : > { %2388 = vmax.xlane.f32.xlu1 %v2387_v46  ;;  %v2384_v10 = vsel %vm1447_vm0, %v6082_v39, -inf }
 0x581   : > { %2385 = vmax.xlane.f32.xlu0 %v2384_v10 }
 0x582   : > { %v6088_v26 = vpop.f32.mrb[54].mxu1 }
 0x583   : > { %v6090_v52 = vpop.f32.mrb[55].mxu1  ;;  %v2393_v59 = vsel %vm1447_vm0, %v6088_v26, -inf }
 0x584   : > { %2394 = vmax.xlane.f32.xlu1 %v2393_v59  ;;  %v2390_v36 = vsel %vm1447_vm0, %v6090_v52, -inf }
 0x585   : > { %2391 = vmax.xlane.f32.xlu0 %v2390_v36 }
 0x586   : > { %v6096_v51 = vpop.f32.mrb[56].mxu1 }
 0x587   : > { %v6098_v1 = vpop.f32.mrb[57].mxu1  ;;  %v2399_v7 = vsel %vm1447_vm0, %v6096_v51, -inf }
 0x588   : > { %2400 = vmax.xlane.f32.xlu1 %v2399_v7  ;;  %v2396_v60 = vsel %vm1447_vm0, %v6098_v1, -inf }
 0x589   : > { %2397 = vmax.xlane.f32.xlu0 %v2396_v60 }
 0x58a   : > { %v6104_v49 = vpop.f32.mrb[58].mxu1 }
 0x58b   : > { %v6106_v20 = vpop.f32.mrb[59].mxu1  ;;  %v2405_v47 = vsel %vm1447_vm0, %v6104_v49, -inf }
 0x58c   : > { %2406 = vmax.xlane.f32.xlu1 %v2405_v47  ;;  %v2402_v27 = vsel %vm1447_vm0, %v6106_v20, -inf }
 0x58d   : > { %2403 = vmax.xlane.f32.xlu0 %v2402_v27 }
 0x58e   : > { %v6112_v28 = vpop.f32.mrb[60].mxu1 }
 0x58f   : > { %v6114_v21 = vpop.f32.mrb[61].mxu1  ;;  %v2411_v58 = vsel %vm1447_vm0, %v6112_v28, -inf }
 0x590   : > { %2412 = vmax.xlane.f32.xlu1 %v2411_v58  ;;  %v2408_v32 = vsel %vm1447_vm0, %v6114_v21, -inf }
 0x591   : > { %2409 = vmax.xlane.f32.xlu0 %v2408_v32 }
 0x592   : > { %v6120_v12 = vpop.f32.mrb[62].mxu1 }
 0x593   : > { %v6122_v48 = vpop.f32.mrb[63].mxu1  ;;  %v2417_v41 = vsel %vm1447_vm0, %v6120_v12, -inf }
 0x594   : > { %2418 = vmax.xlane.f32.xlu1 %v2417_v41  ;;  %v2414_v44 = vsel %vm1447_vm0, %v6122_v48, -inf }
 0x595   : > { %2415 = vmax.xlane.f32.xlu0 %v2414_v44 }
 0x596   : > { %v6128_v61 = vpop.f32.mrb[64].mxu1 }
 0x597   : > { %v6130_v53 = vpop.f32.mrb[65].mxu1  ;;  %v2423_v16 = vsel %vm1447_vm0, %v6128_v61, -inf }
 0x598   : > { %2424 = vmax.xlane.f32.xlu1 %v2423_v16  ;;  %v2420_v54 = vsel %vm1447_vm0, %v6130_v53, -inf }
 0x599   : > { %2421 = vmax.xlane.f32.xlu0 %v2420_v54 }
 0x59a   : > { %v6136_v31 = vpop.f32.mrb[66].mxu1 }
 0x59b   : > { %v6138_v0 = vpop.f32.mrb[67].mxu1  ;;  %v2429_v46 = vsel %vm1447_vm0, %v6136_v31, -inf }
 0x59c   : > { %2430 = vmax.xlane.f32.xlu1 %v2429_v46  ;;  %v2426_v10 = vsel %vm1447_vm0, %v6138_v0, -inf }
 0x59d   : > { %2427 = vmax.xlane.f32.xlu0 %v2426_v10 }
 0x59e   : > { %v6144_v59 = vpop.f32.mrb[68].mxu1 }
 0x59f   : > { %v6146_v36 = vpop.f32.mrb[69].mxu1  ;;  %v2435_v7 = vsel %vm1447_vm0, %v6144_v59, -inf }
 0x5a0   : > { %2436 = vmax.xlane.f32.xlu1 %v2435_v7  ;;  %v2432_v60 = vsel %vm1447_vm0, %v6146_v36, -inf }
 0x5a1   : > { %2433 = vmax.xlane.f32.xlu0 %v2432_v60 }
 0x5a2   : > { %v6152_v47 = vpop.f32.mrb[70].mxu1 }
 0x5a3   : > { %v6154_v27 = vpop.f32.mrb[71].mxu1  ;;  %v2441_v58 = vsel %vm1447_vm0, %v6152_v47, -inf }
 0x5a4   : > { %2442 = vmax.xlane.f32.xlu1 %v2441_v58  ;;  %v2438_v32 = vsel %vm1447_vm0, %v6154_v27, -inf }
 0x5a5   : > { %2439 = vmax.xlane.f32.xlu0 %v2438_v32 }
 0x5a6   : > { %v6160_v41 = vpop.f32.mrb[72].mxu1 }
 0x5a7   : > { %v6162_v44 = vpop.f32.mrb[73].mxu1  ;;  %v2447_v10 = vsel %vm1447_vm0, %v6160_v41, -inf }
 0x5a8   : > { %v2444_v16 = vsel %vm1447_vm0, %v6162_v44, -inf }
 0x5a9   : > { %2445 = vmax.xlane.f32.xlu0 %v2444_v16 }
 0x5aa   : > { %v6166_v54 = vpop.f32.mrb[74].mxu1 }
 0x5ab   : > { %v6168_v46 = vpop.f32.mrb[75].mxu1  ;;  %v2453_v16 = vsel %vm1447_vm0, %v6166_v54, -inf }
 0x5ac   : > { %v2450_v58 = vsel %vm1447_vm0, %v6168_v46, -inf }
 0x5ad   : > { %2448 = vmax.xlane.f32.xlu0 %v2447_v10 }
 0x5ae   : > { %v6172_v7 = vpop.f32.mrb[76].mxu1 }
 0x5af   : > { %v6174_v60 = vpop.f32.mrb[77].mxu1  ;;  %v2459_v2 = vsel %vm1447_vm0, %v6172_v7, -inf }
 0x5b0   : > { %v2456_v10 = vsel %vm1447_vm0, %v6174_v60, -inf }
 0x5b1   : > { %2451 = vmax.xlane.f32.xlu0 %v2450_v58 }
 0x5b2   : > { %v6178_v32 = vpop.f32.mrb[78].mxu1 }
 0x5b3   : > { %v6180_v6 = vpop.f32.mrb[79].mxu1  ;;  %v2465_v50 = vsel %vm1447_vm0, %v6178_v32, -inf }
 0x5b4   : > { %v2462_v58 = vsel %vm1447_vm0, %v6180_v6, -inf }
 0x5b5   : > { %2454 = vmax.xlane.f32.xlu0 %v2453_v16 }
 0x5b6   : > { %v6184_v13 = vpop.f32.mrb[80].mxu1 }
 0x5b7   : > { %v6186_v56 = vpop.f32.mrb[81].mxu1  ;;  %v2471_v55 = vsel %vm1447_vm0, %v6184_v13, -inf }
 0x5b8   : > { %v2468_v16 = vsel %vm1447_vm0, %v6186_v56, -inf }
 0x5b9   : > { %2457 = vmax.xlane.f32.xlu0 %v2456_v10 }
 0x5bd   : > { %2460 = vmax.xlane.f32.xlu0 %v2459_v2 }
 0x5c1   : > { %2463 = vmax.xlane.f32.xlu0 %v2462_v58 }
 0x5c5   : > { %2466 = vmax.xlane.f32.xlu0 %v2465_v50 }
 0x5c9   : > { %2469 = vmax.xlane.f32.xlu0 %v2468_v16 }
 0x5cd   : > { %2472 = vmax.xlane.f32.xlu0 %v2471_v55 }
 0x609   : > { %v2383_v10 = vpop.xlane.xlu1 %2382 }
 0x60a   : > { %v2475_v37 = vsub.f32 %v6072_v18, %v2383_v10  ;;  %v2380_v2 = vpop.xlane.xlu0 %2379 }
 0x60b   : > { %v2474_v45 = vsub.f32 %v6074_v24, %v2380_v2 }
 0x60c   : > { %v2508_v43 = vmul.f32 1.442695, %v2475_v37 }
 0x60d   : > { %v2506_v58 = vmul.f32 1.442695, %v2474_v45  ;;  %v2389_v40 = vpop.xlane.xlu1 %2388 }
 0x60e   : > { %v2386_v57 = vpop.xlane.xlu0 %2385  ;;  %v2477_v16 = vsub.f32 %v6080_v15, %v2389_v40 }
 0x60f   : > { %4600 = vpow2.f32 %v2506_v58  ;;  %v2476_v50 = vsub.f32 %v6082_v39, %v2386_v57 }
 0x610   : > { %4602 = vpow2.f32 %v2508_v43  ;;  %v2512_v55 = vmul.f32 1.442695, %v2477_v16 }
 0x611   : > { %v2510_v38 = vmul.f32 1.442695, %v2476_v50  ;;  %v2395_v11 = vpop.xlane.xlu1 %2394 }
 0x612   : > { %v2392_v35 = vpop.xlane.xlu0 %2391  ;;  %v2479_v37 = vsub.f32 %v6088_v26, %v2395_v11 }
 0x613   : > { %4604 = vpow2.f32 %v2510_v38  ;;  %v2478_v18 = vsub.f32 %v6090_v52, %v2392_v35 }
 0x614   : > { %4606 = vpow2.f32 %v2512_v55  ;;  %v2516_v15 = vmul.f32 1.442695, %v2479_v37 }
 0x615   : > { %v2401_v10 = vpop.xlane.xlu1 %2400  ;;  %v2514_v45 = vmul.f32 1.442695, %v2478_v18 }
 0x616   : > { %v2398_v62 = vpop.xlane.xlu0 %2397  ;;  %v2481_v58 = vsub.f32 %v6096_v51, %v2401_v10 }
 0x617   : > { %4608 = vpow2.f32 %v2514_v45  ;;  %v2480_v35 = vsub.f32 %v6098_v1, %v2398_v62 }
 0x618   : > { %4610 = vpow2.f32 %v2516_v15  ;;  %v2520_v37 = vmul.f32 1.442695, %v2481_v58 }
 0x619   : > { %v6205_v24 = vpop.eup %4600  ;;  %v2407_v2 = vpop.xlane.xlu1 %2406  ;;  %v2518_v50 = vmul.f32 1.442695, %v2480_v35 }
 0x61a   : > { %v2404_v57 = vpop.xlane.xlu0 %2403  ;;  %v2570_v43 = vsel %vm1447_vm0, %v6205_v24, 0.0  ;;  %v6210_v40 = vpop.eup %4602 }
 0x61b   : > { %2571 = vadd.xlane.f32.xlu1 %v2570_v43  ;;  %v2573_v39 = vsel %vm1447_vm0, %v6210_v40, 0.0 }
 0x61d   : > { %v6215_v52 = vpop.eup %4604  ;;  %v2413_v26 = vpop.xlane.xlu1 %2412 }
 0x61e   : > { %v2410_v38 = vpop.xlane.xlu0 %2409  ;;  %v2576_v18 = vsel %vm1447_vm0, %v6215_v52, 0.0  ;;  %v6221_v62 = vpop.eup %4606 }
 0x61f   : > { %v2484_v11 = vsub.f32 %v6114_v21, %v2410_v38  ;;  %2574 = vadd.xlane.f32.xlu1 %v2573_v39  ;;  %v2482_v21 = vsub.f32 %v6106_v20, %v2404_v57  ;;  %v2579_v51 = vsel %vm1447_vm0, %v6221_v62, 0.0 }
 0x621   : > { %v2526_v16 = vmul.f32 1.442695, %v2484_v11  ;;  %v2419_v43 = vpop.xlane.xlu1 %2418  ;;  %v6227_v10 = vpop.eup %4608  ;;  %v2522_v38 = vmul.f32 1.442695, %v2482_v21 }
 0x622   : > { %v2416_v55 = vpop.xlane.xlu0 %2415  ;;  %v2582_v20 = vsel %vm1447_vm0, %v6227_v10, 0.0  ;;  %v6233_v57 = vpop.eup %4610 }
 0x623   : > { %4612 = vpow2.f32 %v2526_v16  ;;  %v2486_v1 = vsub.f32 %v6122_v48, %v2416_v55  ;;  %2577 = vadd.xlane.f32.xlu1 %v2576_v18  ;;  %v2483_v48 = vsub.f32 %v6104_v49, %v2407_v2  ;;  %v2485_v55 = vsub.f32 %v6112_v28, %v2413_v26 }
 0x624   : > { %4614 = vpow2.f32 %v2518_v50  ;;  %v2585_v18 = vsel %vm1447_vm0, %v6233_v57, 0.0  ;;  %v2487_v28 = vsub.f32 %v6120_v12, %v2419_v43 }
 0x625   : > { %v2530_v45 = vmul.f32 1.442695, %v2486_v1  ;;  %v2425_v50 = vpop.xlane.xlu1 %2424 }
 0x626   : > { %v2422_v15 = vpop.xlane.xlu0 %2421  ;;  %v2532_v12 = vmul.f32 1.442695, %v2487_v28  ;;  %v2489_v43 = vsub.f32 %v6128_v61, %v2425_v50 }
 0x627   : > { %4616 = vpow2.f32 %v2530_v45  ;;  %v2488_v35 = vsub.f32 %v6130_v53, %v2422_v15  ;;  %2580 = vadd.xlane.f32.xlu1 %v2579_v51  ;;  %v2524_v53 = vmul.f32 1.442695, %v2483_v48  ;;  %v2528_v45 = vmul.f32 1.442695, %v2485_v55 }
 0x628   : > { %4618 = vpow2.f32 %v2520_v37  ;;  %v2536_v61 = vmul.f32 1.442695, %v2489_v43 }
 0x629   : > { %v2534_v39 = vmul.f32 1.442695, %v2488_v35  ;;  %v2431_v15 = vpop.xlane.xlu1 %2430 }
 0x62a   : > { %v2428_v11 = vpop.xlane.xlu0 %2427  ;;  %v2491_v50 = vsub.f32 %v6136_v31, %v2431_v15 }
 0x62b   : > { %4620 = vpow2.f32 %v2534_v39  ;;  %v2490_v58 = vsub.f32 %v6138_v0, %v2428_v11  ;;  %2583 = vadd.xlane.f32.xlu1 %v2582_v20 }
 0x62c   : > { %4622 = vpow2.f32 %v2522_v38 }
 0x62d   : > { %v6236_v16 = vpop.eup %4612  ;;  %v2538_v49 = vmul.f32 1.442695, %v2490_v58 }
 0x62e   : > { %v2434_v2 = vpop.xlane.xlu0 %2433  ;;  %v2600_v1 = vsel %vm1447_vm0, %v6236_v16, 0.0  ;;  %v6243_v37 = vpop.eup %4614 }
 0x62f   : > { %4624 = vpow2.f32 %v2538_v49  ;;  %v2492_v0 = vsub.f32 %v6146_v36, %v2434_v2  ;;  %2586 = vadd.xlane.f32.xlu1 %v2585_v18  ;;  %2601 = vadd.xlane.f32.xlu0 %v2600_v1  ;;  %v2588_v35 = vsel %vm1447_vm0, %v6243_v37, 0.0  ;;  %v2437_v49 = vpop.xlane.xlu1 %2436 }
 0x630   : > { %4626 = vpow2.f32 %v2524_v53 }
 0x631   : > { %v6246_v21 = vpop.eup %4616  ;;  %v2542_v26 = vmul.f32 1.442695, %v2492_v0 }
 0x632   : > { %v2440_v51 = vpop.xlane.xlu0 %2439  ;;  %v2606_v48 = vsel %vm1447_vm0, %v6246_v21, 0.0  ;;  %v6253_v38 = vpop.eup %4618 }
 0x633   : > { %4628 = vpow2.f32 %v2542_v26  ;;  %v2494_v36 = vsub.f32 %v6154_v27, %v2440_v51  ;;  %2589 = vadd.xlane.f32.xlu1 %v2588_v35  ;;  %2607 = vadd.xlane.f32.xlu0 %v2606_v48  ;;  %v2591_v58 = vsel %vm1447_vm0, %v6253_v38, 0.0  ;;  %v2540_v26 = vmul.f32 1.442695, %v2491_v50  ;;  %v2443_v31 = vpop.xlane.xlu1 %2442 }
 0x634   : > { %4630 = vpow2.f32 %v2528_v45  ;;  %v2493_v51 = vsub.f32 %v6144_v59, %v2437_v49  ;;  %v2495_v59 = vsub.f32 %v6152_v47, %v2443_v31 }
 0x635   : > { %v6256_v39 = vpop.eup %4620  ;;  %v2546_v11 = vmul.f32 1.442695, %v2494_v36 }
 0x636   : > { %v2446_v20 = vpop.xlane.xlu0 %2445  ;;  %v2612_v53 = vsel %vm1447_vm0, %v6256_v39, 0.0  ;;  %v6263_v55 = vpop.eup %4622 }
 0x637   : > { %4632 = vpow2.f32 %v2546_v11  ;;  %v2496_v27 = vsub.f32 %v6162_v44, %v2446_v20  ;;  %2592 = vadd.xlane.f32.xlu1 %v2591_v58  ;;  %2613 = vadd.xlane.f32.xlu0 %v2612_v53  ;;  %v2594_v0 = vsel %vm1447_vm0, %v6263_v55, 0.0  ;;  %v2544_v11 = vmul.f32 1.442695, %v2493_v51 }
 0x638   : > { %4634 = vpow2.f32 %v2532_v12 }
 0x639   : > { %v6266_v2 = vpop.eup %4624  ;;  %v2550_v18 = vmul.f32 1.442695, %v2496_v27 }
 0x63a   : > { %v2449_v1 = vpop.xlane.xlu0 %2448  ;;  %v2618_v45 = vsel %vm1447_vm0, %v6266_v2, 0.0  ;;  %v6273_v28 = vpop.eup %4626 }
 0x63b   : > { %4636 = vpow2.f32 %v2550_v18  ;;  %2595 = vadd.xlane.f32.xlu1 %v2594_v0  ;;  %2619 = vadd.xlane.f32.xlu0 %v2618_v45  ;;  %v2597_v35 = vsel %vm1447_vm0, %v6273_v28, 0.0  ;;  %v2497_v50 = vsub.f32 %v6160_v41, %v2449_v1 }
 0x63c   : > { %4638 = vpow2.f32 %v2536_v61  ;;  %v2548_v61 = vmul.f32 1.442695, %v2495_v59 }
 0x63d   : > { %v6275_v44 = vpop.eup %4628  ;;  %4640 = vpow2.f32 %v2540_v26  ;;  %v2552_v51 = vmul.f32 1.442695, %v2497_v50 }
 0x63e   : > { %v2452_v15 = vpop.xlane.xlu0 %2451  ;;  %v2624_v48 = vsel %vm1447_vm0, %v6275_v44, 0.0  ;;  %v6282_v36 = vpop.eup %4630 }
 0x63f   : > { %v2498_v12 = vsub.f32 %v6168_v46, %v2452_v15  ;;  %2598 = vadd.xlane.f32.xlu1 %v2597_v35  ;;  %2625 = vadd.xlane.f32.xlu0 %v2624_v48  ;;  %v2603_v53 = vsel %vm1447_vm0, %v6282_v36, 0.0 }
 0x641   : > { %v6285_v43 = vpop.eup %4632  ;;  %v2554_v20 = vmul.f32 1.442695, %v2498_v12 }
 0x642   : > { %v2455_v58 = vpop.xlane.xlu0 %2454  ;;  %v2630_v27 = vsel %vm1447_vm0, %v6285_v43, 0.0  ;;  %v6292_v49 = vpop.eup %4634 }
 0x643   : > { %4642 = vpow2.f32 %v2554_v20  ;;  %2604 = vadd.xlane.f32.xlu1 %v2603_v53  ;;  %2631 = vadd.xlane.f32.xlu0 %v2630_v27  ;;  %v2609_v18 = vsel %vm1447_vm0, %v6292_v49, 0.0  ;;  %v2499_v31 = vsub.f32 %v6166_v54, %v2455_v58 }
 0x644   : > { %4644 = vpow2.f32 %v2544_v11 }
 0x645   : > { %v6294_v46 = vpop.eup %4636  ;;  %4646 = vpow2.f32 %v2548_v61  ;;  %v2556_v12 = vmul.f32 1.442695, %v2499_v31 }
 0x646   : > { %v2458_v47 = vpop.xlane.xlu0 %2457  ;;  %v2636_v0 = vsel %vm1447_vm0, %v6294_v46, 0.0  ;;  %v6301_v45 = vpop.eup %4638 }
 0x647   : > { %v2500_v26 = vsub.f32 %v6174_v60, %v2458_v47  ;;  %2610 = vadd.xlane.f32.xlu1 %v2609_v18  ;;  %2637 = vadd.xlane.f32.xlu0 %v2636_v0  ;;  %v2615_v41 = vsel %vm1447_vm0, %v6301_v45, 0.0  ;;  %v6307_v1 = vpop.eup %4640 }
 0x648   : > { %v2621_v59 = vsel %vm1447_vm0, %v6307_v1, 0.0 }
 0x649   : > { %v2558_v15 = vmul.f32 1.442695, %v2500_v26 }
 0x64a   : > { %v2461_v35 = vpop.xlane.xlu0 %2460 }
 0x64b   : > { %4648 = vpow2.f32 %v2558_v15  ;;  %2616 = vadd.xlane.f32.xlu1 %v2615_v41  ;;  %v2501_v60 = vsub.f32 %v6172_v7, %v2461_v35 }
 0x64c   : > { %4650 = vpow2.f32 %v2552_v51 }
 0x64d   : > { %v6309_v48 = vpop.eup %4642  ;;  %4652 = vpow2.f32 %v2556_v12  ;;  %v2560_v53 = vmul.f32 1.442695, %v2501_v60 }
 0x64e   : > { %v2464_v11 = vpop.xlane.xlu0 %2463  ;;  %v2642_v54 = vsel %vm1447_vm0, %v6309_v48, 0.0  ;;  %v6316_v20 = vpop.eup %4644 }
 0x64f   : > { %v2502_v58 = vsub.f32 %v6180_v6, %v2464_v11  ;;  %2622 = vadd.xlane.f32.xlu1 %v2621_v59  ;;  %2643 = vadd.xlane.f32.xlu0 %v2642_v54  ;;  %v2627_v7 = vsel %vm1447_vm0, %v6316_v20, 0.0  ;;  %v6321_v50 = vpop.eup %4646 }
 0x650   : > { %v2633_v26 = vsel %vm1447_vm0, %v6321_v50, 0.0 }
 0x651   : > { %v2562_v27 = vmul.f32 1.442695, %v2502_v58 }
 0x652   : > { %v2467_v61 = vpop.xlane.xlu0 %2466 }
 0x653   : > { %4654 = vpow2.f32 %v2562_v27  ;;  %v2503_v47 = vsub.f32 %v6178_v32, %v2467_v61  ;;  %2628 = vadd.xlane.f32.xlu1 %v2627_v7 }
 0x654   : > { %4656 = vpow2.f32 %v2560_v53 }
 0x655   : > { %v6324_v18 = vpop.eup %4648  ;;  %v2564_v0 = vmul.f32 1.442695, %v2503_v47 }
 0x656   : > { %v2470_v6 = vpop.xlane.xlu0 %2469  ;;  %v2648_v51 = vsel %vm1447_vm0, %v6324_v18, 0.0  ;;  %v6330_v31 = vpop.eup %4650 }
 0x657   : > { %v2504_v15 = vsub.f32 %v6186_v56, %v2470_v6  ;;  %2634 = vadd.xlane.f32.xlu1 %v2633_v26  ;;  %2649 = vadd.xlane.f32.xlu0 %v2648_v51  ;;  %4658 = vpow2.f32 %v2564_v0  ;;  %v2639_v41 = vsel %vm1447_vm0, %v6330_v31, 0.0  ;;  %v6335_v12 = vpop.eup %4652  ;;  %v3148_v6 = vld [vmem:[#allocation14 + $0x8] sm:$0xff]  ;;  %v3150_v26 = vld [vmem:[#allocation14 + $0x18] sm:$0xff]  ;;  %v3147_v51 = vld [vmem:[#allocation14] sm:$0xff] }
 0x658   : > { %v2645_v56 = vsel %vm1447_vm0, %v6335_v12, 0.0 }
 0x659   : > { %v2566_v32 = vmul.f32 1.442695, %v2504_v15  ;;  %v4291_v15 = vpack.c.bf16 %v3150_v26, %v3148_v6  ;;  %v4303_v26 = vpack.c.bf16 %v3162_v9, %v3160_v5  ;;  %v3174_v9 = vld [vmem:[#allocation14 + $0xd8] sm:$0xff] }
 0x65a   : > { %v2473_v35 = vpop.xlane.xlu0 %2472 }
 0x65b   : > { %4660 = vpow2.f32 %v2566_v32  ;;  %v2505_v60 = vsub.f32 %v6184_v13, %v2473_v35  ;;  %2640 = vadd.xlane.f32.xlu1 %v2639_v41  ;;  %v3149_v32 = vld [vmem:[#allocation14 + $0x10] sm:$0xff]  ;;  %v3152_v35 = vld [vmem:[#allocation14 + $0x28] sm:$0xff]  ;;  %v3154_v41 = vld [vmem:[#allocation14 + $0x38] sm:$0xff]  ;;  %4292 = vmatprep.subr.bf16.mxu1 %v4291_v15 }
 0x65d   : > { %v6338_v11 = vpop.eup %4654  ;;  %v2568_v59 = vmul.f32 1.442695, %v2505_v60  ;;  %v4293_v60 = vpack.c.bf16 %v3149_v32, %v3147_v51  ;;  %v3161_v51 = vld [vmem:[#allocation14 + $0x70] sm:$0xff]  ;;  %v3164_v32 = vld [vmem:[#allocation14 + $0x88] sm:$0xff] }
 0x65e   : > { %v2654_v54 = vsel %vm1447_vm0, %v6338_v11, 0.0  ;;  %v6344_v58 = vpop.eup %4656 }
 0x65f   : > { %4662 = vpow2.f32 %v2568_v59  ;;  %2646 = vadd.xlane.f32.xlu1 %v2645_v56  ;;  %2655 = vadd.xlane.f32.xlu0 %v2654_v54  ;;  %v2651_v53 = vsel %vm1447_vm0, %v6344_v58, 0.0  ;;  %v4295_v59 = vpack.c.bf16 %v3154_v41, %v3152_v35  ;;  %v3151_v56 = vld [vmem:[#allocation14 + $0x20] sm:$0xff]  ;;  %v3153_v54 = vld [vmem:[#allocation14 + $0x30] sm:$0xff]  ;;  %v3166_v35 = vld [vmem:[#allocation14 + $0x98] sm:$0xff]  ;;  %v4305_v41 = vpack.c.bf16 %v3161_v51, %v3159_v4 }
 0x660   : > { %4294 = vmatpush1.bf16.msra.mxu1 %v4293_v60  ;;  %v4307_v15 = vpack.c.bf16 %v3166_v35, %v3164_v32  ;;  %v3163_v60 = vld [vmem:[#allocation14 + $0x80] sm:$0xff]  ;;  %v3173_v4 = vld [vmem:[#allocation14 + $0xd0] sm:$0xff]  ;;  %v3178_v51 = vld [vmem:[#allocation14 + $0xf8] sm:$0xff] }
 0x661   : > { %v6348_v27 = vpop.eup %4658  ;;  %4296 = vmatprep.subr.bf16.mxu1 %v4295_v59  ;;  %v3168_v59 = vld [vmem:[#allocation14 + $0xa8] sm:$0xff] }
 0x662   : > { %v2657_v61 = vsel %vm1447_vm0, %v6348_v27, 0.0 }
 0x663   : > { %2652 = vadd.xlane.f32.xlu1 %v2651_v53  ;;  %v3156_v53 = vld [vmem:[#allocation14 + $0x48] sm:$0xff] }
 0x665   : > { %v6350_v13 = vpop.eup %4660 }
 0x666   : > { %v2660_v7 = vsel %vm1447_vm0, %v6350_v13, 0.0 }
 0x667   : > { %2658 = vadd.xlane.f32.xlu1 %v2657_v61  ;;  %2661 = vadd.xlane.f32.xlu0 %v2660_v7  ;;  %v3158_v61 = vld [vmem:[#allocation14 + $0x58] sm:$0xff]  ;;  %v4297_v7 = vpack.c.bf16 %v3153_v54, %v3151_v56  ;;  %v3165_v56 = vld [vmem:[#allocation14 + $0x90] sm:$0xff] }
 0x668   : > { %v4299_v19 = vpack.c.bf16 %v3158_v61, %v3156_v53  ;;  %v3170_v54 = vld [vmem:[#allocation14 + $0xb8] sm:$0xff]  ;;  %v4309_v53 = vpack.c.bf16 %v3165_v56, %v3163_v60  ;;  %v3177_v60 = vld [vmem:[#allocation14 + $0xf0] sm:$0xff] }
 0x669   : > { %v6356_v47 = vpop.eup %4662  ;;  %4298 = vmatpush1.bf16.msra.mxu1 %v4297_v7  ;;  %v4311_v61 = vpack.c.bf16 %v3170_v54, %v3168_v59  ;;  %v3167_v7 = vld [vmem:[#allocation14 + $0xa0] sm:$0xff]  ;;  %v3182_v56 = vld [vmem:[#allocation14 + $0x118] sm:$0xff] }
 0x66a   : > { %v2663_v0 = vsel %vm1447_vm0, %v6356_v47, 0.0  ;;  %4300 = vmatprep.subr.bf16.mxu1 %v4299_v19  ;;  %v3172_v19 = vld [vmem:[#allocation14 + $0xc8] sm:$0xff] }
 0x66b   : > { %2664 = vadd.xlane.f32.xlu1 %v2663_v0  ;;  %v3157_v0 = vld [vmem:[#allocation14 + $0x50] sm:$0xff] }
 0x66c   : > { %v4301_v6 = vpack.c.bf16 %v3157_v0, %v3155_v14  ;;  %v3169_v14 = vld [vmem:[#allocation14 + $0xb0] sm:$0xff]  ;;  %v4315_v0 = vpack.c.bf16 %v3174_v9, %v3172_v19 }
 0x66d   : > { %v4313_v5 = vpack.c.bf16 %v3169_v14, %v3167_v7  ;;  %v3181_v7 = vld [vmem:[#allocation14 + $0x110] sm:$0xff]  ;;  %v3186_v14 = vld [vmem:[#allocation14 + $0x138] sm:$0xff] }
 0x66e   : > { %4302 = vmatpush1.bf16.msra.mxu1 %v4301_v6  ;;  %v3171_v6 = vld [vmem:[#allocation14 + $0xc0] sm:$0xff] }
 0x66f   : > { %4304 = vmatprep.subr.bf16.mxu1 %v4303_v26  ;;  %v3176_v26 = vld [vmem:[#allocation14 + $0xe8] sm:$0xff]  ;;  %v4317_v32 = vpack.c.bf16 %v3173_v4, %v3171_v6  ;;  %v3185_v6 = vld [vmem:[#allocation14 + $0x130] sm:$0xff] }
 0x670   : > { %v4319_v35 = vpack.c.bf16 %v3178_v51, %v3176_v26  ;;  %v3188_v4 = vld [vmem:[#allocation14 + $0x148] sm:$0xff]  ;;  %v3190_v26 = vld [vmem:[#allocation14 + $0x158] sm:$0xff] }
 0x672   : > { %4306 = vmatpush1.bf16.msra.mxu1 %v4305_v41  ;;  %v3175_v41 = vld [vmem:[#allocation14 + $0xe0] sm:$0xff] }
 0x673   : > { %4308 = vmatprep.subr.bf16.mxu1 %v4307_v15  ;;  %v3180_v15 = vld [vmem:[#allocation14 + $0x108] sm:$0xff]  ;;  %v4321_v59 = vpack.c.bf16 %v3177_v60, %v3175_v41  ;;  %v3189_v41 = vld [vmem:[#allocation14 + $0x150] sm:$0xff] }
 0x674   : > { %v4323_v54 = vpack.c.bf16 %v3182_v56, %v3180_v15  ;;  %v3192_v15 = vld [vmem:[#allocation14 + $0x168] sm:$0xff]  ;;  %v3194_v56 = vld [vmem:[#allocation14 + $0x178] sm:$0xff] }
 0x676   : > { %4310 = vmatpush1.bf16.msra.mxu1 %v4309_v53  ;;  %v3179_v53 = vld [vmem:[#allocation14 + $0x100] sm:$0xff] }
 0x677   : > { %4312 = vmatprep.subr.bf16.mxu1 %v4311_v61  ;;  %v3184_v61 = vld [vmem:[#allocation14 + $0x128] sm:$0xff]  ;;  %v4325_v19 = vpack.c.bf16 %v3181_v7, %v3179_v53  ;;  %v3191_v53 = vld [vmem:[#allocation14 + $0x160] sm:$0xff]  ;;  %v3193_v7 = vld [vmem:[#allocation14 + $0x170] sm:$0xff] }
 0x678   : > { %v4327_v9 = vpack.c.bf16 %v3186_v14, %v3184_v61  ;;  %v3196_v14 = vld [vmem:[#allocation14 + $0x188] sm:$0xff] }
 0x67a   : > { %4314 = vmatpush1.bf16.msra.mxu1 %v4313_v5  ;;  %v3183_v5 = vld [vmem:[#allocation14 + $0x120] sm:$0xff] }
 0x67b   : > { %4316 = vmatprep.subr.bf16.mxu1 %v4315_v0  ;;  %v4329_v51 = vpack.c.bf16 %v3185_v6, %v3183_v5  ;;  %v4339_v5 = vpack.c.bf16 %v3198_v22, %v3196_v14  ;;  %v3195_v6 = vld [vmem:[#allocation14 + $0x180] sm:$0xff] }
 0x67c   : > { %v3203_v14 = vld [vmem:[#allocation14 + $0x1c0] sm:$0xff] }
 0x67e   : > { %4318 = vmatpush1.bf16.msra.mxu1 %v4317_v32  ;;  %v4331_v32 = vpack.c.bf16 %v3190_v26, %v3188_v4 }
 0x67f   : > { %4320 = vmatprep.subr.bf16.mxu1 %v4319_v35  ;;  %v3187_v35 = vld [vmem:[#allocation14 + $0x140] sm:$0xff] }
 0x682   : > { %4322 = vmatpush1.bf16.msra.mxu1 %v4321_v59  ;;  %v4333_v59 = vpack.c.bf16 %v3189_v41, %v3187_v35  ;;  %v3202_v35 = vld [vmem:[#allocation14 + $0x1b8] sm:$0xff] }
 0x683   : > { %4324 = vmatprep.subr.bf16.mxu1 %v4323_v54  ;;  %v4335_v54 = vpack.c.bf16 %v3194_v56, %v3192_v15  ;;  %v3199_v15 = vld [vmem:[#allocation14 + $0x1a0] sm:$0xff]  ;;  %v3201_v56 = vld [vmem:[#allocation14 + $0x1b0] sm:$0xff] }
 0x686   : > { %4326 = vmatpush1.bf16.msra.mxu1 %v4325_v19  ;;  %v4337_v19 = vpack.c.bf16 %v3193_v7, %v3191_v53  ;;  %v3206_v53 = vld [vmem:[#allocation14 + $0x1d8] sm:$0xff] }
 0x687   : > { %4328 = vmatprep.subr.bf16.mxu1 %v4327_v9 }
 0x68a   : > { %4330 = vmatpush1.bf16.msra.mxu1 %v4329_v51  ;;  %v3200_v51 = vld [vmem:[#allocation14 + $0x1a8] sm:$0xff] }
 0x68b   : > { %4332 = vmatprep.subr.bf16.mxu1 %v4331_v32 }
 0x68e   : > { %4334 = vmatpush1.bf16.msra.mxu1 %v4333_v59 }
 0x68f   : > { %4336 = vmatprep.subr.bf16.mxu1 %v4335_v54  ;;  %v3204_v54 = vld [vmem:[#allocation14 + $0x1c8] sm:$0xff] }
 0x692   : > { %4338 = vmatpush1.bf16.msra.mxu1 %v4337_v19  ;;  %v3205_v19 = vld [vmem:[#allocation14 + $0x1d0] sm:$0xff] }
 0x693   : > { %4340 = vmatprep.subr.bf16.mxu1 %v4339_v5 }
 0x6a8   : > { %v2572_v0 = vpop.xlane.xlu1 %2571 }
 0x6a9   : > { %4664 = vrcp.f32 %v2572_v0  ;;  %v3197_v0 = vld [vmem:[#allocation14 + $0x190] sm:$0xff] }
 0x6aa   : > { %v4341_v32 = vpack.c.bf16 %v3197_v0, %v3195_v6  ;;  %v3208_v6 = vld [vmem:[#allocation14 + $0x1e8] sm:$0xff]  ;;  %v3210_v0 = vld [vmem:[#allocation14 + $0x1f8] sm:$0xff] }
 0x6ac   : > { %v2575_v60 = vpop.xlane.xlu1 %2574  ;;  %4342 = vmatpush1.bf16.msra.mxu1 %v4341_v32 }
 0x6ad   : > { %4666 = vrcp.f32 %v2575_v60  ;;  %v4343_v60 = vpack.c.bf16 %v3202_v35, %v3200_v51  ;;  %v4351_v51 = vpack.c.bf16 %v3210_v0, %v3208_v6 }
 0x6af   : > { %4344 = vmatprep.subr.bf16.mxu1 %v4343_v60 }
 0x6b0   : > { %v2578_v61 = vpop.xlane.xlu1 %2577 }
 0x6b1   : > { %4668 = vrcp.f32 %v2578_v61  ;;  %v4347_v61 = vpack.c.bf16 %v3206_v53, %v3204_v54 }
 0x6b3   : > { %v4665_v9 = vpop.eup %4664 }
 0x6b4   : > { %v2581_v4 = vpop.xlane.xlu1 %2580  ;;  %v2667_v26 = vmul.f32 %v4665_v9, %v6205_v24  ;;  %v4345_v24 = vpack.c.bf16 %v3201_v56, %v3199_v15 }
 0x6b5   : > { %4670 = vrcp.f32 %v2581_v4  ;;  %v4349_v4 = vpack.c.bf16 %v3205_v19, %v3203_v14 }
 0x6b6   : > { %4099 = vmatprep.mubr.msk.f32.mxu0 %vm1447_vm0, %v2667_v26  ;;  %4346 = vmatpush1.bf16.msra.mxu1 %v4345_v24 }
 0x6b7   : > { %v4667_v41 = vpop.eup %4666  ;;  %4348 = vmatprep.subr.bf16.mxu1 %v4347_v61 }
 0x6b8   : > { %v2669_v59 = vmul.f32 %v4667_v41, %v6210_v40  ;;  %v2584_v22 = vpop.xlane.xlu1 %2583 }
 0x6b9   : > { %4672 = vrcp.f32 %v2584_v22 }
 0x6ba   : > { %4100 = vmatmul.mubr.msk.f32.vlgmr.msra.gmra.mrb[86].mxu0 %vm1447_vm0, %v2669_v59  ;;  %4350 = vmatpush1.bf16.msra.mxu1 %v4349_v4 }
 0x6bb   : > { %v4669_v7 = vpop.eup %4668  ;;  %4352 = vmatprep.subr.bf16.mxu1 %v4351_v51 }
 0x6bc   : > { %v2587_v9 = vpop.xlane.xlu1 %2586  ;;  %v2671_v5 = vmul.f32 %v4669_v7, %v6215_v52  ;;  %v2602_v40 = vpop.xlane.xlu0 %2601 }
 0x6bd   : > { %4674 = vrcp.f32 %v2587_v9 }
 0x6be   : > { %4102 = vmatprep.mubr.msk.f32.mxu0 %vm1447_vm0, %v2671_v5 }
 0x6bf   : > { %v4671_v26 = vpop.eup %4670 }
 0x6c0   : > { %v2590_v35 = vpop.xlane.xlu1 %2589  ;;  %v2673_v32 = vmul.f32 %v4671_v26, %v6221_v62  ;;  %v2608_v52 = vpop.xlane.xlu0 %2607 }
 0x6c1   : > { %4676 = vrcp.f32 %v2590_v35 }
 0x6c2   : > { %4103 = vmatmul.mubr.msk.f32.gmra.mrb[88].mxu0 %vm1447_vm0, %v2673_v32 }
 0x6c3   : > { %v4673_v41 = vpop.eup %4672 }
 0x6c4   : > { %v2593_v60 = vpop.xlane.xlu1 %2592  ;;  %v2675_v15 = vmul.f32 %v4673_v41, %v6227_v10  ;;  %v2614_v54 = vpop.xlane.xlu0 %2613 }
 0x6c5   : > { %4678 = vrcp.f32 %v2593_v60 }
 0x6c6   : > { %4105 = vmatprep.mubr.msk.f32.mxu0 %vm1447_vm0, %v2675_v15 }
 0x6c7   : > { %v4675_v56 = vpop.eup %4674 }
 0x6c8   : > { %v2596_v59 = vpop.xlane.xlu1 %2595  ;;  %v2677_v22 = vmul.f32 %v4675_v56, %v6233_v57  ;;  %v2620_v7 = vpop.xlane.xlu0 %2619 }
 0x6c9   : > { %4680 = vrcp.f32 %v2596_v59 }
 0x6ca   : > { %4106 = vmatmul.mubr.msk.f32.gmra.mrb[90].mxu0 %vm1447_vm0, %v2677_v22  ;;  %4682 = vrcp.f32 %v2602_v40 }
 0x6cb   : > { %v4677_v62 = vpop.eup %4676 }
 0x6cc   : > { %v2599_v53 = vpop.xlane.xlu1 %2598  ;;  %v2679_v24 = vmul.f32 %v4677_v62, %v6243_v37  ;;  %v2626_v5 = vpop.xlane.xlu0 %2625 }
 0x6cd   : > { %4684 = vrcp.f32 %v2599_v53 }
 0x6ce   : > { %4108 = vmatprep.mubr.msk.f32.mxu0 %vm1447_vm0, %v2679_v24  ;;  %4686 = vrcp.f32 %v2608_v52 }
 0x6cf   : > { %v4679_v10 = vpop.eup %4678 }
 0x6d0   : > { %v2605_v61 = vpop.xlane.xlu1 %2604  ;;  %v2681_v14 = vmul.f32 %v4679_v10, %v6253_v38  ;;  %v2632_v51 = vpop.xlane.xlu0 %2631 }
 0x6d1   : > { %4688 = vrcp.f32 %v2605_v61 }
 0x6d2   : > { %4109 = vmatmul.mubr.msk.f32.gmra.mrb[92].mxu0 %vm1447_vm0, %v2681_v14  ;;  %4690 = vrcp.f32 %v2614_v54 }
 0x6d3   : > { %v4681_v57 = vpop.eup %4680 }
 0x6d4   : > { %v2611_v19 = vpop.xlane.xlu1 %2610  ;;  %v2683_v9 = vmul.f32 %v4681_v57, %v6263_v55  ;;  %v4683_v37 = vpop.eup %4682 }
 0x6d5   : > { %4692 = vrcp.f32 %v2611_v19  ;;  %v2687_v38 = vmul.f32 %v4683_v37, %v6236_v16  ;;  %v2638_v60 = vpop.xlane.xlu0 %2637 }
 0x6d6   : > { %4111 = vmatprep.mubr.msk.f32.mxu0 %vm1447_vm0, %v2683_v9  ;;  %4694 = vrcp.f32 %v2620_v7 }
 0x6d7   : > { %v4685_v6 = vpop.eup %4684 }
 0x6d8   : > { %v2617_v0 = vpop.xlane.xlu1 %2616  ;;  %v2685_v40 = vmul.f32 %v4685_v6, %v6273_v28  ;;  %v4687_v4 = vpop.eup %4686 }
 0x6d9   : > { %4696 = vrcp.f32 %v2617_v0  ;;  %v2691_v32 = vmul.f32 %v4687_v4, %v6246_v21 }
 0x6da   : > { %4112 = vmatmul.mubr.msk.f32.gmra.mrb[94].mxu0 %vm1447_vm0, %v2685_v40  ;;  %4698 = vrcp.f32 %v2626_v5 }
 0x6db   : > { %v4689_v26 = vpop.eup %4688  ;;  %4114 = vmatprep.mubr.msk.f32.mxu0 %vm1447_vm0, %v2687_v38 }
 0x6dc   : > { %v2623_v55 = vpop.xlane.xlu1 %2622  ;;  %v2689_v35 = vmul.f32 %v4689_v26, %v6282_v36  ;;  %v4691_v41 = vpop.eup %4690 }
 0x6dd   : > { %4700 = vrcp.f32 %v2623_v55  ;;  %v2695_v15 = vmul.f32 %v4691_v41, %v6256_v39  ;;  %v2644_v22 = vpop.xlane.xlu0 %2643 }
 0x6de   : > { %4115 = vmatmul.mubr.msk.f32.gmra.mrb[96].mxu0 %vm1447_vm0, %v2689_v35  ;;  %4702 = vrcp.f32 %v2632_v51 }
 0x6df   : > { %v4693_v28 = vpop.eup %4692  ;;  %4117 = vmatprep.mubr.msk.f32.mxu0 %vm1447_vm0, %v2691_v32 }
 0x6e0   : > { %v2629_v16 = vpop.xlane.xlu1 %2628  ;;  %v2693_v52 = vmul.f32 %v4693_v28, %v6292_v49  ;;  %v4695_v56 = vpop.eup %4694 }
 0x6e1   : > { %4704 = vrcp.f32 %v2629_v16  ;;  %v2699_v54 = vmul.f32 %v4695_v56, %v6266_v2 }
 0x6e2   : > { %4118 = vmatmul.mubr.msk.f32.gmra.mrb[98].mxu0 %vm1447_vm0, %v2693_v52  ;;  %4706 = vrcp.f32 %v2638_v60 }
 0x6e3   : > { %v4697_v36 = vpop.eup %4696  ;;  %4120 = vmatprep.mubr.msk.f32.mxu0 %vm1447_vm0, %v2695_v15 }
 0x6e4   : > { %v2635_v21 = vpop.xlane.xlu1 %2634  ;;  %v2697_v59 = vmul.f32 %v4697_v36, %v6301_v45  ;;  %v4699_v62 = vpop.eup %4698 }
 0x6e5   : > { %4708 = vrcp.f32 %v2635_v21  ;;  %v2650_v24 = vpop.xlane.xlu0 %2649  ;;  %v2703_v10 = vmul.f32 %v4699_v62, %v6275_v44 }
 0x6e6   : > { %4121 = vmatmul.mubr.msk.f32.gmra.mrb[100].mxu0 %vm1447_vm0, %v2697_v59  ;;  %4710 = vrcp.f32 %v2644_v22  ;;  %v6759_v59 = vld [vmem:[#allocation28_spill] sm:$0xff] }
 0x6e7   : > { %v4701_v49 = vpop.eup %4700  ;;  %4123 = vmatprep.mubr.msk.f32.mxu0 %vm1447_vm0, %v2699_v54  ;;  %v6760_v54 = vld [vmem:[#allocation30_spill] sm:$0xff] }
 0x6e8   : > { %v2641_v39 = vpop.xlane.xlu1 %2640  ;;  %v2701_v53 = vmul.f32 %v4701_v49, %v6307_v1  ;;  %v4703_v7 = vpop.eup %4702  ;;  %v6761_v49 = vld [vmem:[#allocation29_spill] sm:$0xff] }
 0x6e9   : > { %4712 = vrcp.f32 %v2641_v39  ;;  %v2707_v57 = vmul.f32 %v4703_v7, %v6285_v43 }
 0x6ea   : > { %4124 = vmatmul.mubr.msk.f32.gmra.mrb[102].mxu0 %vm1447_vm0, %v2701_v53  ;;  %4714 = vrcp.f32 %v2650_v24  ;;  %v6762_v53 = vld [vmem:[#allocation32_spill] sm:$0xff] }
 0x6eb   : > { %v4705_v45 = vpop.eup %4704  ;;  %4126 = vmatprep.mubr.msk.f32.mxu0 %vm1447_vm0, %v2703_v10  ;;  %v6763_v10 = vld [vmem:[#allocation31_spill] sm:$0xff] }
 0x6ec   : > { %v2647_v2 = vpop.xlane.xlu1 %2646  ;;  %v2705_v61 = vmul.f32 %v4705_v45, %v6316_v20  ;;  %v2656_v14 = vpop.xlane.xlu0 %2655 }
 0x6ed   : > { %4716 = vrcp.f32 %v2647_v2  ;;  %v4707_v19 = vpop.eup %4706  ;;  %v6764_v2 = vld [vmem:[#allocation34_spill] sm:$0xff] }
 0x6ee   : > { %4127 = vmatmul.mubr.msk.f32.gmra.mrb[104].mxu0 %vm1447_vm0, %v2705_v61  ;;  %4718 = vrcp.f32 %v2656_v14  ;;  %v2711_v5 = vmul.f32 %v4707_v19, %v6294_v46 }
 0x6ef   : > { %v4709_v1 = vpop.eup %4708  ;;  %4129 = vmatprep.mubr.msk.f32.mxu0 %vm1447_vm0, %v2707_v57  ;;  %v6765_v57 = vld [vmem:[#allocation33_spill] sm:$0xff] }
 0x6f0   : > { %v2653_v44 = vpop.xlane.xlu1 %2652  ;;  %v2709_v9 = vmul.f32 %v4709_v1, %v6321_v50  ;;  %v4711_v37 = vpop.eup %4710 }
 0x6f1   : > { %4720 = vrcp.f32 %v2653_v44  ;;  %v2715_v40 = vmul.f32 %v4711_v37, %v6309_v48  ;;  %v6766_v44 = vld [vmem:[#allocation36_spill] sm:$0xff]  ;;  %v6767_v37 = vld [vmem:[#allocation35_spill] sm:$0xff] }
 0x6f2   : > { %4130 = vmatmul.mubr.msk.f32.gmra.mrb[106].mxu0 %vm1447_vm0, %v2709_v9 }
 0x6f3   : > { %v4713_v20 = vpop.eup %4712  ;;  %4132 = vmatprep.mubr.msk.f32.mxu0 %vm1447_vm0, %v2711_v5 }
 0x6f4   : > { %v2659_v43 = vpop.xlane.xlu1 %2658  ;;  %v2662_v6 = vpop.xlane.xlu0 %2661  ;;  %v2713_v0 = vmul.f32 %v4713_v20, %v6330_v31  ;;  %v6768_v20 = vld [vmem:[#allocation38_spill] sm:$0xff] }
 0x6f5   : > { %4722 = vrcp.f32 %v2659_v43  ;;  %v4715_v38 = vpop.eup %4714  ;;  %v6769_v43 = vld [vmem:[#allocation37_spill] sm:$0xff] }
 0x6f6   : > { %4724 = vrcp.f32 %v2662_v6  ;;  %4133 = vmatmul.mubr.msk.f32.gmra.mrb[108].mxu0 %vm1447_vm0, %v2713_v0  ;;  %v2719_v26 = vmul.f32 %v4715_v38, %v6324_v18  ;;  %v6770_v6 = vld [vmem:[#allocation40_spill] sm:$0xff]  ;;  %v6771_v0 = vld [vmem:[#allocation39_spill] sm:$0xff]  ;;  %v6773_v38 = vld [vmem:[#allocation41_spill] sm:$0xff] }
 0x6f7   : > { %v4717_v50 = vpop.eup %4716  ;;  %4135 = vmatprep.mubr.msk.f32.mxu0 %vm1447_vm0, %v2715_v40  ;;  %v6772_v40 = vld [vmem:[#allocation42_spill] sm:$0xff] }
 0x6f8   : > { %v2665_v46 = vpop.xlane.xlu1 %2664  ;;  %v2717_v4 = vmul.f32 %v4717_v50, %v6335_v12  ;;  %v4719_v51 = vpop.eup %4718  ;;  %v6774_v50 = vld [vmem:[#allocation44_spill] sm:$0xff] }
 0x6f9   : > { %4726 = vrcp.f32 %v2665_v46  ;;  %v2723_v55 = vmul.f32 %v4719_v51, %v6338_v11  ;;  %v3207_v11 = vld [vmem:[#allocation14 + $0x1e0] sm:$0xff]  ;;  %v6775_v46 = vld [vmem:[#allocation43_spill] sm:$0xff]  ;;  %v6778_v51 = vld [vmem:[#allocation48_spill] sm:$0xff] }
 0x6fa   : > { %4136 = vmatmul.mubr.msk.f32.gmra.mrb[110].mxu0 %vm1447_vm0, %v2717_v4  ;;  %v6776_v4 = vld [vmem:[#allocation46_spill] sm:$0xff] }
 0x6fb   : > { %v4721_v31 = vpop.eup %4720  ;;  %4138 = vmatprep.mubr.msk.f32.mxu0 %vm1447_vm0, %v2719_v26  ;;  %v6777_v26 = vld [vmem:[#allocation45_spill] sm:$0xff] }
 0x6fc   : > { %v2721_v48 = vmul.f32 %v4721_v31, %v6344_v58  ;;  %v3209_v58 = vld [vmem:[#allocation14 + $0x1f0] sm:$0xff]  ;;  %v6779_v31 = vld [vmem:[#allocation47_spill] sm:$0xff] }
 0x6fd   : > { %v4353_v16 = vpack.c.bf16 %v3209_v58, %v3207_v11 }
 0x6fe   : > { %4139 = vmatmul.mubr.msk.f32.gmra.mrb[112].mxu0 %vm1447_vm0, %v2721_v48  ;;  %v3211_v48 = vld [vmem:[%s6780_s30] sm:$0x3] }
 0x6ff   : > { %v4723_v35 = vpop.eup %4722  ;;  %4141 = vmatprep.mubr.msk.f32.mxu0 %vm1447_vm0, %v2723_v55  ;;  %4354 = vmatpush1.bf16.msra.mxu1 %v4353_v16  ;;  %v6781_v55 = vld [vmem:[#allocation27_spill] sm:$0xff] }
 0x700   : > { %v4725_v32 = vpop.eup %4724  ;;  %v2725_v12 = vmul.f32 %v4723_v35, %v6348_v27  ;;  %v6460_v35 = vrot.slane %v3211_v48, %v6781_v55 }
 0x701   : > { %v2727_v18 = vmul.f32 %v4725_v32, %v6350_v13  ;;  %v6782_v32 = vld [vmem:[#allocation26_spill] sm:$0xff] }
 0x702   : > { %4142 = vmatmul.mubr.msk.f32.gmra.mrb[114].mxu0 %vm1447_vm0, %v2725_v12  ;;  %v6463_v12 = vrot.slane %v3211_v48, %v6782_v32 }
 0x703   : > { %v4727_v41 = vpop.eup %4726  ;;  %4144 = vmatprep.mubr.msk.f32.mxu0 %vm1447_vm0, %v2727_v18 }
 0x704   : > { %v2729_v28 = vmul.f32 %v4727_v41, %v6356_v47 }
 0x706   : > { %4145 = vmatmul.mubr.msk.f32.gmra.mrb[116].mxu0 %vm1447_vm0, %v2729_v28 }
 0x78d   : > { %v4101_v52 = vpop.f32.mrb[86].mxu0 }
 0x78e   : > { %v2892_v60 = vpop.f32.mrb[87].mxu0 }
 0x78f   : > { %3287 = vmatprep.mubr.f32.mxu1 %v2892_v60 }
 0x790   : > { %3288 = vmatmul.mubr.f32.vlgmr.msra.gmra.mrb[82].mxu1 %v6010_v42 }
 0x791   : > { %3293 = vmatprep.mubr.f32.mxu1 %v4101_v52 }
 0x794   : > { %3294 = vmatmul.mubr.f32.gmra.mrb[84].mxu1 %v6008_v30 }
 0x795   : > { %v4104_v27 = vpop.f32.mrb[88].mxu0 }
 0x796   : > { %v2902_v13 = vpop.f32.mrb[89].mxu0 }
 0x797   : > { %3299 = vmatprep.mubr.f32.mxu1 %v2902_v13 }
 0x798   : > { %3300 = vmatmul.mubr.f32.gmra.mrb[86].mxu1 %v6014_v8 }
 0x799   : > { %3305 = vmatprep.mubr.f32.mxu1 %v4104_v27 }
 0x79c   : > { %3306 = vmatmul.mubr.f32.gmra.mrb[88].mxu1 %v6012_v34 }
 0x79d   : > { %v4107_v47 = vpop.f32.mrb[90].mxu0 }
 0x79e   : > { %v2912_v15 = vpop.f32.mrb[91].mxu0 }
 0x79f   : > { %3311 = vmatprep.mubr.f32.mxu1 %v2912_v15 }
 0x7a0   : > { %3312 = vmatmul.mubr.f32.gmra.mrb[90].mxu1 %v6018_v33 }
 0x7a1   : > { %3317 = vmatprep.mubr.f32.mxu1 %v4107_v47 }
 0x7a4   : > { %3318 = vmatmul.mubr.f32.gmra.mrb[92].mxu1 %v6016_v3 }
 0x7a5   : > { %v4110_v42 = vpop.f32.mrb[92].mxu0 }
 0x7a6   : > { %v2922_v56 = vpop.f32.mrb[93].mxu0 }
 0x7a7   : > { %3323 = vmatprep.mubr.f32.mxu1 %v2922_v56 }
 0x7a8   : > { %3324 = vmatmul.mubr.f32.gmra.mrb[94].mxu1 %v6022_v23 }
 0x7a9   : > { %3329 = vmatprep.mubr.f32.mxu1 %v4110_v42 }
 0x7ac   : > { %3330 = vmatmul.mubr.f32.gmra.mrb[96].mxu1 %v6020_v25 }
 0x7ad   : > { %v4113_v30 = vpop.f32.mrb[94].mxu0 }
 0x7ae   : > { %v2932_v8 = vpop.f32.mrb[95].mxu0 }
 0x7af   : > { %3335 = vmatprep.mubr.f32.mxu1 %v2932_v8 }
 0x7b0   : > { %3336 = vmatmul.mubr.f32.gmra.mrb[98].mxu1 %v6026_v29 }
 0x7b1   : > { %v4116_v34 = vpop.f32.mrb[96].mxu0  ;;  %3341 = vmatprep.mubr.f32.mxu1 %v4113_v30 }
 0x7b2   : > { %v2942_v36 = vpop.f32.mrb[97].mxu0 }
 0x7b4   : > { %3342 = vmatmul.mubr.f32.gmra.mrb[100].mxu1 %v6024_v63 }
 0x7b5   : > { %v4119_v33 = vpop.f32.mrb[98].mxu0  ;;  %3347 = vmatprep.mubr.f32.mxu1 %v2942_v36 }
 0x7b6   : > { %v2952_v3 = vpop.f32.mrb[99].mxu0 }
 0x7b8   : > { %3348 = vmatmul.mubr.f32.gmra.mrb[102].mxu1 %v6030_v17 }
 0x7b9   : > { %v4122_v21 = vpop.f32.mrb[100].mxu0  ;;  %3353 = vmatprep.mubr.f32.mxu1 %v4116_v34 }
 0x7ba   : > { %v2962_v23 = vpop.f32.mrb[101].mxu0 }
 0x7bc   : > { %3354 = vmatmul.mubr.f32.gmra.mrb[104].mxu1 %v6759_v59 }
 0x7bd   : > { %v4125_v25 = vpop.f32.mrb[102].mxu0  ;;  %3359 = vmatprep.mubr.f32.mxu1 %v2952_v3 }
 0x7be   : > { %v2972_v22 = vpop.f32.mrb[103].mxu0 }
 0x7c0   : > { %3360 = vmatmul.mubr.f32.gmra.mrb[106].mxu1 %v6760_v54 }
 0x7c1   : > { %v4128_v29 = vpop.f32.mrb[104].mxu0  ;;  %3365 = vmatprep.mubr.f32.mxu1 %v4119_v33 }
 0x7c2   : > { %v2982_v62 = vpop.f32.mrb[105].mxu0 }
 0x7c4   : > { %3366 = vmatmul.mubr.f32.gmra.mrb[108].mxu1 %v6761_v49 }
 0x7c5   : > { %v4131_v63 = vpop.f32.mrb[106].mxu0  ;;  %3371 = vmatprep.mubr.f32.mxu1 %v2962_v23 }
 0x7c6   : > { %v2992_v39 = vpop.f32.mrb[107].mxu0 }
 0x7c8   : > { %3372 = vmatmul.mubr.f32.gmra.mrb[110].mxu1 %v6762_v53 }
 0x7c9   : > { %v4134_v17 = vpop.f32.mrb[108].mxu0  ;;  %3377 = vmatprep.mubr.f32.mxu1 %v4122_v21 }
 0x7ca   : > { %v3002_v24 = vpop.f32.mrb[109].mxu0 }
 0x7cc   : > { %3378 = vmatmul.mubr.f32.gmra.mrb[112].mxu1 %v6763_v10 }
 0x7cd   : > { %v4137_v7 = vpop.f32.mrb[110].mxu0  ;;  %3383 = vmatprep.mubr.f32.mxu1 %v2972_v22 }
 0x7ce   : > { %v3012_v45 = vpop.f32.mrb[111].mxu0 }
 0x7d0   : > { %3384 = vmatmul.mubr.f32.gmra.mrb[114].mxu1 %v6764_v2 }
 0x7d1   : > { %v4140_v61 = vpop.f32.mrb[112].mxu0  ;;  %3389 = vmatprep.mubr.f32.mxu1 %v4125_v25 }
 0x7d2   : > { %v3022_v14 = vpop.f32.mrb[113].mxu0 }
 0x7d4   : > { %3390 = vmatmul.mubr.f32.gmra.mrb[116].mxu1 %v6765_v57 }
 0x7d5   : > { %v4143_v19 = vpop.f32.mrb[114].mxu0  ;;  %3395 = vmatprep.mubr.f32.mxu1 %v2982_v62 }
 0x7d6   : > { %v3032_v1 = vpop.f32.mrb[115].mxu0 }
 0x7d8   : > { %3396 = vmatmul.mubr.f32.gmra.mrb[118].mxu1 %v6766_v44 }
 0x7d9   : > { %v4146_v9 = vpop.f32.mrb[116].mxu0  ;;  %3401 = vmatprep.mubr.f32.mxu1 %v4128_v29 }
 0x7da   : > { %v3042_v5 = vpop.f32.mrb[117].mxu0 }
 0x7dc   : > { %3402 = vmatmul.mubr.f32.gmra.mrb[120].mxu1 %v6767_v37 }
 0x7dd   : > { %3407 = vmatprep.mubr.f32.mxu1 %v2992_v39 }
 0x7e0   : > { %3408 = vmatmul.mubr.f32.gmra.mrb[122].mxu1 %v6768_v20 }
 0x7e1   : > { %3413 = vmatprep.mubr.f32.mxu1 %v4131_v63 }
 0x7e4   : > { %3414 = vmatmul.mubr.f32.gmra.mrb[124].mxu1 %v6769_v43 }
 0x7e5   : > { %3419 = vmatprep.mubr.f32.mxu1 %v3002_v24 }
 0x7e8   : > { %3420 = vmatmul.mubr.f32.gmra.mrb[126].mxu1 %v6770_v6 }
 0x7e9   : > { %3425 = vmatprep.mubr.f32.mxu1 %v4134_v17 }
 0x7ec   : > { %3426 = vmatmul.mubr.f32.gmra.mrb[128].mxu1 %v6771_v0 }
 0x7ed   : > { %3431 = vmatprep.mubr.f32.mxu1 %v3012_v45 }
 0x7f0   : > { %3432 = vmatmul.mubr.f32.gmra.mrb[130].mxu1 %v6772_v40 }
 0x7f1   : > { %3437 = vmatprep.mubr.f32.mxu1 %v4137_v7 }
 0x7f4   : > { %3438 = vmatmul.mubr.f32.gmra.mrb[132].mxu1 %v6773_v38 }
 0x7f5   : > { %3443 = vmatprep.mubr.f32.mxu1 %v3022_v14 }
 0x7f8   : > { %3444 = vmatmul.mubr.f32.gmra.mrb[134].mxu1 %v6774_v50 }
 0x7f9   : > { %3449 = vmatprep.mubr.f32.mxu1 %v4140_v61 }
 0x7fc   : > { %3450 = vmatmul.mubr.f32.gmra.mrb[136].mxu1 %v6775_v46 }
 0x7fd   : > { %3455 = vmatprep.mubr.f32.mxu1 %v3032_v1 }
 0x800   : > { %3456 = vmatmul.mubr.f32.gmra.mrb[138].mxu1 %v6776_v4 }
 0x801   : > { %3461 = vmatprep.mubr.f32.mxu1 %v4143_v19 }
 0x804   : > { %3462 = vmatmul.mubr.f32.gmra.mrb[140].mxu1 %v6777_v26 }
 0x805   : > { %3467 = vmatprep.mubr.f32.mxu1 %v3042_v5 }
 0x808   : > { %3468 = vmatmul.mubr.f32.gmra.mrb[142].mxu1 %v6778_v51 }
 0x809   : > { %3473 = vmatprep.mubr.f32.mxu1 %v4146_v9 }
 0x80c   : > { %3474 = vmatmul.mubr.f32.gmra.mrb[144].mxu1 %v6779_v31 }
 0x863   : > { %v3289_v18 = vpop.f32.mrb[82].mxu1 }
 0x864   : > { %v3290_v41 = vadd.f32 %v3289_v18, %v6460_v35  ;;  %v3291_v28 = vpop.f32.mrb[83].mxu1 }
 0x865   : > { %v3292_v11 = vadd.f32 %v3291_v28, %v6463_v12 }
 0x866   : > { %3480 = vst [vmem:[%s6469_s6] sm:$0xff] %v3290_v41 }
 0x867   : > { %3481 = vst [vmem:[%s6469_s6 + $0x8] sm:$0xff] %v3292_v11  ;;  %v3295_v58 = vpop.f32.mrb[84].mxu1 }
 0x868   : > { %v3296_v16 = vadd.f32 %v3295_v58, %v6460_v35  ;;  %v3297_v52 = vpop.f32.mrb[85].mxu1 }
 0x869   : > { %v3298_v60 = vadd.f32 %v3297_v52, %v6463_v12 }
 0x86a   : > { %3482 = vst [vmem:[%s6469_s6 + $0x10] sm:$0xff] %v3296_v16 }
 0x86b   : > { %3483 = vst [vmem:[%s6469_s6 + $0x18] sm:$0xff] %v3298_v60  ;;  %v3301_v27 = vpop.f32.mrb[86].mxu1 }
 0x86c   : > { %v3302_v13 = vadd.f32 %v3301_v27, %v6460_v35  ;;  %v3303_v47 = vpop.f32.mrb[87].mxu1 }
 0x86d   : > { %v3304_v15 = vadd.f32 %v3303_v47, %v6463_v12 }
 0x86e   : > { %3484 = vst [vmem:[%s6469_s6 + $0x20] sm:$0xff] %v3302_v13 }
 0x86f   : > { %3485 = vst [vmem:[%s6469_s6 + $0x28] sm:$0xff] %v3304_v15  ;;  %v3307_v42 = vpop.f32.mrb[88].mxu1 }
 0x870   : > { %v3308_v56 = vadd.f32 %v3307_v42, %v6460_v35  ;;  %v3309_v30 = vpop.f32.mrb[89].mxu1 }
 0x871   : > { %v3310_v8 = vadd.f32 %v3309_v30, %v6463_v12 }
 0x872   : > { %3486 = vst [vmem:[%s6469_s6 + $0x30] sm:$0xff] %v3308_v56 }
 0x873   : > { %3487 = vst [vmem:[%s6469_s6 + $0x38] sm:$0xff] %v3310_v8  ;;  %v3313_v34 = vpop.f32.mrb[90].mxu1 }
 0x874   : > { %v3314_v36 = vadd.f32 %v3313_v34, %v6460_v35  ;;  %v3315_v33 = vpop.f32.mrb[91].mxu1 }
 0x875   : > { %v3316_v3 = vadd.f32 %v3315_v33, %v6463_v12 }
 0x876   : > { %3488 = vst [vmem:[%s6469_s6 + $0x40] sm:$0xff] %v3314_v36 }
 0x877   : > { %3489 = vst [vmem:[%s6469_s6 + $0x48] sm:$0xff] %v3316_v3  ;;  %v3319_v21 = vpop.f32.mrb[92].mxu1 }
 0x878   : > { %v3320_v23 = vadd.f32 %v3319_v21, %v6460_v35  ;;  %v3321_v59 = vpop.f32.mrb[93].mxu1 }
 0x879   : > { %v3322_v25 = vadd.f32 %v3321_v59, %v6463_v12 }
 0x87a   : > { %3490 = vst [vmem:[%s6469_s6 + $0x50] sm:$0xff] %v3320_v23 }
 0x87b   : > { %3491 = vst [vmem:[%s6469_s6 + $0x58] sm:$0xff] %v3322_v25  ;;  %v3325_v22 = vpop.f32.mrb[94].mxu1 }
 0x87c   : > { %v3326_v54 = vadd.f32 %v3325_v22, %v6460_v35  ;;  %v3327_v29 = vpop.f32.mrb[95].mxu1 }
 0x87d   : > { %v3328_v62 = vadd.f32 %v3327_v29, %v6463_v12 }
 0x87e   : > { %3492 = vst [vmem:[%s6469_s6 + $0x60] sm:$0xff] %v3326_v54 }
 0x87f   : > { %3493 = vst [vmem:[%s6469_s6 + $0x68] sm:$0xff] %v3328_v62  ;;  %v3331_v49 = vpop.f32.mrb[96].mxu1 }
 0x880   : > { %v3332_v63 = vadd.f32 %v3331_v49, %v6460_v35  ;;  %v3333_v39 = vpop.f32.mrb[97].mxu1 }
 0x881   : > { %v3334_v53 = vadd.f32 %v3333_v39, %v6463_v12 }
 0x882   : > { %3494 = vst [vmem:[%s6469_s6 + $0x70] sm:$0xff] %v3332_v63 }
 0x883   : > { %3495 = vst [vmem:[%s6469_s6 + $0x78] sm:$0xff] %v3334_v53  ;;  %v3337_v17 = vpop.f32.mrb[98].mxu1 }
 0x884   : > { %v3338_v24 = vadd.f32 %v3337_v17, %v6460_v35  ;;  %v3339_v10 = vpop.f32.mrb[99].mxu1 }
 0x885   : > { %v3340_v7 = vadd.f32 %v3339_v10, %v6463_v12 }
 0x886   : > { %3496 = vst [vmem:[%s6469_s6 + $0x80] sm:$0xff] %v3338_v24 }
 0x887   : > { %3497 = vst [vmem:[%s6469_s6 + $0x88] sm:$0xff] %v3340_v7  ;;  %v3343_v45 = vpop.f32.mrb[100].mxu1 }
 0x888   : > { %v3344_v2 = vadd.f32 %v3343_v45, %v6460_v35  ;;  %v3345_v61 = vpop.f32.mrb[101].mxu1 }
 0x889   : > { %v3346_v14 = vadd.f32 %v3345_v61, %v6463_v12 }
 0x88a   : > { %3498 = vst [vmem:[%s6469_s6 + $0x90] sm:$0xff] %v3344_v2 }
 0x88b   : > { %3499 = vst [vmem:[%s6469_s6 + $0x98] sm:$0xff] %v3346_v14  ;;  %v3349_v57 = vpop.f32.mrb[102].mxu1 }
 0x88c   : > { %v3350_v19 = vadd.f32 %v3349_v57, %v6460_v35  ;;  %v3351_v1 = vpop.f32.mrb[103].mxu1 }
 0x88d   : > { %v3352_v44 = vadd.f32 %v3351_v1, %v6463_v12 }
 0x88e   : > { %3500 = vst [vmem:[%s6469_s6 + $0xa0] sm:$0xff] %v3350_v19 }
 0x88f   : > { %3501 = vst [vmem:[%s6469_s6 + $0xa8] sm:$0xff] %v3352_v44  ;;  %v3355_v9 = vpop.f32.mrb[104].mxu1 }
 0x890   : > { %v3356_v5 = vadd.f32 %v3355_v9, %v6460_v35  ;;  %v3357_v37 = vpop.f32.mrb[105].mxu1 }
 0x891   : > { %v3358_v20 = vadd.f32 %v3357_v37, %v6463_v12 }
 0x892   : > { %3502 = vst [vmem:[%s6469_s6 + $0xb0] sm:$0xff] %v3356_v5 }
 0x893   : > { %3503 = vst [vmem:[%s6469_s6 + $0xb8] sm:$0xff] %v3358_v20  ;;  %v3361_v43 = vpop.f32.mrb[106].mxu1 }
 0x894   : > { %v3362_v6 = vadd.f32 %v3361_v43, %v6460_v35  ;;  %v3363_v0 = vpop.f32.mrb[107].mxu1 }
 0x895   : > { %v3364_v40 = vadd.f32 %v3363_v0, %v6463_v12 }
 0x896   : > { %3504 = vst [vmem:[%s6469_s6 + $0xc0] sm:$0xff] %v3362_v6 }
 0x897   : > { %3505 = vst [vmem:[%s6469_s6 + $0xc8] sm:$0xff] %v3364_v40  ;;  %v3367_v38 = vpop.f32.mrb[108].mxu1 }
 0x898   : > { %v3368_v50 = vadd.f32 %v3367_v38, %v6460_v35  ;;  %v3369_v46 = vpop.f32.mrb[109].mxu1 }
 0x899   : > { %v3370_v4 = vadd.f32 %v3369_v46, %v6463_v12 }
 0x89a   : > { %3506 = vst [vmem:[%s6469_s6 + $0xd0] sm:$0xff] %v3368_v50 }
 0x89b   : > { %3507 = vst [vmem:[%s6469_s6 + $0xd8] sm:$0xff] %v3370_v4  ;;  %v3373_v26 = vpop.f32.mrb[110].mxu1 }
 0x89c   : > { %v3374_v51 = vadd.f32 %v3373_v26, %v6460_v35  ;;  %v3375_v31 = vpop.f32.mrb[111].mxu1 }
 0x89d   : > { %v3376_v48 = vadd.f32 %v3375_v31, %v6463_v12 }
 0x89e   : > { %3508 = vst [vmem:[%s6469_s6 + $0xe0] sm:$0xff] %v3374_v51 }
 0x89f   : > { %3509 = vst [vmem:[%s6469_s6 + $0xe8] sm:$0xff] %v3376_v48  ;;  %v3379_v55 = vpop.f32.mrb[112].mxu1 }
 0x8a0   : > { %v3380_v32 = vadd.f32 %v3379_v55, %v6460_v35  ;;  %v3381_v18 = vpop.f32.mrb[113].mxu1 }
 0x8a1   : > { %v3382_v41 = vadd.f32 %v3381_v18, %v6463_v12 }
 0x8a2   : > { %3510 = vst [vmem:[%s6469_s6 + $0xf0] sm:$0xff] %v3380_v32 }
 0x8a3   : > { %3511 = vst [vmem:[%s6469_s6 + $0xf8] sm:$0xff] %v3382_v41  ;;  %v3385_v28 = vpop.f32.mrb[114].mxu1 }
 0x8a4   : > { %v3386_v11 = vadd.f32 %v3385_v28, %v6460_v35  ;;  %v3387_v58 = vpop.f32.mrb[115].mxu1 }
 0x8a5   : > { %v3388_v16 = vadd.f32 %v3387_v58, %v6463_v12 }
 0x8a6   : > { %3512 = vst [vmem:[%s6469_s6 + $0x100] sm:$0xff] %v3386_v11 }
 0x8a7   : > { %3513 = vst [vmem:[%s6469_s6 + $0x108] sm:$0xff] %v3388_v16  ;;  %v3391_v52 = vpop.f32.mrb[116].mxu1 }
 0x8a8   : > { %v3392_v60 = vadd.f32 %v3391_v52, %v6460_v35  ;;  %v3393_v27 = vpop.f32.mrb[117].mxu1 }
 0x8a9   : > { %v3394_v13 = vadd.f32 %v3393_v27, %v6463_v12 }
 0x8aa   : > { %3514 = vst [vmem:[%s6469_s6 + $0x110] sm:$0xff] %v3392_v60 }
 0x8ab   : > { %3515 = vst [vmem:[%s6469_s6 + $0x118] sm:$0xff] %v3394_v13  ;;  %v3397_v47 = vpop.f32.mrb[118].mxu1 }
 0x8ac   : > { %v3398_v15 = vadd.f32 %v3397_v47, %v6460_v35  ;;  %v3399_v42 = vpop.f32.mrb[119].mxu1 }
 0x8ad   : > { %v3400_v56 = vadd.f32 %v3399_v42, %v6463_v12 }
 0x8ae   : > { %3516 = vst [vmem:[%s6469_s6 + $0x120] sm:$0xff] %v3398_v15 }
 0x8af   : > { %3517 = vst [vmem:[%s6469_s6 + $0x128] sm:$0xff] %v3400_v56  ;;  %v3403_v30 = vpop.f32.mrb[120].mxu1 }
 0x8b0   : > { %v3404_v8 = vadd.f32 %v3403_v30, %v6460_v35  ;;  %v3405_v34 = vpop.f32.mrb[121].mxu1 }
 0x8b1   : > { %v3406_v36 = vadd.f32 %v3405_v34, %v6463_v12 }
 0x8b2   : > { %3518 = vst [vmem:[%s6469_s6 + $0x130] sm:$0xff] %v3404_v8 }
 0x8b3   : > { %3519 = vst [vmem:[%s6469_s6 + $0x138] sm:$0xff] %v3406_v36  ;;  %v3409_v33 = vpop.f32.mrb[122].mxu1 }
 0x8b4   : > { %v3410_v3 = vadd.f32 %v3409_v33, %v6460_v35  ;;  %v3411_v21 = vpop.f32.mrb[123].mxu1 }
 0x8b5   : > { %v3412_v23 = vadd.f32 %v3411_v21, %v6463_v12 }
 0x8b6   : > { %3520 = vst [vmem:[%s6469_s6 + $0x140] sm:$0xff] %v3410_v3 }
 0x8b7   : > { %3521 = vst [vmem:[%s6469_s6 + $0x148] sm:$0xff] %v3412_v23  ;;  %v3415_v59 = vpop.f32.mrb[124].mxu1 }
 0x8b8   : > { %v3416_v25 = vadd.f32 %v3415_v59, %v6460_v35  ;;  %v3417_v22 = vpop.f32.mrb[125].mxu1 }
 0x8b9   : > { %v3418_v54 = vadd.f32 %v3417_v22, %v6463_v12 }
 0x8ba   : > { %3522 = vst [vmem:[%s6469_s6 + $0x150] sm:$0xff] %v3416_v25 }
 0x8bb   : > { %3523 = vst [vmem:[%s6469_s6 + $0x158] sm:$0xff] %v3418_v54  ;;  %v3421_v29 = vpop.f32.mrb[126].mxu1 }
 0x8bc   : > { %v3422_v62 = vadd.f32 %v3421_v29, %v6460_v35  ;;  %v3423_v49 = vpop.f32.mrb[127].mxu1 }
 0x8bd   : > { %v3424_v63 = vadd.f32 %v3423_v49, %v6463_v12 }
 0x8be   : > { %3524 = vst [vmem:[%s6469_s6 + $0x160] sm:$0xff] %v3422_v62 }
 0x8bf   : > { %3525 = vst [vmem:[%s6469_s6 + $0x168] sm:$0xff] %v3424_v63  ;;  %v3427_v39 = vpop.f32.mrb[128].mxu1 }
 0x8c0   : > { %v3428_v53 = vadd.f32 %v3427_v39, %v6460_v35  ;;  %v3429_v17 = vpop.f32.mrb[129].mxu1 }
 0x8c1   : > { %v3430_v24 = vadd.f32 %v3429_v17, %v6463_v12 }
 0x8c2   : > { %3526 = vst [vmem:[%s6469_s6 + $0x170] sm:$0xff] %v3428_v53 }
 0x8c3   : > { %3527 = vst [vmem:[%s6469_s6 + $0x178] sm:$0xff] %v3430_v24  ;;  %v3433_v10 = vpop.f32.mrb[130].mxu1 }
 0x8c4   : > { %v3434_v7 = vadd.f32 %v3433_v10, %v6460_v35  ;;  %v3435_v45 = vpop.f32.mrb[131].mxu1 }
 0x8c5   : > { %v3436_v2 = vadd.f32 %v3435_v45, %v6463_v12 }
 0x8c6   : > { %3528 = vst [vmem:[%s6469_s6 + $0x180] sm:$0xff] %v3434_v7 }
 0x8c7   : > { %3529 = vst [vmem:[%s6469_s6 + $0x188] sm:$0xff] %v3436_v2  ;;  %v3439_v61 = vpop.f32.mrb[132].mxu1 }
 0x8c8   : > { %v3440_v14 = vadd.f32 %v3439_v61, %v6460_v35  ;;  %v3441_v57 = vpop.f32.mrb[133].mxu1 }
 0x8c9   : > { %v3442_v19 = vadd.f32 %v3441_v57, %v6463_v12 }
 0x8ca   : > { %3530 = vst [vmem:[%s6469_s6 + $0x190] sm:$0xff] %v3440_v14 }
 0x8cb   : > { %3531 = vst [vmem:[%s6469_s6 + $0x198] sm:$0xff] %v3442_v19  ;;  %v3445_v1 = vpop.f32.mrb[134].mxu1 }
 0x8cc   : > { %v3446_v44 = vadd.f32 %v3445_v1, %v6460_v35  ;;  %v3447_v9 = vpop.f32.mrb[135].mxu1 }
 0x8cd   : > { %v3448_v5 = vadd.f32 %v3447_v9, %v6463_v12 }
 0x8ce   : > { %3532 = vst [vmem:[%s6469_s6 + $0x1a0] sm:$0xff] %v3446_v44 }
 0x8cf   : > { %3533 = vst [vmem:[%s6469_s6 + $0x1a8] sm:$0xff] %v3448_v5  ;;  %v3451_v37 = vpop.f32.mrb[136].mxu1 }
 0x8d0   : > { %v3452_v20 = vadd.f32 %v3451_v37, %v6460_v35  ;;  %v3453_v43 = vpop.f32.mrb[137].mxu1 }
 0x8d1   : > { %v3454_v6 = vadd.f32 %v3453_v43, %v6463_v12 }
 0x8d2   : > { %3534 = vst [vmem:[%s6469_s6 + $0x1b0] sm:$0xff] %v3452_v20 }
 0x8d3   : > { %3535 = vst [vmem:[%s6469_s6 + $0x1b8] sm:$0xff] %v3454_v6  ;;  %v3457_v0 = vpop.f32.mrb[138].mxu1 }
 0x8d4   : > { %v3458_v40 = vadd.f32 %v3457_v0, %v6460_v35  ;;  %v3459_v38 = vpop.f32.mrb[139].mxu1 }
 0x8d5   : > { %v3460_v50 = vadd.f32 %v3459_v38, %v6463_v12 }
 0x8d6   : > { %3536 = vst [vmem:[%s6469_s6 + $0x1c0] sm:$0xff] %v3458_v40 }
 0x8d7   : > { %3537 = vst [vmem:[%s6469_s6 + $0x1c8] sm:$0xff] %v3460_v50  ;;  %v3463_v46 = vpop.f32.mrb[140].mxu1 }
 0x8d8   : > { %v3464_v4 = vadd.f32 %v3463_v46, %v6460_v35  ;;  %v3465_v26 = vpop.f32.mrb[141].mxu1 }
 0x8d9   : > { %v3466_v51 = vadd.f32 %v3465_v26, %v6463_v12 }
 0x8da   : > { %3538 = vst [vmem:[%s6469_s6 + $0x1d0] sm:$0xff] %v3464_v4 }
 0x8db   : > { %3539 = vst [vmem:[%s6469_s6 + $0x1d8] sm:$0xff] %v3466_v51  ;;  %v3469_v31 = vpop.f32.mrb[142].mxu1 }
 0x8dc   : > { %v3470_v48 = vadd.f32 %v3469_v31, %v6460_v35  ;;  %v3471_v55 = vpop.f32.mrb[143].mxu1 }
 0x8dd   : > { %v3472_v32 = vadd.f32 %v3471_v55, %v6463_v12 }
 0x8de   : > { %3540 = vst [vmem:[%s6469_s6 + $0x1e0] sm:$0xff] %v3470_v48 }
 0x8df   : > { %3541 = vst [vmem:[%s6469_s6 + $0x1e8] sm:$0xff] %v3472_v32  ;;  %v3475_v18 = vpop.f32.mrb[144].mxu1 }
 0x8e0   : > { %v3476_v41 = vadd.f32 %v3475_v18, %v6460_v35  ;;  %v3477_v28 = vpop.f32.mrb[145].mxu1 }
 0x8e1   : > { %v3478_v11 = vadd.f32 %v3477_v28, %v6463_v12 }
 0x8e2   : > { %3542 = vst [vmem:[%s6469_s6 + $0x1f0] sm:$0xff] %v3476_v41 }
 0x8e3   : > { %3543 = vst [vmem:[%s6469_s6 + $0x1f8] sm:$0xff] %v3478_v11 }
 0x8e4   : > { %4913 = shalt.err (!%p4910_p6)
}
 0x8e5   : > { %s4914_s28 = scalar_lea.hbm %s6599_s23, 8192  ;;  %s4918_s29 = scalar_lea.hbm %s6784_s4, 16384 }
 0x8e6   : > { %p4915_p7 = scmp.ne.s32.totalorder %s6599_s23, %s4914_s28  ;;  %p4919_p2 = scmp.lt.u32.totalorder %s6599_s23, %s6784_s4 }
 0x8e7   : > { %p4920_p13 = scmp.lt.u32.totalorder %s4918_s29, %s4914_s28  ;;  %p4922_p1 = scmp.lt.u32.totalorder %s4914_s28, %s6599_s23 }
 0x8e8   : > { %p4916_p9 = pnand %p4915_p7, %p5249_p5 }
 0x8e9   : > { %p4921_p4 = por %p4920_p13, %p4919_p2 }
 0x8ea   : > { %p4917_p0 = pneg %p4916_p9 }
 0x8eb   : > { %p4923_p8 = por %p4922_p1, %p4921_p4 }
 0x8ed   : > { %p4924_p10 = pnand %p4923_p8, %p4917_p0 }
 0x8ef   : > { %4927 = shalt.err (!%p4924_p10)
}
 0x8f0   : > { %s5012_s6 = smov 256   ;;  %s5013_s26 = smov 16  }
 0x8f1   : > { %4377 = dma.vmem_to_hbm [thread:$0]  (%p5249_p5), %s6601_s12, 8192, %s6599_s23, %s3545_s3, %s5012_s6, %s5012_s6, %s5013_s26  }
 0x8f2 PF: > { %s6785_s11 = sld [smem:[#allocation23_spill]]  ;;  %s6786_s20 = sld [smem:[#allocation25_spill]] }
 0x8f3   : > { %p6788_p11 = scmp.ge.s32.totalorder %s4998_s18, 2 }
 0x8f8   : > { %s3576_s0 = sand.u32 1, %s6785_s11   ;;  %p6787_p3 = scmp.ne.s32.totalorder %s6786_s20, 0 }
 0x8f9   : > { %s3577_s19 = scalar_lea.sflag [#allocation7], %s3576_s0 }
 0x8fa   : > { %p4400_p12 = pnand %p6788_p11, %p6787_p3 }
 0x8fc   : > { %4973 = dma.done.wait (!%p4400_p12), %s3577_s19, 8192  }
 0x8fd   : > { %4975 = vsyncadd (!%p4400_p12), %s3577_s19, 4294959104  ;;  %s31_s18 = sadd.s32 1, %s4998_s18   ;;  %s6789_s9 = smov %s6796_s13 }
 0x8fe   : > { %p28_p6 = scmp.ge.s32.totalorder %s31_s18, 4   ;;  %s6790_s13 = smov %s4982_s14 }
 0x8ff   : > { %s6791_s14 = smov %s4986_s15  ;;  %s6792_s15 = smov %s5261_s27 }
 0x900   : > { %s6793_s16 = smov %s4994_s17  ;;  %s6794_s17 = smov %s6789_s9 }
 0x901   :  { %30 = sbr.rel (!%p28_p6) target bundleno = 18 (0x12), region = 138 }
 0x908   :  { %3582 = vsyncpa [#allocation6], 1 }
 0x909   :  { %3584 = vsyncpa [#allocation6 + $0x1], 1 }
 0x90a   :  { %3585 = vsyncpa [#allocation9], 1 }
 0x90b   :  { %3587 = vsyncpa [#allocation9 + $0x1], 1 }
 0x90c   :  { %3588 = vsyncpa [#allocation12], 1 }
 0x90d   :  { %3589 = vsyncpa [#allocation15], 1 }
 0x90e   :  { %3590 = vsyncpa [#allocation7], 1 }
 0x90f   :  { %3592 = vsyncpa [#allocation7 + $0x1], 1 }

// kernel: tpu_custom_call.1
= control target key start
LH: loop header
LB: loop body
LE: loop exit
PB: predicated region body
PF: predicated region fallthrough
CT: control target
= control target key end

     0   :  { %s6653_s0 = inlined_call_operand.hbm [shape: f32[2,256,256], index: 0, kind: input, shape index: {}]   ;;  %s6654_s1 = inlined_call_operand.hbm [shape: f32[2,16,128], index: 1, kind: input, shape index: {}]   ;;  %s6655_s2 = inlined_call_operand.hbm [shape: f32[256,256], index: 2, kind: input, shape index: {}]   ;;  %s6656_s3 = inlined_call_operand.vmem [shape: f32[1,256], index: 3, kind: input, shape index: {}]   ;;  %s6657_s4 = inlined_call_operand.hbm [shape: f32[128,256], index: 4, kind: input, shape index: {}]   ;;  %s6658_s5 = inlined_call_operand.vmem [shape: f32[1,256], index: 5, kind: input, shape index: {}]   ;;  %s6659_s6 = inlined_call_operand.hbm [shape: f32[128,256], index: 6, kind: input, shape index: {}]   ;;  %s6660_s7 = inlined_call_operand.vmem [shape: f32[1,256], index: 7, kind: input, shape index: {}]   ;;  %s6661_s8 = inlined_call_operand.hbm [shape: f32[256,256], index: 8, kind: input, shape index: {}]   ;;  %s6662_s9 = inlined_call_operand.vmem [shape: f32[1,256], index: 9, kind: input, shape index: {}]   ;;  %s6663_s10 = inlined_call_operand.hbm [shape: f32[2,256,256], index: 10, kind: output, shape index: {}]  }
   0x1   :  { %6673 = sst [smem:[#allocation49_spill]] %s6653_s0 }
   0x2   :  { %6674 = sst [smem:[#allocation50_spill]] %s6655_s2 }
   0x3   :  { %6675 = sst [smem:[#allocation51_spill]] %s6656_s3 }
   0x4   :  { %6676 = sst [smem:[#allocation52_spill]] %s6657_s4 }
   0x5   :  { %6677 = sst [smem:[#allocation53_spill]] %s6659_s6 }
   0x6   :  { %6678 = sst [smem:[#allocation54_spill]] %s6662_s9 }
   0x7   :  { %6679 = sst [smem:[#allocation55_spill]] %s6663_s10 }
   0x8   :  { %15 = vsyncpa [#allocation6], 0 }
   0x9   :  { %17 = vsyncpa [#allocation6 + $0x1], 0 }
   0xa   :  { %18 = vsyncpa [#allocation9], 0 }
   0xb   :  { %20 = vsyncpa [#allocation9 + $0x1], 0 }
   0xc   :  { %21 = vsyncpa [#allocation12], 0 }
   0xd   :  { %22 = vsyncpa [#allocation15], 0 }
   0xe   :  { %23 = vsyncpa [#allocation7], 0 }
   0xf   :  { %25 = vsyncpa [#allocation7 + $0x1], 0  ;;  %s5069_s13 = smov 0   ;;  %s5071_s14 = smov 0  }
  0x10   :  { %s5073_s15 = smov 0   ;;  %s5075_s16 = smov 0  }
  0x11   :  { %s5077_s17 = smov 0   ;;  %s5079_s18 = smov 0  }
  0x12 LB: > { %6680 = sst [smem:[#allocation23_spill]] %s4978_s13  ;;  %s5100_s19 = sadd.s32 4294967295, %s4998_s18   ;;  %s4998_s18 = sphi %s5079_s18, %s31_s18   ;;  %s4994_s17 = sphi %s5077_s17, %s6794_s17   ;;  %s4990_s16 = sphi %s5075_s16, %s6793_s16   ;;  %s4986_s15 = sphi %s5073_s15, %s6792_s15   ;;  %s4982_s14 = sphi %s5071_s14, %s6791_s14   ;;  %s4978_s13 = sphi %s5069_s13, %s6790_s13  }
  0x13   : > { %6681 = sst [smem:[#allocation24_spill]] %s4990_s16  ;;  %s3710_s20 = sadd.s32 4294967294, %s4998_s18  }
  0x14   : > { %p65_p0 = scmp.ne.s32.totalorder %s4982_s14, %s4978_s13  ;;  %p6666_p1 = scmp.eq.s32.totalorder %s5100_s19, 0 }
  0x15   : > { %p291_p3 = scmp.eq.s32.totalorder %s3710_s20, 1  ;;  %p3711_p5 = scmp.ge.s32.totalorder %s4998_s18, 1 }
  0x16   : > { %p5109_p4 = por %p6666_p1, %p65_p0  ;;  %p298_p7 = scmp.lt.s32.totalorder %s4998_s18, 3 }
  0x17   : > { %p5114_p6 = por %p291_p3, %p65_p0  ;;  %s5000_s24 = smov [#allocation10]  }
  0x18   : > { %s6682_s21 = scalar_select %p5109_p4, 1, 0 }
  0x19   : > { %s6683_s22 = scalar_select %p5114_p6, 1, 0 }
  0x1a   : > { %p5119_p8 = pnand %p3711_p5, %p298_p7  ;;  %s310_s25 = sshll.u32 %s5000_s24, 4  ;;  %s5123_s25 = int_to_ptr.vmem [resolvable:$true] %s310_s25 }
  0x1b   : > { %6684 = sst [smem:[#allocation25_spill]] %s6683_s22  ;;  %s5001_s27 = smov [#allocation11]  }
  0x1c   : > { %s6685_s23 = scalar_select %p5119_p8, 1, 0 }
  0x1d   : > { %p4379_p9 = pneg %p5119_p8  ;;  %s326_s28 = sshll.u32 %s5001_s27, 4  ;;  %s5134_s28 = int_to_ptr.vmem [resolvable:$true] %s326_s28 }
  0x1e   : > { %s5002_s29 = smov [#allocation13]   ;;  %s6687_s2 = sld [smem:[#allocation50_spill]] }
  0x1f   : > { %p5130_p11 = pnand %p4379_p9, %p6666_p1  ;;  %s5136_s30 = sshll.u32 %s5002_s29, 4  ;;  %s343_s30 = int_to_ptr.vmem [resolvable:$true] %s5136_s30 }
  0x21   : > { %p5146_p13 = pneg %p5130_p11 }
  0x24   : > { %s4728_s20 = scalar_lea.hbm %s6687_s2, 8192 }
  0x25   : > { %p4729_p12 = scmp.ne.s32.totalorder %s6687_s2, %s4728_s20  ;;  %p4735_p5 = scmp.lt.u32.totalorder %s4728_s20, %s6687_s2 }
  0x27   : > { %p4731_p0 = pnand %p5146_p13, %p4729_p12 }
  0x29   : > { %p4732_p3 = pneg %p4731_p0 }
  0x2b   : > { %p4737_p7 = pnand %p4735_p5, %p4732_p3 }
  0x2d   : > { %4740 = shalt.err (!%p4737_p7)
}
  0x2e   : > { %s4741_s22 = scalar_lea.vmem %s5123_s25, 8192  ;;  %p4749_p2 = scmp.lt.s32.totalorder %s5123_s25, %s5123_s25 }
  0x2f   : > { %p4742_p9 = scmp.ne.s32.totalorder %s5123_s25, %s4741_s22  ;;  %p4750_p6 = scmp.lt.s32.totalorder %s4741_s22, %s4741_s22 }
  0x31   : > { %p4744_p10 = pnand %p4742_p9, %p5146_p13  ;;  %p4751_p12 = por %p4750_p6, %p4749_p2 }
  0x33   : > { %p4745_p1 = pneg %p4744_p10 }
  0x35   : > { %p4752_p0 = pnand %p4751_p12, %p4745_p1 }
  0x37   : > { %4755 = shalt.err (!%p4752_p0)
}
  0x38   : > { %s6670_s11 = smov 256   ;;  %s5004_s12 = smov 16  }
  0x39   : > { %4382 = dma.hbm_to_vmem [thread:$0]  (!%p5130_p11), %s6687_s2, 8192, %s5123_s25, [#allocation9], %s6670_s11, %s6670_s11, %s5004_s12  }
  0x3a   : > { %s6689_s4 = sld [smem:[#allocation52_spill]] }
  0x40   : > { %s4756_s22 = scalar_lea.hbm %s6689_s4, 4096 }
  0x41   : > { %p4757_p1 = scmp.ne.s32.totalorder %s6689_s4, %s4756_s22  ;;  %p4763_p10 = scmp.lt.u32.totalorder %s4756_s22, %s6689_s4 }
  0x43   : > { %p4759_p2 = pnand %p4757_p1, %p5146_p13 }
  0x45   : > { %p4760_p6 = pneg %p4759_p2 }
  0x47   : > { %p4765_p3 = pnand %p4763_p10, %p4760_p6 }
  0x49   : > { %4768 = shalt.err (!%p4765_p3)
}
  0x4a   : > { %s4769_s25 = scalar_lea.vmem %s5134_s28, 4096  ;;  %p4777_p12 = scmp.lt.s32.totalorder %s5134_s28, %s5134_s28 }
  0x4b   : > { %p4770_p5 = scmp.ne.s32.totalorder %s5134_s28, %s4769_s25  ;;  %p4778_p0 = scmp.lt.s32.totalorder %s4769_s25, %s4769_s25 }
  0x4d   : > { %p4772_p7 = pnand %p4770_p5, %p5146_p13  ;;  %p4779_p1 = por %p4778_p0, %p4777_p12 }
  0x4f   : > { %p4773_p9 = pneg %p4772_p7 }
  0x51   : > { %p4780_p2 = pnand %p4779_p1, %p4773_p9 }
  0x53   : > { %4783 = shalt.err (!%p4780_p2)
}
  0x54   : > { %4385 = dma.hbm_to_vmem [thread:$0]  (!%p5130_p11), %s6689_s4, 4096, %s5134_s28, [#allocation12], %s6670_s11, %s6670_s11, %s5004_s12  }
  0x55   : > { %s6690_s6 = sld [smem:[#allocation53_spill]] }
  0x5b   : > { %s4784_s20 = scalar_lea.hbm %s6690_s6, 4096 }
  0x5c   : > { %p4785_p6 = scmp.ne.s32.totalorder %s6690_s6, %s4784_s20  ;;  %p4791_p5 = scmp.lt.u32.totalorder %s4784_s20, %s6690_s6 }
  0x5e   : > { %p4787_p10 = pnand %p4785_p6, %p5146_p13 }
  0x60   : > { %p4788_p3 = pneg %p4787_p10 }
  0x62   : > { %p4793_p7 = pnand %p4791_p5, %p4788_p3 }
  0x64   : > { %4796 = shalt.err (!%p4793_p7)
}
  0x65   : > { %s4797_s25 = scalar_lea.vmem %s343_s30, 4096  ;;  %p4805_p1 = scmp.lt.s32.totalorder %s343_s30, %s343_s30 }
  0x66   : > { %p4798_p9 = scmp.ne.s32.totalorder %s343_s30, %s4797_s25  ;;  %p4806_p2 = scmp.lt.s32.totalorder %s4797_s25, %s4797_s25 }
  0x68   : > { %p4800_p12 = pnand %p4798_p9, %p5146_p13  ;;  %p4807_p4 = por %p4806_p2, %p4805_p1 }
  0x6a   : > { %p4801_p0 = pneg %p4800_p12 }
  0x6c   : > { %p4808_p8 = pnand %p4807_p4, %p4801_p0 }
  0x6e   : > { %4811 = shalt.err (!%p4808_p8)
}
  0x6f   : > { %4388 = dma.hbm_to_vmem [thread:$0]  (!%p5130_p11), %s6690_s6, 4096, %s343_s30, [#allocation12], %s6670_s11, %s6670_s11, %s5004_s12  }
  0x70   : > { %s5005_s9 = smov [#allocation14]   ;;  %s4812_s24 = scalar_lea.hbm %s6661_s8, 8192 }
  0x71   : > { %s358_s10 = sshll.u32 %s5005_s9, 4  ;;  %p4813_p4 = scmp.ne.s32.totalorder %s6661_s8, %s4812_s24  ;;  %s359_s10 = int_to_ptr.vmem [resolvable:$true] %s358_s10 }
  0x72   : > { %p4819_p10 = scmp.lt.u32.totalorder %s4812_s24, %s6661_s8 }
  0x73   : > { %p4815_p8 = pnand %p4813_p4, %p5146_p13 }
  0x75   : > { %p4816_p6 = pneg %p4815_p8 }
  0x77   : > { %p4821_p3 = pnand %p4819_p10, %p4816_p6 }
  0x79   : > { %4824 = shalt.err (!%p4821_p3)
}
  0x7a   : > { %s4825_s30 = scalar_lea.vmem %s359_s10, 8192  ;;  %p4833_p12 = scmp.lt.s32.totalorder %s359_s10, %s359_s10 }
  0x7b   : > { %p4826_p5 = scmp.ne.s32.totalorder %s359_s10, %s4825_s30  ;;  %p4834_p0 = scmp.lt.s32.totalorder %s4825_s30, %s4825_s30 }
  0x7d   : > { %p4828_p7 = pnand %p4826_p5, %p5146_p13  ;;  %p4835_p1 = por %p4834_p0, %p4833_p12 }
  0x7f   : > { %p4829_p9 = pneg %p4828_p7 }
  0x81   : > { %p4836_p2 = pnand %p4835_p1, %p4829_p9 }
  0x83   : > { %4839 = shalt.err (!%p4836_p2)
}
  0x84   : > { %4391 = dma.hbm_to_vmem [thread:$0]  (!%p5130_p11), %s6661_s8, 8192, %s359_s10, [#allocation15], %s6670_s11, %s6670_s11, %s5004_s12  }
  0x85   : > { %s43_s13 = sadd.s32 1, %s4994_s17  ;;  %s52_s26 = sadd.s32 1, %s4986_s15 }
  0x86   : > { %p45_p13 = scmp.ge.s32.totalorder %s43_s13, 2  ;;  %p59_p4 = scmp.ne.s32.totalorder %s4986_s15, %s4982_s14 }
  0x87   : > { %p60_p8 = scmp.eq.s32.totalorder %s4998_s18, 0  ;;  %p4407_p6 = scmp.lt.s32.totalorder %s4998_s18, 2 }
  0x88   : > { %s6796_s13 = smov (%p45_p13, %s43_s13), 0  ;;  %p6691_p3 = scmp.eq.s32.totalorder %s5100_s19, 1 }
  0x89   : > { %p61_p10 = por %p60_p8, %p59_p4  ;;  %s47_s16 = ssub.s32 %s4994_s17, %s6796_s13 }
  0x8a   : > { %p5249_p5 = por %p6691_p3, %p59_p4  ;;  %s5256_s20 = sand.u32 1, %s4986_s15  }
  0x8b   : > { %p50_p11 = scmp.eq.s32.totalorder %s47_s16, 0  ;;  %s3717_s10 = sshll.u32 %s5256_s20, 9 }
  0x8c   : > { %s3800_s24 = sshll.u32 %s4994_s17, 13  ;;  %s6693_s0 = sld [smem:[#allocation49_spill]] }
  0x8d   : > { %s5261_s27 = scalar_select %p50_p11, %s4986_s15, %s52_s26  }
  0x8e   : > { %s379_s30 = scalar_lea.vmem [#allocation5], %s3717_s10  ;;  %p5270_p7 = pnand %p4407_p6, %p61_p10 }
  0x8f   : > { %s389_s28 = sshll.u32 %s379_s30, 4  ;;  %s376_s16 = scalar_lea.sflag [#allocation6], %s5256_s20  ;;  %s5274_s28 = int_to_ptr.vmem [resolvable:$true] %s389_s28 }
  0x90   : > { %p4842_p12 = pneg %p5270_p7 }
  0x92   : > { %s5266_s25 = scalar_lea.hbm %s6693_s0, %s3800_s24  ;;  %s4845_s22 = scalar_lea.hbm %s6693_s0, 16384 }
  0x93   : > { %s4840_s29 = scalar_lea.hbm %s5266_s25, 8192  ;;  %p4846_p2 = scmp.lt.u32.totalorder %s5266_s25, %s6693_s0 }
  0x94   : > { %p4841_p9 = scmp.ne.s32.totalorder %s5266_s25, %s4840_s29  ;;  %p4847_p13 = scmp.lt.u32.totalorder %s4845_s22, %s4840_s29 }
  0x95   : > { %p4849_p8 = scmp.lt.u32.totalorder %s4840_s29, %s5266_s25 }
  0x96   : > { %p4843_p0 = pnand %p4842_p12, %p4841_p9  ;;  %p4848_p4 = por %p4847_p13, %p4846_p2 }
  0x98   : > { %p4844_p1 = pneg %p4843_p0  ;;  %p4850_p6 = por %p4849_p8, %p4848_p4 }
  0x9a   : > { %p4851_p10 = pnand %p4850_p6, %p4844_p1 }
  0x9c   : > { %4854 = shalt.err (!%p4851_p10)
}
  0x9d   : > { %s4855_s26 = scalar_lea.vmem %s5274_s28, 8192  ;;  %s5006_s10 = smov [#allocation5]  }
  0x9e   : > { %p4856_p3 = scmp.ne.s32.totalorder %s5274_s28, %s4855_s26  ;;  %s4860_s24 = sshll.u32 %s5006_s10, 4  ;;  %s4861_s24 = int_to_ptr.vmem [resolvable:$false] %s4860_s24 }
  0x9f   : > { %s4862_s11 = scalar_lea.vmem %s4861_s24, 16384  ;;  %p4863_p0 = scmp.lt.s32.totalorder %s5274_s28, %s4861_s24 }
  0xa0   : > { %p4858_p11 = pnand %p4856_p3, %p4842_p12  ;;  %p4864_p2 = scmp.lt.s32.totalorder %s4862_s11, %s4855_s26 }
  0xa2   : > { %p4859_p9 = pneg %p4858_p11  ;;  %p4865_p13 = por %p4864_p2, %p4863_p0 }
  0xa4   : > { %p4866_p4 = pnand %p4865_p13, %p4859_p9 }
  0xa6   : > { %4869 = shalt.err (!%p4866_p4)
}
  0xa7   : > { %s6695_s29 = smov 256   ;;  %s3720_s22 = sshll.u32 %s5256_s20, 4 }
  0xa8   : > { %4395 = dma.hbm_to_vmem [thread:$0]  (!%p5270_p7), %s5266_s25, 8192, %s5274_s28, %s376_s16, %s6695_s29, %s6695_s29, %s5004_s12  }
  0xa9   : > { %s3801_s30 = sshll.u32 %s4994_s17, 8  ;;  %s403_s11 = scalar_lea.vmem [#allocation8], %s3720_s22 }
  0xaa   : > { %s5313_s24 = scalar_lea.hbm %s6654_s1, %s3801_s30  ;;  %s410_s0 = sshll.u32 %s403_s11, 4  ;;  %s5315_s0 = int_to_ptr.vmem [resolvable:$true] %s410_s0 }
  0xab   : > { %s6696_s2 = sand.u32 1, %s4998_s18   ;;  %s4870_s6 = scalar_lea.hbm %s5313_s24, 256 }
  0xac   : > { %s5319_s4 = scalar_lea.sflag [#allocation9], %s6696_s2  ;;  %p4871_p1 = scmp.ne.s32.totalorder %s5313_s24, %s4870_s6 }
  0xad   : > { %s4875_s25 = scalar_lea.hbm %s6654_s1, 512  ;;  %p4876_p10 = scmp.lt.u32.totalorder %s5313_s24, %s6654_s1 }
  0xae   : > { %p4873_p8 = pnand %p4871_p1, %p4842_p12  ;;  %p4877_p3 = scmp.lt.u32.totalorder %s4875_s25, %s4870_s6 }
  0xaf   : > { %p4879_p9 = scmp.lt.u32.totalorder %s4870_s6, %s5313_s24 }
  0xb0   : > { %p4874_p6 = pneg %p4873_p8  ;;  %p4878_p11 = por %p4877_p3, %p4876_p10 }
  0xb2   : > { %p4880_p0 = por %p4879_p9, %p4878_p11 }
  0xb4   : > { %p4881_p2 = pnand %p4880_p0, %p4874_p6 }
  0xb6   : > { %4884 = shalt.err (!%p4881_p2)
}
  0xb7   : > { %s4885_s2 = scalar_lea.vmem %s5315_s0, 256  ;;  %s5007_s29 = smov [#allocation8]  }
  0xb8   : > { %p4886_p13 = scmp.ne.s32.totalorder %s5315_s0, %s4885_s2  ;;  %s4890_s22 = sshll.u32 %s5007_s29, 4  ;;  %s4891_s22 = int_to_ptr.vmem [resolvable:$false] %s4890_s22 }
  0xb9   : > { %s4892_s30 = scalar_lea.vmem %s4891_s22, 512  ;;  %p4893_p8 = scmp.lt.s32.totalorder %s5315_s0, %s4891_s22 }
  0xba   : > { %p4888_p4 = pnand %p4886_p13, %p4842_p12  ;;  %p4894_p10 = scmp.lt.s32.totalorder %s4892_s30, %s4885_s2 }
  0xbc   : > { %p4889_p1 = pneg %p4888_p4  ;;  %p4895_p3 = por %p4894_p10, %p4893_p8 }
  0xbe   : > { %p4896_p11 = pnand %p4895_p3, %p4889_p1 }
  0xc0   : > { %4899 = shalt.err (!%p4896_p11)
}
  0xc1   : > { %s5008_s6 = smov 128   ;;  %s5009_s26 = smov 8  }
  0xc2   : > { %4398 = dma.hbm_to_vmem [thread:$0]  (!%p5270_p7), %s5313_s24, 256, %s5315_s0, %s5319_s4, %s5008_s6, %s5008_s6, %s5009_s26  }
  0xc3   : > { %p6697_p12 = scmp.ne.s32.totalorder %s6685_s23, 0 }
  0xc5   : > { %422 = sbr.rel (%p6697_p12) target bundleno = 2290 (0x8f2), region = 60 }
  0xcc   : > { %s5348_s10 = sand.u32 1, %s4982_s14   ;;  %p6698_p6 = scmp.ne.s32.totalorder %s6682_s21, 0 }
  0xcd   : > { %s3724_s11 = sshll.u32 %s5348_s10, 9  ;;  %s425_s12 = scalar_lea.sflag [#allocation6], %s5348_s10 }
  0xce   : > { %s5354_s20 = scalar_lea.vmem [#allocation5], %s3724_s11 }
  0xcf   : > { %4953 = dma.done.wait (%p6698_p6), %s425_s12, 8192  }
  0xd0   : > { %4955 = vsyncadd (%p6698_p6), %s425_s12, 4294959104  ;;  %s433_s0 = sand.u32 1, %s5100_s19   ;;  %s3725_s4 = sshll.u32 %s5348_s10, 4 }
  0xd1   : > { %s434_s23 = scalar_lea.sflag [#allocation9], %s433_s0  ;;  %s5362_s3 = scalar_lea.vmem [#allocation8], %s3725_s4 }
  0xd2   : > { %4957 = dma.done.wait (%p6698_p6), %s434_s23, 256  }
  0xd3   : > { %4959 = vsyncadd (%p6698_p6), %s434_s23, 4294967040  ;;  %p6699_p7 = scmp.eq.s32.totalorder %s5100_s19, 0 }
  0xd5   : > { %4961 = dma.done.wait (%p6699_p7), [#allocation9], 8192   ;;  %p6700_p9 = pmov %p6699_p7 }
  0xd6   : > { %p6701_p0 = pmov %p6699_p7 }
  0xd7   : > { %4963 = vsyncadd (%p6700_p9), [#allocation9], 4294959104 }
  0xd8   : > { %4965 = dma.done.wait (%p6701_p0), [#allocation12], 8192   ;;  %p6702_p2 = pmov %p6701_p0 }
  0xd9   : > { %p6703_p13 = pmov %p6701_p0 }
  0xda   : > { %4967 = vsyncadd (%p6702_p2), [#allocation12], 4294959104 }
  0xdb   : > { %4969 = dma.done.wait (%p6703_p13), [#allocation15], 8192   ;;  %p6704_p4 = pmov %p6701_p0 }
  0xdc   : > { %v5010_v0 = vmov 0.0   ;;  %v504_v1 = vld [vmem:[#allocation11 + $0x8] sm:$0xff]  ;;  %v506_v2 = vld [vmem:[#allocation11 + $0x18] sm:$0xff]  ;;  %v503_v3 = vld [vmem:[#allocation11] sm:$0xff]  ;;  %s6707_s2 = sld [smem:[#allocation51_spill]]  ;;  %vm1447_vm0 = vcmask 130048  }
  0xdd   : > { %4971 = vsyncadd (%p6704_p4), [#allocation15], 4294959104  ;;  %611 = vmatprep.mubr.f32.mxu0 %v5010_v0  ;;  %732 = vmatprep.mubr.f32.mxu1 %v5010_v0  ;;  %v4147_v4 = vpack.c.bf16 %v506_v2, %v504_v1  ;;  %v505_v5 = vld [vmem:[#allocation11 + $0x10] sm:$0xff]  ;;  %v508_v6 = vld [vmem:[#allocation11 + $0x28] sm:$0xff]  ;;  %s6780_s30 = sld [smem:[#allocation54_spill]]  ;;  %s6469_s6 = scalar_lea.vmem [#allocation16], %s3724_s11 }
  0xde   : > { %v510_v7 = vld [vmem:[#allocation11 + $0x38] sm:$0xff]  ;;  %v4149_v8 = vpack.c.bf16 %v505_v5, %v503_v3  ;;  %v507_v10 = vld [vmem:[#allocation11 + $0x20] sm:$0xff]  ;;  %v509_v11 = vld [vmem:[#allocation11 + $0x30] sm:$0xff]  ;;  %s6783_s26 = sld [smem:[#allocation24_spill]]  ;;  %s3561_s12 = sshll.u32 %s6469_s6, 4  ;;  %s6601_s12 = int_to_ptr.vmem [resolvable:$true] %s3561_s12 }
  0xdf   : > { %v4151_v9 = vpack.c.bf16 %v510_v7, %v508_v6  ;;  %v512_v12 = vld [vmem:[#allocation11 + $0x48] sm:$0xff]  ;;  %4148 = vmatprep.subr.bf16.mxu0 %v4147_v4  ;;  %v514_v13 = vld [vmem:[#allocation11 + $0x58] sm:$0xff]  ;;  %v4153_v14 = vpack.c.bf16 %v509_v11, %v507_v10  ;;  %v511_v16 = vld [vmem:[#allocation11 + $0x40] sm:$0xff]  ;;  %s6784_s4 = sld [smem:[#allocation55_spill]]  ;;  %s4900_s19 = scalar_lea.vmem %s6601_s12, 8192 }
  0xe0   : > { %4150 = vmatpush1.bf16.msra.mxu0 %v4149_v8  ;;  %v4155_v15 = vpack.c.bf16 %v514_v13, %v512_v12  ;;  %v513_v17 = vld [vmem:[#allocation11 + $0x50] sm:$0xff]  ;;  %v516_v18 = vld [vmem:[#allocation11 + $0x68] sm:$0xff]  ;;  %v518_v19 = vld [vmem:[#allocation11 + $0x78] sm:$0xff]  ;;  %p4901_p1 = scmp.ne.s32.totalorder %s6601_s12, %s4900_s19  ;;  %s5011_s21 = smov [#allocation16]  }
  0xe1   : > { %4152 = vmatprep.subr.bf16.mxu0 %v4151_v9  ;;  %v4157_v20 = vpack.c.bf16 %v513_v17, %v511_v16  ;;  %v4159_v21 = vpack.c.bf16 %v518_v19, %v516_v18  ;;  %v515_v22 = vld [vmem:[#allocation11 + $0x60] sm:$0xff]  ;;  %v517_v23 = vld [vmem:[#allocation11 + $0x70] sm:$0xff]  ;;  %v520_v24 = vld [vmem:[#allocation11 + $0x88] sm:$0xff]  ;;  %s4904_s24 = sshll.u32 %s5011_s21, 4  ;;  %s4905_s24 = int_to_ptr.vmem [resolvable:$false] %s4904_s24 }
  0xe2   : > { %v522_v25 = vld [vmem:[#allocation11 + $0x98] sm:$0xff]  ;;  %v4161_v26 = vpack.c.bf16 %v517_v23, %v515_v22  ;;  %v519_v28 = vld [vmem:[#allocation11 + $0x80] sm:$0xff]  ;;  %v521_v29 = vld [vmem:[#allocation11 + $0x90] sm:$0xff]  ;;  %p4902_p8 = pnand %p4901_p1, %p5249_p5  ;;  %s4906_s25 = scalar_lea.vmem %s4905_s24, 16384 }
  0xe3   : > { %v4163_v27 = vpack.c.bf16 %v522_v25, %v520_v24  ;;  %v524_v30 = vld [vmem:[#allocation11 + $0xa8] sm:$0xff]  ;;  %v526_v31 = vld [vmem:[#allocation11 + $0xb8] sm:$0xff]  ;;  %v4165_v32 = vpack.c.bf16 %v521_v29, %v519_v28  ;;  %v523_v34 = vld [vmem:[#allocation11 + $0xa0] sm:$0xff]  ;;  %p4907_p3 = scmp.lt.s32.totalorder %s6601_s12, %s4905_s24  ;;  %p4908_p11 = scmp.lt.s32.totalorder %s4906_s25, %s4900_s19 }
  0xe4   : > { %4154 = vmatpush1.bf16.msra.mxu0 %v4153_v14  ;;  %v4167_v33 = vpack.c.bf16 %v526_v31, %v524_v30  ;;  %v525_v35 = vld [vmem:[#allocation11 + $0xb0] sm:$0xff]  ;;  %v528_v36 = vld [vmem:[#allocation11 + $0xc8] sm:$0xff]  ;;  %v530_v37 = vld [vmem:[#allocation11 + $0xd8] sm:$0xff]  ;;  %s3802_s11 = sshll.u32 %s6783_s26, 13  ;;  %p4903_p10 = pneg %p4902_p8 }
  0xe5   : > { %4156 = vmatprep.subr.bf16.mxu0 %v4155_v15  ;;  %v4169_v38 = vpack.c.bf16 %v525_v35, %v523_v34  ;;  %v4171_v39 = vpack.c.bf16 %v530_v37, %v528_v36  ;;  %v527_v40 = vld [vmem:[#allocation11 + $0xc0] sm:$0xff]  ;;  %v529_v41 = vld [vmem:[#allocation11 + $0xd0] sm:$0xff]  ;;  %v532_v42 = vld [vmem:[#allocation11 + $0xe8] sm:$0xff]  ;;  %s6599_s23 = scalar_lea.hbm %s6784_s4, %s3802_s11  ;;  %p4909_p12 = por %p4908_p11, %p4907_p3 }
  0xe6   : > { %v534_v43 = vld [vmem:[#allocation11 + $0xf8] sm:$0xff]  ;;  %v4173_v44 = vpack.c.bf16 %v529_v41, %v527_v40  ;;  %v531_v46 = vld [vmem:[#allocation11 + $0xe0] sm:$0xff]  ;;  %v533_v47 = vld [vmem:[#allocation11 + $0xf0] sm:$0xff] }
  0xe7   : > { %v4175_v45 = vpack.c.bf16 %v534_v43, %v532_v42  ;;  %v818_v48 = vld [vmem:[#allocation10 + $0x8] sm:$0xff]  ;;  %v820_v49 = vld [vmem:[#allocation10 + $0x18] sm:$0xff]  ;;  %v4177_v50 = vpack.c.bf16 %v533_v47, %v531_v46  ;;  %v817_v52 = vld [vmem:[#allocation10] sm:$0xff]  ;;  %p4910_p6 = pnand %p4909_p12, %p4903_p10 }
  0xe8   : > { %4158 = vmatpush1.bf16.msra.mxu0 %v4157_v20  ;;  %v4211_v51 = vpack.c.bf16 %v820_v49, %v818_v48  ;;  %v819_v53 = vld [vmem:[#allocation10 + $0x10] sm:$0xff]  ;;  %v822_v54 = vld [vmem:[#allocation10 + $0x28] sm:$0xff]  ;;  %v824_v55 = vld [vmem:[#allocation10 + $0x38] sm:$0xff] }
  0xe9   : > { %4160 = vmatprep.subr.bf16.mxu0 %v4159_v21  ;;  %v5383_v56 = vld [vmem:[%s5362_s3] sm:$0xff]  ;;  %v4213_v57 = vpack.c.bf16 %v819_v53, %v817_v52  ;;  %v4215_v58 = vpack.c.bf16 %v824_v55, %v822_v54  ;;  %v826_v61 = vld [vmem:[#allocation10 + $0x48] sm:$0xff]  ;;  %v828_v62 = vld [vmem:[#allocation10 + $0x58] sm:$0xff] }
  0xea   : > { %v821_v59 = vld [vmem:[#allocation10 + $0x20] sm:$0xff]  ;;  %v823_v60 = vld [vmem:[#allocation10 + $0x30] sm:$0xff]  ;;  %v5388_v63 = vld [vmem:[%s5362_s3 + $0x8] sm:$0xff]  ;;  %v4219_v2 = vpack.c.bf16 %v828_v62, %v826_v61  ;;  %s3545_s3 = scalar_lea.sflag [#allocation7], %s5348_s10 }
  0xeb   : > { %v4217_v1 = vpack.c.bf16 %v823_v60, %v821_v59  ;;  %v825_v3 = vld [vmem:[#allocation10 + $0x40] sm:$0xff]  ;;  %v827_v4 = vld [vmem:[#allocation10 + $0x50] sm:$0xff]  ;;  %v754_v5 = vld [vmem:[%s5354_s20 + $0x8] sm:$0xff] }
  0xec   : > { %4162 = vmatpush1.bf16.msra.mxu0 %v4161_v26  ;;  %v830_v6 = vld [vmem:[#allocation10 + $0x68] sm:$0xff]  ;;  %v832_v7 = vld [vmem:[#allocation10 + $0x78] sm:$0xff]  ;;  %v829_v8 = vld [vmem:[#allocation10 + $0x60] sm:$0xff]  ;;  %v4221_v11 = vpack.c.bf16 %v827_v4, %v825_v3 }
  0xed   : > { %4164 = vmatprep.subr.bf16.mxu0 %v4163_v27  ;;  %v625_v9 = vld [vmem:[#allocation13 + $0x8] sm:$0xff]  ;;  %v627_v10 = vld [vmem:[#allocation13 + $0x18] sm:$0xff]  ;;  %v831_v12 = vld [vmem:[#allocation10 + $0x70] sm:$0xff]  ;;  %v4223_v16 = vpack.c.bf16 %v832_v7, %v830_v6 }
  0xee   : > { %v4179_v13 = vpack.c.bf16 %v627_v10, %v625_v9  ;;  %v624_v14 = vld [vmem:[#allocation13] sm:$0xff]  ;;  %v626_v15 = vld [vmem:[#allocation13 + $0x10] sm:$0xff]  ;;  %v834_v17 = vld [vmem:[#allocation10 + $0x88] sm:$0xff]  ;;  %v4225_v28 = vpack.c.bf16 %v831_v12, %v829_v8 }
  0xef   : > { %v4181_v18 = vpack.c.bf16 %v626_v15, %v624_v14  ;;  %v629_v19 = vld [vmem:[#allocation13 + $0x28] sm:$0xff]  ;;  %v631_v20 = vld [vmem:[#allocation13 + $0x38] sm:$0xff]  ;;  %v628_v23 = vld [vmem:[#allocation13 + $0x20] sm:$0xff] }
  0xf0   : > { %4166 = vmatpush1.bf16.msra.mxu0 %v4165_v32  ;;  %v836_v21 = vld [vmem:[#allocation10 + $0x98] sm:$0xff]  ;;  %4180 = vmatprep.subr.bf16.mxu1 %v4179_v13  ;;  %v4183_v22 = vpack.c.bf16 %v631_v20, %v629_v19  ;;  %v630_v24 = vld [vmem:[#allocation13 + $0x30] sm:$0xff]  ;;  %v633_v26 = vld [vmem:[#allocation13 + $0x48] sm:$0xff] }
  0xf1   : > { %4168 = vmatprep.subr.bf16.mxu0 %v4167_v33  ;;  %4182 = vmatpush1.bf16.msra.mxu1 %v4181_v18  ;;  %v4185_v25 = vpack.c.bf16 %v630_v24, %v628_v23  ;;  %v635_v27 = vld [vmem:[#allocation13 + $0x58] sm:$0xff]  ;;  %v833_v29 = vld [vmem:[#allocation10 + $0x80] sm:$0xff]  ;;  %v634_v32 = vld [vmem:[#allocation13 + $0x50] sm:$0xff]  ;;  %v4227_v33 = vpack.c.bf16 %v836_v21, %v834_v17 }
  0xf2   : > { %4184 = vmatprep.subr.bf16.mxu1 %v4183_v22  ;;  %v4187_v30 = vpack.c.bf16 %v635_v27, %v633_v26  ;;  %v632_v31 = vld [vmem:[#allocation13 + $0x40] sm:$0xff]  ;;  %v835_v34 = vld [vmem:[#allocation10 + $0x90] sm:$0xff]  ;;  %v637_v35 = vld [vmem:[#allocation13 + $0x68] sm:$0xff] }
  0xf3   : > { %v639_v36 = vld [vmem:[#allocation13 + $0x78] sm:$0xff]  ;;  %v838_v37 = vld [vmem:[#allocation10 + $0xa8] sm:$0xff]  ;;  %v4229_v40 = vpack.c.bf16 %v835_v34, %v833_v29  ;;  %v837_v41 = vld [vmem:[#allocation10 + $0xa0] sm:$0xff] }
  0xf4   : > { %4170 = vmatpush1.bf16.msra.mxu0 %v4169_v38  ;;  %v840_v38 = vld [vmem:[#allocation10 + $0xb8] sm:$0xff]  ;;  %v4191_v42 = vpack.c.bf16 %v639_v36, %v637_v35  ;;  %v636_v43 = vld [vmem:[#allocation13 + $0x60] sm:$0xff]  ;;  %v839_v46 = vld [vmem:[#allocation10 + $0xb0] sm:$0xff] }
  0xf5   : > { %4172 = vmatprep.subr.bf16.mxu0 %v4171_v39  ;;  %4186 = vmatpush1.bf16.msra.mxu1 %v4185_v25  ;;  %v4189_v39 = vpack.c.bf16 %v634_v32, %v632_v31  ;;  %v641_v47 = vld [vmem:[#allocation13 + $0x88] sm:$0xff]  ;;  %v643_v48 = vld [vmem:[#allocation13 + $0x98] sm:$0xff]  ;;  %v4233_v52 = vpack.c.bf16 %v839_v46, %v837_v41  ;;  %v841_v53 = vld [vmem:[#allocation10 + $0xc0] sm:$0xff] }
  0xf6   : > { %4188 = vmatprep.subr.bf16.mxu1 %v4187_v30  ;;  %v842_v49 = vld [vmem:[#allocation10 + $0xc8] sm:$0xff]  ;;  %v4195_v54 = vpack.c.bf16 %v643_v48, %v641_v47  ;;  %v640_v55 = vld [vmem:[#allocation13 + $0x80] sm:$0xff]  ;;  %v843_v59 = vld [vmem:[#allocation10 + $0xd0] sm:$0xff] }
  0xf7   : > { %v645_v60 = vld [vmem:[#allocation13 + $0xa8] sm:$0xff]  ;;  %v647_v61 = vld [vmem:[#allocation13 + $0xb8] sm:$0xff]  ;;  %v4237_v3 = vpack.c.bf16 %v843_v59, %v841_v53  ;;  %v845_v4 = vld [vmem:[#allocation10 + $0xe0] sm:$0xff] }
  0xf8   : > { %4174 = vmatpush1.bf16.msra.mxu0 %v4173_v44  ;;  %v638_v44 = vld [vmem:[#allocation13 + $0x70] sm:$0xff]  ;;  %v846_v62 = vld [vmem:[#allocation10 + $0xe8] sm:$0xff]  ;;  %v644_v6 = vld [vmem:[#allocation13 + $0xa0] sm:$0xff] }
  0xf9   : > { %4176 = vmatprep.subr.bf16.mxu0 %v4175_v45  ;;  %v4231_v45 = vpack.c.bf16 %v840_v38, %v838_v37  ;;  %4190 = vmatpush1.bf16.msra.mxu1 %v4189_v39  ;;  %v646_v7 = vld [vmem:[#allocation13 + $0xb0] sm:$0xff]  ;;  %v649_v10 = vld [vmem:[#allocation13 + $0xc8] sm:$0xff]  ;;  %v852_v13 = vld [vmem:[#allocation10 + $0x118] sm:$0xff] }
  0xfa   : > { %4192 = vmatprep.subr.bf16.mxu1 %v4191_v42  ;;  %v847_v9 = vld [vmem:[#allocation10 + $0xf0] sm:$0xff]  ;;  %v850_v12 = vld [vmem:[#allocation10 + $0x108] sm:$0xff]  ;;  %v4201_v14 = vpack.c.bf16 %v646_v7, %v644_v6  ;;  %v648_v18 = vld [vmem:[#allocation13 + $0xc0] sm:$0xff] }
  0xfb   : > { %v4241_v15 = vpack.c.bf16 %v847_v9, %v845_v4  ;;  %v650_v19 = vld [vmem:[#allocation13 + $0xd0] sm:$0xff]  ;;  %v4243_v20 = vpack.c.bf16 %v852_v13, %v850_v12  ;;  %v653_v22 = vld [vmem:[#allocation13 + $0xe8] sm:$0xff]  ;;  %v655_v23 = vld [vmem:[#allocation13 + $0xf8] sm:$0xff] }
  0xfc   : > { %4178 = vmatpush1.bf16.msra.mxu0 %v4177_v50  ;;  %v844_v50 = vld [vmem:[#allocation10 + $0xd8] sm:$0xff]  ;;  %v851_v21 = vld [vmem:[#allocation10 + $0x110] sm:$0xff]  ;;  %v854_v24 = vld [vmem:[#allocation10 + $0x128] sm:$0xff]  ;;  %v4205_v26 = vpack.c.bf16 %v650_v19, %v648_v18 }
  0xfd   : > { %4212 = vmatprep.subr.bf16.mxu0 %v4211_v51  ;;  %v4193_v51 = vpack.c.bf16 %v638_v44, %v636_v43  ;;  %v856_v25 = vld [vmem:[#allocation10 + $0x138] sm:$0xff]  ;;  %v652_v29 = vld [vmem:[#allocation13 + $0xe0] sm:$0xff]  ;;  %v654_v30 = vld [vmem:[#allocation13 + $0xf0] sm:$0xff] }
  0xfe   : > { %v4247_v31 = vpack.c.bf16 %v856_v25, %v854_v24  ;;  %v853_v32 = vld [vmem:[#allocation10 + $0x120] sm:$0xff]  ;;  %v858_v34 = vld [vmem:[#allocation10 + $0x148] sm:$0xff]  ;;  %v860_v35 = vld [vmem:[#allocation10 + $0x158] sm:$0xff]  ;;  %v4209_v36 = vpack.c.bf16 %v654_v30, %v652_v29 }
  0xff   : > { %612 = vmatmul.mubr.f32.vlgmr.msra.gmra.mrb[0].mxu0 %v5383_v56  ;;  %4194 = vmatpush1.bf16.msra.mxu1 %v4193_v51  ;;  %v4251_v38 = vpack.c.bf16 %v860_v35, %v858_v34  ;;  %v857_v39 = vld [vmem:[#allocation10 + $0x140] sm:$0xff]  ;;  %v862_v41 = vld [vmem:[#allocation10 + $0x168] sm:$0xff]  ;;  %v864_v42 = vld [vmem:[#allocation10 + $0x178] sm:$0xff] }
 0x100   : > { %4214 = vmatpush1.bf16.msra.mxu0 %v4213_v57  ;;  %617 = vmatprep.mubr.f32.mxu0 %v5010_v0  ;;  %v642_v57 = vld [vmem:[#allocation13 + $0x90] sm:$0xff]  ;;  %v4255_v44 = vpack.c.bf16 %v864_v42, %v862_v41  ;;  %v866_v47 = vld [vmem:[#allocation10 + $0x188] sm:$0xff]  ;;  %v868_v48 = vld [vmem:[#allocation10 + $0x198] sm:$0xff] }
 0x101   : > { %4216 = vmatprep.subr.bf16.mxu0 %v4215_v58  ;;  %v4235_v58 = vpack.c.bf16 %v844_v50, %v842_v49  ;;  %4196 = vmatprep.subr.bf16.mxu1 %v4195_v54  ;;  %v863_v46 = vld [vmem:[#allocation10 + $0x170] sm:$0xff]  ;;  %v4259_v50 = vpack.c.bf16 %v868_v48, %v866_v47  ;;  %v865_v51 = vld [vmem:[#allocation10 + $0x180] sm:$0xff]  ;;  %v870_v53 = vld [vmem:[#allocation10 + $0x1a8] sm:$0xff] }
 0x102   : > { %v872_v54 = vld [vmem:[#allocation10 + $0x1b8] sm:$0xff]  ;;  %v871_v59 = vld [vmem:[#allocation10 + $0x1b0] sm:$0xff]  ;;  %v757_v12 = vld [vmem:[%s5354_s20 + $0x20] sm:$0xff] }
 0x103   : > { %618 = vmatmul.mubr.f32.gmra.mrb[2].mxu0 %v5388_v63  ;;  %v879_v6 = vld [vmem:[#allocation10 + $0x1f0] sm:$0xff]  ;;  %v756_v9 = vld [vmem:[%s5354_s20 + $0x18] sm:$0xff]  ;;  %v766_v19 = vld [vmem:[%s5354_s20 + $0x68] sm:$0xff] }
 0x104   : > { %4218 = vmatpush1.bf16.msra.mxu0 %v4217_v1  ;;  %957 = vmatprep.mubr.f32.mxu0 %v754_v5  ;;  %v848_v1 = vld [vmem:[#allocation10 + $0xf8] sm:$0xff]  ;;  %v4199_v5 = vpack.c.bf16 %v647_v61, %v645_v60  ;;  %v874_v60 = vld [vmem:[#allocation10 + $0x1c8] sm:$0xff]  ;;  %v763_v18 = vld [vmem:[%s5354_s20 + $0x50] sm:$0xff] }
 0x105   : > { %4220 = vmatprep.subr.bf16.mxu0 %v4219_v2  ;;  %v4197_v2 = vpack.c.bf16 %v642_v57, %v640_v55  ;;  %v4239_v8 = vpack.c.bf16 %v848_v1, %v846_v62  ;;  %v4263_v57 = vpack.c.bf16 %v872_v54, %v870_v53  ;;  %v873_v62 = vld [vmem:[#allocation10 + $0x1c0] sm:$0xff]  ;;  %v875_v1 = vld [vmem:[#allocation10 + $0x1d0] sm:$0xff]  ;;  %v760_v13 = vld [vmem:[%s5354_s20 + $0x38] sm:$0xff] }
 0x106   : > { %v769_v24 = vld [vmem:[%s5354_s20 + $0x80] sm:$0xff]  ;;  %v772_v25 = vld [vmem:[%s5354_s20 + $0x98] sm:$0xff]  ;;  %v775_v30 = vld [vmem:[%s5354_s20 + $0xb0] sm:$0xff] }
 0x107   : > { %4198 = vmatpush1.bf16.msra.mxu1 %v4197_v2  ;;  %v878_v2 = vld [vmem:[#allocation10 + $0x1e8] sm:$0xff]  ;;  %v776_v29 = vld [vmem:[%s5354_s20 + $0xb8] sm:$0xff]  ;;  %v779_v34 = vld [vmem:[%s5354_s20 + $0xd0] sm:$0xff] }
 0x108   : > { %4222 = vmatpush1.bf16.msra.mxu0 %v4221_v11  ;;  %v651_v11 = vld [vmem:[#allocation13 + $0xd8] sm:$0xff]  ;;  %4200 = vmatprep.subr.bf16.mxu1 %v4199_v5  ;;  %v877_v5 = vld [vmem:[#allocation10 + $0x1e0] sm:$0xff]  ;;  %v782_v35 = vld [vmem:[%s5354_s20 + $0xe8] sm:$0xff] }
 0x109   : > { %4224 = vmatprep.subr.bf16.mxu0 %v4223_v16  ;;  %v849_v16 = vld [vmem:[#allocation10 + $0x100] sm:$0xff]  ;;  %v4203_v17 = vpack.c.bf16 %v651_v11, %v649_v10  ;;  %v4273_v7 = vpack.c.bf16 %v879_v6, %v877_v5  ;;  %v755_v10 = vld [vmem:[%s5354_s20 + $0x10] sm:$0xff]  ;;  %v758_v11 = vld [vmem:[%s5354_s20 + $0x28] sm:$0xff] }
 0x10a   : > { %v4245_v27 = vpack.c.bf16 %v851_v21, %v849_v16  ;;  %v761_v16 = vld [vmem:[%s5354_s20 + $0x40] sm:$0xff]  ;;  %v768_v21 = vld [vmem:[%s5354_s20 + $0x78] sm:$0xff]  ;;  %v787_v42 = vld [vmem:[%s5354_s20 + $0x110] sm:$0xff] }
 0x10b   : > { %4202 = vmatpush1.bf16.msra.mxu1 %v4201_v14  ;;  %v759_v14 = vld [vmem:[%s5354_s20 + $0x30] sm:$0xff]  ;;  %v788_v41 = vld [vmem:[%s5354_s20 + $0x118] sm:$0xff]  ;;  %v794_v47 = vld [vmem:[%s5354_s20 + $0x148] sm:$0xff] }
 0x10c   : > { %4226 = vmatpush1.bf16.msra.mxu0 %v4225_v28  ;;  %4204 = vmatprep.subr.bf16.mxu1 %v4203_v17  ;;  %v4207_v28 = vpack.c.bf16 %v655_v23, %v653_v22  ;;  %v764_v17 = vld [vmem:[%s5354_s20 + $0x58] sm:$0xff]  ;;  %v767_v22 = vld [vmem:[%s5354_s20 + $0x70] sm:$0xff]  ;;  %v770_v23 = vld [vmem:[%s5354_s20 + $0x88] sm:$0xff] }
 0x10d   : > { %4228 = vmatprep.subr.bf16.mxu0 %v4227_v33  ;;  %v855_v33 = vld [vmem:[#allocation10 + $0x130] sm:$0xff]  ;;  %v793_v48 = vld [vmem:[%s5354_s20 + $0x140] sm:$0xff]  ;;  %v800_v53 = vld [vmem:[%s5354_s20 + $0x178] sm:$0xff] }
 0x10e   : > { %v4249_v37 = vpack.c.bf16 %v855_v33, %v853_v32  ;;  %v777_v32 = vld [vmem:[%s5354_s20 + $0xc0] sm:$0xff]  ;;  %v780_v33 = vld [vmem:[%s5354_s20 + $0xd8] sm:$0xff]  ;;  %v799_v54 = vld [vmem:[%s5354_s20 + $0x170] sm:$0xff] }
 0x10f   : > { %4206 = vmatpush1.bf16.msra.mxu1 %v4205_v26  ;;  %v771_v26 = vld [vmem:[%s5354_s20 + $0x90] sm:$0xff]  ;;  %v816_v5 = vld [vmem:[%s5354_s20 + $0x1f8] sm:$0xff] }
 0x110   : > { %4230 = vmatpush1.bf16.msra.mxu0 %v4229_v40  ;;  %4208 = vmatprep.subr.bf16.mxu1 %v4207_v28  ;;  %v859_v40 = vld [vmem:[#allocation10 + $0x150] sm:$0xff]  ;;  %v773_v28 = vld [vmem:[%s5354_s20 + $0xa0] sm:$0xff] }
 0x111   : > { %4232 = vmatprep.subr.bf16.mxu0 %v4231_v45  ;;  %v4253_v43 = vpack.c.bf16 %v859_v40, %v857_v39  ;;  %v861_v45 = vld [vmem:[#allocation10 + $0x160] sm:$0xff]  ;;  %v786_v39 = vld [vmem:[%s5354_s20 + $0x108] sm:$0xff]  ;;  %v815_v6 = vld [vmem:[%s5354_s20 + $0x1f0] sm:$0xff] }
 0x112   : > { %v4257_v49 = vpack.c.bf16 %v863_v46, %v861_v45  ;;  %v785_v40 = vld [vmem:[%s5354_s20 + $0x100] sm:$0xff]  ;;  %v792_v45 = vld [vmem:[%s5354_s20 + $0x138] sm:$0xff]  ;;  %v791_v46 = vld [vmem:[%s5354_s20 + $0x130] sm:$0xff] }
 0x113   : > { %4210 = vmatpush1.bf16.msra.mxu1 %v4209_v36  ;;  %v781_v36 = vld [vmem:[%s5354_s20 + $0xe0] sm:$0xff] }
 0x114   : > { %4234 = vmatpush1.bf16.msra.mxu0 %v4233_v52  ;;  %v867_v52 = vld [vmem:[#allocation10 + $0x190] sm:$0xff] }
 0x115   : > { %4236 = vmatprep.subr.bf16.mxu0 %v4235_v58  ;;  %v4261_v55 = vpack.c.bf16 %v867_v52, %v865_v51  ;;  %v869_v58 = vld [vmem:[#allocation10 + $0x1a0] sm:$0xff]  ;;  %v798_v51 = vld [vmem:[%s5354_s20 + $0x168] sm:$0xff] }
 0x116   : > { %733 = vmatmul.mubr.f32.vlgmr.msra.gmra.mrb[0].mxu1 %v5383_v56  ;;  %v876_v56 = vld [vmem:[#allocation10 + $0x1d8] sm:$0xff]  ;;  %v797_v52 = vld [vmem:[%s5354_s20 + $0x160] sm:$0xff] }
 0x117   : > { %738 = vmatprep.mubr.f32.mxu1 %v5010_v0  ;;  %v4265_v0 = vpack.c.bf16 %v871_v59, %v869_v58  ;;  %v4267_v61 = vpack.c.bf16 %v876_v56, %v874_v60  ;;  %v804_v58 = vld [vmem:[%s5354_s20 + $0x198] sm:$0xff]  ;;  %v803_v59 = vld [vmem:[%s5354_s20 + $0x190] sm:$0xff]  ;;  %v806_v60 = vld [vmem:[%s5354_s20 + $0x1a8] sm:$0xff] }
 0x118   : > { %4238 = vmatpush1.bf16.msra.mxu0 %v4237_v3  ;;  %v880_v3 = vld [vmem:[#allocation10 + $0x1f8] sm:$0xff]  ;;  %v805_v56 = vld [vmem:[%s5354_s20 + $0x1a0] sm:$0xff] }
 0x119   : > { %4240 = vmatprep.subr.bf16.mxu0 %v4239_v8  ;;  %v4271_v4 = vpack.c.bf16 %v880_v3, %v878_v2  ;;  %v753_v8 = vld [vmem:[%s5354_s20] sm:$0xff]  ;;  %v812_v2 = vld [vmem:[%s5354_s20 + $0x1d8] sm:$0xff]  ;;  %v811_v3 = vld [vmem:[%s5354_s20 + $0x1d0] sm:$0xff] }
 0x11a   : > { %739 = vmatmul.mubr.f32.gmra.mrb[2].mxu1 %v5388_v63  ;;  %v4269_v63 = vpack.c.bf16 %v875_v1, %v873_v62  ;;  %v810_v62 = vld [vmem:[%s5354_s20 + $0x1c8] sm:$0xff]  ;;  %v809_v1 = vld [vmem:[%s5354_s20 + $0x1c0] sm:$0xff] }
 0x11c   : > { %4242 = vmatpush1.bf16.msra.mxu0 %v4241_v15  ;;  %v762_v15 = vld [vmem:[%s5354_s20 + $0x48] sm:$0xff] }
 0x11d   : > { %4244 = vmatprep.subr.bf16.mxu0 %v4243_v20  ;;  %v765_v20 = vld [vmem:[%s5354_s20 + $0x60] sm:$0xff] }
 0x120   : > { %4246 = vmatpush1.bf16.msra.mxu0 %v4245_v27  ;;  %v774_v27 = vld [vmem:[%s5354_s20 + $0xa8] sm:$0xff] }
 0x121   : > { %4248 = vmatprep.subr.bf16.mxu0 %v4247_v31  ;;  %v778_v31 = vld [vmem:[%s5354_s20 + $0xc8] sm:$0xff] }
 0x124   : > { %4250 = vmatpush1.bf16.msra.mxu0 %v4249_v37  ;;  %v784_v37 = vld [vmem:[%s5354_s20 + $0xf8] sm:$0xff] }
 0x125   : > { %4252 = vmatprep.subr.bf16.mxu0 %v4251_v38  ;;  %v783_v38 = vld [vmem:[%s5354_s20 + $0xf0] sm:$0xff] }
 0x128   : > { %4254 = vmatpush1.bf16.msra.mxu0 %v4253_v43  ;;  %v790_v43 = vld [vmem:[%s5354_s20 + $0x128] sm:$0xff] }
 0x129   : > { %4256 = vmatprep.subr.bf16.mxu0 %v4255_v44  ;;  %v789_v44 = vld [vmem:[%s5354_s20 + $0x120] sm:$0xff] }
 0x12c   : > { %4258 = vmatpush1.bf16.msra.mxu0 %v4257_v49  ;;  %v796_v49 = vld [vmem:[%s5354_s20 + $0x158] sm:$0xff] }
 0x12d   : > { %4260 = vmatprep.subr.bf16.mxu0 %v4259_v50  ;;  %v795_v50 = vld [vmem:[%s5354_s20 + $0x150] sm:$0xff] }
 0x130   : > { %4262 = vmatpush1.bf16.msra.mxu0 %v4261_v55  ;;  %v802_v55 = vld [vmem:[%s5354_s20 + $0x188] sm:$0xff] }
 0x131   : > { %4264 = vmatprep.subr.bf16.mxu0 %v4263_v57  ;;  %v801_v57 = vld [vmem:[%s5354_s20 + $0x180] sm:$0xff] }
 0x134   : > { %4266 = vmatpush1.bf16.msra.mxu0 %v4265_v0  ;;  %v808_v0 = vld [vmem:[%s5354_s20 + $0x1b8] sm:$0xff] }
 0x135   : > { %4268 = vmatprep.subr.bf16.mxu0 %v4267_v61  ;;  %v807_v61 = vld [vmem:[%s5354_s20 + $0x1b0] sm:$0xff] }
 0x138   : > { %4270 = vmatpush1.bf16.msra.mxu0 %v4269_v63  ;;  %v814_v63 = vld [vmem:[%s5354_s20 + $0x1e8] sm:$0xff] }
 0x139   : > { %4272 = vmatprep.subr.bf16.mxu0 %v4271_v4  ;;  %v813_v4 = vld [vmem:[%s5354_s20 + $0x1e0] sm:$0xff] }
 0x13c   : > { %4274 = vmatpush1.bf16.msra.mxu0 %v4273_v7  ;;  %v537_v7 = vlaneseq }
 0x13f   : > { %958 = vmatmul.mubr.f32.vlgmr.msra.gmra.mrb[4].mxu0 %v753_v8  ;;  %v538_v8 = vshrl.u32 %v537_v7, 7 }
 0x140   : > { %963 = vmatprep.mubr.f32.mxu0 %v756_v9 }
 0x141   : > { %v5458_v9 = vsub.s32 1, %v538_v8 }
 0x143   : > { %964 = vmatmul.mubr.f32.gmra.mrb[6].mxu0 %v755_v10  ;;  %6705 = vst [vmem:[#allocation26_spill] sm:$0xff] %v5458_v9  ;;  %v535_v10 = vld [vmem:[%s6658_s5] sm:$0x3] }
 0x144   : > { %969 = vmatprep.mubr.f32.mxu0 %v758_v11  ;;  %v5463_v11 = vsub.s32 0, %v538_v8 }
 0x146   : > { %6706 = vst [vmem:[#allocation27_spill] sm:$0xff] %v5463_v11 }
 0x147   : > { %970 = vmatmul.mubr.f32.gmra.mrb[8].mxu0 %v757_v12  ;;  %v544_v12 = vrot.slane %v535_v10, %v5458_v9 }
 0x148   : > { %975 = vmatprep.mubr.f32.mxu0 %v760_v13 }
 0x14b   : > { %976 = vmatmul.mubr.f32.gmra.mrb[10].mxu0 %v759_v14  ;;  %v540_v14 = vrot.slane %v535_v10, %v5463_v11 }
 0x14c   : > { %981 = vmatprep.mubr.f32.mxu0 %v762_v15 }
 0x14f   : > { %982 = vmatmul.mubr.f32.gmra.mrb[12].mxu0 %v761_v16 }
 0x150   : > { %987 = vmatprep.mubr.f32.mxu0 %v764_v17 }
 0x153   : > { %988 = vmatmul.mubr.f32.gmra.mrb[14].mxu0 %v763_v18 }
 0x154   : > { %993 = vmatprep.mubr.f32.mxu0 %v766_v19 }
 0x157   : > { %994 = vmatmul.mubr.f32.gmra.mrb[16].mxu0 %v765_v20 }
 0x158   : > { %999 = vmatprep.mubr.f32.mxu0 %v768_v21 }
 0x15b   : > { %1000 = vmatmul.mubr.f32.gmra.mrb[18].mxu0 %v767_v22 }
 0x15c   : > { %1005 = vmatprep.mubr.f32.mxu0 %v770_v23 }
 0x15f   : > { %1006 = vmatmul.mubr.f32.gmra.mrb[20].mxu0 %v769_v24  ;;  %v656_v24 = vld [vmem:[%s6660_s7] sm:$0x3] }
 0x160   : > { %1011 = vmatprep.mubr.f32.mxu0 %v772_v25  ;;  %v5473_v25 = vrot.slane %v656_v24, %v5458_v9 }
 0x163   : > { %1012 = vmatmul.mubr.f32.gmra.mrb[22].mxu0 %v771_v26  ;;  %v661_v26 = vrot.slane %v656_v24, %v5463_v11 }
 0x164   : > { %1017 = vmatprep.mubr.f32.mxu0 %v774_v27 }
 0x167   : > { %1018 = vmatmul.mubr.f32.gmra.mrb[24].mxu0 %v773_v28 }
 0x168   : > { %1023 = vmatprep.mubr.f32.mxu0 %v776_v29 }
 0x16b   : > { %1024 = vmatmul.mubr.f32.gmra.mrb[26].mxu0 %v775_v30 }
 0x16c   : > { %1029 = vmatprep.mubr.f32.mxu0 %v778_v31 }
 0x16f   : > { %1030 = vmatmul.mubr.f32.gmra.mrb[28].mxu0 %v777_v32 }
 0x170   : > { %1035 = vmatprep.mubr.f32.mxu0 %v780_v33 }
 0x173   : > { %1036 = vmatmul.mubr.f32.gmra.mrb[30].mxu0 %v779_v34  ;;  %v881_v34 = vld [vmem:[%s6707_s2] sm:$0x3] }
 0x174   : > { %1041 = vmatprep.mubr.f32.mxu0 %v782_v35  ;;  %v5486_v35 = vrot.slane %v881_v34, %v5463_v11 }
 0x177   : > { %1042 = vmatmul.mubr.f32.gmra.mrb[32].mxu0 %v781_v36  ;;  %v5489_v36 = vrot.slane %v881_v34, %v5458_v9 }
 0x178   : > { %1047 = vmatprep.mubr.f32.mxu0 %v784_v37 }
 0x17b   : > { %1048 = vmatmul.mubr.f32.gmra.mrb[34].mxu0 %v783_v38 }
 0x17c   : > { %1053 = vmatprep.mubr.f32.mxu0 %v786_v39 }
 0x17f   : > { %1054 = vmatmul.mubr.f32.gmra.mrb[36].mxu0 %v785_v40 }
 0x180   : > { %1059 = vmatprep.mubr.f32.mxu0 %v788_v41 }
 0x183   : > { %1060 = vmatmul.mubr.f32.gmra.mrb[38].mxu0 %v787_v42 }
 0x184   : > { %1065 = vmatprep.mubr.f32.mxu0 %v790_v43 }
 0x187   : > { %1066 = vmatmul.mubr.f32.gmra.mrb[40].mxu0 %v789_v44 }
 0x188   : > { %1071 = vmatprep.mubr.f32.mxu0 %v792_v45 }
 0x18b   : > { %1072 = vmatmul.mubr.f32.gmra.mrb[42].mxu0 %v791_v46 }
 0x18c   : > { %1077 = vmatprep.mubr.f32.mxu0 %v794_v47 }
 0x18f   : > { %1078 = vmatmul.mubr.f32.gmra.mrb[44].mxu0 %v793_v48 }
 0x190   : > { %1083 = vmatprep.mubr.f32.mxu0 %v796_v49 }
 0x193   : > { %1084 = vmatmul.mubr.f32.gmra.mrb[46].mxu0 %v795_v50 }
 0x194   : > { %1089 = vmatprep.mubr.f32.mxu0 %v798_v51 }
 0x197   : > { %1090 = vmatmul.mubr.f32.gmra.mrb[48].mxu0 %v797_v52 }
 0x198   : > { %1095 = vmatprep.mubr.f32.mxu0 %v800_v53 }
 0x19b   : > { %1096 = vmatmul.mubr.f32.gmra.mrb[50].mxu0 %v799_v54 }
 0x19c   : > { %1101 = vmatprep.mubr.f32.mxu0 %v802_v55 }
 0x19f   : > { %1102 = vmatmul.mubr.f32.gmra.mrb[52].mxu0 %v801_v57 }
 0x1a0   : > { %1107 = vmatprep.mubr.f32.mxu0 %v804_v58 }
 0x1a3   : > { %1108 = vmatmul.mubr.f32.gmra.mrb[54].mxu0 %v803_v59 }
 0x1a4   : > { %1113 = vmatprep.mubr.f32.mxu0 %v806_v60 }
 0x1a7   : > { %1114 = vmatmul.mubr.f32.gmra.mrb[56].mxu0 %v805_v56 }
 0x1a8   : > { %1119 = vmatprep.mubr.f32.mxu0 %v808_v0 }
 0x1ab   : > { %1120 = vmatmul.mubr.f32.gmra.mrb[58].mxu0 %v807_v61 }
 0x1ac   : > { %1125 = vmatprep.mubr.f32.mxu0 %v810_v62 }
 0x1af   : > { %1126 = vmatmul.mubr.f32.gmra.mrb[60].mxu0 %v809_v1 }
 0x1b0   : > { %1131 = vmatprep.mubr.f32.mxu0 %v812_v2 }
 0x1b3   : > { %1132 = vmatmul.mubr.f32.gmra.mrb[62].mxu0 %v811_v3 }
 0x1b4   : > { %1137 = vmatprep.mubr.f32.mxu0 %v814_v63 }
 0x1b7   : > { %1138 = vmatmul.mubr.f32.gmra.mrb[64].mxu0 %v813_v4 }
 0x1b8   : > { %1143 = vmatprep.mubr.f32.mxu0 %v816_v5 }
 0x1bb   : > { %1144 = vmatmul.mubr.f32.gmra.mrb[66].mxu0 %v815_v6 }
 0x1d2   : > { %v613_v13 = vpop.f32.mrb[0].mxu0 }
 0x1d3   : > { %v615_v15 = vpop.f32.mrb[1].mxu0  ;;  %v614_v18 = vadd.f32 %v613_v13, %v540_v14 }
 0x1d4   : > { %v616_v16 = vadd.f32 %v615_v15, %v544_v12 }
 0x1d6   : > { %v619_v17 = vpop.f32.mrb[2].mxu0 }
 0x1d7   : > { %v620_v19 = vadd.f32 %v619_v17, %v540_v14  ;;  %v621_v20 = vpop.f32.mrb[3].mxu0 }
 0x1d8   : > { %v622_v21 = vadd.f32 %v621_v20, %v544_v12 }
 0x1d9   : > { %v4275_v22 = vpack.c.bf16 %v620_v19, %v614_v18 }
 0x1da   : > { %v5467_v23 = vpack.c.bf16 %v622_v21, %v616_v16 }
 0x1db   : > { %4276 = vmatprep.subr.bf16.mxu0 %v4275_v22  ;;  %4355 = vmatprep.subr.bf16.mxu1 %v4275_v22 }
 0x1dc   : > { %4278 = vmatpush3.bf16.xpose.msra.mxu0 %v4275_v22  ;;  %4356 = vmatpush3.bf16.xpose.msra.mxu1 %v4275_v22 }
 0x1e9   : > { %v734_v27 = vpop.f32.mrb[0].mxu1 }
 0x1ea   : > { %v736_v28 = vpop.f32.mrb[1].mxu1  ;;  %v735_v30 = vadd.f32 %v734_v27, %v661_v26 }
 0x1eb   : > { %v5477_v29 = vadd.f32 %v736_v28, %v5473_v25 }
 0x1ed   : > { %v740_v31 = vpop.f32.mrb[2].mxu1 }
 0x1ee   : > { %v741_v32 = vadd.f32 %v740_v31, %v661_v26 }
 0x1f0   : > { %v5479_v33 = vpack.c.bf16 %v741_v32, %v735_v30 }
 0x1f2   : > { %4280 = vmatprep.subr.bf16.mxu1 %v5479_v33 }
 0x212   : > { %v959_v37 = vpop.f32.mrb[4].mxu0 }
 0x213   : > { %v960_v38 = vadd.f32 %v959_v37, %v5486_v35  ;;  %v961_v39 = vpop.f32.mrb[5].mxu0 }
 0x214   : > { %v5493_v40 = vadd.f32 %v961_v39, %v5489_v36 }
 0x215   : > { %v1150_v41 = vmul.f32 0.088388346, %v960_v38 }
 0x216   : > { %v965_v42 = vpop.f32.mrb[6].mxu0 }
 0x217   : > { %v966_v43 = vadd.f32 %v965_v42, %v5486_v35  ;;  %3943 = vmatprep.mubr.f32.mxu0 %v1150_v41  ;;  %v967_v44 = vpop.f32.mrb[7].mxu0 }
 0x218   : > { %v5497_v45 = vadd.f32 %v967_v44, %v5489_v36 }
 0x219   : > { %v1152_v46 = vmul.f32 0.088388346, %v966_v43 }
 0x21a   : > { %v971_v47 = vpop.f32.mrb[8].mxu0 }
 0x21b   : > { %3944 = vmatmul.mubr.f32.vlgmr.msra.gmra.mrb[68].mxu0 %v1152_v46  ;;  %v972_v48 = vadd.f32 %v971_v47, %v5486_v35  ;;  %v973_v49 = vpop.f32.mrb[9].mxu0 }
 0x21c   : > { %v5501_v50 = vadd.f32 %v973_v49, %v5489_v36 }
 0x21d   : > { %v1154_v51 = vmul.f32 0.088388346, %v972_v48 }
 0x21e   : > { %v977_v52 = vpop.f32.mrb[10].mxu0 }
 0x21f   : > { %v978_v53 = vadd.f32 %v977_v52, %v5486_v35  ;;  %3946 = vmatprep.mubr.f32.mxu0 %v1154_v51  ;;  %v979_v54 = vpop.f32.mrb[11].mxu0 }
 0x220   : > { %v5505_v55 = vadd.f32 %v979_v54, %v5489_v36 }
 0x221   : > { %v1156_v57 = vmul.f32 0.088388346, %v978_v53 }
 0x222   : > { %v983_v58 = vpop.f32.mrb[12].mxu0 }
 0x223   : > { %3947 = vmatmul.mubr.f32.gmra.mrb[70].mxu0 %v1156_v57  ;;  %v984_v59 = vadd.f32 %v983_v58, %v5486_v35  ;;  %v985_v60 = vpop.f32.mrb[13].mxu0 }
 0x224   : > { %v5509_v56 = vadd.f32 %v985_v60, %v5489_v36 }
 0x225   : > { %v1158_v0 = vmul.f32 0.088388346, %v984_v59 }
 0x226   : > { %v989_v61 = vpop.f32.mrb[14].mxu0 }
 0x227   : > { %v990_v62 = vadd.f32 %v989_v61, %v5486_v35  ;;  %3949 = vmatprep.mubr.f32.mxu0 %v1158_v0  ;;  %v991_v1 = vpop.f32.mrb[15].mxu0 }
 0x228   : > { %v5513_v2 = vadd.f32 %v991_v1, %v5489_v36 }
 0x229   : > { %v1160_v3 = vmul.f32 0.088388346, %v990_v62 }
 0x22a   : > { %v995_v63 = vpop.f32.mrb[16].mxu0 }
 0x22b   : > { %3950 = vmatmul.mubr.f32.gmra.mrb[72].mxu0 %v1160_v3  ;;  %v996_v4 = vadd.f32 %v995_v63, %v5486_v35  ;;  %v997_v5 = vpop.f32.mrb[17].mxu0 }
 0x22c   : > { %v5517_v6 = vadd.f32 %v997_v5, %v5489_v36 }
 0x22d   : > { %v1162_v7 = vmul.f32 0.088388346, %v996_v4 }
 0x22e   : > { %v1001_v8 = vpop.f32.mrb[18].mxu0 }
 0x22f   : > { %v1002_v10 = vadd.f32 %v1001_v8, %v5486_v35  ;;  %3952 = vmatprep.mubr.f32.mxu0 %v1162_v7  ;;  %v1003_v12 = vpop.f32.mrb[19].mxu0 }
 0x230   : > { %v5521_v13 = vadd.f32 %v1003_v12, %v5489_v36 }
 0x231   : > { %v1164_v14 = vmul.f32 0.088388346, %v1002_v10 }
 0x232   : > { %v1007_v15 = vpop.f32.mrb[20].mxu0 }
 0x233   : > { %3953 = vmatmul.mubr.f32.gmra.mrb[74].mxu0 %v1164_v14  ;;  %v1008_v16 = vadd.f32 %v1007_v15, %v5486_v35  ;;  %v1009_v17 = vpop.f32.mrb[21].mxu0 }
 0x234   : > { %v5525_v18 = vadd.f32 %v1009_v17, %v5489_v36 }
 0x235   : > { %v1166_v19 = vmul.f32 0.088388346, %v1008_v16 }
 0x236   : > { %v1013_v20 = vpop.f32.mrb[22].mxu0 }
 0x237   : > { %v1014_v21 = vadd.f32 %v1013_v20, %v5486_v35  ;;  %3955 = vmatprep.mubr.f32.mxu0 %v1166_v19  ;;  %v1015_v22 = vpop.f32.mrb[23].mxu0 }
 0x238   : > { %v5529_v24 = vadd.f32 %v1015_v22, %v5489_v36 }
 0x239   : > { %v1168_v26 = vmul.f32 0.088388346, %v1014_v21 }
 0x23a   : > { %v1019_v27 = vpop.f32.mrb[24].mxu0 }
 0x23b   : > { %3956 = vmatmul.mubr.f32.gmra.mrb[76].mxu0 %v1168_v26  ;;  %v1020_v28 = vadd.f32 %v1019_v27, %v5486_v35  ;;  %v1021_v30 = vpop.f32.mrb[25].mxu0 }
 0x23c   : > { %v5533_v31 = vadd.f32 %v1021_v30, %v5489_v36 }
 0x23d   : > { %v1170_v32 = vmul.f32 0.088388346, %v1020_v28 }
 0x23e   : > { %v1025_v34 = vpop.f32.mrb[26].mxu0 }
 0x23f   : > { %v1026_v37 = vadd.f32 %v1025_v34, %v5486_v35  ;;  %3958 = vmatprep.mubr.f32.mxu0 %v1170_v32  ;;  %v1027_v38 = vpop.f32.mrb[27].mxu0 }
 0x240   : > { %v5537_v39 = vadd.f32 %v1027_v38, %v5489_v36 }
 0x241   : > { %v1172_v41 = vmul.f32 0.088388346, %v1026_v37 }
 0x242   : > { %v1031_v42 = vpop.f32.mrb[28].mxu0 }
 0x243   : > { %3959 = vmatmul.mubr.f32.gmra.mrb[78].mxu0 %v1172_v41  ;;  %v1032_v43 = vadd.f32 %v1031_v42, %v5486_v35  ;;  %v1033_v44 = vpop.f32.mrb[29].mxu0 }
 0x244   : > { %v5541_v46 = vadd.f32 %v1033_v44, %v5489_v36 }
 0x245   : > { %v1174_v47 = vmul.f32 0.088388346, %v1032_v43 }
 0x246   : > { %v1037_v48 = vpop.f32.mrb[30].mxu0 }
 0x247   : > { %v1038_v49 = vadd.f32 %v1037_v48, %v5486_v35  ;;  %3961 = vmatprep.mubr.f32.mxu0 %v1174_v47  ;;  %v1039_v51 = vpop.f32.mrb[31].mxu0 }
 0x248   : > { %v5545_v52 = vadd.f32 %v1039_v51, %v5489_v36 }
 0x249   : > { %v1176_v53 = vmul.f32 0.088388346, %v1038_v49 }
 0x24a   : > { %v1043_v54 = vpop.f32.mrb[32].mxu0 }
 0x24b   : > { %3962 = vmatmul.mubr.f32.gmra.mrb[80].mxu0 %v1176_v53  ;;  %v1044_v57 = vadd.f32 %v1043_v54, %v5486_v35  ;;  %v1045_v58 = vpop.f32.mrb[33].mxu0 }
 0x24c   : > { %v5549_v59 = vadd.f32 %v1045_v58, %v5489_v36 }
 0x24d   : > { %v1178_v60 = vmul.f32 0.088388346, %v1044_v57 }
 0x24e   : > { %v1049_v0 = vpop.f32.mrb[34].mxu0 }
 0x24f   : > { %v1050_v61 = vadd.f32 %v1049_v0, %v5486_v35  ;;  %3964 = vmatprep.mubr.f32.mxu0 %v1178_v60  ;;  %v1051_v62 = vpop.f32.mrb[35].mxu0 }
 0x250   : > { %v5553_v1 = vadd.f32 %v1051_v62, %v5489_v36 }
 0x251   : > { %v1180_v3 = vmul.f32 0.088388346, %v1050_v61 }
 0x252   : > { %v1055_v63 = vpop.f32.mrb[36].mxu0 }
 0x253   : > { %3965 = vmatmul.mubr.f32.gmra.mrb[82].mxu0 %v1180_v3  ;;  %v1056_v4 = vadd.f32 %v1055_v63, %v5486_v35  ;;  %v1057_v5 = vpop.f32.mrb[37].mxu0 }
 0x254   : > { %v5557_v7 = vadd.f32 %v1057_v5, %v5489_v36 }
 0x255   : > { %v1182_v8 = vmul.f32 0.088388346, %v1056_v4 }
 0x256   : > { %v1061_v10 = vpop.f32.mrb[38].mxu0 }
 0x257   : > { %v1062_v12 = vadd.f32 %v1061_v10, %v5486_v35  ;;  %3967 = vmatprep.mubr.f32.mxu0 %v1182_v8  ;;  %v1063_v14 = vpop.f32.mrb[39].mxu0 }
 0x258   : > { %v5561_v15 = vadd.f32 %v1063_v14, %v5489_v36 }
 0x259   : > { %v1184_v16 = vmul.f32 0.088388346, %v1062_v12 }
 0x25a   : > { %6708 = vst [vmem:[#allocation28_spill] sm:$0xff] %v5561_v15  ;;  %v1067_v17 = vpop.f32.mrb[40].mxu0 }
 0x25b   : > { %3968 = vmatmul.mubr.f32.gmra.mrb[84].mxu0 %v1184_v16  ;;  %v1068_v19 = vadd.f32 %v1067_v17, %v5486_v35  ;;  %v1069_v20 = vpop.f32.mrb[41].mxu0 }
 0x25c   : > { %v5565_v21 = vadd.f32 %v1069_v20, %v5489_v36 }
 0x25d   : > { %v1186_v22 = vmul.f32 0.088388346, %v1068_v19 }
 0x25e   : > { %6709 = vst [vmem:[#allocation29_spill] sm:$0xff] %v5565_v21  ;;  %v1073_v26 = vpop.f32.mrb[42].mxu0 }
 0x25f   : > { %v1074_v27 = vadd.f32 %v1073_v26, %v5486_v35  ;;  %3970 = vmatprep.mubr.f32.mxu1 %v1186_v22  ;;  %v1075_v28 = vpop.f32.mrb[43].mxu0 }
 0x260   : > { %v5569_v30 = vadd.f32 %v1075_v28, %v5489_v36 }
 0x261   : > { %v1188_v32 = vmul.f32 0.088388346, %v1074_v27 }
 0x262   : > { %6710 = vst [vmem:[#allocation30_spill] sm:$0xff] %v5569_v30  ;;  %v1079_v34 = vpop.f32.mrb[44].mxu0 }
 0x263   : > { %3971 = vmatmul.mubr.f32.vlgmr.msra.gmra.mrb[4].mxu1 %v1188_v32  ;;  %v1080_v37 = vadd.f32 %v1079_v34, %v5486_v35  ;;  %v1081_v38 = vpop.f32.mrb[45].mxu0 }
 0x264   : > { %4282 = vmatpush3.bf16.msra.mxu1 %v5479_v33  ;;  %v5574_v41 = vadd.f32 %v1081_v38, %v5489_v36 }
 0x265   : > { %v1190_v42 = vmul.f32 0.088388346, %v1080_v37  ;;  %4284 = vmatprep.subr.bf16.mxu1 %v5467_v23 }
 0x266   : > { %6711 = vst [vmem:[#allocation31_spill] sm:$0xff] %v5574_v41  ;;  %v1085_v43 = vpop.f32.mrb[46].mxu0 }
 0x267   : > { %v1086_v44 = vadd.f32 %v1085_v43, %v5486_v35  ;;  %3973 = vmatprep.mubr.f32.mxu1 %v1190_v42  ;;  %v1087_v47 = vpop.f32.mrb[47].mxu0 }
 0x268   : > { %v5579_v48 = vadd.f32 %v1087_v47, %v5489_v36 }
 0x269   : > { %v1192_v49 = vmul.f32 0.088388346, %v1086_v44 }
 0x26a   : > { %6712 = vst [vmem:[#allocation32_spill] sm:$0xff] %v5579_v48  ;;  %v1091_v51 = vpop.f32.mrb[48].mxu0 }
 0x26b   : > { %3974 = vmatmul.mubr.f32.gmra.mrb[6].mxu1 %v1192_v49  ;;  %v1092_v53 = vadd.f32 %v1091_v51, %v5486_v35  ;;  %v1093_v33 = vpop.f32.mrb[49].mxu0 }
 0x26c   : > { %v5583_v54 = vadd.f32 %v1093_v33, %v5489_v36 }
 0x26d   : > { %v1194_v57 = vmul.f32 0.088388346, %v1092_v53 }
 0x26e   : > { %6713 = vst [vmem:[#allocation33_spill] sm:$0xff] %v5583_v54  ;;  %v1097_v58 = vpop.f32.mrb[50].mxu0 }
 0x26f   : > { %v1098_v60 = vadd.f32 %v1097_v58, %v5486_v35  ;;  %3976 = vmatprep.mubr.f32.mxu1 %v1194_v57  ;;  %v1099_v0 = vpop.f32.mrb[51].mxu0 }
 0x270   : > { %v5587_v61 = vadd.f32 %v1099_v0, %v5489_v36 }
 0x271   : > { %v1196_v62 = vmul.f32 0.088388346, %v1098_v60 }
 0x272   : > { %6714 = vst [vmem:[#allocation34_spill] sm:$0xff] %v5587_v61  ;;  %v1103_v3 = vpop.f32.mrb[52].mxu0 }
 0x273   : > { %3977 = vmatmul.mubr.f32.gmra.mrb[8].mxu1 %v1196_v62  ;;  %v1104_v63 = vadd.f32 %v1103_v3, %v5486_v35  ;;  %v1105_v4 = vpop.f32.mrb[53].mxu0 }
 0x274   : > { %v5591_v5 = vadd.f32 %v1105_v4, %v5489_v36 }
 0x275   : > { %v1198_v8 = vmul.f32 0.088388346, %v1104_v63 }
 0x276   : > { %6715 = vst [vmem:[#allocation35_spill] sm:$0xff] %v5591_v5  ;;  %v1109_v10 = vpop.f32.mrb[54].mxu0 }
 0x277   : > { %v1110_v12 = vadd.f32 %v1109_v10, %v5486_v35  ;;  %3979 = vmatprep.mubr.f32.mxu1 %v1198_v8  ;;  %v1111_v14 = vpop.f32.mrb[55].mxu0 }
 0x278   : > { %v5595_v16 = vadd.f32 %v1111_v14, %v5489_v36 }
 0x279   : > { %v1200_v17 = vmul.f32 0.088388346, %v1110_v12 }
 0x27a   : > { %6716 = vst [vmem:[#allocation36_spill] sm:$0xff] %v5595_v16  ;;  %v1115_v19 = vpop.f32.mrb[56].mxu0 }
 0x27b   : > { %3980 = vmatmul.mubr.f32.gmra.mrb[10].mxu1 %v1200_v17  ;;  %v1116_v20 = vadd.f32 %v1115_v19, %v5486_v35  ;;  %v1117_v22 = vpop.f32.mrb[57].mxu0  ;;  %v742_v17 = vpop.f32.mrb[3].mxu1 }
 0x27c   : > { %v5599_v26 = vadd.f32 %v1117_v22, %v5489_v36  ;;  %v743_v19 = vadd.f32 %v742_v17, %v5473_v25 }
 0x27d   : > { %v1202_v27 = vmul.f32 0.088388346, %v1116_v20 }
 0x27e   : > { %6717 = vst [vmem:[#allocation37_spill] sm:$0xff] %v5599_v26  ;;  %v1121_v28 = vpop.f32.mrb[58].mxu0  ;;  %v4287_v20 = vpack.c.bf16 %v743_v19, %v5477_v29 }
 0x27f   : > { %v1122_v32 = vadd.f32 %v1121_v28, %v5486_v35  ;;  %3982 = vmatprep.mubr.f32.mxu1 %v1202_v27  ;;  %v1123_v34 = vpop.f32.mrb[59].mxu0 }
 0x280   : > { %v5603_v37 = vadd.f32 %v1123_v34, %v5489_v36  ;;  %4288 = vmatprep.subr.bf16.mxu0 %v4287_v20 }
 0x281   : > { %v1204_v38 = vmul.f32 0.088388346, %v1122_v32  ;;  %4290 = vmatpush3.bf16.msra.mxu0 %v4287_v20 }
 0x282   : > { %6718 = vst [vmem:[#allocation38_spill] sm:$0xff] %v5603_v37  ;;  %v1127_v42 = vpop.f32.mrb[60].mxu0 }
 0x283   : > { %3983 = vmatmul.mubr.f32.gmra.mrb[12].mxu1 %v1204_v38  ;;  %v1128_v43 = vadd.f32 %v1127_v42, %v5486_v35  ;;  %v1129_v44 = vpop.f32.mrb[61].mxu0 }
 0x284   : > { %v5607_v47 = vadd.f32 %v1129_v44, %v5489_v36 }
 0x285   : > { %v1206_v49 = vmul.f32 0.088388346, %v1128_v43 }
 0x286   : > { %6719 = vst [vmem:[#allocation39_spill] sm:$0xff] %v5607_v47  ;;  %v1133_v51 = vpop.f32.mrb[62].mxu0 }
 0x287   : > { %v1134_v53 = vadd.f32 %v1133_v51, %v5486_v35  ;;  %3985 = vmatprep.mubr.f32.mxu1 %v1206_v49  ;;  %v1135_v33 = vpop.f32.mrb[63].mxu0 }
 0x288   : > { %v5611_v57 = vadd.f32 %v1135_v33, %v5489_v36 }
 0x289   : > { %v1208_v58 = vmul.f32 0.088388346, %v1134_v53 }
 0x28a   : > { %6720 = vst [vmem:[#allocation40_spill] sm:$0xff] %v5611_v57  ;;  %v1139_v60 = vpop.f32.mrb[64].mxu0 }
 0x28b   : > { %3986 = vmatmul.mubr.f32.gmra.mrb[14].mxu1 %v1208_v58  ;;  %v1140_v0 = vadd.f32 %v1139_v60, %v5486_v35  ;;  %v1141_v62 = vpop.f32.mrb[65].mxu0 }
 0x28c   : > { %v5615_v3 = vadd.f32 %v1141_v62, %v5489_v36 }
 0x28d   : > { %v1210_v63 = vmul.f32 0.088388346, %v1140_v0 }
 0x28e   : > { %6721 = vst [vmem:[#allocation41_spill] sm:$0xff] %v5615_v3  ;;  %v1145_v4 = vpop.f32.mrb[66].mxu0 }
 0x28f   : > { %v1146_v8 = vadd.f32 %v1145_v4, %v5486_v35  ;;  %3988 = vmatprep.mubr.f32.mxu1 %v1210_v63  ;;  %v1147_v10 = vpop.f32.mrb[67].mxu0 }
 0x290   : > { %v5619_v12 = vadd.f32 %v1147_v10, %v5489_v36 }
 0x291   : > { %v1212_v14 = vmul.f32 0.088388346, %v1146_v8 }
 0x292   : > { %6722 = vst [vmem:[#allocation42_spill] sm:$0xff] %v5619_v12 }
 0x293   : > { %3989 = vmatmul.mubr.f32.gmra.mrb[16].mxu1 %v1212_v14 }
 0x2ee   : > { %v5623_v22 = vpop.f32.mrb[68].mxu0 }
 0x2ef   : > { %v5625_v27 = vpop.f32.mrb[69].mxu0  ;;  %v1451_v36 = vsel %vm1447_vm0, %v5623_v22, -inf }
 0x2f0   : > { %v1448_v35 = vsel %vm1447_vm0, %v5625_v27, -inf }
 0x2f1   : > { %1449 = vmax.xlane.f32.xlu0 %v1448_v35 }
 0x2f5   : > { %1452 = vmax.xlane.f32.xlu0 %v1451_v36 }
 0x2f6   : > { %v5631_v28 = vpop.f32.mrb[70].mxu0 }
 0x2f7   : > { %v5633_v25 = vpop.f32.mrb[71].mxu0  ;;  %v1457_v32 = vsel %vm1447_vm0, %v5631_v28, -inf }
 0x2f8   : > { %v1454_v29 = vsel %vm1447_vm0, %v5633_v25, -inf }
 0x2f9   : > { %1455 = vmax.xlane.f32.xlu1 %v1454_v29 }
 0x2fd   : > { %1458 = vmax.xlane.f32.xlu1 %v1457_v32 }
 0x2fe   : > { %v5639_v34 = vpop.f32.mrb[72].mxu0 }
 0x2ff   : > { %v5641_v38 = vpop.f32.mrb[73].mxu0  ;;  %v1463_v42 = vsel %vm1447_vm0, %v5639_v34, -inf }
 0x300   : > { %v1460_v43 = vsel %vm1447_vm0, %v5641_v38, -inf }
 0x301   : > { %1464 = vmax.xlane.f32.xlu1 %v1463_v42  ;;  %1461 = vmax.xlane.f32.xlu0 %v1460_v43 }
 0x306   : > { %v5647_v44 = vpop.f32.mrb[74].mxu0 }
 0x307   : > { %v5649_v49 = vpop.f32.mrb[75].mxu0  ;;  %v1469_v51 = vsel %vm1447_vm0, %v5647_v44, -inf }
 0x308   : > { %1470 = vmax.xlane.f32.xlu1 %v1469_v51  ;;  %v1466_v53 = vsel %vm1447_vm0, %v5649_v49, -inf }
 0x309   : > { %1467 = vmax.xlane.f32.xlu0 %v1466_v53 }
 0x30e   : > { %v5655_v33 = vpop.f32.mrb[76].mxu0 }
 0x30f   : > { %v5657_v58 = vpop.f32.mrb[77].mxu0  ;;  %v1475_v60 = vsel %vm1447_vm0, %v5655_v33, -inf }
 0x310   : > { %1476 = vmax.xlane.f32.xlu1 %v1475_v60  ;;  %v1472_v0 = vsel %vm1447_vm0, %v5657_v58, -inf }
 0x311   : > { %1473 = vmax.xlane.f32.xlu0 %v1472_v0 }
 0x316   : > { %v5663_v62 = vpop.f32.mrb[78].mxu0 }
 0x317   : > { %v5665_v63 = vpop.f32.mrb[79].mxu0  ;;  %v1481_v4 = vsel %vm1447_vm0, %v5663_v62, -inf }
 0x318   : > { %1482 = vmax.xlane.f32.xlu1 %v1481_v4  ;;  %v1478_v8 = vsel %vm1447_vm0, %v5665_v63, -inf }
 0x319   : > { %1479 = vmax.xlane.f32.xlu0 %v1478_v8 }
 0x31e   : > { %v5671_v10 = vpop.f32.mrb[80].mxu0 }
 0x31f   : > { %v5673_v14 = vpop.f32.mrb[81].mxu0  ;;  %v1487_v17 = vsel %vm1447_vm0, %v5671_v10, -inf }
 0x320   : > { %1488 = vmax.xlane.f32.xlu1 %v1487_v17  ;;  %v1484_v19 = vsel %vm1447_vm0, %v5673_v14, -inf }
 0x321   : > { %1485 = vmax.xlane.f32.xlu0 %v1484_v19 }
 0x326   : > { %v5679_v20 = vpop.f32.mrb[82].mxu0 }
 0x327   : > { %v5681_v35 = vpop.f32.mrb[83].mxu0  ;;  %v1493_v36 = vsel %vm1447_vm0, %v5679_v20, -inf }
 0x328   : > { %1494 = vmax.xlane.f32.xlu1 %v1493_v36  ;;  %v1490_v29 = vsel %vm1447_vm0, %v5681_v35, -inf }
 0x329   : > { %1491 = vmax.xlane.f32.xlu0 %v1490_v29 }
 0x32e   : > { %v5687_v32 = vpop.f32.mrb[84].mxu0 }
 0x32f   : > { %v5689_v42 = vpop.f32.mrb[85].mxu0  ;;  %v1499_v43 = vsel %vm1447_vm0, %v5687_v32, -inf }
 0x330   : > { %1500 = vmax.xlane.f32.xlu1 %v1499_v43  ;;  %v1496_v51 = vsel %vm1447_vm0, %v5689_v42, -inf }
 0x331   : > { %1497 = vmax.xlane.f32.xlu0 %v1496_v51 }
 0x336   : > { %v5695_v53 = vpop.f32.mrb[4].mxu1 }
 0x337   : > { %v5697_v60 = vpop.f32.mrb[5].mxu1  ;;  %v1505_v0 = vsel %vm1447_vm0, %v5695_v53, -inf }
 0x338   : > { %1506 = vmax.xlane.f32.xlu1 %v1505_v0  ;;  %v1502_v4 = vsel %vm1447_vm0, %v5697_v60, -inf }
 0x339   : > { %1503 = vmax.xlane.f32.xlu0 %v1502_v4 }
 0x33e   : > { %v5703_v8 = vpop.f32.mrb[6].mxu1 }
 0x33f   : > { %v5705_v17 = vpop.f32.mrb[7].mxu1  ;;  %v1511_v19 = vsel %vm1447_vm0, %v5703_v8, -inf }
 0x340   : > { %1512 = vmax.xlane.f32.xlu1 %v1511_v19  ;;  %v1508_v36 = vsel %vm1447_vm0, %v5705_v17, -inf }
 0x341   : > { %1509 = vmax.xlane.f32.xlu0 %v1508_v36 }
 0x346   : > { %v5711_v29 = vpop.f32.mrb[8].mxu1 }
 0x347   : > { %v5713_v43 = vpop.f32.mrb[9].mxu1  ;;  %v1517_v51 = vsel %vm1447_vm0, %v5711_v29, -inf }
 0x348   : > { %1518 = vmax.xlane.f32.xlu1 %v1517_v51  ;;  %v1514_v0 = vsel %vm1447_vm0, %v5713_v43, -inf }
 0x349   : > { %1515 = vmax.xlane.f32.xlu0 %v1514_v0 }
 0x34e   : > { %v5719_v4 = vpop.f32.mrb[10].mxu1 }
 0x34f   : > { %v5721_v9 = vpop.f32.mrb[11].mxu1  ;;  %v1523_v19 = vsel %vm1447_vm0, %v5719_v4, -inf }
 0x350   : > { %1524 = vmax.xlane.f32.xlu1 %v1523_v19  ;;  %v1520_v36 = vsel %vm1447_vm0, %v5721_v9, -inf }
 0x351   : > { %1521 = vmax.xlane.f32.xlu0 %v1520_v36 }
 0x356   : > { %v5727_v11 = vpop.f32.mrb[12].mxu1 }
 0x357   : > { %v5729_v12 = vpop.f32.mrb[13].mxu1  ;;  %v1529_v51 = vsel %vm1447_vm0, %v5727_v11, -inf }
 0x358   : > { %1530 = vmax.xlane.f32.xlu1 %v1529_v51  ;;  %v1526_v0 = vsel %vm1447_vm0, %v5729_v12, -inf }
 0x359   : > { %1527 = vmax.xlane.f32.xlu0 %v1526_v0 }
 0x35e   : > { %v5735_v3 = vpop.f32.mrb[14].mxu1 }
 0x35f   : > { %v5737_v57 = vpop.f32.mrb[15].mxu1  ;;  %v1535_v19 = vsel %vm1447_vm0, %v5735_v3, -inf }
 0x360   : > { %1536 = vmax.xlane.f32.xlu1 %v1535_v19  ;;  %v1532_v36 = vsel %vm1447_vm0, %v5737_v57, -inf }
 0x361   : > { %1533 = vmax.xlane.f32.xlu0 %v1532_v36 }
 0x366   : > { %v5743_v47 = vpop.f32.mrb[16].mxu1 }
 0x367   : > { %v5745_v37 = vpop.f32.mrb[17].mxu1  ;;  %v1541_v51 = vsel %vm1447_vm0, %v5743_v47, -inf }
 0x368   : > { %1542 = vmax.xlane.f32.xlu1 %v1541_v51  ;;  %v1538_v0 = vsel %vm1447_vm0, %v5745_v37, -inf }
 0x369   : > { %1539 = vmax.xlane.f32.xlu0 %v1538_v0 }
 0x37e   : > { %v1450_v26 = vpop.xlane.xlu0 %1449 }
 0x37f   : > { %v1544_v16 = vsub.f32 %v5625_v27, %v1450_v26 }
 0x381   : > { %v1576_v19 = vmul.f32 1.442695, %v1544_v16 }
 0x382   : > { %v1453_v5 = vpop.xlane.xlu0 %1452 }
 0x383   : > { %4472 = vpow2.f32 %v1576_v19  ;;  %v1545_v36 = vsub.f32 %v5623_v22, %v1453_v5 }
 0x385   : > { %v1578_v61 = vmul.f32 1.442695, %v1545_v36 }
 0x386   : > { %v1456_v54 = vpop.xlane.xlu1 %1455 }
 0x387   : > { %4474 = vpow2.f32 %v1578_v61  ;;  %v1546_v48 = vsub.f32 %v5633_v25, %v1456_v54 }
 0x389   : > { %v1580_v41 = vmul.f32 1.442695, %v1546_v48 }
 0x38a   : > { %v1459_v30 = vpop.xlane.xlu1 %1458 }
 0x38b   : > { %4476 = vpow2.f32 %v1580_v41  ;;  %v1547_v51 = vsub.f32 %v5631_v28, %v1459_v30 }
 0x38d   : > { %v5755_v21 = vpop.eup %4472  ;;  %v1582_v0 = vmul.f32 1.442695, %v1547_v51 }
 0x38e   : > { %v1465_v15 = vpop.xlane.xlu1 %1464  ;;  %v1462_v26 = vpop.xlane.xlu0 %1461  ;;  %v1640_v16 = vsel %vm1447_vm0, %v5755_v21, 0.0 }
 0x38f   : > { %4478 = vpow2.f32 %v1582_v0  ;;  %v1549_v5 = vsub.f32 %v5639_v34, %v1465_v15  ;;  %v1548_v61 = vsub.f32 %v5641_v38, %v1462_v26  ;;  %1641 = vadd.xlane.f32.xlu0 %v1640_v16 }
 0x391   : > { %v5761_v54 = vpop.eup %4474  ;;  %v1586_v48 = vmul.f32 1.442695, %v1549_v5  ;;  %v1584_v41 = vmul.f32 1.442695, %v1548_v61 }
 0x392   : > { %v1643_v30 = vsel %vm1447_vm0, %v5761_v54, 0.0 }
 0x393   : > { %4480 = vpow2.f32 %v1586_v48  ;;  %1644 = vadd.xlane.f32.xlu1 %v1643_v30 }
 0x394   : > { %4482 = vpow2.f32 %v1584_v41 }
 0x395   : > { %v5765_v22 = vpop.eup %4476  ;;  %v1471_v27 = vpop.xlane.xlu1 %1470 }
 0x396   : > { %v1551_v28 = vsub.f32 %v5647_v44, %v1471_v27  ;;  %v1468_v25 = vpop.xlane.xlu0 %1467  ;;  %v1646_v15 = vsel %vm1447_vm0, %v5765_v22, 0.0 }
 0x397   : > { %v1550_v34 = vsub.f32 %v5649_v49, %v1468_v25  ;;  %1647 = vadd.xlane.f32.xlu0 %v1646_v15 }
 0x398   : > { %v1590_v38 = vmul.f32 1.442695, %v1551_v28 }
 0x399   : > { %v5771_v19 = vpop.eup %4478  ;;  %v1588_v36 = vmul.f32 1.442695, %v1550_v34 }
 0x39a   : > { %4484 = vpow2.f32 %v1590_v38  ;;  %v1649_v51 = vsel %vm1447_vm0, %v5771_v19, 0.0 }
 0x39b   : > { %4486 = vpow2.f32 %v1588_v36  ;;  %1650 = vadd.xlane.f32.xlu1 %v1649_v51 }
 0x39d   : > { %v5775_v0 = vpop.eup %4480  ;;  %v1477_v44 = vpop.xlane.xlu1 %1476 }
 0x39e   : > { %v5777_v26 = vpop.eup %4482  ;;  %v1553_v16 = vsub.f32 %v5655_v33, %v1477_v44  ;;  %v1474_v5 = vpop.xlane.xlu0 %1473  ;;  %v1655_v49 = vsel %vm1447_vm0, %v5775_v0, 0.0 }
 0x39f   : > { %v1552_v61 = vsub.f32 %v5657_v58, %v1474_v5  ;;  %1656 = vadd.xlane.f32.xlu1 %v1655_v49  ;;  %v1652_v48 = vsel %vm1447_vm0, %v5777_v26, 0.0 }
 0x3a0   : > { %v1594_v41 = vmul.f32 1.442695, %v1553_v16  ;;  %1653 = vadd.xlane.f32.xlu0 %v1652_v48 }
 0x3a1   : > { %v1592_v30 = vmul.f32 1.442695, %v1552_v61 }
 0x3a2   : > { %4488 = vpow2.f32 %v1594_v41 }
 0x3a3   : > { %4490 = vpow2.f32 %v1592_v30 }
 0x3a4   : > { %v5785_v27 = vpop.eup %4484 }
 0x3a5   : > { %v5787_v28 = vpop.eup %4486  ;;  %v1483_v33 = vpop.xlane.xlu1 %1482  ;;  %v1661_v25 = vsel %vm1447_vm0, %v5785_v27, 0.0 }
 0x3a6   : > { %v1555_v15 = vsub.f32 %v5663_v62, %v1483_v33  ;;  %v1480_v58 = vpop.xlane.xlu0 %1479  ;;  %1662 = vadd.xlane.f32.xlu1 %v1661_v25  ;;  %v1658_v34 = vsel %vm1447_vm0, %v5787_v28, 0.0 }
 0x3a7   : > { %v1554_v38 = vsub.f32 %v5665_v63, %v1480_v58  ;;  %1659 = vadd.xlane.f32.xlu0 %v1658_v34 }
 0x3a8   : > { %v1598_v36 = vmul.f32 1.442695, %v1555_v15 }
 0x3a9   : > { %v1596_v51 = vmul.f32 1.442695, %v1554_v38 }
 0x3aa   : > { %4492 = vpow2.f32 %v1598_v36 }
 0x3ab   : > { %4494 = vpow2.f32 %v1596_v51 }
 0x3ac   : > { %v5795_v44 = vpop.eup %4488 }
 0x3ad   : > { %v5797_v16 = vpop.eup %4490  ;;  %v1489_v5 = vpop.xlane.xlu1 %1488  ;;  %v1667_v62 = vsel %vm1447_vm0, %v5795_v44, 0.0 }
 0x3ae   : > { %v1557_v49 = vsub.f32 %v5671_v10, %v1489_v5  ;;  %v1486_v61 = vpop.xlane.xlu0 %1485  ;;  %1668 = vadd.xlane.f32.xlu1 %v1667_v62  ;;  %v1664_v63 = vsel %vm1447_vm0, %v5797_v16, 0.0 }
 0x3af   : > { %v1556_v48 = vsub.f32 %v5673_v14, %v1486_v61  ;;  %1665 = vadd.xlane.f32.xlu0 %v1664_v63 }
 0x3b0   : > { %v1602_v41 = vmul.f32 1.442695, %v1557_v49 }
 0x3b1   : > { %v1600_v30 = vmul.f32 1.442695, %v1556_v48 }
 0x3b2   : > { %4496 = vpow2.f32 %v1602_v41 }
 0x3b3   : > { %4498 = vpow2.f32 %v1600_v30 }
 0x3b4   : > { %v5805_v33 = vpop.eup %4492 }
 0x3b5   : > { %v5807_v25 = vpop.eup %4494  ;;  %v1495_v15 = vpop.xlane.xlu1 %1494  ;;  %v1673_v10 = vsel %vm1447_vm0, %v5805_v33, 0.0 }
 0x3b6   : > { %v1559_v58 = vsub.f32 %v5679_v20, %v1495_v15  ;;  %v1492_v34 = vpop.xlane.xlu0 %1491  ;;  %1674 = vadd.xlane.f32.xlu1 %v1673_v10  ;;  %v1670_v14 = vsel %vm1447_vm0, %v5807_v25, 0.0 }
 0x3b7   : > { %v1558_v38 = vsub.f32 %v5681_v35, %v1492_v34  ;;  %1671 = vadd.xlane.f32.xlu0 %v1670_v14 }
 0x3b8   : > { %v1606_v36 = vmul.f32 1.442695, %v1559_v58 }
 0x3b9   : > { %v1604_v51 = vmul.f32 1.442695, %v1558_v38 }
 0x3ba   : > { %4500 = vpow2.f32 %v1606_v36 }
 0x3bb   : > { %4502 = vpow2.f32 %v1604_v51 }
 0x3bc   : > { %v5815_v5 = vpop.eup %4496 }
 0x3bd   : > { %v5817_v62 = vpop.eup %4498  ;;  %v1501_v49 = vpop.xlane.xlu1 %1500  ;;  %v1679_v20 = vsel %vm1447_vm0, %v5815_v5, 0.0 }
 0x3be   : > { %v1561_v61 = vsub.f32 %v5687_v32, %v1501_v49  ;;  %1680 = vadd.xlane.f32.xlu1 %v1679_v20  ;;  %v1498_v63 = vpop.xlane.xlu0 %1497  ;;  %v1676_v35 = vsel %vm1447_vm0, %v5817_v62, 0.0 }
 0x3bf   : > { %v1560_v48 = vsub.f32 %v5689_v42, %v1498_v63  ;;  %1677 = vadd.xlane.f32.xlu0 %v1676_v35 }
 0x3c0   : > { %v1610_v41 = vmul.f32 1.442695, %v1561_v61 }
 0x3c1   : > { %v1608_v30 = vmul.f32 1.442695, %v1560_v48 }
 0x3c2   : > { %4504 = vpow2.f32 %v1610_v41 }
 0x3c3   : > { %4506 = vpow2.f32 %v1608_v30 }
 0x3c4   : > { %v5825_v15 = vpop.eup %4500 }
 0x3c5   : > { %v5827_v10 = vpop.eup %4502  ;;  %v1507_v58 = vpop.xlane.xlu1 %1506  ;;  %v1685_v32 = vsel %vm1447_vm0, %v5825_v15, 0.0 }
 0x3c6   : > { %v1563_v34 = vsub.f32 %v5695_v53, %v1507_v58  ;;  %1686 = vadd.xlane.f32.xlu1 %v1685_v32  ;;  %v1504_v14 = vpop.xlane.xlu0 %1503  ;;  %v1682_v42 = vsel %vm1447_vm0, %v5827_v10, 0.0 }
 0x3c7   : > { %v1562_v38 = vsub.f32 %v5697_v60, %v1504_v14  ;;  %1683 = vadd.xlane.f32.xlu0 %v1682_v42 }
 0x3c8   : > { %v1614_v36 = vmul.f32 1.442695, %v1563_v34 }
 0x3c9   : > { %v1612_v51 = vmul.f32 1.442695, %v1562_v38 }
 0x3ca   : > { %4508 = vpow2.f32 %v1614_v36 }
 0x3cb   : > { %4510 = vpow2.f32 %v1612_v51 }
 0x3cc   : > { %v5835_v49 = vpop.eup %4504 }
 0x3cd   : > { %v5837_v20 = vpop.eup %4506  ;;  %v1513_v61 = vpop.xlane.xlu1 %1512  ;;  %v1691_v53 = vsel %vm1447_vm0, %v5835_v49, 0.0 }
 0x3ce   : > { %v1565_v63 = vsub.f32 %v5703_v8, %v1513_v61  ;;  %1692 = vadd.xlane.f32.xlu1 %v1691_v53  ;;  %v1510_v35 = vpop.xlane.xlu0 %1509  ;;  %v1688_v60 = vsel %vm1447_vm0, %v5837_v20, 0.0 }
 0x3cf   : > { %v1564_v48 = vsub.f32 %v5705_v17, %v1510_v35  ;;  %1689 = vadd.xlane.f32.xlu0 %v1688_v60 }
 0x3d0   : > { %v1618_v41 = vmul.f32 1.442695, %v1565_v63 }
 0x3d1   : > { %v1616_v30 = vmul.f32 1.442695, %v1564_v48 }
 0x3d2   : > { %4512 = vpow2.f32 %v1618_v41 }
 0x3d3   : > { %4514 = vpow2.f32 %v1616_v30 }
 0x3d4   : > { %v5845_v58 = vpop.eup %4508 }
 0x3d5   : > { %v5847_v32 = vpop.eup %4510  ;;  %v1519_v34 = vpop.xlane.xlu1 %1518  ;;  %v1697_v8 = vsel %vm1447_vm0, %v5845_v58, 0.0 }
 0x3d6   : > { %v1567_v14 = vsub.f32 %v5711_v29, %v1519_v34  ;;  %1698 = vadd.xlane.f32.xlu1 %v1697_v8  ;;  %v1516_v42 = vpop.xlane.xlu0 %1515  ;;  %v1694_v17 = vsel %vm1447_vm0, %v5847_v32, 0.0 }
 0x3d7   : > { %v1566_v38 = vsub.f32 %v5713_v43, %v1516_v42  ;;  %1695 = vadd.xlane.f32.xlu0 %v1694_v17 }
 0x3d8   : > { %v1622_v36 = vmul.f32 1.442695, %v1567_v14 }
 0x3d9   : > { %v1620_v51 = vmul.f32 1.442695, %v1566_v38 }
 0x3da   : > { %4516 = vpow2.f32 %v1622_v36 }
 0x3db   : > { %4518 = vpow2.f32 %v1620_v51 }
 0x3dc   : > { %v5855_v61 = vpop.eup %4512 }
 0x3dd   : > { %v5857_v53 = vpop.eup %4514  ;;  %v1525_v63 = vpop.xlane.xlu1 %1524  ;;  %v1703_v29 = vsel %vm1447_vm0, %v5855_v61, 0.0 }
 0x3de   : > { %v1569_v35 = vsub.f32 %v5719_v4, %v1525_v63  ;;  %1704 = vadd.xlane.f32.xlu1 %v1703_v29  ;;  %v1522_v60 = vpop.xlane.xlu0 %1521  ;;  %v1700_v43 = vsel %vm1447_vm0, %v5857_v53, 0.0 }
 0x3df   : > { %v1568_v48 = vsub.f32 %v5721_v9, %v1522_v60  ;;  %1701 = vadd.xlane.f32.xlu0 %v1700_v43 }
 0x3e0   : > { %v1626_v41 = vmul.f32 1.442695, %v1569_v35 }
 0x3e1   : > { %v1624_v30 = vmul.f32 1.442695, %v1568_v48 }
 0x3e2   : > { %4520 = vpow2.f32 %v1626_v41 }
 0x3e3   : > { %4522 = vpow2.f32 %v1624_v30 }
 0x3e4   : > { %v5865_v34 = vpop.eup %4516 }
 0x3e5   : > { %v5867_v8 = vpop.eup %4518  ;;  %v1531_v14 = vpop.xlane.xlu1 %1530  ;;  %v1709_v4 = vsel %vm1447_vm0, %v5865_v34, 0.0 }
 0x3e6   : > { %v1571_v42 = vsub.f32 %v5727_v11, %v1531_v14  ;;  %1710 = vadd.xlane.f32.xlu1 %v1709_v4  ;;  %v1528_v17 = vpop.xlane.xlu0 %1527  ;;  %v1706_v9 = vsel %vm1447_vm0, %v5867_v8, 0.0 }
 0x3e7   : > { %v1570_v38 = vsub.f32 %v5729_v12, %v1528_v17  ;;  %1707 = vadd.xlane.f32.xlu0 %v1706_v9 }
 0x3e8   : > { %v1630_v36 = vmul.f32 1.442695, %v1571_v42 }
 0x3e9   : > { %v1628_v51 = vmul.f32 1.442695, %v1570_v38 }
 0x3ea   : > { %4524 = vpow2.f32 %v1630_v36 }
 0x3eb   : > { %4526 = vpow2.f32 %v1628_v51 }
 0x3ec   : > { %v5875_v63 = vpop.eup %4520 }
 0x3ed   : > { %v5877_v29 = vpop.eup %4522  ;;  %v1537_v35 = vpop.xlane.xlu1 %1536  ;;  %v1715_v11 = vsel %vm1447_vm0, %v5875_v63, 0.0 }
 0x3ee   : > { %v1573_v60 = vsub.f32 %v5735_v3, %v1537_v35  ;;  %1716 = vadd.xlane.f32.xlu1 %v1715_v11  ;;  %v1534_v43 = vpop.xlane.xlu0 %1533  ;;  %v1712_v12 = vsel %vm1447_vm0, %v5877_v29, 0.0 }
 0x3ef   : > { %v1572_v48 = vsub.f32 %v5737_v57, %v1534_v43  ;;  %1713 = vadd.xlane.f32.xlu0 %v1712_v12 }
 0x3f0   : > { %v1634_v41 = vmul.f32 1.442695, %v1573_v60 }
 0x3f1   : > { %v1632_v30 = vmul.f32 1.442695, %v1572_v48 }
 0x3f2   : > { %4528 = vpow2.f32 %v1634_v41 }
 0x3f3   : > { %4530 = vpow2.f32 %v1632_v30 }
 0x3f4   : > { %v5885_v14 = vpop.eup %4524 }
 0x3f5   : > { %v5887_v4 = vpop.eup %4526  ;;  %v1543_v42 = vpop.xlane.xlu1 %1542  ;;  %v1721_v3 = vsel %vm1447_vm0, %v5885_v14, 0.0 }
 0x3f6   : > { %v1575_v17 = vsub.f32 %v5743_v47, %v1543_v42  ;;  %1722 = vadd.xlane.f32.xlu1 %v1721_v3  ;;  %v1540_v9 = vpop.xlane.xlu0 %1539  ;;  %v1718_v57 = vsel %vm1447_vm0, %v5887_v4, 0.0 }
 0x3f7   : > { %v1574_v38 = vsub.f32 %v5745_v37, %v1540_v9  ;;  %1719 = vadd.xlane.f32.xlu0 %v1718_v57 }
 0x3f8   : > { %v1638_v36 = vmul.f32 1.442695, %v1575_v17 }
 0x3f9   : > { %v1636_v51 = vmul.f32 1.442695, %v1574_v38 }
 0x3fa   : > { %4532 = vpow2.f32 %v1638_v36 }
 0x3fb   : > { %4534 = vpow2.f32 %v1636_v51 }
 0x3fc   : > { %v5895_v35 = vpop.eup %4528 }
 0x3fd   : > { %v5897_v11 = vpop.eup %4530  ;;  %v1727_v60 = vsel %vm1447_vm0, %v5895_v35, 0.0 }
 0x3fe   : > { %1728 = vadd.xlane.f32.xlu1 %v1727_v60  ;;  %v1724_v47 = vsel %vm1447_vm0, %v5897_v11, 0.0 }
 0x3ff   : > { %1725 = vadd.xlane.f32.xlu0 %v1724_v47 }
 0x404   : > { %v5903_v43 = vpop.eup %4532 }
 0x405   : > { %v5905_v37 = vpop.eup %4534  ;;  %v1733_v12 = vsel %vm1447_vm0, %v5903_v43, 0.0 }
 0x406   : > { %1734 = vadd.xlane.f32.xlu1 %v1733_v12  ;;  %v1730_v48 = vsel %vm1447_vm0, %v5905_v37, 0.0 }
 0x407   : > { %1731 = vadd.xlane.f32.xlu0 %v1730_v48 }
 0x41c   : > { %v1642_v41 = vpop.xlane.xlu0 %1641 }
 0x41d   : > { %4536 = vrcp.f32 %v1642_v41 }
 0x420   : > { %v1645_v30 = vpop.xlane.xlu1 %1644 }
 0x421   : > { %4538 = vrcp.f32 %v1645_v30 }
 0x424   : > { %v1648_v42 = vpop.xlane.xlu0 %1647 }
 0x425   : > { %4540 = vrcp.f32 %v1648_v42 }
 0x427   : > { %v4537_v3 = vpop.eup %4536 }
 0x428   : > { %v1651_v17 = vpop.xlane.xlu1 %1650  ;;  %v1737_v9 = vmul.f32 %v4537_v3, %v5755_v21 }
 0x429   : > { %4542 = vrcp.f32 %v1651_v17 }
 0x42a   : > { %3995 = vmatprep.mubr.msk.f32.mxu1 %vm1447_vm0, %v1737_v9 }
 0x42b   : > { %v4539_v57 = vpop.eup %4538 }
 0x42c   : > { %v1739_v38 = vmul.f32 %v4539_v57, %v5761_v54  ;;  %v1657_v36 = vpop.xlane.xlu1 %1656 }
 0x42d   : > { %4544 = vrcp.f32 %v1657_v36  ;;  %v1654_v51 = vpop.xlane.xlu0 %1653 }
 0x42e   : > { %4546 = vrcp.f32 %v1654_v51  ;;  %3996 = vmatmul.mubr.msk.f32.vlgmr.msra.gmra.mrb[18].mxu1 %vm1447_vm0, %v1739_v38 }
 0x42f   : > { %v4541_v60 = vpop.eup %4540  ;;  %4286 = vmatpush3.bf16.xpose.msra.mxu1 %v5467_v23 }
 0x430   : > { %v1741_v47 = vmul.f32 %v4541_v60, %v5765_v22 }
 0x432   : > { %3998 = vmatprep.mubr.msk.f32.mxu1 %vm1447_vm0, %v1741_v47 }
 0x433   : > { %v4543_v21 = vpop.eup %4542  ;;  %v1663_v12 = vpop.xlane.xlu1 %1662 }
 0x434   : > { %4548 = vrcp.f32 %v1663_v12  ;;  %v1660_v48 = vpop.xlane.xlu0 %1659  ;;  %v1743_v41 = vmul.f32 %v4543_v21, %v5771_v19 }
 0x435   : > { %4550 = vrcp.f32 %v1660_v48 }
 0x436   : > { %3999 = vmatmul.mubr.msk.f32.gmra.mrb[20].mxu1 %vm1447_vm0, %v1743_v41 }
 0x437   : > { %v4545_v54 = vpop.eup %4544 }
 0x438   : > { %v4547_v30 = vpop.eup %4546  ;;  %v1747_v42 = vmul.f32 %v4545_v54, %v5775_v0 }
 0x439   : > { %v1745_v3 = vmul.f32 %v4547_v30, %v5777_v26 }
 0x43b   : > { %4001 = vmatprep.mubr.msk.f32.mxu1 %vm1447_vm0, %v1745_v3  ;;  %v1669_v23 = vpop.xlane.xlu1 %1668 }
 0x43c   : > { %4552 = vrcp.f32 %v1669_v23  ;;  %4002 = vmatmul.mubr.msk.f32.gmra.mrb[22].mxu1 %vm1447_vm0, %v1747_v42  ;;  %v1666_v22 = vpop.xlane.xlu0 %1665 }
 0x43d   : > { %4554 = vrcp.f32 %v1666_v22 }
 0x43e   : > { %v4549_v17 = vpop.eup %4548 }
 0x43f   : > { %v4551_v9 = vpop.eup %4550  ;;  %v1751_v57 = vmul.f32 %v4549_v17, %v5785_v27 }
 0x440   : > { %v1749_v19 = vmul.f32 %v4551_v9, %v5787_v28 }
 0x442   : > { %4004 = vmatprep.mubr.msk.f32.mxu1 %vm1447_vm0, %v1749_v19 }
 0x443   : > { %v1675_v38 = vpop.xlane.xlu1 %1674  ;;  %4005 = vmatmul.mubr.msk.f32.gmra.mrb[24].mxu1 %vm1447_vm0, %v1751_v57 }
 0x444   : > { %4556 = vrcp.f32 %v1675_v38  ;;  %v1672_v0 = vpop.xlane.xlu0 %1671 }
 0x445   : > { %4558 = vrcp.f32 %v1672_v0 }
 0x446   : > { %v4553_v26 = vpop.eup %4552 }
 0x447   : > { %v4555_v36 = vpop.eup %4554  ;;  %v1755_v60 = vmul.f32 %v4553_v26, %v5795_v44 }
 0x448   : > { %v1753_v51 = vmul.f32 %v4555_v36, %v5797_v16 }
 0x44a   : > { %4007 = vmatprep.mubr.msk.f32.mxu1 %vm1447_vm0, %v1753_v51 }
 0x44b   : > { %v1681_v47 = vpop.xlane.xlu1 %1680  ;;  %4008 = vmatmul.mubr.msk.f32.gmra.mrb[26].mxu1 %vm1447_vm0, %v1755_v60 }
 0x44c   : > { %4560 = vrcp.f32 %v1681_v47  ;;  %v1678_v27 = vpop.xlane.xlu0 %1677 }
 0x44d   : > { %4562 = vrcp.f32 %v1678_v27 }
 0x44e   : > { %v4557_v28 = vpop.eup %4556 }
 0x44f   : > { %v4559_v21 = vpop.eup %4558  ;;  %v1759_v48 = vmul.f32 %v4557_v28, %v5805_v33 }
 0x450   : > { %v1757_v12 = vmul.f32 %v4559_v21, %v5807_v25 }
 0x452   : > { %4010 = vmatprep.mubr.msk.f32.mxu1 %vm1447_vm0, %v1757_v12 }
 0x453   : > { %v1687_v41 = vpop.xlane.xlu1 %1686  ;;  %4011 = vmatmul.mubr.msk.f32.gmra.mrb[28].mxu1 %vm1447_vm0, %v1759_v48 }
 0x454   : > { %4564 = vrcp.f32 %v1687_v41  ;;  %v1684_v44 = vpop.xlane.xlu0 %1683 }
 0x455   : > { %4566 = vrcp.f32 %v1684_v44 }
 0x456   : > { %v4561_v16 = vpop.eup %4560 }
 0x457   : > { %v4563_v54 = vpop.eup %4562  ;;  %v1763_v42 = vmul.f32 %v4561_v16, %v5815_v5 }
 0x458   : > { %v1761_v30 = vmul.f32 %v4563_v54, %v5817_v62 }
 0x45a   : > { %4013 = vmatprep.mubr.msk.f32.mxu1 %vm1447_vm0, %v1761_v30 }
 0x45b   : > { %v1693_v3 = vpop.xlane.xlu1 %1692  ;;  %4014 = vmatmul.mubr.msk.f32.gmra.mrb[30].mxu1 %vm1447_vm0, %v1763_v42 }
 0x45c   : > { %4568 = vrcp.f32 %v1693_v3  ;;  %v1690_v33 = vpop.xlane.xlu0 %1689 }
 0x45d   : > { %4570 = vrcp.f32 %v1690_v33 }
 0x45e   : > { %v4565_v25 = vpop.eup %4564 }
 0x45f   : > { %v4567_v23 = vpop.eup %4566  ;;  %v1767_v17 = vmul.f32 %v4565_v25, %v5825_v15 }
 0x460   : > { %v1765_v22 = vmul.f32 %v4567_v23, %v5827_v10 }
 0x462   : > { %4016 = vmatprep.mubr.msk.f32.mxu1 %vm1447_vm0, %v1765_v22 }
 0x463   : > { %v1699_v9 = vpop.xlane.xlu1 %1698  ;;  %4017 = vmatmul.mubr.msk.f32.gmra.mrb[32].mxu1 %vm1447_vm0, %v1767_v17 }
 0x464   : > { %4572 = vrcp.f32 %v1699_v9  ;;  %v1696_v5 = vpop.xlane.xlu0 %1695 }
 0x465   : > { %4574 = vrcp.f32 %v1696_v5 }
 0x466   : > { %v4569_v62 = vpop.eup %4568 }
 0x467   : > { %v4571_v19 = vpop.eup %4570  ;;  %v1771_v38 = vmul.f32 %v4569_v62, %v5835_v49 }
 0x468   : > { %v1769_v57 = vmul.f32 %v4571_v19, %v5837_v20  ;;  %v1151_v19 = vmul.f32 0.088388346, %v5493_v40  ;;  %v1163_v40 = vmul.f32 0.088388346, %v5517_v6  ;;  %v1177_v6 = vmul.f32 0.088388346, %v5545_v52 }
 0x46a   : > { %4019 = vmatprep.mubr.msk.f32.mxu1 %vm1447_vm0, %v1769_v57  ;;  %v1157_v57 = vmul.f32 0.088388346, %v5505_v55  ;;  %v1171_v55 = vmul.f32 0.088388346, %v5533_v31  ;;  %v6723_v31 = vld [vmem:[#allocation28_spill] sm:$0xff] }
 0x46b   : > { %v1705_v0 = vpop.xlane.xlu1 %1704  ;;  %4020 = vmatmul.mubr.msk.f32.gmra.mrb[34].mxu1 %vm1447_vm0, %v1771_v38  ;;  %v1159_v38 = vmul.f32 0.088388346, %v5509_v56  ;;  %v1173_v56 = vmul.f32 0.088388346, %v5537_v39 }
 0x46c   : > { %4576 = vrcp.f32 %v1705_v0  ;;  %v1702_v15 = vpop.xlane.xlu0 %1701  ;;  %v1185_v0 = vmul.f32 0.088388346, %v6723_v31 }
 0x46d   : > { %4578 = vrcp.f32 %v1702_v15  ;;  %v6724_v15 = vld [vmem:[#allocation29_spill] sm:$0xff] }
 0x46e   : > { %v4573_v10 = vpop.eup %4572  ;;  %v1187_v39 = vmul.f32 0.088388346, %v6724_v15 }
 0x46f   : > { %v4575_v26 = vpop.eup %4574  ;;  %v1775_v51 = vmul.f32 %v4573_v10, %v5845_v58 }
 0x470   : > { %v1773_v36 = vmul.f32 %v4575_v26, %v5847_v32  ;;  %v6726_v26 = vld [vmem:[#allocation31_spill] sm:$0xff] }
 0x471   : > { %v1191_v52 = vmul.f32 0.088388346, %v6726_v26 }
 0x472   : > { %4022 = vmatprep.mubr.msk.f32.mxu1 %vm1447_vm0, %v1773_v36 }
 0x473   : > { %v1711_v60 = vpop.xlane.xlu1 %1710  ;;  %4023 = vmatmul.mubr.msk.f32.gmra.mrb[36].mxu1 %vm1447_vm0, %v1775_v51  ;;  %v6728_v51 = vld [vmem:[#allocation33_spill] sm:$0xff] }
 0x474   : > { %4580 = vrcp.f32 %v1711_v60  ;;  %v1708_v49 = vpop.xlane.xlu0 %1707 }
 0x475   : > { %4582 = vrcp.f32 %v1708_v49  ;;  %v6730_v49 = vld [vmem:[#allocation35_spill] sm:$0xff] }
 0x476   : > { %v4577_v20 = vpop.eup %4576 }
 0x477   : > { %v4579_v47 = vpop.eup %4578  ;;  %v1779_v28 = vmul.f32 %v4577_v20, %v5855_v61  ;;  %v1199_v20 = vmul.f32 0.088388346, %v6730_v49 }
 0x478   : > { %v1777_v27 = vmul.f32 %v4579_v47, %v5857_v53  ;;  %v6731_v47 = vld [vmem:[#allocation36_spill] sm:$0xff] }
 0x47a   : > { %4025 = vmatprep.mubr.msk.f32.mxu1 %vm1447_vm0, %v1777_v27  ;;  %v1201_v27 = vmul.f32 0.088388346, %v6731_v47 }
 0x47b   : > { %v1717_v21 = vpop.xlane.xlu1 %1716  ;;  %4026 = vmatmul.mubr.msk.f32.gmra.mrb[38].mxu1 %vm1447_vm0, %v1779_v28  ;;  %v6732_v28 = vld [vmem:[#allocation37_spill] sm:$0xff] }
 0x47c   : > { %4584 = vrcp.f32 %v1717_v21  ;;  %v1714_v58 = vpop.xlane.xlu0 %1713  ;;  %v1203_v21 = vmul.f32 0.088388346, %v6732_v28 }
 0x47d   : > { %4586 = vrcp.f32 %v1714_v58  ;;  %v6733_v58 = vld [vmem:[#allocation38_spill] sm:$0xff] }
 0x47e   : > { %v4581_v32 = vpop.eup %4580 }
 0x47f   : > { %v4583_v12 = vpop.eup %4582  ;;  %v1783_v41 = vmul.f32 %v4581_v32, %v5865_v34  ;;  %v1205_v32 = vmul.f32 0.088388346, %v6733_v58 }
 0x480   : > { %v1781_v48 = vmul.f32 %v4583_v12, %v5867_v8  ;;  %v6734_v12 = vld [vmem:[#allocation39_spill] sm:$0xff] }
 0x482   : > { %4028 = vmatprep.mubr.msk.f32.mxu1 %vm1447_vm0, %v1781_v48  ;;  %v1207_v48 = vmul.f32 0.088388346, %v6734_v12 }
 0x483   : > { %v1723_v44 = vpop.xlane.xlu1 %1722  ;;  %4029 = vmatmul.mubr.msk.f32.gmra.mrb[40].mxu1 %vm1447_vm0, %v1783_v41  ;;  %v6735_v41 = vld [vmem:[#allocation40_spill] sm:$0xff] }
 0x484   : > { %4588 = vrcp.f32 %v1723_v44  ;;  %v1720_v61 = vpop.xlane.xlu0 %1719  ;;  %v1209_v44 = vmul.f32 0.088388346, %v6735_v41 }
 0x485   : > { %4590 = vrcp.f32 %v1720_v61  ;;  %v6736_v61 = vld [vmem:[#allocation41_spill] sm:$0xff] }
 0x486   : > { %v4585_v53 = vpop.eup %4584 }
 0x487   : > { %v4587_v16 = vpop.eup %4586  ;;  %v1787_v30 = vmul.f32 %v4585_v53, %v5875_v63  ;;  %v1211_v53 = vmul.f32 0.088388346, %v6736_v61 }
 0x488   : > { %v1785_v54 = vmul.f32 %v4587_v16, %v5877_v29  ;;  %v6737_v16 = vld [vmem:[#allocation42_spill] sm:$0xff] }
 0x48a   : > { %4031 = vmatprep.mubr.msk.f32.mxu1 %vm1447_vm0, %v1785_v54  ;;  %v1213_v54 = vmul.f32 0.088388346, %v6737_v16 }
 0x48b   : > { %v1729_v42 = vpop.xlane.xlu1 %1728  ;;  %4032 = vmatmul.mubr.msk.f32.gmra.mrb[42].mxu1 %vm1447_vm0, %v1787_v30 }
 0x48c   : > { %4592 = vrcp.f32 %v1729_v42  ;;  %v1726_v34 = vpop.xlane.xlu0 %1725 }
 0x48d   : > { %4594 = vrcp.f32 %v1726_v34 }
 0x48e   : > { %v4589_v8 = vpop.eup %4588 }
 0x48f   : > { %v4591_v3 = vpop.eup %4590  ;;  %v1791_v25 = vmul.f32 %v4589_v8, %v5885_v14 }
 0x490   : > { %v1789_v33 = vmul.f32 %v4591_v3, %v5887_v4 }
 0x492   : > { %4034 = vmatprep.mubr.msk.f32.mxu1 %vm1447_vm0, %v1789_v33 }
 0x493   : > { %v1735_v23 = vpop.xlane.xlu1 %1734  ;;  %4035 = vmatmul.mubr.msk.f32.gmra.mrb[44].mxu1 %vm1447_vm0, %v1791_v25 }
 0x494   : > { %4596 = vrcp.f32 %v1735_v23  ;;  %v1732_v63 = vpop.xlane.xlu0 %1731 }
 0x495   : > { %4598 = vrcp.f32 %v1732_v63 }
 0x496   : > { %v4593_v29 = vpop.eup %4592 }
 0x497   : > { %v4595_v22 = vpop.eup %4594  ;;  %v1795_v9 = vmul.f32 %v4593_v29, %v5895_v35  ;;  %v1155_v35 = vmul.f32 0.088388346, %v5501_v50  ;;  %v1169_v50 = vmul.f32 0.088388346, %v5529_v24  ;;  %v1183_v24 = vmul.f32 0.088388346, %v5557_v7 }
 0x498   : > { %v1793_v17 = vmul.f32 %v4595_v22, %v5897_v11  ;;  %v1153_v11 = vmul.f32 0.088388346, %v5497_v45  ;;  %v1167_v45 = vmul.f32 0.088388346, %v5525_v18  ;;  %v1181_v18 = vmul.f32 0.088388346, %v5553_v1 }
 0x499   : > { %v1195_v1 = vmul.f32 0.088388346, %v6728_v51  ;;  %v6729_v7 = vld [vmem:[#allocation34_spill] sm:$0xff] }
 0x49a   : > { %4037 = vmatprep.mubr.msk.f32.mxu1 %vm1447_vm0, %v1793_v17  ;;  %v1197_v60 = vmul.f32 0.088388346, %v6729_v7 }
 0x49b   : > { %4038 = vmatmul.mubr.msk.f32.gmra.mrb[46].mxu1 %vm1447_vm0, %v1795_v9 }
 0x49e   : > { %v4597_v4 = vpop.eup %4596 }
 0x49f   : > { %v4599_v14 = vpop.eup %4598  ;;  %v1799_v62 = vmul.f32 %v4597_v4, %v5903_v43  ;;  %v1161_v43 = vmul.f32 0.088388346, %v5513_v2  ;;  %v1175_v2 = vmul.f32 0.088388346, %v5541_v46  ;;  %v6725_v46 = vld [vmem:[#allocation30_spill] sm:$0xff] }
 0x4a0   : > { %v1797_v5 = vmul.f32 %v4599_v14, %v5905_v37  ;;  %v1165_v37 = vmul.f32 0.088388346, %v5521_v13  ;;  %v1179_v13 = vmul.f32 0.088388346, %v5549_v59  ;;  %v1189_v10 = vmul.f32 0.088388346, %v6725_v46 }
 0x4a1   : > { %v6727_v59 = vld [vmem:[#allocation32_spill] sm:$0xff] }
 0x4a2   : > { %4040 = vmatprep.mubr.msk.f32.mxu1 %vm1447_vm0, %v1797_v5  ;;  %v1193_v36 = vmul.f32 0.088388346, %v6727_v59 }
 0x4a3   : > { %4041 = vmatmul.mubr.msk.f32.gmra.mrb[48].mxu1 %vm1447_vm0, %v1799_v62 }
 0x4a4   : > { %4047 = vmatprep.mubr.f32.mxu1 %v1151_v19 }
 0x4a7   : > { %4048 = vmatmul.mubr.f32.vlgmr.msra.gmra.mrb[50].mxu1 %v1153_v11 }
 0x4a8   : > { %4050 = vmatprep.mubr.f32.mxu1 %v1155_v35 }
 0x4ab   : > { %4051 = vmatmul.mubr.f32.gmra.mrb[52].mxu1 %v1157_v57 }
 0x4ac   : > { %4053 = vmatprep.mubr.f32.mxu1 %v1159_v38 }
 0x4af   : > { %4054 = vmatmul.mubr.f32.gmra.mrb[54].mxu1 %v1161_v43 }
 0x4b0   : > { %4056 = vmatprep.mubr.f32.mxu1 %v1163_v40 }
 0x4b3   : > { %4057 = vmatmul.mubr.f32.gmra.mrb[56].mxu1 %v1165_v37 }
 0x4b4   : > { %4059 = vmatprep.mubr.f32.mxu1 %v1167_v45 }
 0x4b7   : > { %4060 = vmatmul.mubr.f32.gmra.mrb[58].mxu1 %v1169_v50 }
 0x4b8   : > { %4062 = vmatprep.mubr.f32.mxu1 %v1171_v55 }
 0x4bb   : > { %4063 = vmatmul.mubr.f32.gmra.mrb[60].mxu1 %v1173_v56 }
 0x4bc   : > { %4065 = vmatprep.mubr.f32.mxu1 %v1175_v2 }
 0x4bf   : > { %4066 = vmatmul.mubr.f32.gmra.mrb[62].mxu1 %v1177_v6 }
 0x4c0   : > { %4068 = vmatprep.mubr.f32.mxu1 %v1179_v13 }
 0x4c3   : > { %4069 = vmatmul.mubr.f32.gmra.mrb[64].mxu1 %v1181_v18 }
 0x4c4   : > { %4071 = vmatprep.mubr.f32.mxu1 %v1183_v24 }
 0x4c7   : > { %4072 = vmatmul.mubr.f32.gmra.mrb[66].mxu1 %v1185_v0 }
 0x4c8   : > { %4074 = vmatprep.mubr.f32.mxu1 %v1187_v39 }
 0x4cb   : > { %4075 = vmatmul.mubr.f32.gmra.mrb[68].mxu1 %v1189_v10 }
 0x4cc   : > { %4077 = vmatprep.mubr.f32.mxu1 %v1191_v52 }
 0x4cf   : > { %4078 = vmatmul.mubr.f32.gmra.mrb[70].mxu1 %v1193_v36 }
 0x4d0   : > { %4080 = vmatprep.mubr.f32.mxu1 %v1195_v1 }
 0x4d3   : > { %4081 = vmatmul.mubr.f32.gmra.mrb[72].mxu1 %v1197_v60 }
 0x4d4   : > { %4083 = vmatprep.mubr.f32.mxu1 %v1199_v20 }
 0x4d7   : > { %4084 = vmatmul.mubr.f32.gmra.mrb[74].mxu1 %v1201_v27 }
 0x4d8   : > { %4086 = vmatprep.mubr.f32.mxu1 %v1203_v21 }
 0x4db   : > { %4087 = vmatmul.mubr.f32.gmra.mrb[76].mxu1 %v1205_v32 }
 0x4dc   : > { %4089 = vmatprep.mubr.f32.mxu1 %v1207_v48 }
 0x4df   : > { %4090 = vmatmul.mubr.f32.gmra.mrb[78].mxu1 %v1209_v44 }
 0x4e0   : > { %4092 = vmatprep.mubr.f32.mxu1 %v1211_v53 }
 0x4e3   : > { %4093 = vmatmul.mubr.f32.gmra.mrb[80].mxu1 %v1213_v54 }
 0x501   : > { %v6008_v30 = vpop.f32.mrb[18].mxu1 }
 0x502   : > { %v6010_v42 = vpop.f32.mrb[19].mxu1 }
 0x509   : > { %v6012_v34 = vpop.f32.mrb[20].mxu1 }
 0x50a   : > { %v6014_v8 = vpop.f32.mrb[21].mxu1 }
 0x50f   : > { %v6016_v3 = vpop.f32.mrb[22].mxu1 }
 0x510   : > { %v6018_v33 = vpop.f32.mrb[23].mxu1 }
 0x516   : > { %v6020_v25 = vpop.f32.mrb[24].mxu1 }
 0x517   : > { %v6022_v23 = vpop.f32.mrb[25].mxu1 }
 0x51e   : > { %v6024_v63 = vpop.f32.mrb[26].mxu1 }
 0x51f   : > { %v6026_v29 = vpop.f32.mrb[27].mxu1 }
 0x526   : > { %v6028_v22 = vpop.f32.mrb[28].mxu1 }
 0x527   : > { %6738 = vst [vmem:[#allocation28_spill] sm:$0xff] %v6028_v22  ;;  %v6030_v17 = vpop.f32.mrb[29].mxu1  ;;  %v3198_v22 = vld [vmem:[#allocation14 + $0x198] sm:$0xff] }
 0x52e   : > { %v6032_v9 = vpop.f32.mrb[30].mxu1 }
 0x52f   : > { %6739 = vst [vmem:[#allocation29_spill] sm:$0xff] %v6032_v9  ;;  %v6034_v4 = vpop.f32.mrb[31].mxu1  ;;  %v3162_v9 = vld [vmem:[#allocation14 + $0x78] sm:$0xff] }
 0x530   : > { %6740 = vst [vmem:[#allocation30_spill] sm:$0xff] %v6034_v4  ;;  %v3159_v4 = vld [vmem:[#allocation14 + $0x60] sm:$0xff] }
 0x536   : > { %v6036_v14 = vpop.f32.mrb[32].mxu1 }
 0x537   : > { %6741 = vst [vmem:[#allocation31_spill] sm:$0xff] %v6036_v14  ;;  %v6038_v5 = vpop.f32.mrb[33].mxu1  ;;  %v3155_v14 = vld [vmem:[#allocation14 + $0x40] sm:$0xff] }
 0x538   : > { %6742 = vst [vmem:[#allocation32_spill] sm:$0xff] %v6038_v5  ;;  %v3160_v5 = vld [vmem:[#allocation14 + $0x68] sm:$0xff] }
 0x53e   : > { %v6040_v62 = vpop.f32.mrb[34].mxu1 }
 0x53f   : > { %6743 = vst [vmem:[#allocation33_spill] sm:$0xff] %v6040_v62  ;;  %v6042_v19 = vpop.f32.mrb[35].mxu1 }
 0x540   : > { %6744 = vst [vmem:[#allocation34_spill] sm:$0xff] %v6042_v19 }
 0x546   : > { %v6044_v11 = vpop.f32.mrb[36].mxu1 }
 0x547   : > { %6745 = vst [vmem:[#allocation35_spill] sm:$0xff] %v6044_v11  ;;  %v6046_v35 = vpop.f32.mrb[37].mxu1 }
 0x548   : > { %6746 = vst [vmem:[#allocation36_spill] sm:$0xff] %v6046_v35 }
 0x54e   : > { %v6048_v57 = vpop.f32.mrb[38].mxu1 }
 0x54f   : > { %6747 = vst [vmem:[#allocation37_spill] sm:$0xff] %v6048_v57  ;;  %v6050_v38 = vpop.f32.mrb[39].mxu1 }
 0x550   : > { %6748 = vst [vmem:[#allocation38_spill] sm:$0xff] %v6050_v38 }
 0x556   : > { %v6052_v43 = vpop.f32.mrb[40].mxu1 }
 0x557   : > { %6749 = vst [vmem:[#allocation39_spill] sm:$0xff] %v6052_v43  ;;  %v6054_v40 = vpop.f32.mrb[41].mxu1 }
 0x558   : > { %6750 = vst [vmem:[#allocation40_spill] sm:$0xff] %v6054_v40 }
 0x55e   : > { %v6056_v37 = vpop.f32.mrb[42].mxu1 }
 0x55f   : > { %6751 = vst [vmem:[#allocation41_spill] sm:$0xff] %v6056_v37  ;;  %v6058_v45 = vpop.f32.mrb[43].mxu1 }
 0x560   : > { %6752 = vst [vmem:[#allocation42_spill] sm:$0xff] %v6058_v45 }
 0x566   : > { %v6060_v50 = vpop.f32.mrb[44].mxu1 }
 0x567   : > { %6753 = vst [vmem:[#allocation43_spill] sm:$0xff] %v6060_v50  ;;  %v6062_v55 = vpop.f32.mrb[45].mxu1 }
 0x568   : > { %6754 = vst [vmem:[#allocation44_spill] sm:$0xff] %v6062_v55 }
 0x56e   : > { %v6064_v56 = vpop.f32.mrb[46].mxu1 }
 0x56f   : > { %6755 = vst [vmem:[#allocation45_spill] sm:$0xff] %v6064_v56  ;;  %v6066_v2 = vpop.f32.mrb[47].mxu1 }
 0x570   : > { %6756 = vst [vmem:[#allocation46_spill] sm:$0xff] %v6066_v2 }
 0x576   : > { %v6068_v6 = vpop.f32.mrb[48].mxu1 }
 0x577   : > { %6757 = vst [vmem:[#allocation47_spill] sm:$0xff] %v6068_v6  ;;  %v6070_v13 = vpop.f32.mrb[49].mxu1 }
 0x578   : > { %6758 = vst [vmem:[#allocation48_spill] sm:$0xff] %v6070_v13 }
 0x57a   : > { %v6072_v18 = vpop.f32.mrb[50].mxu1 }
 0x57b   : > { %v6074_v24 = vpop.f32.mrb[51].mxu1  ;;  %v2381_v31 = vsel %vm1447_vm0, %v6072_v18, -inf }
 0x57c   : > { %2382 = vmax.xlane.f32.xlu1 %v2381_v31  ;;  %v2378_v0 = vsel %vm1447_vm0, %v6074_v24, -inf }
 0x57d   : > { %2379 = vmax.xlane.f32.xlu0 %v2378_v0 }
 0x57e   : > { %v6080_v15 = vpop.f32.mrb[52].mxu1 }
 0x57f   : > { %v6082_v39 = vpop.f32.mrb[53].mxu1  ;;  %v2387_v46 = vsel %vm1447_vm0, %v6080_v15, -inf }
 0x580   : > { %2388 = vmax.xlane.f32.xlu1 %v2387_v46  ;;  %v2384_v10 = vsel %vm1447_vm0, %v6082_v39, -inf }
 0x581   : > { %2385 = vmax.xlane.f32.xlu0 %v2384_v10 }
 0x582   : > { %v6088_v26 = vpop.f32.mrb[54].mxu1 }
 0x583   : > { %v6090_v52 = vpop.f32.mrb[55].mxu1  ;;  %v2393_v59 = vsel %vm1447_vm0, %v6088_v26, -inf }
 0x584   : > { %2394 = vmax.xlane.f32.xlu1 %v2393_v59  ;;  %v2390_v36 = vsel %vm1447_vm0, %v6090_v52, -inf }
 0x585   : > { %2391 = vmax.xlane.f32.xlu0 %v2390_v36 }
 0x586   : > { %v6096_v51 = vpop.f32.mrb[56].mxu1 }
 0x587   : > { %v6098_v1 = vpop.f32.mrb[57].mxu1  ;;  %v2399_v7 = vsel %vm1447_vm0, %v6096_v51, -inf }
 0x588   : > { %2400 = vmax.xlane.f32.xlu1 %v2399_v7  ;;  %v2396_v60 = vsel %vm1447_vm0, %v6098_v1, -inf }
 0x589   : > { %2397 = vmax.xlane.f32.xlu0 %v2396_v60 }
 0x58a   : > { %v6104_v49 = vpop.f32.mrb[58].mxu1 }
 0x58b   : > { %v6106_v20 = vpop.f32.mrb[59].mxu1  ;;  %v2405_v47 = vsel %vm1447_vm0, %v6104_v49, -inf }
 0x58c   : > { %2406 = vmax.xlane.f32.xlu1 %v2405_v47  ;;  %v2402_v27 = vsel %vm1447_vm0, %v6106_v20, -inf }
 0x58d   : > { %2403 = vmax.xlane.f32.xlu0 %v2402_v27 }
 0x58e   : > { %v6112_v28 = vpop.f32.mrb[60].mxu1 }
 0x58f   : > { %v6114_v21 = vpop.f32.mrb[61].mxu1  ;;  %v2411_v58 = vsel %vm1447_vm0, %v6112_v28, -inf }
 0x590   : > { %2412 = vmax.xlane.f32.xlu1 %v2411_v58  ;;  %v2408_v32 = vsel %vm1447_vm0, %v6114_v21, -inf }
 0x591   : > { %2409 = vmax.xlane.f32.xlu0 %v2408_v32 }
 0x592   : > { %v6120_v12 = vpop.f32.mrb[62].mxu1 }
 0x593   : > { %v6122_v48 = vpop.f32.mrb[63].mxu1  ;;  %v2417_v41 = vsel %vm1447_vm0, %v6120_v12, -inf }
 0x594   : > { %2418 = vmax.xlane.f32.xlu1 %v2417_v41  ;;  %v2414_v44 = vsel %vm1447_vm0, %v6122_v48, -inf }
 0x595   : > { %2415 = vmax.xlane.f32.xlu0 %v2414_v44 }
 0x596   : > { %v6128_v61 = vpop.f32.mrb[64].mxu1 }
 0x597   : > { %v6130_v53 = vpop.f32.mrb[65].mxu1  ;;  %v2423_v16 = vsel %vm1447_vm0, %v6128_v61, -inf }
 0x598   : > { %2424 = vmax.xlane.f32.xlu1 %v2423_v16  ;;  %v2420_v54 = vsel %vm1447_vm0, %v6130_v53, -inf }
 0x599   : > { %2421 = vmax.xlane.f32.xlu0 %v2420_v54 }
 0x59a   : > { %v6136_v31 = vpop.f32.mrb[66].mxu1 }
 0x59b   : > { %v6138_v0 = vpop.f32.mrb[67].mxu1  ;;  %v2429_v46 = vsel %vm1447_vm0, %v6136_v31, -inf }
 0x59c   : > { %2430 = vmax.xlane.f32.xlu1 %v2429_v46  ;;  %v2426_v10 = vsel %vm1447_vm0, %v6138_v0, -inf }
 0x59d   : > { %2427 = vmax.xlane.f32.xlu0 %v2426_v10 }
 0x59e   : > { %v6144_v59 = vpop.f32.mrb[68].mxu1 }
 0x59f   : > { %v6146_v36 = vpop.f32.mrb[69].mxu1  ;;  %v2435_v7 = vsel %vm1447_vm0, %v6144_v59, -inf }
 0x5a0   : > { %2436 = vmax.xlane.f32.xlu1 %v2435_v7  ;;  %v2432_v60 = vsel %vm1447_vm0, %v6146_v36, -inf }
 0x5a1   : > { %2433 = vmax.xlane.f32.xlu0 %v2432_v60 }
 0x5a2   : > { %v6152_v47 = vpop.f32.mrb[70].mxu1 }
 0x5a3   : > { %v6154_v27 = vpop.f32.mrb[71].mxu1  ;;  %v2441_v58 = vsel %vm1447_vm0, %v6152_v47, -inf }
 0x5a4   : > { %2442 = vmax.xlane.f32.xlu1 %v2441_v58  ;;  %v2438_v32 = vsel %vm1447_vm0, %v6154_v27, -inf }
 0x5a5   : > { %2439 = vmax.xlane.f32.xlu0 %v2438_v32 }
 0x5a6   : > { %v6160_v41 = vpop.f32.mrb[72].mxu1 }
 0x5a7   : > { %v6162_v44 = vpop.f32.mrb[73].mxu1  ;;  %v2447_v10 = vsel %vm1447_vm0, %v6160_v41, -inf }
 0x5a8   : > { %v2444_v16 = vsel %vm1447_vm0, %v6162_v44, -inf }
 0x5a9   : > { %2445 = vmax.xlane.f32.xlu0 %v2444_v16 }
 0x5aa   : > { %v6166_v54 = vpop.f32.mrb[74].mxu1 }
 0x5ab   : > { %v6168_v46 = vpop.f32.mrb[75].mxu1  ;;  %v2453_v16 = vsel %vm1447_vm0, %v6166_v54, -inf }
 0x5ac   : > { %v2450_v58 = vsel %vm1447_vm0, %v6168_v46, -inf }
 0x5ad   : > { %2448 = vmax.xlane.f32.xlu0 %v2447_v10 }
 0x5ae   : > { %v6172_v7 = vpop.f32.mrb[76].mxu1 }
 0x5af   : > { %v6174_v60 = vpop.f32.mrb[77].mxu1  ;;  %v2459_v2 = vsel %vm1447_vm0, %v6172_v7, -inf }
 0x5b0   : > { %v2456_v10 = vsel %vm1447_vm0, %v6174_v60, -inf }
 0x5b1   : > { %2451 = vmax.xlane.f32.xlu0 %v2450_v58 }
 0x5b2   : > { %v6178_v32 = vpop.f32.mrb[78].mxu1 }
 0x5b3   : > { %v6180_v6 = vpop.f32.mrb[79].mxu1  ;;  %v2465_v50 = vsel %vm1447_vm0, %v6178_v32, -inf }
 0x5b4   : > { %v2462_v58 = vsel %vm1447_vm0, %v6180_v6, -inf }
 0x5b5   : > { %2454 = vmax.xlane.f32.xlu0 %v2453_v16 }
 0x5b6   : > { %v6184_v13 = vpop.f32.mrb[80].mxu1 }
 0x5b7   : > { %v6186_v56 = vpop.f32.mrb[81].mxu1  ;;  %v2471_v55 = vsel %vm1447_vm0, %v6184_v13, -inf }
 0x5b8   : > { %v2468_v16 = vsel %vm1447_vm0, %v6186_v56, -inf }
 0x5b9   : > { %2457 = vmax.xlane.f32.xlu0 %v2456_v10 }
 0x5bd   : > { %2460 = vmax.xlane.f32.xlu0 %v2459_v2 }
 0x5c1   : > { %2463 = vmax.xlane.f32.xlu0 %v2462_v58 }
 0x5c5   : > { %2466 = vmax.xlane.f32.xlu0 %v2465_v50 }
 0x5c9   : > { %2469 = vmax.xlane.f32.xlu0 %v2468_v16 }
 0x5cd   : > { %2472 = vmax.xlane.f32.xlu0 %v2471_v55 }
 0x609   : > { %v2383_v10 = vpop.xlane.xlu1 %2382 }
 0x60a   : > { %v2475_v37 = vsub.f32 %v6072_v18, %v2383_v10  ;;  %v2380_v2 = vpop.xlane.xlu0 %2379 }
 0x60b   : > { %v2474_v45 = vsub.f32 %v6074_v24, %v2380_v2 }
 0x60c   : > { %v2508_v43 = vmul.f32 1.442695, %v2475_v37 }
 0x60d   : > { %v2506_v58 = vmul.f32 1.442695, %v2474_v45  ;;  %v2389_v40 = vpop.xlane.xlu1 %2388 }
 0x60e   : > { %v2386_v57 = vpop.xlane.xlu0 %2385  ;;  %v2477_v16 = vsub.f32 %v6080_v15, %v2389_v40 }
 0x60f   : > { %4600 = vpow2.f32 %v2506_v58  ;;  %v2476_v50 = vsub.f32 %v6082_v39, %v2386_v57 }
 0x610   : > { %4602 = vpow2.f32 %v2508_v43  ;;  %v2512_v55 = vmul.f32 1.442695, %v2477_v16 }
 0x611   : > { %v2510_v38 = vmul.f32 1.442695, %v2476_v50  ;;  %v2395_v11 = vpop.xlane.xlu1 %2394 }
 0x612   : > { %v2392_v35 = vpop.xlane.xlu0 %2391  ;;  %v2479_v37 = vsub.f32 %v6088_v26, %v2395_v11 }
 0x613   : > { %4604 = vpow2.f32 %v2510_v38  ;;  %v2478_v18 = vsub.f32 %v6090_v52, %v2392_v35 }
 0x614   : > { %4606 = vpow2.f32 %v2512_v55  ;;  %v2516_v15 = vmul.f32 1.442695, %v2479_v37 }
 0x615   : > { %v2401_v10 = vpop.xlane.xlu1 %2400  ;;  %v2514_v45 = vmul.f32 1.442695, %v2478_v18 }
 0x616   : > { %v2398_v62 = vpop.xlane.xlu0 %2397  ;;  %v2481_v58 = vsub.f32 %v6096_v51, %v2401_v10 }
 0x617   : > { %4608 = vpow2.f32 %v2514_v45  ;;  %v2480_v35 = vsub.f32 %v6098_v1, %v2398_v62 }
 0x618   : > { %4610 = vpow2.f32 %v2516_v15  ;;  %v2520_v37 = vmul.f32 1.442695, %v2481_v58 }
 0x619   : > { %v6205_v24 = vpop.eup %4600  ;;  %v2407_v2 = vpop.xlane.xlu1 %2406  ;;  %v2518_v50 = vmul.f32 1.442695, %v2480_v35 }
 0x61a   : > { %v2404_v57 = vpop.xlane.xlu0 %2403  ;;  %v2570_v43 = vsel %vm1447_vm0, %v6205_v24, 0.0  ;;  %v6210_v40 = vpop.eup %4602 }
 0x61b   : > { %2571 = vadd.xlane.f32.xlu1 %v2570_v43  ;;  %v2573_v39 = vsel %vm1447_vm0, %v6210_v40, 0.0 }
 0x61d   : > { %v6215_v52 = vpop.eup %4604  ;;  %v2413_v26 = vpop.xlane.xlu1 %2412 }
 0x61e   : > { %v2410_v38 = vpop.xlane.xlu0 %2409  ;;  %v2576_v18 = vsel %vm1447_vm0, %v6215_v52, 0.0  ;;  %v6221_v62 = vpop.eup %4606 }
 0x61f   : > { %v2484_v11 = vsub.f32 %v6114_v21, %v2410_v38  ;;  %2574 = vadd.xlane.f32.xlu1 %v2573_v39  ;;  %v2482_v21 = vsub.f32 %v6106_v20, %v2404_v57  ;;  %v2579_v51 = vsel %vm1447_vm0, %v6221_v62, 0.0 }
 0x621   : > { %v2526_v16 = vmul.f32 1.442695, %v2484_v11  ;;  %v2419_v43 = vpop.xlane.xlu1 %2418  ;;  %v6227_v10 = vpop.eup %4608  ;;  %v2522_v38 = vmul.f32 1.442695, %v2482_v21 }
 0x622   : > { %v2416_v55 = vpop.xlane.xlu0 %2415  ;;  %v2582_v20 = vsel %vm1447_vm0, %v6227_v10, 0.0  ;;  %v6233_v57 = vpop.eup %4610 }
 0x623   : > { %4612 = vpow2.f32 %v2526_v16  ;;  %v2486_v1 = vsub.f32 %v6122_v48, %v2416_v55  ;;  %2577 = vadd.xlane.f32.xlu1 %v2576_v18  ;;  %v2483_v48 = vsub.f32 %v6104_v49, %v2407_v2  ;;  %v2485_v55 = vsub.f32 %v6112_v28, %v2413_v26 }
 0x624   : > { %4614 = vpow2.f32 %v2518_v50  ;;  %v2585_v18 = vsel %vm1447_vm0, %v6233_v57, 0.0  ;;  %v2487_v28 = vsub.f32 %v6120_v12, %v2419_v43 }
 0x625   : > { %v2530_v45 = vmul.f32 1.442695, %v2486_v1  ;;  %v2425_v50 = vpop.xlane.xlu1 %2424 }
 0x626   : > { %v2422_v15 = vpop.xlane.xlu0 %2421  ;;  %v2532_v12 = vmul.f32 1.442695, %v2487_v28  ;;  %v2489_v43 = vsub.f32 %v6128_v61, %v2425_v50 }
 0x627   : > { %4616 = vpow2.f32 %v2530_v45  ;;  %v2488_v35 = vsub.f32 %v6130_v53, %v2422_v15  ;;  %2580 = vadd.xlane.f32.xlu1 %v2579_v51  ;;  %v2524_v53 = vmul.f32 1.442695, %v2483_v48  ;;  %v2528_v45 = vmul.f32 1.442695, %v2485_v55 }
 0x628   : > { %4618 = vpow2.f32 %v2520_v37  ;;  %v2536_v61 = vmul.f32 1.442695, %v2489_v43 }
 0x629   : > { %v2534_v39 = vmul.f32 1.442695, %v2488_v35  ;;  %v2431_v15 = vpop.xlane.xlu1 %2430 }
 0x62a   : > { %v2428_v11 = vpop.xlane.xlu0 %2427  ;;  %v2491_v50 = vsub.f32 %v6136_v31, %v2431_v15 }
 0x62b   : > { %4620 = vpow2.f32 %v2534_v39  ;;  %v2490_v58 = vsub.f32 %v6138_v0, %v2428_v11  ;;  %2583 = vadd.xlane.f32.xlu1 %v2582_v20 }
 0x62c   : > { %4622 = vpow2.f32 %v2522_v38 }
 0x62d   : > { %v6236_v16 = vpop.eup %4612  ;;  %v2538_v49 = vmul.f32 1.442695, %v2490_v58 }
 0x62e   : > { %v2434_v2 = vpop.xlane.xlu0 %2433  ;;  %v2600_v1 = vsel %vm1447_vm0, %v6236_v16, 0.0  ;;  %v6243_v37 = vpop.eup %4614 }
 0x62f   : > { %4624 = vpow2.f32 %v2538_v49  ;;  %v2492_v0 = vsub.f32 %v6146_v36, %v2434_v2  ;;  %2586 = vadd.xlane.f32.xlu1 %v2585_v18  ;;  %2601 = vadd.xlane.f32.xlu0 %v2600_v1  ;;  %v2588_v35 = vsel %vm1447_vm0, %v6243_v37, 0.0  ;;  %v2437_v49 = vpop.xlane.xlu1 %2436 }
 0x630   : > { %4626 = vpow2.f32 %v2524_v53 }
 0x631   : > { %v6246_v21 = vpop.eup %4616  ;;  %v2542_v26 = vmul.f32 1.442695, %v2492_v0 }
 0x632   : > { %v2440_v51 = vpop.xlane.xlu0 %2439  ;;  %v2606_v48 = vsel %vm1447_vm0, %v6246_v21, 0.0  ;;  %v6253_v38 = vpop.eup %4618 }
 0x633   : > { %4628 = vpow2.f32 %v2542_v26  ;;  %v2494_v36 = vsub.f32 %v6154_v27, %v2440_v51  ;;  %2589 = vadd.xlane.f32.xlu1 %v2588_v35  ;;  %2607 = vadd.xlane.f32.xlu0 %v2606_v48  ;;  %v2591_v58 = vsel %vm1447_vm0, %v6253_v38, 0.0  ;;  %v2540_v26 = vmul.f32 1.442695, %v2491_v50  ;;  %v2443_v31 = vpop.xlane.xlu1 %2442 }
 0x634   : > { %4630 = vpow2.f32 %v2528_v45  ;;  %v2493_v51 = vsub.f32 %v6144_v59, %v2437_v49  ;;  %v2495_v59 = vsub.f32 %v6152_v47, %v2443_v31 }
 0x635   : > { %v6256_v39 = vpop.eup %4620  ;;  %v2546_v11 = vmul.f32 1.442695, %v2494_v36 }
 0x636   : > { %v2446_v20 = vpop.xlane.xlu0 %2445  ;;  %v2612_v53 = vsel %vm1447_vm0, %v6256_v39, 0.0  ;;  %v6263_v55 = vpop.eup %4622 }
 0x637   : > { %4632 = vpow2.f32 %v2546_v11  ;;  %v2496_v27 = vsub.f32 %v6162_v44, %v2446_v20  ;;  %2592 = vadd.xlane.f32.xlu1 %v2591_v58  ;;  %2613 = vadd.xlane.f32.xlu0 %v2612_v53  ;;  %v2594_v0 = vsel %vm1447_vm0, %v6263_v55, 0.0  ;;  %v2544_v11 = vmul.f32 1.442695, %v2493_v51 }
 0x638   : > { %4634 = vpow2.f32 %v2532_v12 }
 0x639   : > { %v6266_v2 = vpop.eup %4624  ;;  %v2550_v18 = vmul.f32 1.442695, %v2496_v27 }
 0x63a   : > { %v2449_v1 = vpop.xlane.xlu0 %2448  ;;  %v2618_v45 = vsel %vm1447_vm0, %v6266_v2, 0.0  ;;  %v6273_v28 = vpop.eup %4626 }
 0x63b   : > { %4636 = vpow2.f32 %v2550_v18  ;;  %2595 = vadd.xlane.f32.xlu1 %v2594_v0  ;;  %2619 = vadd.xlane.f32.xlu0 %v2618_v45  ;;  %v2597_v35 = vsel %vm1447_vm0, %v6273_v28, 0.0  ;;  %v2497_v50 = vsub.f32 %v6160_v41, %v2449_v1 }
 0x63c   : > { %4638 = vpow2.f32 %v2536_v61  ;;  %v2548_v61 = vmul.f32 1.442695, %v2495_v59 }
 0x63d   : > { %v6275_v44 = vpop.eup %4628  ;;  %4640 = vpow2.f32 %v2540_v26  ;;  %v2552_v51 = vmul.f32 1.442695, %v2497_v50 }
 0x63e   : > { %v2452_v15 = vpop.xlane.xlu0 %2451  ;;  %v2624_v48 = vsel %vm1447_vm0, %v6275_v44, 0.0  ;;  %v6282_v36 = vpop.eup %4630 }
 0x63f   : > { %v2498_v12 = vsub.f32 %v6168_v46, %v2452_v15  ;;  %2598 = vadd.xlane.f32.xlu1 %v2597_v35  ;;  %2625 = vadd.xlane.f32.xlu0 %v2624_v48  ;;  %v2603_v53 = vsel %vm1447_vm0, %v6282_v36, 0.0 }
 0x641   : > { %v6285_v43 = vpop.eup %4632  ;;  %v2554_v20 = vmul.f32 1.442695, %v2498_v12 }
 0x642   : > { %v2455_v58 = vpop.xlane.xlu0 %2454  ;;  %v2630_v27 = vsel %vm1447_vm0, %v6285_v43, 0.0  ;;  %v6292_v49 = vpop.eup %4634 }
 0x643   : > { %4642 = vpow2.f32 %v2554_v20  ;;  %2604 = vadd.xlane.f32.xlu1 %v2603_v53  ;;  %2631 = vadd.xlane.f32.xlu0 %v2630_v27  ;;  %v2609_v18 = vsel %vm1447_vm0, %v6292_v49, 0.0  ;;  %v2499_v31 = vsub.f32 %v6166_v54, %v2455_v58 }
 0x644   : > { %4644 = vpow2.f32 %v2544_v11 }
 0x645   : > { %v6294_v46 = vpop.eup %4636  ;;  %4646 = vpow2.f32 %v2548_v61  ;;  %v2556_v12 = vmul.f32 1.442695, %v2499_v31 }
 0x646   : > { %v2458_v47 = vpop.xlane.xlu0 %2457  ;;  %v2636_v0 = vsel %vm1447_vm0, %v6294_v46, 0.0  ;;  %v6301_v45 = vpop.eup %4638 }
 0x647   : > { %v2500_v26 = vsub.f32 %v6174_v60, %v2458_v47  ;;  %2610 = vadd.xlane.f32.xlu1 %v2609_v18  ;;  %2637 = vadd.xlane.f32.xlu0 %v2636_v0  ;;  %v2615_v41 = vsel %vm1447_vm0, %v6301_v45, 0.0  ;;  %v6307_v1 = vpop.eup %4640 }
 0x648   : > { %v2621_v59 = vsel %vm1447_vm0, %v6307_v1, 0.0 }
 0x649   : > { %v2558_v15 = vmul.f32 1.442695, %v2500_v26 }
 0x64a   : > { %v2461_v35 = vpop.xlane.xlu0 %2460 }
 0x64b   : > { %4648 = vpow2.f32 %v2558_v15  ;;  %2616 = vadd.xlane.f32.xlu1 %v2615_v41  ;;  %v2501_v60 = vsub.f32 %v6172_v7, %v2461_v35 }
 0x64c   : > { %4650 = vpow2.f32 %v2552_v51 }
 0x64d   : > { %v6309_v48 = vpop.eup %4642  ;;  %4652 = vpow2.f32 %v2556_v12  ;;  %v2560_v53 = vmul.f32 1.442695, %v2501_v60 }
 0x64e   : > { %v2464_v11 = vpop.xlane.xlu0 %2463  ;;  %v2642_v54 = vsel %vm1447_vm0, %v6309_v48, 0.0  ;;  %v6316_v20 = vpop.eup %4644 }
 0x64f   : > { %v2502_v58 = vsub.f32 %v6180_v6, %v2464_v11  ;;  %2622 = vadd.xlane.f32.xlu1 %v2621_v59  ;;  %2643 = vadd.xlane.f32.xlu0 %v2642_v54  ;;  %v2627_v7 = vsel %vm1447_vm0, %v6316_v20, 0.0  ;;  %v6321_v50 = vpop.eup %4646 }
 0x650   : > { %v2633_v26 = vsel %vm1447_vm0, %v6321_v50, 0.0 }
 0x651   : > { %v2562_v27 = vmul.f32 1.442695, %v2502_v58 }
 0x652   : > { %v2467_v61 = vpop.xlane.xlu0 %2466 }
 0x653   : > { %4654 = vpow2.f32 %v2562_v27  ;;  %v2503_v47 = vsub.f32 %v6178_v32, %v2467_v61  ;;  %2628 = vadd.xlane.f32.xlu1 %v2627_v7 }
 0x654   : > { %4656 = vpow2.f32 %v2560_v53 }
 0x655   : > { %v6324_v18 = vpop.eup %4648  ;;  %v2564_v0 = vmul.f32 1.442695, %v2503_v47 }
 0x656   : > { %v2470_v6 = vpop.xlane.xlu0 %2469  ;;  %v2648_v51 = vsel %vm1447_vm0, %v6324_v18, 0.0  ;;  %v6330_v31 = vpop.eup %4650 }
 0x657   : > { %v2504_v15 = vsub.f32 %v6186_v56, %v2470_v6  ;;  %2634 = vadd.xlane.f32.xlu1 %v2633_v26  ;;  %2649 = vadd.xlane.f32.xlu0 %v2648_v51  ;;  %4658 = vpow2.f32 %v2564_v0  ;;  %v2639_v41 = vsel %vm1447_vm0, %v6330_v31, 0.0  ;;  %v6335_v12 = vpop.eup %4652  ;;  %v3148_v6 = vld [vmem:[#allocation14 + $0x8] sm:$0xff]  ;;  %v3150_v26 = vld [vmem:[#allocation14 + $0x18] sm:$0xff]  ;;  %v3147_v51 = vld [vmem:[#allocation14] sm:$0xff] }
 0x658   : > { %v2645_v56 = vsel %vm1447_vm0, %v6335_v12, 0.0 }
 0x659   : > { %v2566_v32 = vmul.f32 1.442695, %v2504_v15  ;;  %v4291_v15 = vpack.c.bf16 %v3150_v26, %v3148_v6  ;;  %v4303_v26 = vpack.c.bf16 %v3162_v9, %v3160_v5  ;;  %v3174_v9 = vld [vmem:[#allocation14 + $0xd8] sm:$0xff] }
 0x65a   : > { %v2473_v35 = vpop.xlane.xlu0 %2472 }
 0x65b   : > { %4660 = vpow2.f32 %v2566_v32  ;;  %v2505_v60 = vsub.f32 %v6184_v13, %v2473_v35  ;;  %2640 = vadd.xlane.f32.xlu1 %v2639_v41  ;;  %v3149_v32 = vld [vmem:[#allocation14 + $0x10] sm:$0xff]  ;;  %v3152_v35 = vld [vmem:[#allocation14 + $0x28] sm:$0xff]  ;;  %v3154_v41 = vld [vmem:[#allocation14 + $0x38] sm:$0xff]  ;;  %4292 = vmatprep.subr.bf16.mxu1 %v4291_v15 }
 0x65d   : > { %v6338_v11 = vpop.eup %4654  ;;  %v2568_v59 = vmul.f32 1.442695, %v2505_v60  ;;  %v4293_v60 = vpack.c.bf16 %v3149_v32, %v3147_v51  ;;  %v3161_v51 = vld [vmem:[#allocation14 + $0x70] sm:$0xff]  ;;  %v3164_v32 = vld [vmem:[#allocation14 + $0x88] sm:$0xff] }
 0x65e   : > { %v2654_v54 = vsel %vm1447_vm0, %v6338_v11, 0.0  ;;  %v6344_v58 = vpop.eup %4656 }
 0x65f   : > { %4662 = vpow2.f32 %v2568_v59  ;;  %2646 = vadd.xlane.f32.xlu1 %v2645_v56  ;;  %2655 = vadd.xlane.f32.xlu0 %v2654_v54  ;;  %v2651_v53 = vsel %vm1447_vm0, %v6344_v58, 0.0  ;;  %v4295_v59 = vpack.c.bf16 %v3154_v41, %v3152_v35  ;;  %v3151_v56 = vld [vmem:[#allocation14 + $0x20] sm:$0xff]  ;;  %v3153_v54 = vld [vmem:[#allocation14 + $0x30] sm:$0xff]  ;;  %v3166_v35 = vld [vmem:[#allocation14 + $0x98] sm:$0xff]  ;;  %v4305_v41 = vpack.c.bf16 %v3161_v51, %v3159_v4 }
 0x660   : > { %4294 = vmatpush1.bf16.msra.mxu1 %v4293_v60  ;;  %v4307_v15 = vpack.c.bf16 %v3166_v35, %v3164_v32  ;;  %v3163_v60 = vld [vmem:[#allocation14 + $0x80] sm:$0xff]  ;;  %v3173_v4 = vld [vmem:[#allocation14 + $0xd0] sm:$0xff]  ;;  %v3178_v51 = vld [vmem:[#allocation14 + $0xf8] sm:$0xff] }
 0x661   : > { %v6348_v27 = vpop.eup %4658  ;;  %4296 = vmatprep.subr.bf16.mxu1 %v4295_v59  ;;  %v3168_v59 = vld [vmem:[#allocation14 + $0xa8] sm:$0xff] }
 0x662   : > { %v2657_v61 = vsel %vm1447_vm0, %v6348_v27, 0.0 }
 0x663   : > { %2652 = vadd.xlane.f32.xlu1 %v2651_v53  ;;  %v3156_v53 = vld [vmem:[#allocation14 + $0x48] sm:$0xff] }
 0x665   : > { %v6350_v13 = vpop.eup %4660 }
 0x666   : > { %v2660_v7 = vsel %vm1447_vm0, %v6350_v13, 0.0 }
 0x667   : > { %2658 = vadd.xlane.f32.xlu1 %v2657_v61  ;;  %2661 = vadd.xlane.f32.xlu0 %v2660_v7  ;;  %v3158_v61 = vld [vmem:[#allocation14 + $0x58] sm:$0xff]  ;;  %v4297_v7 = vpack.c.bf16 %v3153_v54, %v3151_v56  ;;  %v3165_v56 = vld [vmem:[#allocation14 + $0x90] sm:$0xff] }
 0x668   : > { %v4299_v19 = vpack.c.bf16 %v3158_v61, %v3156_v53  ;;  %v3170_v54 = vld [vmem:[#allocation14 + $0xb8] sm:$0xff]  ;;  %v4309_v53 = vpack.c.bf16 %v3165_v56, %v3163_v60  ;;  %v3177_v60 = vld [vmem:[#allocation14 + $0xf0] sm:$0xff] }
 0x669   : > { %v6356_v47 = vpop.eup %4662  ;;  %4298 = vmatpush1.bf16.msra.mxu1 %v4297_v7  ;;  %v4311_v61 = vpack.c.bf16 %v3170_v54, %v3168_v59  ;;  %v3167_v7 = vld [vmem:[#allocation14 + $0xa0] sm:$0xff]  ;;  %v3182_v56 = vld [vmem:[#allocation14 + $0x118] sm:$0xff] }
 0x66a   : > { %v2663_v0 = vsel %vm1447_vm0, %v6356_v47, 0.0  ;;  %4300 = vmatprep.subr.bf16.mxu1 %v4299_v19  ;;  %v3172_v19 = vld [vmem:[#allocation14 + $0xc8] sm:$0xff] }
 0x66b   : > { %2664 = vadd.xlane.f32.xlu1 %v2663_v0  ;;  %v3157_v0 = vld [vmem:[#allocation14 + $0x50] sm:$0xff] }
 0x66c   : > { %v4301_v6 = vpack.c.bf16 %v3157_v0, %v3155_v14  ;;  %v3169_v14 = vld [vmem:[#allocation14 + $0xb0] sm:$0xff]  ;;  %v4315_v0 = vpack.c.bf16 %v3174_v9, %v3172_v19 }
 0x66d   : > { %v4313_v5 = vpack.c.bf16 %v3169_v14, %v3167_v7  ;;  %v3181_v7 = vld [vmem:[#allocation14 + $0x110] sm:$0xff]  ;;  %v3186_v14 = vld [vmem:[#allocation14 + $0x138] sm:$0xff] }
 0x66e   : > { %4302 = vmatpush1.bf16.msra.mxu1 %v4301_v6  ;;  %v3171_v6 = vld [vmem:[#allocation14 + $0xc0] sm:$0xff] }
 0x66f   : > { %4304 = vmatprep.subr.bf16.mxu1 %v4303_v26  ;;  %v3176_v26 = vld [vmem:[#allocation14 + $0xe8] sm:$0xff]  ;;  %v4317_v32 = vpack.c.bf16 %v3173_v4, %v3171_v6  ;;  %v3185_v6 = vld [vmem:[#allocation14 + $0x130] sm:$0xff] }
 0x670   : > { %v4319_v35 = vpack.c.bf16 %v3178_v51, %v3176_v26  ;;  %v3188_v4 = vld [vmem:[#allocation14 + $0x148] sm:$0xff]  ;;  %v3190_v26 = vld [vmem:[#allocation14 + $0x158] sm:$0xff] }
 0x672   : > { %4306 = vmatpush1.bf16.msra.mxu1 %v4305_v41  ;;  %v3175_v41 = vld [vmem:[#allocation14 + $0xe0] sm:$0xff] }
 0x673   : > { %4308 = vmatprep.subr.bf16.mxu1 %v4307_v15  ;;  %v3180_v15 = vld [vmem:[#allocation14 + $0x108] sm:$0xff]  ;;  %v4321_v59 = vpack.c.bf16 %v3177_v60, %v3175_v41  ;;  %v3189_v41 = vld [vmem:[#allocation14 + $0x150] sm:$0xff] }
 0x674   : > { %v4323_v54 = vpack.c.bf16 %v3182_v56, %v3180_v15  ;;  %v3192_v15 = vld [vmem:[#allocation14 + $0x168] sm:$0xff]  ;;  %v3194_v56 = vld [vmem:[#allocation14 + $0x178] sm:$0xff] }
 0x676   : > { %4310 = vmatpush1.bf16.msra.mxu1 %v4309_v53  ;;  %v3179_v53 = vld [vmem:[#allocation14 + $0x100] sm:$0xff] }
 0x677   : > { %4312 = vmatprep.subr.bf16.mxu1 %v4311_v61  ;;  %v3184_v61 = vld [vmem:[#allocation14 + $0x128] sm:$0xff]  ;;  %v4325_v19 = vpack.c.bf16 %v3181_v7, %v3179_v53  ;;  %v3191_v53 = vld [vmem:[#allocation14 + $0x160] sm:$0xff]  ;;  %v3193_v7 = vld [vmem:[#allocation14 + $0x170] sm:$0xff] }
 0x678   : > { %v4327_v9 = vpack.c.bf16 %v3186_v14, %v3184_v61  ;;  %v3196_v14 = vld [vmem:[#allocation14 + $0x188] sm:$0xff] }
 0x67a   : > { %4314 = vmatpush1.bf16.msra.mxu1 %v4313_v5  ;;  %v3183_v5 = vld [vmem:[#allocation14 + $0x120] sm:$0xff] }
 0x67b   : > { %4316 = vmatprep.subr.bf16.mxu1 %v4315_v0  ;;  %v4329_v51 = vpack.c.bf16 %v3185_v6, %v3183_v5  ;;  %v4339_v5 = vpack.c.bf16 %v3198_v22, %v3196_v14  ;;  %v3195_v6 = vld [vmem:[#allocation14 + $0x180] sm:$0xff] }
 0x67c   : > { %v3203_v14 = vld [vmem:[#allocation14 + $0x1c0] sm:$0xff] }
 0x67e   : > { %4318 = vmatpush1.bf16.msra.mxu1 %v4317_v32  ;;  %v4331_v32 = vpack.c.bf16 %v3190_v26, %v3188_v4 }
 0x67f   : > { %4320 = vmatprep.subr.bf16.mxu1 %v4319_v35  ;;  %v3187_v35 = vld [vmem:[#allocation14 + $0x140] sm:$0xff] }
 0x682   : > { %4322 = vmatpush1.bf16.msra.mxu1 %v4321_v59  ;;  %v4333_v59 = vpack.c.bf16 %v3189_v41, %v3187_v35  ;;  %v3202_v35 = vld [vmem:[#allocation14 + $0x1b8] sm:$0xff] }
 0x683   : > { %4324 = vmatprep.subr.bf16.mxu1 %v4323_v54  ;;  %v4335_v54 = vpack.c.bf16 %v3194_v56, %v3192_v15  ;;  %v3199_v15 = vld [vmem:[#allocation14 + $0x1a0] sm:$0xff]  ;;  %v3201_v56 = vld [vmem:[#allocation14 + $0x1b0] sm:$0xff] }
 0x686   : > { %4326 = vmatpush1.bf16.msra.mxu1 %v4325_v19  ;;  %v4337_v19 = vpack.c.bf16 %v3193_v7, %v3191_v53  ;;  %v3206_v53 = vld [vmem:[#allocation14 + $0x1d8] sm:$0xff] }
 0x687   : > { %4328 = vmatprep.subr.bf16.mxu1 %v4327_v9 }
 0x68a   : > { %4330 = vmatpush1.bf16.msra.mxu1 %v4329_v51  ;;  %v3200_v51 = vld [vmem:[#allocation14 + $0x1a8] sm:$0xff] }
 0x68b   : > { %4332 = vmatprep.subr.bf16.mxu1 %v4331_v32 }
 0x68e   : > { %4334 = vmatpush1.bf16.msra.mxu1 %v4333_v59 }
 0x68f   : > { %4336 = vmatprep.subr.bf16.mxu1 %v4335_v54  ;;  %v3204_v54 = vld [vmem:[#allocation14 + $0x1c8] sm:$0xff] }
 0x692   : > { %4338 = vmatpush1.bf16.msra.mxu1 %v4337_v19  ;;  %v3205_v19 = vld [vmem:[#allocation14 + $0x1d0] sm:$0xff] }
 0x693   : > { %4340 = vmatprep.subr.bf16.mxu1 %v4339_v5 }
 0x6a8   : > { %v2572_v0 = vpop.xlane.xlu1 %2571 }
 0x6a9   : > { %4664 = vrcp.f32 %v2572_v0  ;;  %v3197_v0 = vld [vmem:[#allocation14 + $0x190] sm:$0xff] }
 0x6aa   : > { %v4341_v32 = vpack.c.bf16 %v3197_v0, %v3195_v6  ;;  %v3208_v6 = vld [vmem:[#allocation14 + $0x1e8] sm:$0xff]  ;;  %v3210_v0 = vld [vmem:[#allocation14 + $0x1f8] sm:$0xff] }
 0x6ac   : > { %v2575_v60 = vpop.xlane.xlu1 %2574  ;;  %4342 = vmatpush1.bf16.msra.mxu1 %v4341_v32 }
 0x6ad   : > { %4666 = vrcp.f32 %v2575_v60  ;;  %v4343_v60 = vpack.c.bf16 %v3202_v35, %v3200_v51  ;;  %v4351_v51 = vpack.c.bf16 %v3210_v0, %v3208_v6 }
 0x6af   : > { %4344 = vmatprep.subr.bf16.mxu1 %v4343_v60 }
 0x6b0   : > { %v2578_v61 = vpop.xlane.xlu1 %2577 }
 0x6b1   : > { %4668 = vrcp.f32 %v2578_v61  ;;  %v4347_v61 = vpack.c.bf16 %v3206_v53, %v3204_v54 }
 0x6b3   : > { %v4665_v9 = vpop.eup %4664 }
 0x6b4   : > { %v2581_v4 = vpop.xlane.xlu1 %2580  ;;  %v2667_v26 = vmul.f32 %v4665_v9, %v6205_v24  ;;  %v4345_v24 = vpack.c.bf16 %v3201_v56, %v3199_v15 }
 0x6b5   : > { %4670 = vrcp.f32 %v2581_v4  ;;  %v4349_v4 = vpack.c.bf16 %v3205_v19, %v3203_v14 }
 0x6b6   : > { %4099 = vmatprep.mubr.msk.f32.mxu0 %vm1447_vm0, %v2667_v26  ;;  %4346 = vmatpush1.bf16.msra.mxu1 %v4345_v24 }
 0x6b7   : > { %v4667_v41 = vpop.eup %4666  ;;  %4348 = vmatprep.subr.bf16.mxu1 %v4347_v61 }
 0x6b8   : > { %v2669_v59 = vmul.f32 %v4667_v41, %v6210_v40  ;;  %v2584_v22 = vpop.xlane.xlu1 %2583 }
 0x6b9   : > { %4672 = vrcp.f32 %v2584_v22 }
 0x6ba   : > { %4100 = vmatmul.mubr.msk.f32.vlgmr.msra.gmra.mrb[86].mxu0 %vm1447_vm0, %v2669_v59  ;;  %4350 = vmatpush1.bf16.msra.mxu1 %v4349_v4 }
 0x6bb   : > { %v4669_v7 = vpop.eup %4668  ;;  %4352 = vmatprep.subr.bf16.mxu1 %v4351_v51 }
 0x6bc   : > { %v2587_v9 = vpop.xlane.xlu1 %2586  ;;  %v2671_v5 = vmul.f32 %v4669_v7, %v6215_v52  ;;  %v2602_v40 = vpop.xlane.xlu0 %2601 }
 0x6bd   : > { %4674 = vrcp.f32 %v2587_v9 }
 0x6be   : > { %4102 = vmatprep.mubr.msk.f32.mxu0 %vm1447_vm0, %v2671_v5 }
 0x6bf   : > { %v4671_v26 = vpop.eup %4670 }
 0x6c0   : > { %v2590_v35 = vpop.xlane.xlu1 %2589  ;;  %v2673_v32 = vmul.f32 %v4671_v26, %v6221_v62  ;;  %v2608_v52 = vpop.xlane.xlu0 %2607 }
 0x6c1   : > { %4676 = vrcp.f32 %v2590_v35 }
 0x6c2   : > { %4103 = vmatmul.mubr.msk.f32.gmra.mrb[88].mxu0 %vm1447_vm0, %v2673_v32 }
 0x6c3   : > { %v4673_v41 = vpop.eup %4672 }
 0x6c4   : > { %v2593_v60 = vpop.xlane.xlu1 %2592  ;;  %v2675_v15 = vmul.f32 %v4673_v41, %v6227_v10  ;;  %v2614_v54 = vpop.xlane.xlu0 %2613 }
 0x6c5   : > { %4678 = vrcp.f32 %v2593_v60 }
 0x6c6   : > { %4105 = vmatprep.mubr.msk.f32.mxu0 %vm1447_vm0, %v2675_v15 }
 0x6c7   : > { %v4675_v56 = vpop.eup %4674 }
 0x6c8   : > { %v2596_v59 = vpop.xlane.xlu1 %2595  ;;  %v2677_v22 = vmul.f32 %v4675_v56, %v6233_v57  ;;  %v2620_v7 = vpop.xlane.xlu0 %2619 }
 0x6c9   : > { %4680 = vrcp.f32 %v2596_v59 }
 0x6ca   : > { %4106 = vmatmul.mubr.msk.f32.gmra.mrb[90].mxu0 %vm1447_vm0, %v2677_v22  ;;  %4682 = vrcp.f32 %v2602_v40 }
 0x6cb   : > { %v4677_v62 = vpop.eup %4676 }
 0x6cc   : > { %v2599_v53 = vpop.xlane.xlu1 %2598  ;;  %v2679_v24 = vmul.f32 %v4677_v62, %v6243_v37  ;;  %v2626_v5 = vpop.xlane.xlu0 %2625 }
 0x6cd   : > { %4684 = vrcp.f32 %v2599_v53 }
 0x6ce   : > { %4108 = vmatprep.mubr.msk.f32.mxu0 %vm1447_vm0, %v2679_v24  ;;  %4686 = vrcp.f32 %v2608_v52 }
 0x6cf   : > { %v4679_v10 = vpop.eup %4678 }
 0x6d0   : > { %v2605_v61 = vpop.xlane.xlu1 %2604  ;;  %v2681_v14 = vmul.f32 %v4679_v10, %v6253_v38  ;;  %v2632_v51 = vpop.xlane.xlu0 %2631 }
 0x6d1   : > { %4688 = vrcp.f32 %v2605_v61 }
 0x6d2   : > { %4109 = vmatmul.mubr.msk.f32.gmra.mrb[92].mxu0 %vm1447_vm0, %v2681_v14  ;;  %4690 = vrcp.f32 %v2614_v54 }
 0x6d3   : > { %v4681_v57 = vpop.eup %4680 }
 0x6d4   : > { %v2611_v19 = vpop.xlane.xlu1 %2610  ;;  %v2683_v9 = vmul.f32 %v4681_v57, %v6263_v55  ;;  %v4683_v37 = vpop.eup %4682 }
 0x6d5   : > { %4692 = vrcp.f32 %v2611_v19  ;;  %v2687_v38 = vmul.f32 %v4683_v37, %v6236_v16  ;;  %v2638_v60 = vpop.xlane.xlu0 %2637 }
 0x6d6   : > { %4111 = vmatprep.mubr.msk.f32.mxu0 %vm1447_vm0, %v2683_v9  ;;  %4694 = vrcp.f32 %v2620_v7 }
 0x6d7   : > { %v4685_v6 = vpop.eup %4684 }
 0x6d8   : > { %v2617_v0 = vpop.xlane.xlu1 %2616  ;;  %v2685_v40 = vmul.f32 %v4685_v6, %v6273_v28  ;;  %v4687_v4 = vpop.eup %4686 }
 0x6d9   : > { %4696 = vrcp.f32 %v2617_v0  ;;  %v2691_v32 = vmul.f32 %v4687_v4, %v6246_v21 }
 0x6da   : > { %4112 = vmatmul.mubr.msk.f32.gmra.mrb[94].mxu0 %vm1447_vm0, %v2685_v40  ;;  %4698 = vrcp.f32 %v2626_v5 }
 0x6db   : > { %v4689_v26 = vpop.eup %4688  ;;  %4114 = vmatprep.mubr.msk.f32.mxu0 %vm1447_vm0, %v2687_v38 }
 0x6dc   : > { %v2623_v55 = vpop.xlane.xlu1 %2622  ;;  %v2689_v35 = vmul.f32 %v4689_v26, %v6282_v36  ;;  %v4691_v41 = vpop.eup %4690 }
 0x6dd   : > { %4700 = vrcp.f32 %v2623_v55  ;;  %v2695_v15 = vmul.f32 %v4691_v41, %v6256_v39  ;;  %v2644_v22 = vpop.xlane.xlu0 %2643 }
 0x6de   : > { %4115 = vmatmul.mubr.msk.f32.gmra.mrb[96].mxu0 %vm1447_vm0, %v2689_v35  ;;  %4702 = vrcp.f32 %v2632_v51 }
 0x6df   : > { %v4693_v28 = vpop.eup %4692  ;;  %4117 = vmatprep.mubr.msk.f32.mxu0 %vm1447_vm0, %v2691_v32 }
 0x6e0   : > { %v2629_v16 = vpop.xlane.xlu1 %2628  ;;  %v2693_v52 = vmul.f32 %v4693_v28, %v6292_v49  ;;  %v4695_v56 = vpop.eup %4694 }
 0x6e1   : > { %4704 = vrcp.f32 %v2629_v16  ;;  %v2699_v54 = vmul.f32 %v4695_v56, %v6266_v2 }
 0x6e2   : > { %4118 = vmatmul.mubr.msk.f32.gmra.mrb[98].mxu0 %vm1447_vm0, %v2693_v52  ;;  %4706 = vrcp.f32 %v2638_v60 }
 0x6e3   : > { %v4697_v36 = vpop.eup %4696  ;;  %4120 = vmatprep.mubr.msk.f32.mxu0 %vm1447_vm0, %v2695_v15 }
 0x6e4   : > { %v2635_v21 = vpop.xlane.xlu1 %2634  ;;  %v2697_v59 = vmul.f32 %v4697_v36, %v6301_v45  ;;  %v4699_v62 = vpop.eup %4698 }
 0x6e5   : > { %4708 = vrcp.f32 %v2635_v21  ;;  %v2650_v24 = vpop.xlane.xlu0 %2649  ;;  %v2703_v10 = vmul.f32 %v4699_v62, %v6275_v44 }
 0x6e6   : > { %4121 = vmatmul.mubr.msk.f32.gmra.mrb[100].mxu0 %vm1447_vm0, %v2697_v59  ;;  %4710 = vrcp.f32 %v2644_v22  ;;  %v6759_v59 = vld [vmem:[#allocation28_spill] sm:$0xff] }
 0x6e7   : > { %v4701_v49 = vpop.eup %4700  ;;  %4123 = vmatprep.mubr.msk.f32.mxu0 %vm1447_vm0, %v2699_v54  ;;  %v6760_v54 = vld [vmem:[#allocation30_spill] sm:$0xff] }
 0x6e8   : > { %v2641_v39 = vpop.xlane.xlu1 %2640  ;;  %v2701_v53 = vmul.f32 %v4701_v49, %v6307_v1  ;;  %v4703_v7 = vpop.eup %4702  ;;  %v6761_v49 = vld [vmem:[#allocation29_spill] sm:$0xff] }
 0x6e9   : > { %4712 = vrcp.f32 %v2641_v39  ;;  %v2707_v57 = vmul.f32 %v4703_v7, %v6285_v43 }
 0x6ea   : > { %4124 = vmatmul.mubr.msk.f32.gmra.mrb[102].mxu0 %vm1447_vm0, %v2701_v53  ;;  %4714 = vrcp.f32 %v2650_v24  ;;  %v6762_v53 = vld [vmem:[#allocation32_spill] sm:$0xff] }
 0x6eb   : > { %v4705_v45 = vpop.eup %4704  ;;  %4126 = vmatprep.mubr.msk.f32.mxu0 %vm1447_vm0, %v2703_v10  ;;  %v6763_v10 = vld [vmem:[#allocation31_spill] sm:$0xff] }
 0x6ec   : > { %v2647_v2 = vpop.xlane.xlu1 %2646  ;;  %v2705_v61 = vmul.f32 %v4705_v45, %v6316_v20  ;;  %v2656_v14 = vpop.xlane.xlu0 %2655 }
 0x6ed   : > { %4716 = vrcp.f32 %v2647_v2  ;;  %v4707_v19 = vpop.eup %4706  ;;  %v6764_v2 = vld [vmem:[#allocation34_spill] sm:$0xff] }
 0x6ee   : > { %4127 = vmatmul.mubr.msk.f32.gmra.mrb[104].mxu0 %vm1447_vm0, %v2705_v61  ;;  %4718 = vrcp.f32 %v2656_v14  ;;  %v2711_v5 = vmul.f32 %v4707_v19, %v6294_v46 }
 0x6ef   : > { %v4709_v1 = vpop.eup %4708  ;;  %4129 = vmatprep.mubr.msk.f32.mxu0 %vm1447_vm0, %v2707_v57  ;;  %v6765_v57 = vld [vmem:[#allocation33_spill] sm:$0xff] }
 0x6f0   : > { %v2653_v44 = vpop.xlane.xlu1 %2652  ;;  %v2709_v9 = vmul.f32 %v4709_v1, %v6321_v50  ;;  %v4711_v37 = vpop.eup %4710 }
 0x6f1   : > { %4720 = vrcp.f32 %v2653_v44  ;;  %v2715_v40 = vmul.f32 %v4711_v37, %v6309_v48  ;;  %v6766_v44 = vld [vmem:[#allocation36_spill] sm:$0xff]  ;;  %v6767_v37 = vld [vmem:[#allocation35_spill] sm:$0xff] }
 0x6f2   : > { %4130 = vmatmul.mubr.msk.f32.gmra.mrb[106].mxu0 %vm1447_vm0, %v2709_v9 }
 0x6f3   : > { %v4713_v20 = vpop.eup %4712  ;;  %4132 = vmatprep.mubr.msk.f32.mxu0 %vm1447_vm0, %v2711_v5 }
 0x6f4   : > { %v2659_v43 = vpop.xlane.xlu1 %2658  ;;  %v2662_v6 = vpop.xlane.xlu0 %2661  ;;  %v2713_v0 = vmul.f32 %v4713_v20, %v6330_v31  ;;  %v6768_v20 = vld [vmem:[#allocation38_spill] sm:$0xff] }
 0x6f5   : > { %4722 = vrcp.f32 %v2659_v43  ;;  %v4715_v38 = vpop.eup %4714  ;;  %v6769_v43 = vld [vmem:[#allocation37_spill] sm:$0xff] }
 0x6f6   : > { %4724 = vrcp.f32 %v2662_v6  ;;  %4133 = vmatmul.mubr.msk.f32.gmra.mrb[108].mxu0 %vm1447_vm0, %v2713_v0  ;;  %v2719_v26 = vmul.f32 %v4715_v38, %v6324_v18  ;;  %v6770_v6 = vld [vmem:[#allocation40_spill] sm:$0xff]  ;;  %v6771_v0 = vld [vmem:[#allocation39_spill] sm:$0xff]  ;;  %v6773_v38 = vld [vmem:[#allocation41_spill] sm:$0xff] }
 0x6f7   : > { %v4717_v50 = vpop.eup %4716  ;;  %4135 = vmatprep.mubr.msk.f32.mxu0 %vm1447_vm0, %v2715_v40  ;;  %v6772_v40 = vld [vmem:[#allocation42_spill] sm:$0xff] }
 0x6f8   : > { %v2665_v46 = vpop.xlane.xlu1 %2664  ;;  %v2717_v4 = vmul.f32 %v4717_v50, %v6335_v12  ;;  %v4719_v51 = vpop.eup %4718  ;;  %v6774_v50 = vld [vmem:[#allocation44_spill] sm:$0xff] }
 0x6f9   : > { %4726 = vrcp.f32 %v2665_v46  ;;  %v2723_v55 = vmul.f32 %v4719_v51, %v6338_v11  ;;  %v3207_v11 = vld [vmem:[#allocation14 + $0x1e0] sm:$0xff]  ;;  %v6775_v46 = vld [vmem:[#allocation43_spill] sm:$0xff]  ;;  %v6778_v51 = vld [vmem:[#allocation48_spill] sm:$0xff] }
 0x6fa   : > { %4136 = vmatmul.mubr.msk.f32.gmra.mrb[110].mxu0 %vm1447_vm0, %v2717_v4  ;;  %v6776_v4 = vld [vmem:[#allocation46_spill] sm:$0xff] }
 0x6fb   : > { %v4721_v31 = vpop.eup %4720  ;;  %4138 = vmatprep.mubr.msk.f32.mxu0 %vm1447_vm0, %v2719_v26  ;;  %v6777_v26 = vld [vmem:[#allocation45_spill] sm:$0xff] }
 0x6fc   : > { %v2721_v48 = vmul.f32 %v4721_v31, %v6344_v58  ;;  %v3209_v58 = vld [vmem:[#allocation14 + $0x1f0] sm:$0xff]  ;;  %v6779_v31 = vld [vmem:[#allocation47_spill] sm:$0xff] }
 0x6fd   : > { %v4353_v16 = vpack.c.bf16 %v3209_v58, %v3207_v11 }
 0x6fe   : > { %4139 = vmatmul.mubr.msk.f32.gmra.mrb[112].mxu0 %vm1447_vm0, %v2721_v48  ;;  %v3211_v48 = vld [vmem:[%s6780_s30] sm:$0x3] }
 0x6ff   : > { %v4723_v35 = vpop.eup %4722  ;;  %4141 = vmatprep.mubr.msk.f32.mxu0 %vm1447_vm0, %v2723_v55  ;;  %4354 = vmatpush1.bf16.msra.mxu1 %v4353_v16  ;;  %v6781_v55 = vld [vmem:[#allocation27_spill] sm:$0xff] }
 0x700   : > { %v4725_v32 = vpop.eup %4724  ;;  %v2725_v12 = vmul.f32 %v4723_v35, %v6348_v27  ;;  %v6460_v35 = vrot.slane %v3211_v48, %v6781_v55 }
 0x701   : > { %v2727_v18 = vmul.f32 %v4725_v32, %v6350_v13  ;;  %v6782_v32 = vld [vmem:[#allocation26_spill] sm:$0xff] }
 0x702   : > { %4142 = vmatmul.mubr.msk.f32.gmra.mrb[114].mxu0 %vm1447_vm0, %v2725_v12  ;;  %v6463_v12 = vrot.slane %v3211_v48, %v6782_v32 }
 0x703   : > { %v4727_v41 = vpop.eup %4726  ;;  %4144 = vmatprep.mubr.msk.f32.mxu0 %vm1447_vm0, %v2727_v18 }
 0x704   : > { %v2729_v28 = vmul.f32 %v4727_v41, %v6356_v47 }
 0x706   : > { %4145 = vmatmul.mubr.msk.f32.gmra.mrb[116].mxu0 %vm1447_vm0, %v2729_v28 }
 0x78d   : > { %v4101_v52 = vpop.f32.mrb[86].mxu0 }
 0x78e   : > { %v2892_v60 = vpop.f32.mrb[87].mxu0 }
 0x78f   : > { %3287 = vmatprep.mubr.f32.mxu1 %v2892_v60 }
 0x790   : > { %3288 = vmatmul.mubr.f32.vlgmr.msra.gmra.mrb[82].mxu1 %v6010_v42 }
 0x791   : > { %3293 = vmatprep.mubr.f32.mxu1 %v4101_v52 }
 0x794   : > { %3294 = vmatmul.mubr.f32.gmra.mrb[84].mxu1 %v6008_v30 }
 0x795   : > { %v4104_v27 = vpop.f32.mrb[88].mxu0 }
 0x796   : > { %v2902_v13 = vpop.f32.mrb[89].mxu0 }
 0x797   : > { %3299 = vmatprep.mubr.f32.mxu1 %v2902_v13 }
 0x798   : > { %3300 = vmatmul.mubr.f32.gmra.mrb[86].mxu1 %v6014_v8 }
 0x799   : > { %3305 = vmatprep.mubr.f32.mxu1 %v4104_v27 }
 0x79c   : > { %3306 = vmatmul.mubr.f32.gmra.mrb[88].mxu1 %v6012_v34 }
 0x79d   : > { %v4107_v47 = vpop.f32.mrb[90].mxu0 }
 0x79e   : > { %v2912_v15 = vpop.f32.mrb[91].mxu0 }
 0x79f   : > { %3311 = vmatprep.mubr.f32.mxu1 %v2912_v15 }
 0x7a0   : > { %3312 = vmatmul.mubr.f32.gmra.mrb[90].mxu1 %v6018_v33 }
 0x7a1   : > { %3317 = vmatprep.mubr.f32.mxu1 %v4107_v47 }
 0x7a4   : > { %3318 = vmatmul.mubr.f32.gmra.mrb[92].mxu1 %v6016_v3 }
 0x7a5   : > { %v4110_v42 = vpop.f32.mrb[92].mxu0 }
 0x7a6   : > { %v2922_v56 = vpop.f32.mrb[93].mxu0 }
 0x7a7   : > { %3323 = vmatprep.mubr.f32.mxu1 %v2922_v56 }
 0x7a8   : > { %3324 = vmatmul.mubr.f32.gmra.mrb[94].mxu1 %v6022_v23 }
 0x7a9   : > { %3329 = vmatprep.mubr.f32.mxu1 %v4110_v42 }
 0x7ac   : > { %3330 = vmatmul.mubr.f32.gmra.mrb[96].mxu1 %v6020_v25 }
 0x7ad   : > { %v4113_v30 = vpop.f32.mrb[94].mxu0 }
 0x7ae   : > { %v2932_v8 = vpop.f32.mrb[95].mxu0 }
 0x7af   : > { %3335 = vmatprep.mubr.f32.mxu1 %v2932_v8 }
 0x7b0   : > { %3336 = vmatmul.mubr.f32.gmra.mrb[98].mxu1 %v6026_v29 }
 0x7b1   : > { %v4116_v34 = vpop.f32.mrb[96].mxu0  ;;  %3341 = vmatprep.mubr.f32.mxu1 %v4113_v30 }
 0x7b2   : > { %v2942_v36 = vpop.f32.mrb[97].mxu0 }
 0x7b4   : > { %3342 = vmatmul.mubr.f32.gmra.mrb[100].mxu1 %v6024_v63 }
 0x7b5   : > { %v4119_v33 = vpop.f32.mrb[98].mxu0  ;;  %3347 = vmatprep.mubr.f32.mxu1 %v2942_v36 }
 0x7b6   : > { %v2952_v3 = vpop.f32.mrb[99].mxu0 }
 0x7b8   : > { %3348 = vmatmul.mubr.f32.gmra.mrb[102].mxu1 %v6030_v17 }
 0x7b9   : > { %v4122_v21 = vpop.f32.mrb[100].mxu0  ;;  %3353 = vmatprep.mubr.f32.mxu1 %v4116_v34 }
 0x7ba   : > { %v2962_v23 = vpop.f32.mrb[101].mxu0 }
 0x7bc   : > { %3354 = vmatmul.mubr.f32.gmra.mrb[104].mxu1 %v6759_v59 }
 0x7bd   : > { %v4125_v25 = vpop.f32.mrb[102].mxu0  ;;  %3359 = vmatprep.mubr.f32.mxu1 %v2952_v3 }
 0x7be   : > { %v2972_v22 = vpop.f32.mrb[103].mxu0 }
 0x7c0   : > { %3360 = vmatmul.mubr.f32.gmra.mrb[106].mxu1 %v6760_v54 }
 0x7c1   : > { %v4128_v29 = vpop.f32.mrb[104].mxu0  ;;  %3365 = vmatprep.mubr.f32.mxu1 %v4119_v33 }
 0x7c2   : > { %v2982_v62 = vpop.f32.mrb[105].mxu0 }
 0x7c4   : > { %3366 = vmatmul.mubr.f32.gmra.mrb[108].mxu1 %v6761_v49 }
 0x7c5   : > { %v4131_v63 = vpop.f32.mrb[106].mxu0  ;;  %3371 = vmatprep.mubr.f32.mxu1 %v2962_v23 }
 0x7c6   : > { %v2992_v39 = vpop.f32.mrb[107].mxu0 }
 0x7c8   : > { %3372 = vmatmul.mubr.f32.gmra.mrb[110].mxu1 %v6762_v53 }
 0x7c9   : > { %v4134_v17 = vpop.f32.mrb[108].mxu0  ;;  %3377 = vmatprep.mubr.f32.mxu1 %v4122_v21 }
 0x7ca   : > { %v3002_v24 = vpop.f32.mrb[109].mxu0 }
 0x7cc   : > { %3378 = vmatmul.mubr.f32.gmra.mrb[112].mxu1 %v6763_v10 }
 0x7cd   : > { %v4137_v7 = vpop.f32.mrb[110].mxu0  ;;  %3383 = vmatprep.mubr.f32.mxu1 %v2972_v22 }
 0x7ce   : > { %v3012_v45 = vpop.f32.mrb[111].mxu0 }
 0x7d0   : > { %3384 = vmatmul.mubr.f32.gmra.mrb[114].mxu1 %v6764_v2 }
 0x7d1   : > { %v4140_v61 = vpop.f32.mrb[112].mxu0  ;;  %3389 = vmatprep.mubr.f32.mxu1 %v4125_v25 }
 0x7d2   : > { %v3022_v14 = vpop.f32.mrb[113].mxu0 }
 0x7d4   : > { %3390 = vmatmul.mubr.f32.gmra.mrb[116].mxu1 %v6765_v57 }
 0x7d5   : > { %v4143_v19 = vpop.f32.mrb[114].mxu0  ;;  %3395 = vmatprep.mubr.f32.mxu1 %v2982_v62 }
 0x7d6   : > { %v3032_v1 = vpop.f32.mrb[115].mxu0 }
 0x7d8   : > { %3396 = vmatmul.mubr.f32.gmra.mrb[118].mxu1 %v6766_v44 }
 0x7d9   : > { %v4146_v9 = vpop.f32.mrb[116].mxu0  ;;  %3401 = vmatprep.mubr.f32.mxu1 %v4128_v29 }
 0x7da   : > { %v3042_v5 = vpop.f32.mrb[117].mxu0 }
 0x7dc   : > { %3402 = vmatmul.mubr.f32.gmra.mrb[120].mxu1 %v6767_v37 }
 0x7dd   : > { %3407 = vmatprep.mubr.f32.mxu1 %v2992_v39 }
 0x7e0   : > { %3408 = vmatmul.mubr.f32.gmra.mrb[122].mxu1 %v6768_v20 }
 0x7e1   : > { %3413 = vmatprep.mubr.f32.mxu1 %v4131_v63 }
 0x7e4   : > { %3414 = vmatmul.mubr.f32.gmra.mrb[124].mxu1 %v6769_v43 }
 0x7e5   : > { %3419 = vmatprep.mubr.f32.mxu1 %v3002_v24 }
 0x7e8   : > { %3420 = vmatmul.mubr.f32.gmra.mrb[126].mxu1 %v6770_v6 }
 0x7e9   : > { %3425 = vmatprep.mubr.f32.mxu1 %v4134_v17 }
 0x7ec   : > { %3426 = vmatmul.mubr.f32.gmra.mrb[128].mxu1 %v6771_v0 }
 0x7ed   : > { %3431 = vmatprep.mubr.f32.mxu1 %v3012_v45 }
 0x7f0   : > { %3432 = vmatmul.mubr.f32.gmra.mrb[130].mxu1 %v6772_v40 }
 0x7f1   : > { %3437 = vmatprep.mubr.f32.mxu1 %v4137_v7 }
 0x7f4   : > { %3438 = vmatmul.mubr.f32.gmra.mrb[132].mxu1 %v6773_v38 }
 0x7f5   : > { %3443 = vmatprep.mubr.f32.mxu1 %v3022_v14 }
 0x7f8   : > { %3444 = vmatmul.mubr.f32.gmra.mrb[134].mxu1 %v6774_v50 }
 0x7f9   : > { %3449 = vmatprep.mubr.f32.mxu1 %v4140_v61 }
 0x7fc   : > { %3450 = vmatmul.mubr.f32.gmra.mrb[136].mxu1 %v6775_v46 }
 0x7fd   : > { %3455 = vmatprep.mubr.f32.mxu1 %v3032_v1 }
 0x800   : > { %3456 = vmatmul.mubr.f32.gmra.mrb[138].mxu1 %v6776_v4 }
 0x801   : > { %3461 = vmatprep.mubr.f32.mxu1 %v4143_v19 }
 0x804   : > { %3462 = vmatmul.mubr.f32.gmra.mrb[140].mxu1 %v6777_v26 }
 0x805   : > { %3467 = vmatprep.mubr.f32.mxu1 %v3042_v5 }
 0x808   : > { %3468 = vmatmul.mubr.f32.gmra.mrb[142].mxu1 %v6778_v51 }
 0x809   : > { %3473 = vmatprep.mubr.f32.mxu1 %v4146_v9 }
 0x80c   : > { %3474 = vmatmul.mubr.f32.gmra.mrb[144].mxu1 %v6779_v31 }
 0x863   : > { %v3289_v18 = vpop.f32.mrb[82].mxu1 }
 0x864   : > { %v3290_v41 = vadd.f32 %v3289_v18, %v6460_v35  ;;  %v3291_v28 = vpop.f32.mrb[83].mxu1 }
 0x865   : > { %v3292_v11 = vadd.f32 %v3291_v28, %v6463_v12 }
 0x866   : > { %3480 = vst [vmem:[%s6469_s6] sm:$0xff] %v3290_v41 }
 0x867   : > { %3481 = vst [vmem:[%s6469_s6 + $0x8] sm:$0xff] %v3292_v11  ;;  %v3295_v58 = vpop.f32.mrb[84].mxu1 }
 0x868   : > { %v3296_v16 = vadd.f32 %v3295_v58, %v6460_v35  ;;  %v3297_v52 = vpop.f32.mrb[85].mxu1 }
 0x869   : > { %v3298_v60 = vadd.f32 %v3297_v52, %v6463_v12 }
 0x86a   : > { %3482 = vst [vmem:[%s6469_s6 + $0x10] sm:$0xff] %v3296_v16 }
 0x86b   : > { %3483 = vst [vmem:[%s6469_s6 + $0x18] sm:$0xff] %v3298_v60  ;;  %v3301_v27 = vpop.f32.mrb[86].mxu1 }
 0x86c   : > { %v3302_v13 = vadd.f32 %v3301_v27, %v6460_v35  ;;  %v3303_v47 = vpop.f32.mrb[87].mxu1 }
 0x86d   : > { %v3304_v15 = vadd.f32 %v3303_v47, %v6463_v12 }
 0x86e   : > { %3484 = vst [vmem:[%s6469_s6 + $0x20] sm:$0xff] %v3302_v13 }
 0x86f   : > { %3485 = vst [vmem:[%s6469_s6 + $0x28] sm:$0xff] %v3304_v15  ;;  %v3307_v42 = vpop.f32.mrb[88].mxu1 }
 0x870   : > { %v3308_v56 = vadd.f32 %v3307_v42, %v6460_v35  ;;  %v3309_v30 = vpop.f32.mrb[89].mxu1 }
 0x871   : > { %v3310_v8 = vadd.f32 %v3309_v30, %v6463_v12 }
 0x872   : > { %3486 = vst [vmem:[%s6469_s6 + $0x30] sm:$0xff] %v3308_v56 }
 0x873   : > { %3487 = vst [vmem:[%s6469_s6 + $0x38] sm:$0xff] %v3310_v8  ;;  %v3313_v34 = vpop.f32.mrb[90].mxu1 }
 0x874   : > { %v3314_v36 = vadd.f32 %v3313_v34, %v6460_v35  ;;  %v3315_v33 = vpop.f32.mrb[91].mxu1 }
 0x875   : > { %v3316_v3 = vadd.f32 %v3315_v33, %v6463_v12 }
 0x876   : > { %3488 = vst [vmem:[%s6469_s6 + $0x40] sm:$0xff] %v3314_v36 }
 0x877   : > { %3489 = vst [vmem:[%s6469_s6 + $0x48] sm:$0xff] %v3316_v3  ;;  %v3319_v21 = vpop.f32.mrb[92].mxu1 }
 0x878   : > { %v3320_v23 = vadd.f32 %v3319_v21, %v6460_v35  ;;  %v3321_v59 = vpop.f32.mrb[93].mxu1 }
 0x879   : > { %v3322_v25 = vadd.f32 %v3321_v59, %v6463_v12 }
 0x87a   : > { %3490 = vst [vmem:[%s6469_s6 + $0x50] sm:$0xff] %v3320_v23 }
 0x87b   : > { %3491 = vst [vmem:[%s6469_s6 + $0x58] sm:$0xff] %v3322_v25  ;;  %v3325_v22 = vpop.f32.mrb[94].mxu1 }
 0x87c   : > { %v3326_v54 = vadd.f32 %v3325_v22, %v6460_v35  ;;  %v3327_v29 = vpop.f32.mrb[95].mxu1 }
 0x87d   : > { %v3328_v62 = vadd.f32 %v3327_v29, %v6463_v12 }
 0x87e   : > { %3492 = vst [vmem:[%s6469_s6 + $0x60] sm:$0xff] %v3326_v54 }
 0x87f   : > { %3493 = vst [vmem:[%s6469_s6 + $0x68] sm:$0xff] %v3328_v62  ;;  %v3331_v49 = vpop.f32.mrb[96].mxu1 }
 0x880   : > { %v3332_v63 = vadd.f32 %v3331_v49, %v6460_v35  ;;  %v3333_v39 = vpop.f32.mrb[97].mxu1 }
 0x881   : > { %v3334_v53 = vadd.f32 %v3333_v39, %v6463_v12 }
 0x882   : > { %3494 = vst [vmem:[%s6469_s6 + $0x70] sm:$0xff] %v3332_v63 }
 0x883   : > { %3495 = vst [vmem:[%s6469_s6 + $0x78] sm:$0xff] %v3334_v53  ;;  %v3337_v17 = vpop.f32.mrb[98].mxu1 }
 0x884   : > { %v3338_v24 = vadd.f32 %v3337_v17, %v6460_v35  ;;  %v3339_v10 = vpop.f32.mrb[99].mxu1 }
 0x885   : > { %v3340_v7 = vadd.f32 %v3339_v10, %v6463_v12 }
 0x886   : > { %3496 = vst [vmem:[%s6469_s6 + $0x80] sm:$0xff] %v3338_v24 }
 0x887   : > { %3497 = vst [vmem:[%s6469_s6 + $0x88] sm:$0xff] %v3340_v7  ;;  %v3343_v45 = vpop.f32.mrb[100].mxu1 }
 0x888   : > { %v3344_v2 = vadd.f32 %v3343_v45, %v6460_v35  ;;  %v3345_v61 = vpop.f32.mrb[101].mxu1 }
 0x889   : > { %v3346_v14 = vadd.f32 %v3345_v61, %v6463_v12 }
 0x88a   : > { %3498 = vst [vmem:[%s6469_s6 + $0x90] sm:$0xff] %v3344_v2 }
 0x88b   : > { %3499 = vst [vmem:[%s6469_s6 + $0x98] sm:$0xff] %v3346_v14  ;;  %v3349_v57 = vpop.f32.mrb[102].mxu1 }
 0x88c   : > { %v3350_v19 = vadd.f32 %v3349_v57, %v6460_v35  ;;  %v3351_v1 = vpop.f32.mrb[103].mxu1 }
 0x88d   : > { %v3352_v44 = vadd.f32 %v3351_v1, %v6463_v12 }
 0x88e   : > { %3500 = vst [vmem:[%s6469_s6 + $0xa0] sm:$0xff] %v3350_v19 }
 0x88f   : > { %3501 = vst [vmem:[%s6469_s6 + $0xa8] sm:$0xff] %v3352_v44  ;;  %v3355_v9 = vpop.f32.mrb[104].mxu1 }
 0x890   : > { %v3356_v5 = vadd.f32 %v3355_v9, %v6460_v35  ;;  %v3357_v37 = vpop.f32.mrb[105].mxu1 }
 0x891   : > { %v3358_v20 = vadd.f32 %v3357_v37, %v6463_v12 }
 0x892   : > { %3502 = vst [vmem:[%s6469_s6 + $0xb0] sm:$0xff] %v3356_v5 }
 0x893   : > { %3503 = vst [vmem:[%s6469_s6 + $0xb8] sm:$0xff] %v3358_v20  ;;  %v3361_v43 = vpop.f32.mrb[106].mxu1 }
 0x894   : > { %v3362_v6 = vadd.f32 %v3361_v43, %v6460_v35  ;;  %v3363_v0 = vpop.f32.mrb[107].mxu1 }
 0x895   : > { %v3364_v40 = vadd.f32 %v3363_v0, %v6463_v12 }
 0x896   : > { %3504 = vst [vmem:[%s6469_s6 + $0xc0] sm:$0xff] %v3362_v6 }
 0x897   : > { %3505 = vst [vmem:[%s6469_s6 + $0xc8] sm:$0xff] %v3364_v40  ;;  %v3367_v38 = vpop.f32.mrb[108].mxu1 }
 0x898   : > { %v3368_v50 = vadd.f32 %v3367_v38, %v6460_v35  ;;  %v3369_v46 = vpop.f32.mrb[109].mxu1 }
 0x899   : > { %v3370_v4 = vadd.f32 %v3369_v46, %v6463_v12 }
 0x89a   : > { %3506 = vst [vmem:[%s6469_s6 + $0xd0] sm:$0xff] %v3368_v50 }
 0x89b   : > { %3507 = vst [vmem:[%s6469_s6 + $0xd8] sm:$0xff] %v3370_v4  ;;  %v3373_v26 = vpop.f32.mrb[110].mxu1 }
 0x89c   : > { %v3374_v51 = vadd.f32 %v3373_v26, %v6460_v35  ;;  %v3375_v31 = vpop.f32.mrb[111].mxu1 }
 0x89d   : > { %v3376_v48 = vadd.f32 %v3375_v31, %v6463_v12 }
 0x89e   : > { %3508 = vst [vmem:[%s6469_s6 + $0xe0] sm:$0xff] %v3374_v51 }
 0x89f   : > { %3509 = vst [vmem:[%s6469_s6 + $0xe8] sm:$0xff] %v3376_v48  ;;  %v3379_v55 = vpop.f32.mrb[112].mxu1 }
 0x8a0   : > { %v3380_v32 = vadd.f32 %v3379_v55, %v6460_v35  ;;  %v3381_v18 = vpop.f32.mrb[113].mxu1 }
 0x8a1   : > { %v3382_v41 = vadd.f32 %v3381_v18, %v6463_v12 }
 0x8a2   : > { %3510 = vst [vmem:[%s6469_s6 + $0xf0] sm:$0xff] %v3380_v32 }
 0x8a3   : > { %3511 = vst [vmem:[%s6469_s6 + $0xf8] sm:$0xff] %v3382_v41  ;;  %v3385_v28 = vpop.f32.mrb[114].mxu1 }
 0x8a4   : > { %v3386_v11 = vadd.f32 %v3385_v28, %v6460_v35  ;;  %v3387_v58 = vpop.f32.mrb[115].mxu1 }
 0x8a5   : > { %v3388_v16 = vadd.f32 %v3387_v58, %v6463_v12 }
 0x8a6   : > { %3512 = vst [vmem:[%s6469_s6 + $0x100] sm:$0xff] %v3386_v11 }
 0x8a7   : > { %3513 = vst [vmem:[%s6469_s6 + $0x108] sm:$0xff] %v3388_v16  ;;  %v3391_v52 = vpop.f32.mrb[116].mxu1 }
 0x8a8   : > { %v3392_v60 = vadd.f32 %v3391_v52, %v6460_v35  ;;  %v3393_v27 = vpop.f32.mrb[117].mxu1 }
 0x8a9   : > { %v3394_v13 = vadd.f32 %v3393_v27, %v6463_v12 }
 0x8aa   : > { %3514 = vst [vmem:[%s6469_s6 + $0x110] sm:$0xff] %v3392_v60 }
 0x8ab   : > { %3515 = vst [vmem:[%s6469_s6 + $0x118] sm:$0xff] %v3394_v13  ;;  %v3397_v47 = vpop.f32.mrb[118].mxu1 }
 0x8ac   : > { %v3398_v15 = vadd.f32 %v3397_v47, %v6460_v35  ;;  %v3399_v42 = vpop.f32.mrb[119].mxu1 }
 0x8ad   : > { %v3400_v56 = vadd.f32 %v3399_v42, %v6463_v12 }
 0x8ae   : > { %3516 = vst [vmem:[%s6469_s6 + $0x120] sm:$0xff] %v3398_v15 }
 0x8af   : > { %3517 = vst [vmem:[%s6469_s6 + $0x128] sm:$0xff] %v3400_v56  ;;  %v3403_v30 = vpop.f32.mrb[120].mxu1 }
 0x8b0   : > { %v3404_v8 = vadd.f32 %v3403_v30, %v6460_v35  ;;  %v3405_v34 = vpop.f32.mrb[121].mxu1 }
 0x8b1   : > { %v3406_v36 = vadd.f32 %v3405_v34, %v6463_v12 }
 0x8b2   : > { %3518 = vst [vmem:[%s6469_s6 + $0x130] sm:$0xff] %v3404_v8 }
 0x8b3   : > { %3519 = vst [vmem:[%s6469_s6 + $0x138] sm:$0xff] %v3406_v36  ;;  %v3409_v33 = vpop.f32.mrb[122].mxu1 }
 0x8b4   : > { %v3410_v3 = vadd.f32 %v3409_v33, %v6460_v35  ;;  %v3411_v21 = vpop.f32.mrb[123].mxu1 }
 0x8b5   : > { %v3412_v23 = vadd.f32 %v3411_v21, %v6463_v12 }
 0x8b6   : > { %3520 = vst [vmem:[%s6469_s6 + $0x140] sm:$0xff] %v3410_v3 }
 0x8b7   : > { %3521 = vst [vmem:[%s6469_s6 + $0x148] sm:$0xff] %v3412_v23  ;;  %v3415_v59 = vpop.f32.mrb[124].mxu1 }
 0x8b8   : > { %v3416_v25 = vadd.f32 %v3415_v59, %v6460_v35  ;;  %v3417_v22 = vpop.f32.mrb[125].mxu1 }
 0x8b9   : > { %v3418_v54 = vadd.f32 %v3417_v22, %v6463_v12 }
 0x8ba   : > { %3522 = vst [vmem:[%s6469_s6 + $0x150] sm:$0xff] %v3416_v25 }
 0x8bb   : > { %3523 = vst [vmem:[%s6469_s6 + $0x158] sm:$0xff] %v3418_v54  ;;  %v3421_v29 = vpop.f32.mrb[126].mxu1 }
 0x8bc   : > { %v3422_v62 = vadd.f32 %v3421_v29, %v6460_v35  ;;  %v3423_v49 = vpop.f32.mrb[127].mxu1 }
 0x8bd   : > { %v3424_v63 = vadd.f32 %v3423_v49, %v6463_v12 }
 0x8be   : > { %3524 = vst [vmem:[%s6469_s6 + $0x160] sm:$0xff] %v3422_v62 }
 0x8bf   : > { %3525 = vst [vmem:[%s6469_s6 + $0x168] sm:$0xff] %v3424_v63  ;;  %v3427_v39 = vpop.f32.mrb[128].mxu1 }
 0x8c0   : > { %v3428_v53 = vadd.f32 %v3427_v39, %v6460_v35  ;;  %v3429_v17 = vpop.f32.mrb[129].mxu1 }
 0x8c1   : > { %v3430_v24 = vadd.f32 %v3429_v17, %v6463_v12 }
 0x8c2   : > { %3526 = vst [vmem:[%s6469_s6 + $0x170] sm:$0xff] %v3428_v53 }
 0x8c3   : > { %3527 = vst [vmem:[%s6469_s6 + $0x178] sm:$0xff] %v3430_v24  ;;  %v3433_v10 = vpop.f32.mrb[130].mxu1 }
 0x8c4   : > { %v3434_v7 = vadd.f32 %v3433_v10, %v6460_v35  ;;  %v3435_v45 = vpop.f32.mrb[131].mxu1 }
 0x8c5   : > { %v3436_v2 = vadd.f32 %v3435_v45, %v6463_v12 }
 0x8c6   : > { %3528 = vst [vmem:[%s6469_s6 + $0x180] sm:$0xff] %v3434_v7 }
 0x8c7   : > { %3529 = vst [vmem:[%s6469_s6 + $0x188] sm:$0xff] %v3436_v2  ;;  %v3439_v61 = vpop.f32.mrb[132].mxu1 }
 0x8c8   : > { %v3440_v14 = vadd.f32 %v3439_v61, %v6460_v35  ;;  %v3441_v57 = vpop.f32.mrb[133].mxu1 }
 0x8c9   : > { %v3442_v19 = vadd.f32 %v3441_v57, %v6463_v12 }
 0x8ca   : > { %3530 = vst [vmem:[%s6469_s6 + $0x190] sm:$0xff] %v3440_v14 }
 0x8cb   : > { %3531 = vst [vmem:[%s6469_s6 + $0x198] sm:$0xff] %v3442_v19  ;;  %v3445_v1 = vpop.f32.mrb[134].mxu1 }
 0x8cc   : > { %v3446_v44 = vadd.f32 %v3445_v1, %v6460_v35  ;;  %v3447_v9 = vpop.f32.mrb[135].mxu1 }
 0x8cd   : > { %v3448_v5 = vadd.f32 %v3447_v9, %v6463_v12 }
 0x8ce   : > { %3532 = vst [vmem:[%s6469_s6 + $0x1a0] sm:$0xff] %v3446_v44 }
 0x8cf   : > { %3533 = vst [vmem:[%s6469_s6 + $0x1a8] sm:$0xff] %v3448_v5  ;;  %v3451_v37 = vpop.f32.mrb[136].mxu1 }
 0x8d0   : > { %v3452_v20 = vadd.f32 %v3451_v37, %v6460_v35  ;;  %v3453_v43 = vpop.f32.mrb[137].mxu1 }
 0x8d1   : > { %v3454_v6 = vadd.f32 %v3453_v43, %v6463_v12 }
 0x8d2   : > { %3534 = vst [vmem:[%s6469_s6 + $0x1b0] sm:$0xff] %v3452_v20 }
 0x8d3   : > { %3535 = vst [vmem:[%s6469_s6 + $0x1b8] sm:$0xff] %v3454_v6  ;;  %v3457_v0 = vpop.f32.mrb[138].mxu1 }
 0x8d4   : > { %v3458_v40 = vadd.f32 %v3457_v0, %v6460_v35  ;;  %v3459_v38 = vpop.f32.mrb[139].mxu1 }
 0x8d5   : > { %v3460_v50 = vadd.f32 %v3459_v38, %v6463_v12 }
 0x8d6   : > { %3536 = vst [vmem:[%s6469_s6 + $0x1c0] sm:$0xff] %v3458_v40 }
 0x8d7   : > { %3537 = vst [vmem:[%s6469_s6 + $0x1c8] sm:$0xff] %v3460_v50  ;;  %v3463_v46 = vpop.f32.mrb[140].mxu1 }
 0x8d8   : > { %v3464_v4 = vadd.f32 %v3463_v46, %v6460_v35  ;;  %v3465_v26 = vpop.f32.mrb[141].mxu1 }
 0x8d9   : > { %v3466_v51 = vadd.f32 %v3465_v26, %v6463_v12 }
 0x8da   : > { %3538 = vst [vmem:[%s6469_s6 + $0x1d0] sm:$0xff] %v3464_v4 }
 0x8db   : > { %3539 = vst [vmem:[%s6469_s6 + $0x1d8] sm:$0xff] %v3466_v51  ;;  %v3469_v31 = vpop.f32.mrb[142].mxu1 }
 0x8dc   : > { %v3470_v48 = vadd.f32 %v3469_v31, %v6460_v35  ;;  %v3471_v55 = vpop.f32.mrb[143].mxu1 }
 0x8dd   : > { %v3472_v32 = vadd.f32 %v3471_v55, %v6463_v12 }
 0x8de   : > { %3540 = vst [vmem:[%s6469_s6 + $0x1e0] sm:$0xff] %v3470_v48 }
 0x8df   : > { %3541 = vst [vmem:[%s6469_s6 + $0x1e8] sm:$0xff] %v3472_v32  ;;  %v3475_v18 = vpop.f32.mrb[144].mxu1 }
 0x8e0   : > { %v3476_v41 = vadd.f32 %v3475_v18, %v6460_v35  ;;  %v3477_v28 = vpop.f32.mrb[145].mxu1 }
 0x8e1   : > { %v3478_v11 = vadd.f32 %v3477_v28, %v6463_v12 }
 0x8e2   : > { %3542 = vst [vmem:[%s6469_s6 + $0x1f0] sm:$0xff] %v3476_v41 }
 0x8e3   : > { %3543 = vst [vmem:[%s6469_s6 + $0x1f8] sm:$0xff] %v3478_v11 }
 0x8e4   : > { %4913 = shalt.err (!%p4910_p6)
}
 0x8e5   : > { %s4914_s28 = scalar_lea.hbm %s6599_s23, 8192  ;;  %s4918_s29 = scalar_lea.hbm %s6784_s4, 16384 }
 0x8e6   : > { %p4915_p7 = scmp.ne.s32.totalorder %s6599_s23, %s4914_s28  ;;  %p4919_p2 = scmp.lt.u32.totalorder %s6599_s23, %s6784_s4 }
 0x8e7   : > { %p4920_p13 = scmp.lt.u32.totalorder %s4918_s29, %s4914_s28  ;;  %p4922_p1 = scmp.lt.u32.totalorder %s4914_s28, %s6599_s23 }
 0x8e8   : > { %p4916_p9 = pnand %p4915_p7, %p5249_p5 }
 0x8e9   : > { %p4921_p4 = por %p4920_p13, %p4919_p2 }
 0x8ea   : > { %p4917_p0 = pneg %p4916_p9 }
 0x8eb   : > { %p4923_p8 = por %p4922_p1, %p4921_p4 }
 0x8ed   : > { %p4924_p10 = pnand %p4923_p8, %p4917_p0 }
 0x8ef   : > { %4927 = shalt.err (!%p4924_p10)
}
 0x8f0   : > { %s5012_s6 = smov 256   ;;  %s5013_s26 = smov 16  }
 0x8f1   : > { %4377 = dma.vmem_to_hbm [thread:$0]  (%p5249_p5), %s6601_s12, 8192, %s6599_s23, %s3545_s3, %s5012_s6, %s5012_s6, %s5013_s26  }
 0x8f2 PF: > { %s6785_s11 = sld [smem:[#allocation23_spill]]  ;;  %s6786_s20 = sld [smem:[#allocation25_spill]] }
 0x8f3   : > { %p6788_p11 = scmp.ge.s32.totalorder %s4998_s18, 2 }
 0x8f8   : > { %s3576_s0 = sand.u32 1, %s6785_s11   ;;  %p6787_p3 = scmp.ne.s32.totalorder %s6786_s20, 0 }
 0x8f9   : > { %s3577_s19 = scalar_lea.sflag [#allocation7], %s3576_s0 }
 0x8fa   : > { %p4400_p12 = pnand %p6788_p11, %p6787_p3 }
 0x8fc   : > { %4973 = dma.done.wait (!%p4400_p12), %s3577_s19, 8192  }
 0x8fd   : > { %4975 = vsyncadd (!%p4400_p12), %s3577_s19, 4294959104  ;;  %s31_s18 = sadd.s32 1, %s4998_s18   ;;  %s6789_s9 = smov %s6796_s13 }
 0x8fe   : > { %p28_p6 = scmp.ge.s32.totalorder %s31_s18, 4   ;;  %s6790_s13 = smov %s4982_s14 }
 0x8ff   : > { %s6791_s14 = smov %s4986_s15  ;;  %s6792_s15 = smov %s5261_s27 }
 0x900   : > { %s6793_s16 = smov %s4994_s17  ;;  %s6794_s17 = smov %s6789_s9 }
 0x901   :  { %30 = sbr.rel (!%p28_p6) target bundleno = 18 (0x12), region = 138 }
 0x908   :  { %3582 = vsyncpa [#allocation6], 1 }
 0x909   :  { %3584 = vsyncpa [#allocation6 + $0x1], 1 }
 0x90a   :  { %3585 = vsyncpa [#allocation9], 1 }
 0x90b   :  { %3587 = vsyncpa [#allocation9 + $0x1], 1 }
 0x90c   :  { %3588 = vsyncpa [#allocation12], 1 }
 0x90d   :  { %3589 = vsyncpa [#allocation15], 1 }
 0x90e   :  { %3590 = vsyncpa [#allocation7], 1 }
 0x90f   :  { %3592 = vsyncpa [#allocation7 + $0x1], 1 }

</bundles_post_ra>
